<compile_context>
chip_gen: v7x
topology: tpu7x:2x2x1
jax: 0.10.0
libtpu: 0.0.40
codegen_flags: <defaults>
</compile_context>

<pallas_src>
import functools
import math

import jax
import jax.numpy as jnp
import numpy as np
from jax import lax
from jax.experimental import pallas as pl
from jax.experimental.pallas import tpu as pltpu

# ----------------------------- model config (small) ------------------------
# Reference file hardcodes n_embd=384, n_head=6, n_layers=6, block_size=256.
# Same architecture at small, TPU-friendly sizes (lane/sublane aligned).
VOCAB_SIZE = 256
N_EMBD     = 128
N_HEAD     = 4
HEAD_SIZE  = N_EMBD // N_HEAD
N_LAYERS   = 2
BLOCK_SIZE = 128
LN_EPS     = 1e-5

_PER_LAYER_REFS = 11   # ln1_g, ln1_b, wqkv, proj_w, proj_b, ln2_g, ln2_b, w1, b1, w2, b2


# ----------------------------- in-kernel helpers ----------------------------
def _layernorm_f32(x, g, b):
    # x: (R, C) f32 ; g/b: (1, C) f32
    mean = jnp.mean(x, axis=-1, keepdims=True)
    var = jnp.mean((x - mean) ** 2, axis=-1, keepdims=True)
    return (x - mean) * lax.rsqrt(var + LN_EPS) * g + b


def _replicated(shape):
    """BlockSpec for a small weight that is fully VMEM-resident every grid step."""
    n = len(shape)
    return pl.BlockSpec(shape, lambda i, _n=n: (0,) * _n)


# ----------------------------- fully-fused kernel ---------------------------
def gpt_fused_kernel(*refs, n_layers, scale):
    """One batch element per grid step: full GPT forward (pos add -> N blocks
    -> final LN -> lm_head) with the residual stream resident in f32."""
    tok_ref, pos_ref = refs[0], refs[1]
    lyr = refs[2:2 + _PER_LAYER_REFS * n_layers]
    lnf_g, lnf_b, lm_w, lm_b = refs[2 + _PER_LAYER_REFS * n_layers:
                                    2 + _PER_LAYER_REFS * n_layers + 4]
    o_ref = refs[-1]

    T, C = tok_ref.shape
    # Positional-embedding add folded into the kernel (was an XLA pass).
    x = tok_ref[...].astype(jnp.float32) + pos_ref[...].astype(jnp.float32)   # (T, C) f32

    # Causal mask, hoisted above the layer & head loops.
    row = lax.broadcasted_iota(jnp.int32, (T, T), 0)
    col = lax.broadcasted_iota(jnp.int32, (T, T), 1)
    causal = col <= row

    for L in range(n_layers):                                  # static unrolled
        (ln1_g, ln1_b, wqkv, wp, bp,
         ln2_g, ln2_b, w1, b1, w2, b2) = lyr[_PER_LAYER_REFS * L:_PER_LAYER_REFS * (L + 1)]

        # ---------------- attention half ----------------
        h = _layernorm_f32(x, ln1_g[...], ln1_b[...])
        # Fused QKV matmul: bf16 operands on the MXU, f32 accumulation.
        qkv = jnp.dot(h.astype(wqkv.dtype), wqkv[...],
                      preferred_element_type=jnp.float32)      # (T, 3C) f32
        qkv_bf = qkv.astype(jnp.bfloat16)                      # single cast, then slice

        outs = []
        for hh in range(N_HEAD):                               # static unrolled loop
            lo = hh * HEAD_SIZE
            qh = qkv_bf[:, lo:lo + HEAD_SIZE]
            kh = qkv_bf[:, C + lo:C + lo + HEAD_SIZE]
            vh = qkv_bf[:, 2 * C + lo:2 * C + lo + HEAD_SIZE]
            # q @ k^T via dot_general contracting the D axis (no XLU transpose).
            # PyTorch Head scales by 1/sqrt(n_embd) (C of the block input).
            s = lax.dot_general(qh, kh, (((1,), (1,)), ((), ())),
                                preferred_element_type=jnp.float32) * scale  # (T, T) f32
            s = jnp.where(causal, s, -jnp.inf)
            s = s - jnp.max(s, axis=-1, keepdims=True)
            p = jnp.exp(s)
            p = p / jnp.sum(p, axis=-1, keepdims=True)         # exact softmax division
            outs.append(jnp.dot(p.astype(jnp.bfloat16), vh,
                                preferred_element_type=jnp.float32))          # (T, D)
        attn = jnp.concatenate(outs, axis=-1)                  # (T, C) lane-dense

        y = jnp.dot(attn.astype(wp.dtype), wp[...],
                    preferred_element_type=jnp.float32) + bp[...]
        x = x + y                                              # residual (stays f32)

        # ---------------- FFN half ----------------
        h2 = _layernorm_f32(x, ln2_g[...], ln2_b[...])
        h1 = jnp.dot(h2.astype(w1.dtype), w1[...],
                     preferred_element_type=jnp.float32) + b1[...]
        h1 = jnp.maximum(h1, 0.0)                              # ReLU
        x = x + jnp.dot(h1.astype(w2.dtype), w2[...],
                        preferred_element_type=jnp.float32) + b2[...]

    # ---------------- final LayerNorm + lm_head ----------------
    hf = _layernorm_f32(x, lnf_g[...], lnf_b[...])
    o_ref[...] = (jnp.dot(hf.astype(lm_w.dtype), lm_w[...],
                          preferred_element_type=jnp.float32) + lm_b[...]).astype(o_ref.dtype)


# ----------------------------- pallas_call wrapper --------------------------
def gpt_forward(kparams, idx, target=None):
    B, T = idx.shape
    C, V = N_EMBD, VOCAB_SIZE
    assert T <= BLOCK_SIZE and T % 8 == 0, "T must fit block_size and be sublane-aligned"
    scale = 1.0 / math.sqrt(N_EMBD)   # module divides by C**0.5 with C = n_embd

    # Token-embedding gather stays as XLA glue (embedding lookup); the pos add
    # and all downstream compute happen inside the single fused kernel.
    tok = jnp.take(kparams["tok_emb"], idx, axis=0).reshape(B * T, C)   # (B*T, C) f32
    pos = kparams["pos_emb"][:T]                                        # (T, C) f32

    inputs = [tok, pos]
    in_specs = [pl.BlockSpec((T, C), lambda i: (i, 0)),   # one batch element per step
                _replicated((T, C))]
    for l in kparams["layers"]:
        layer_inputs = [
            l["ln1_g"].reshape(1, C), l["ln1_b"].reshape(1, C), l["wqkv"],
            l["proj_w"], l["proj_b"].reshape(1, C),
            l["ln2_g"].reshape(1, C), l["ln2_b"].reshape(1, C),
            l["ffn_w1"], l["ffn_b1"].reshape(1, 4 * C),
            l["ffn_w2"], l["ffn_b2"].reshape(1, C),
        ]
        inputs += layer_inputs
        in_specs += [_replicated(a.shape) for a in layer_inputs]
    final_inputs = [kparams["lnf_g"].reshape(1, C), kparams["lnf_b"].reshape(1, C),
                    kparams["lm_w"], kparams["lm_b"].reshape(1, V)]
    inputs += final_inputs
    in_specs += [_replicated(a.shape) for a in final_inputs]

    # Advisory cost estimate for XLA scheduling of the surrounding glue ops.
    flops = B * (N_LAYERS * (2 * T * C * 3 * C        # fused QKV matmul
                             + 4 * T * T * C          # QK^T + PV over all heads
                             + 2 * T * C * C          # output projection
                             + 4 * T * C * 4 * C)     # FFN (two matmuls)
                 + 2 * T * C * V)                     # lm_head
    transcendentals = B * N_LAYERS * N_HEAD * T * T   # softmax exp
    bytes_accessed = int(sum(int(a.size) * int(a.dtype.itemsize) for a in inputs)
                         + B * T * V * 4)

    logits = pl.pallas_call(
        functools.partial(gpt_fused_kernel, n_layers=N_LAYERS, scale=scale),
        out_shape=jax.ShapeDtypeStruct((B * T, V), jnp.float32),
        grid=(B,),
        in_specs=in_specs,
        out_specs=pl.BlockSpec((T, V), lambda i: (i, 0)),
        compiler_params=pltpu.CompilerParams(dimension_semantics=("parallel",)),
        cost_estimate=pl.CostEstimate(flops=flops, transcendentals=transcendentals,
                                      bytes_accessed=bytes_accessed),
    )(*inputs)
    logits = logits.reshape(B, T, V)

    loss = None
    if target is not None:
        lg = logits.reshape(B * T, V)
        lse = jax.nn.logsumexp(lg, axis=-1)
        picked = jnp.take_along_axis(lg, target.reshape(-1, 1), axis=-1)[:, 0]
        loss = jnp.mean(lse - picked)
    return logits, loss


# ----------------------------- parameters -----------------------------------
def init_params(key):
    """Deterministic init mirroring _init_weights: Linear/Embedding ~ N(0,0.02),
    Linear bias = 0, LayerNorm weight=1 bias=0.  Stored in f32 (reference dtype)."""
    def nrm(k, shape):
        return jax.random.normal(k, shape, jnp.float32) * 0.02

    keys = iter(jax.random.split(key, 4 + 4 * N_LAYERS))
    params = {
        "tok_emb": nrm(next(keys), (VOCAB_SIZE, N_EMBD)),
        "pos_emb": nrm(next(keys), (BLOCK_SIZE, N_EMBD)),
        "lnf_g": jnp.ones((N_EMBD,), jnp.float32),
        "lnf_b": jnp.zeros((N_EMBD,), jnp.float32),
        "lm_w": nrm(next(keys), (N_EMBD, VOCAB_SIZE)),
        "lm_b": jnp.zeros((VOCAB_SIZE,), jnp.float32),
        "layers": [],
    }
    for _ in range(N_LAYERS):
        layer = {
            "ln1_g": jnp.ones((N_EMBD,), jnp.float32),
            "ln1_b": jnp.zeros((N_EMBD,), jnp.float32),
            # per-head bias-free Q/K/V linears fused into one (C, 3C) weight
            "wqkv": nrm(next(keys), (N_EMBD, 3 * N_EMBD)),
            "proj_w": nrm(next(keys), (N_EMBD, N_EMBD)),
            "proj_b": jnp.zeros((N_EMBD,), jnp.float32),
            "ln2_g": jnp.ones((N_EMBD,), jnp.float32),
            "ln2_b": jnp.zeros((N_EMBD,), jnp.float32),
            "ffn_w1": nrm(next(keys), (N_EMBD, 4 * N_EMBD)),
            "ffn_b1": jnp.zeros((4 * N_EMBD,), jnp.float32),
            "ffn_w2": nrm(next(keys), (4 * N_EMBD, N_EMBD)),
            "ffn_b2": jnp.zeros((N_EMBD,), jnp.float32),
        }
        params["layers"].append(layer)
    return params


def convert_params_for_kernel(params):
    """Matmul weights -> bf16 (MXU path, half HBM); LN params / biases stay f32."""
    bf16 = lambda w: w.astype(jnp.bfloat16)
    kp = {
        "tok_emb": params["tok_emb"], "pos_emb": params["pos_emb"],
        "lnf_g": params["lnf_g"], "lnf_b": params["lnf_b"],
        "lm_w": bf16(params["lm_w"]), "lm_b": params["lm_b"],
        "layers": [],
    }
    for l in params["layers"]:
        kp["layers"].append({
            "ln1_g": l["ln1_g"], "ln1_b": l["ln1_b"],
            "wqkv": bf16(l["wqkv"]),
            "proj_w": bf16(l["proj_w"]), "proj_b": l["proj_b"],
            "ln2_g": l["ln2_g"], "ln2_b": l["ln2_b"],
            "ffn_w1": bf16(l["ffn_w1"]), "ffn_b1": l["ffn_b1"],
            "ffn_w2": bf16(l["ffn_w2"]), "ffn_b2": l["ffn_b2"],
        })
    return kp


# ----------------------------- pure-JAX reference (f32) ---------------------
def gpt_forward_ref(params, idx):
    B, T = idx.shape
    scale = 1.0 / math.sqrt(N_EMBD)
    x = jnp.take(params["tok_emb"], idx, axis=0) + params["pos_emb"][:T]

    def ln(x, g, b):
        m = x.mean(-1, keepdims=True)
        v = ((x - m) ** 2).mean(-1, keepdims=True)
        return (x - m) / jnp.sqrt(v + LN_EPS) * g + b

    for layer in params["layers"]:
        h = ln(x, layer["ln1_g"], layer["ln1_b"])
        qkv = h @ layer["wqkv"]
        q, k, v = jnp.split(qkv, 3, axis=-1)
        q = q.reshape(B, T, N_HEAD, HEAD_SIZE).transpose(0, 2, 1, 3)
        k = k.reshape(B, T, N_HEAD, HEAD_SIZE).transpose(0, 2, 1, 3)
        v = v.reshape(B, T, N_HEAD, HEAD_SIZE).transpose(0, 2, 1, 3)
        s = jnp.einsum("bhqd,bhkd->bhqk", q, k) * scale
        mask = jnp.tril(jnp.ones((T, T), bool))
        s = jnp.where(mask, s, -jnp.inf)
        p = jax.nn.softmax(s, axis=-1)
        o = jnp.einsum("bhqk,bhkd->bhqd", p, v).transpose(0, 2, 1, 3).reshape(B, T, N_EMBD)
        x = x + o @ layer["proj_w"] + layer["proj_b"]
        h2 = ln(x, layer["ln2_g"], layer["ln2_b"])
        ff = jnp.maximum(h2 @ layer["ffn_w1"] + layer["ffn_b1"], 0.0)
        x = x + ff @ layer["ffn_w2"] + layer["ffn_b2"]
    x = ln(x, params["lnf_g"], params["lnf_b"])
    return x @ params["lm_w"] + params["lm_b"]


# TODO(synk): `generate()` uses multinomial sampling over softmax'd logits;
# sampling is host/JAX-level control flow, not implemented as a Pallas kernel.

if __name__ == "__main__":
    key = jax.random.PRNGKey(0)
    pkey, ikey = jax.random.split(key)
    params = init_params(pkey)
    kparams = convert_params_for_kernel(params)

    B, T = 2, BLOCK_SIZE  # (2, 128): lane/sublane-aligned tiles, 2-way parallel grid
    idx = jax.random.randint(ikey, (B, T), 0, VOCAB_SIZE, dtype=jnp.int32)

    logits, loss = gpt_forward(kparams, idx, target=None)
    logits = jax.block_until_ready(logits)
    assert logits.shape == (B, T, VOCAB_SIZE)
    assert loss is None

    ref = jax.block_until_ready(gpt_forward_ref(params, idx))
    # Tolerance accounts for bf16 matmul weights (f32 accumulation, f32 LN /
    # softmax / residual stream keep the error well inside this bound).
    np.testing.assert_allclose(np.asarray(logits), np.asarray(ref),
                               rtol=2e-2, atol=2e-2)
    print("KERNEL_OK")
</pallas_src>

<mosaic_0001>
module attributes {stable_mosaic.version = 11 : i64} {
  func.func @gpt_fused_kernel(%arg0: i32, %arg1: memref<128x128xf32, #tpu.memory_space<vmem>>, %arg2: memref<128x128xf32, #tpu.memory_space<vmem>>, %arg3: memref<1x128xf32, #tpu.memory_space<vmem>>, %arg4: memref<1x128xf32, #tpu.memory_space<vmem>>, %arg5: memref<128x384xbf16, #tpu.memory_space<vmem>>, %arg6: memref<128x128xbf16, #tpu.memory_space<vmem>>, %arg7: memref<1x128xf32, #tpu.memory_space<vmem>>, %arg8: memref<1x128xf32, #tpu.memory_space<vmem>>, %arg9: memref<1x128xf32, #tpu.memory_space<vmem>>, %arg10: memref<128x512xbf16, #tpu.memory_space<vmem>>, %arg11: memref<1x512xf32, #tpu.memory_space<vmem>>, %arg12: memref<512x128xbf16, #tpu.memory_space<vmem>>, %arg13: memref<1x128xf32, #tpu.memory_space<vmem>>, %arg14: memref<1x128xf32, #tpu.memory_space<vmem>>, %arg15: memref<1x128xf32, #tpu.memory_space<vmem>>, %arg16: memref<128x384xbf16, #tpu.memory_space<vmem>>, %arg17: memref<128x128xbf16, #tpu.memory_space<vmem>>, %arg18: memref<1x128xf32, #tpu.memory_space<vmem>>, %arg19: memref<1x128xf32, #tpu.memory_space<vmem>>, %arg20: memref<1x128xf32, #tpu.memory_space<vmem>>, %arg21: memref<128x512xbf16, #tpu.memory_space<vmem>>, %arg22: memref<1x512xf32, #tpu.memory_space<vmem>>, %arg23: memref<512x128xbf16, #tpu.memory_space<vmem>>, %arg24: memref<1x128xf32, #tpu.memory_space<vmem>>, %arg25: memref<1x128xf32, #tpu.memory_space<vmem>>, %arg26: memref<1x128xf32, #tpu.memory_space<vmem>>, %arg27: memref<128x256xbf16, #tpu.memory_space<vmem>>, %arg28: memref<1x256xf32, #tpu.memory_space<vmem>>, %arg29: memref<128x256xf32, #tpu.memory_space<vmem>>) attributes {dimension_semantics = [#tpu.dimension_semantics<parallel>], iteration_bounds = array<i64: 2>, scalar_prefetch = 0 : i64, scratch_operands = 0 : i64, tpu.core_type = #tpu.core_type<tc>, window_params = [{transform_indices = @transform_0, window_bounds = array<i64: 128, 128>}, {pipeline_mode = #tpu.pipeline_mode<synchronous>, transform_indices = @transform_1, window_bounds = array<i64: 128, 128>}, {pipeline_mode = #tpu.pipeline_mode<synchronous>, transform_indices = @transform_2, window_bounds = array<i64: 1, 128>}, {pipeline_mode = #tpu.pipeline_mode<synchronous>, transform_indices = @transform_3, window_bounds = array<i64: 1, 128>}, {pipeline_mode = #tpu.pipeline_mode<synchronous>, transform_indices = @transform_4, window_bounds = array<i64: 128, 384>}, {pipeline_mode = #tpu.pipeline_mode<synchronous>, transform_indices = @transform_5, window_bounds = array<i64: 128, 128>}, {pipeline_mode = #tpu.pipeline_mode<synchronous>, transform_indices = @transform_6, window_bounds = array<i64: 1, 128>}, {pipeline_mode = #tpu.pipeline_mode<synchronous>, transform_indices = @transform_7, window_bounds = array<i64: 1, 128>}, {pipeline_mode = #tpu.pipeline_mode<synchronous>, transform_indices = @transform_8, window_bounds = array<i64: 1, 128>}, {pipeline_mode = #tpu.pipeline_mode<synchronous>, transform_indices = @transform_9, window_bounds = array<i64: 128, 512>}, {pipeline_mode = #tpu.pipeline_mode<synchronous>, transform_indices = @transform_10, window_bounds = array<i64: 1, 512>}, {pipeline_mode = #tpu.pipeline_mode<synchronous>, transform_indices = @transform_11, window_bounds = array<i64: 512, 128>}, {pipeline_mode = #tpu.pipeline_mode<synchronous>, transform_indices = @transform_12, window_bounds = array<i64: 1, 128>}, {pipeline_mode = #tpu.pipeline_mode<synchronous>, transform_indices = @transform_13, window_bounds = array<i64: 1, 128>}, {pipeline_mode = #tpu.pipeline_mode<synchronous>, transform_indices = @transform_14, window_bounds = array<i64: 1, 128>}, {pipeline_mode = #tpu.pipeline_mode<synchronous>, transform_indices = @transform_15, window_bounds = array<i64: 128, 384>}, {pipeline_mode = #tpu.pipeline_mode<synchronous>, transform_indices = @transform_16, window_bounds = array<i64: 128, 128>}, {pipeline_mode = #tpu.pipeline_mode<synchronous>, transform_indices = @transform_17, window_bounds = array<i64: 1, 128>}, {pipeline_mode = #tpu.pipeline_mode<synchronous>, transform_indices = @transform_18, window_bounds = array<i64: 1, 128>}, {pipeline_mode = #tpu.pipeline_mode<synchronous>, transform_indices = @transform_19, window_bounds = array<i64: 1, 128>}, {pipeline_mode = #tpu.pipeline_mode<synchronous>, transform_indices = @transform_20, window_bounds = array<i64: 128, 512>}, {pipeline_mode = #tpu.pipeline_mode<synchronous>, transform_indices = @transform_21, window_bounds = array<i64: 1, 512>}, {pipeline_mode = #tpu.pipeline_mode<synchronous>, transform_indices = @transform_22, window_bounds = array<i64: 512, 128>}, {pipeline_mode = #tpu.pipeline_mode<synchronous>, transform_indices = @transform_23, window_bounds = array<i64: 1, 128>}, {pipeline_mode = #tpu.pipeline_mode<synchronous>, transform_indices = @transform_24, window_bounds = array<i64: 1, 128>}, {pipeline_mode = #tpu.pipeline_mode<synchronous>, transform_indices = @transform_25, window_bounds = array<i64: 1, 128>}, {pipeline_mode = #tpu.pipeline_mode<synchronous>, transform_indices = @transform_26, window_bounds = array<i64: 128, 256>}, {pipeline_mode = #tpu.pipeline_mode<synchronous>, transform_indices = @transform_27, window_bounds = array<i64: 1, 256>}, {transform_indices = @transform_28, window_bounds = array<i64: 128, 256>}]} {
    %c0 = arith.constant 0 : index
    %c0_0 = arith.constant 0 : index
    %0 = vector.load %arg1[%c0, %c0_0] : memref<128x128xf32, #tpu.memory_space<vmem>>, vector<128x128xf32>
    %c0_1 = arith.constant 0 : index
    %c0_2 = arith.constant 0 : index
    %1 = vector.load %arg2[%c0_1, %c0_2] : memref<128x128xf32, #tpu.memory_space<vmem>>, vector<128x128xf32>
    %2 = arith.addf %0, %1 : vector<128x128xf32>
    %3 = tpu.iota {dimensions = array<i32: 0>} : vector<128x128xi32>
    %4 = tpu.iota {dimensions = array<i32: 1>} : vector<128x128xi32>
    %5 = arith.cmpi sle, %4, %3 : vector<128x128xi32>
    %c0_3 = arith.constant 0 : index
    %c0_4 = arith.constant 0 : index
    %6 = vector.load %arg3[%c0_3, %c0_4] : memref<1x128xf32, #tpu.memory_space<vmem>>, vector<1x128xf32>
    %c0_5 = arith.constant 0 : index
    %c0_6 = arith.constant 0 : index
    %7 = vector.load %arg4[%c0_5, %c0_6] : memref<1x128xf32, #tpu.memory_space<vmem>>, vector<1x128xf32>
    %cst = arith.constant dense<0.000000e+00> : vector<128xf32>
    %8 = vector.multi_reduction <add>, %2, %cst [1] : vector<128x128xf32> to vector<128xf32>
    %9 = vector.shape_cast %8 : vector<128xf32> to vector<128x1xf32>
    %cst_7 = arith.constant 1.280000e+02 : f32
    %10 = vector.broadcast %cst_7 : f32 to vector<128x1xf32>
    %11 = arith.divf %9, %10 : vector<128x1xf32>
    %12 = vector.broadcast %11 : vector<128x1xf32> to vector<128x128xf32>
    %13 = arith.subf %2, %12 : vector<128x128xf32>
    %14 = arith.mulf %13, %13 : vector<128x128xf32>
    %cst_8 = arith.constant dense<0.000000e+00> : vector<128xf32>
    %15 = vector.multi_reduction <add>, %14, %cst_8 [1] : vector<128x128xf32> to vector<128xf32>
    %16 = vector.shape_cast %15 : vector<128xf32> to vector<128x1xf32>
    %cst_9 = arith.constant 1.280000e+02 : f32
    %17 = vector.broadcast %cst_9 : f32 to vector<128x1xf32>
    %18 = arith.divf %16, %17 : vector<128x1xf32>
    %19 = vector.broadcast %11 : vector<128x1xf32> to vector<128x128xf32>
    %20 = arith.subf %2, %19 : vector<128x128xf32>
    %cst_10 = arith.constant 9.99999974E-6 : f32
    %21 = vector.broadcast %cst_10 : f32 to vector<128x1xf32>
    %22 = arith.addf %18, %21 : vector<128x1xf32>
    %23 = math.rsqrt %22 : vector<128x1xf32>
    %24 = vector.broadcast %23 : vector<128x1xf32> to vector<128x128xf32>
    %25 = arith.mulf %20, %24 : vector<128x128xf32>
    %26 = vector.broadcast %6 : vector<1x128xf32> to vector<128x128xf32>
    %27 = arith.mulf %25, %26 : vector<128x128xf32>
    %28 = vector.broadcast %7 : vector<1x128xf32> to vector<128x128xf32>
    %29 = arith.addf %27, %28 : vector<128x128xf32>
    %30 = arith.truncf %29 : vector<128x128xf32> to vector<128x128xbf16>
    %c0_11 = arith.constant 0 : index
    %c0_12 = arith.constant 0 : index
    %31 = vector.load %arg5[%c0_11, %c0_12] : memref<128x384xbf16, #tpu.memory_space<vmem>>, vector<128x384xbf16>
    %cst_13 = arith.constant dense<0.000000e+00> : vector<128x384xf32>
    %32 = tpu.matmul %30, %31, %cst_13 {dimension_numbers = #tpu.dot_dimension_numbers<[1], [0], [0], [1], [0, 0, 1, 1], [], []>} : vector<128x128xbf16>, vector<128x384xbf16>, vector<128x384xf32> -> vector<128x384xf32>
    %33 = arith.truncf %32 : vector<128x384xf32> to vector<128x384xbf16>
    %34 = vector.extract_strided_slice %33 {offsets = [0, 0], sizes = [128, 32], strides = [1, 1]} : vector<128x384xbf16> to vector<128x32xbf16>
    %35 = vector.extract_strided_slice %33 {offsets = [0, 128], sizes = [128, 32], strides = [1, 1]} : vector<128x384xbf16> to vector<128x32xbf16>
    %36 = vector.extract_strided_slice %33 {offsets = [0, 256], sizes = [128, 32], strides = [1, 1]} : vector<128x384xbf16> to vector<128x32xbf16>
    %cst_14 = arith.constant dense<0.000000e+00> : vector<128x128xf32>
    %37 = tpu.matmul %34, %35, %cst_14 {dimension_numbers = #tpu.dot_dimension_numbers<[1], [1], [0], [0], [0, 0, 1, 0], [], []>} : vector<128x32xbf16>, vector<128x32xbf16>, vector<128x128xf32> -> vector<128x128xf32>
    %cst_15 = arith.constant 0.0883883461 : f32
    %38 = vector.broadcast %cst_15 : f32 to vector<128x128xf32>
    %39 = arith.mulf %37, %38 : vector<128x128xf32>
    %cst_16 = arith.constant 0xFF800000 : f32
    %40 = vector.broadcast %cst_16 : f32 to vector<128x128xf32>
    %41 = arith.select %5, %39, %40 : vector<128x128xi1>, vector<128x128xf32>
    %cst_17 = arith.constant dense<0xFF800000> : vector<128xf32>
    %42 = vector.multi_reduction <maximumf>, %41, %cst_17 [1] : vector<128x128xf32> to vector<128xf32>
    %43 = vector.shape_cast %42 : vector<128xf32> to vector<128x1xf32>
    %44 = vector.broadcast %43 : vector<128x1xf32> to vector<128x128xf32>
    %45 = arith.subf %41, %44 : vector<128x128xf32>
    %46 = math.exp %45 : vector<128x128xf32>
    %cst_18 = arith.constant dense<0.000000e+00> : vector<128xf32>
    %47 = vector.multi_reduction <add>, %46, %cst_18 [1] : vector<128x128xf32> to vector<128xf32>
    %48 = vector.shape_cast %47 : vector<128xf32> to vector<128x1xf32>
    %49 = vector.broadcast %48 : vector<128x1xf32> to vector<128x128xf32>
    %50 = arith.divf %46, %49 : vector<128x128xf32>
    %51 = arith.truncf %50 : vector<128x128xf32> to vector<128x128xbf16>
    %cst_19 = arith.constant dense<0.000000e+00> : vector<128x32xf32>
    %52 = tpu.matmul %51, %36, %cst_19 {dimension_numbers = #tpu.dot_dimension_numbers<[1], [0], [0], [1], [0, 0, 1, 1], [], []>} : vector<128x128xbf16>, vector<128x32xbf16>, vector<128x32xf32> -> vector<128x32xf32>
    %53 = vector.extract_strided_slice %33 {offsets = [0, 32], sizes = [128, 32], strides = [1, 1]} : vector<128x384xbf16> to vector<128x32xbf16>
    %54 = vector.extract_strided_slice %33 {offsets = [0, 160], sizes = [128, 32], strides = [1, 1]} : vector<128x384xbf16> to vector<128x32xbf16>
    %55 = vector.extract_strided_slice %33 {offsets = [0, 288], sizes = [128, 32], strides = [1, 1]} : vector<128x384xbf16> to vector<128x32xbf16>
    %cst_20 = arith.constant dense<0.000000e+00> : vector<128x128xf32>
    %56 = tpu.matmul %53, %54, %cst_20 {dimension_numbers = #tpu.dot_dimension_numbers<[1], [1], [0], [0], [0, 0, 1, 0], [], []>} : vector<128x32xbf16>, vector<128x32xbf16>, vector<128x128xf32> -> vector<128x128xf32>
    %cst_21 = arith.constant 0.0883883461 : f32
    %57 = vector.broadcast %cst_21 : f32 to vector<128x128xf32>
    %58 = arith.mulf %56, %57 : vector<128x128xf32>
    %cst_22 = arith.constant 0xFF800000 : f32
    %59 = vector.broadcast %cst_22 : f32 to vector<128x128xf32>
    %60 = arith.select %5, %58, %59 : vector<128x128xi1>, vector<128x128xf32>
    %cst_23 = arith.constant dense<0xFF800000> : vector<128xf32>
    %61 = vector.multi_reduction <maximumf>, %60, %cst_23 [1] : vector<128x128xf32> to vector<128xf32>
    %62 = vector.shape_cast %61 : vector<128xf32> to vector<128x1xf32>
    %63 = vector.broadcast %62 : vector<128x1xf32> to vector<128x128xf32>
    %64 = arith.subf %60, %63 : vector<128x128xf32>
    %65 = math.exp %64 : vector<128x128xf32>
    %cst_24 = arith.constant dense<0.000000e+00> : vector<128xf32>
    %66 = vector.multi_reduction <add>, %65, %cst_24 [1] : vector<128x128xf32> to vector<128xf32>
    %67 = vector.shape_cast %66 : vector<128xf32> to vector<128x1xf32>
    %68 = vector.broadcast %67 : vector<128x1xf32> to vector<128x128xf32>
    %69 = arith.divf %65, %68 : vector<128x128xf32>
    %70 = arith.truncf %69 : vector<128x128xf32> to vector<128x128xbf16>
    %cst_25 = arith.constant dense<0.000000e+00> : vector<128x32xf32>
    %71 = tpu.matmul %70, %55, %cst_25 {dimension_numbers = #tpu.dot_dimension_numbers<[1], [0], [0], [1], [0, 0, 1, 1], [], []>} : vector<128x128xbf16>, vector<128x32xbf16>, vector<128x32xf32> -> vector<128x32xf32>
    %72 = vector.extract_strided_slice %33 {offsets = [0, 64], sizes = [128, 32], strides = [1, 1]} : vector<128x384xbf16> to vector<128x32xbf16>
    %73 = vector.extract_strided_slice %33 {offsets = [0, 192], sizes = [128, 32], strides = [1, 1]} : vector<128x384xbf16> to vector<128x32xbf16>
    %74 = vector.extract_strided_slice %33 {offsets = [0, 320], sizes = [128, 32], strides = [1, 1]} : vector<128x384xbf16> to vector<128x32xbf16>
    %cst_26 = arith.constant dense<0.000000e+00> : vector<128x128xf32>
    %75 = tpu.matmul %72, %73, %cst_26 {dimension_numbers = #tpu.dot_dimension_numbers<[1], [1], [0], [0], [0, 0, 1, 0], [], []>} : vector<128x32xbf16>, vector<128x32xbf16>, vector<128x128xf32> -> vector<128x128xf32>
    %cst_27 = arith.constant 0.0883883461 : f32
    %76 = vector.broadcast %cst_27 : f32 to vector<128x128xf32>
    %77 = arith.mulf %75, %76 : vector<128x128xf32>
    %cst_28 = arith.constant 0xFF800000 : f32
    %78 = vector.broadcast %cst_28 : f32 to vector<128x128xf32>
    %79 = arith.select %5, %77, %78 : vector<128x128xi1>, vector<128x128xf32>
    %cst_29 = arith.constant dense<0xFF800000> : vector<128xf32>
    %80 = vector.multi_reduction <maximumf>, %79, %cst_29 [1] : vector<128x128xf32> to vector<128xf32>
    %81 = vector.shape_cast %80 : vector<128xf32> to vector<128x1xf32>
    %82 = vector.broadcast %81 : vector<128x1xf32> to vector<128x128xf32>
    %83 = arith.subf %79, %82 : vector<128x128xf32>
    %84 = math.exp %83 : vector<128x128xf32>
    %cst_30 = arith.constant dense<0.000000e+00> : vector<128xf32>
    %85 = vector.multi_reduction <add>, %84, %cst_30 [1] : vector<128x128xf32> to vector<128xf32>
    %86 = vector.shape_cast %85 : vector<128xf32> to vector<128x1xf32>
    %87 = vector.broadcast %86 : vector<128x1xf32> to vector<128x128xf32>
    %88 = arith.divf %84, %87 : vector<128x128xf32>
    %89 = arith.truncf %88 : vector<128x128xf32> to vector<128x128xbf16>
    %cst_31 = arith.constant dense<0.000000e+00> : vector<128x32xf32>
    %90 = tpu.matmul %89, %74, %cst_31 {dimension_numbers = #tpu.dot_dimension_numbers<[1], [0], [0], [1], [0, 0, 1, 1], [], []>} : vector<128x128xbf16>, vector<128x32xbf16>, vector<128x32xf32> -> vector<128x32xf32>
    %91 = vector.extract_strided_slice %33 {offsets = [0, 96], sizes = [128, 32], strides = [1, 1]} : vector<128x384xbf16> to vector<128x32xbf16>
    %92 = vector.extract_strided_slice %33 {offsets = [0, 224], sizes = [128, 32], strides = [1, 1]} : vector<128x384xbf16> to vector<128x32xbf16>
    %93 = vector.extract_strided_slice %33 {offsets = [0, 352], sizes = [128, 32], strides = [1, 1]} : vector<128x384xbf16> to vector<128x32xbf16>
    %cst_32 = arith.constant dense<0.000000e+00> : vector<128x128xf32>
    %94 = tpu.matmul %91, %92, %cst_32 {dimension_numbers = #tpu.dot_dimension_numbers<[1], [1], [0], [0], [0, 0, 1, 0], [], []>} : vector<128x32xbf16>, vector<128x32xbf16>, vector<128x128xf32> -> vector<128x128xf32>
    %cst_33 = arith.constant 0.0883883461 : f32
    %95 = vector.broadcast %cst_33 : f32 to vector<128x128xf32>
    %96 = arith.mulf %94, %95 : vector<128x128xf32>
    %cst_34 = arith.constant 0xFF800000 : f32
    %97 = vector.broadcast %cst_34 : f32 to vector<128x128xf32>
    %98 = arith.select %5, %96, %97 : vector<128x128xi1>, vector<128x128xf32>
    %cst_35 = arith.constant dense<0xFF800000> : vector<128xf32>
    %99 = vector.multi_reduction <maximumf>, %98, %cst_35 [1] : vector<128x128xf32> to vector<128xf32>
    %100 = vector.shape_cast %99 : vector<128xf32> to vector<128x1xf32>
    %101 = vector.broadcast %100 : vector<128x1xf32> to vector<128x128xf32>
    %102 = arith.subf %98, %101 : vector<128x128xf32>
    %103 = math.exp %102 : vector<128x128xf32>
    %cst_36 = arith.constant dense<0.000000e+00> : vector<128xf32>
    %104 = vector.multi_reduction <add>, %103, %cst_36 [1] : vector<128x128xf32> to vector<128xf32>
    %105 = vector.shape_cast %104 : vector<128xf32> to vector<128x1xf32>
    %106 = vector.broadcast %105 : vector<128x1xf32> to vector<128x128xf32>
    %107 = arith.divf %103, %106 : vector<128x128xf32>
    %108 = arith.truncf %107 : vector<128x128xf32> to vector<128x128xbf16>
    %cst_37 = arith.constant dense<0.000000e+00> : vector<128x32xf32>
    %109 = tpu.matmul %108, %93, %cst_37 {dimension_numbers = #tpu.dot_dimension_numbers<[1], [0], [0], [1], [0, 0, 1, 1], [], []>} : vector<128x128xbf16>, vector<128x32xbf16>, vector<128x32xf32> -> vector<128x32xf32>
    %110 = tpu.concatenate %52, %71, %90, %109 in 1 : vector<128x32xf32>, vector<128x32xf32>, vector<128x32xf32>, vector<128x32xf32> -> vector<128x128xf32>
    %111 = arith.truncf %110 : vector<128x128xf32> to vector<128x128xbf16>
    %c0_38 = arith.constant 0 : index
    %c0_39 = arith.constant 0 : index
    %112 = vector.load %arg6[%c0_38, %c0_39] : memref<128x128xbf16, #tpu.memory_space<vmem>>, vector<128x128xbf16>
    %cst_40 = arith.constant dense<0.000000e+00> : vector<128x128xf32>
    %113 = tpu.matmul %111, %112, %cst_40 {dimension_numbers = #tpu.dot_dimension_numbers<[1], [0], [0], [1], [0, 0, 1, 1], [], []>} : vector<128x128xbf16>, vector<128x128xbf16>, vector<128x128xf32> -> vector<128x128xf32>
    %c0_41 = arith.constant 0 : index
    %c0_42 = arith.constant 0 : index
    %114 = vector.load %arg7[%c0_41, %c0_42] : memref<1x128xf32, #tpu.memory_space<vmem>>, vector<1x128xf32>
    %115 = vector.broadcast %114 : vector<1x128xf32> to vector<128x128xf32>
    %116 = arith.addf %113, %115 : vector<128x128xf32>
    %117 = arith.addf %2, %116 : vector<128x128xf32>
    %c0_43 = arith.constant 0 : index
    %c0_44 = arith.constant 0 : index
    %118 = vector.load %arg8[%c0_43, %c0_44] : memref<1x128xf32, #tpu.memory_space<vmem>>, vector<1x128xf32>
    %c0_45 = arith.constant 0 : index
    %c0_46 = arith.constant 0 : index
    %119 = vector.load %arg9[%c0_45, %c0_46] : memref<1x128xf32, #tpu.memory_space<vmem>>, vector<1x128xf32>
    %cst_47 = arith.constant dense<0.000000e+00> : vector<128xf32>
    %120 = vector.multi_reduction <add>, %117, %cst_47 [1] : vector<128x128xf32> to vector<128xf32>
    %121 = vector.shape_cast %120 : vector<128xf32> to vector<128x1xf32>
    %cst_48 = arith.constant 1.280000e+02 : f32
    %122 = vector.broadcast %cst_48 : f32 to vector<128x1xf32>
    %123 = arith.divf %121, %122 : vector<128x1xf32>
    %124 = vector.broadcast %123 : vector<128x1xf32> to vector<128x128xf32>
    %125 = arith.subf %117, %124 : vector<128x128xf32>
    %126 = arith.mulf %125, %125 : vector<128x128xf32>
    %cst_49 = arith.constant dense<0.000000e+00> : vector<128xf32>
    %127 = vector.multi_reduction <add>, %126, %cst_49 [1] : vector<128x128xf32> to vector<128xf32>
    %128 = vector.shape_cast %127 : vector<128xf32> to vector<128x1xf32>
    %cst_50 = arith.constant 1.280000e+02 : f32
    %129 = vector.broadcast %cst_50 : f32 to vector<128x1xf32>
    %130 = arith.divf %128, %129 : vector<128x1xf32>
    %131 = vector.broadcast %123 : vector<128x1xf32> to vector<128x128xf32>
    %132 = arith.subf %117, %131 : vector<128x128xf32>
    %cst_51 = arith.constant 9.99999974E-6 : f32
    %133 = vector.broadcast %cst_51 : f32 to vector<128x1xf32>
    %134 = arith.addf %130, %133 : vector<128x1xf32>
    %135 = math.rsqrt %134 : vector<128x1xf32>
    %136 = vector.broadcast %135 : vector<128x1xf32> to vector<128x128xf32>
    %137 = arith.mulf %132, %136 : vector<128x128xf32>
    %138 = vector.broadcast %118 : vector<1x128xf32> to vector<128x128xf32>
    %139 = arith.mulf %137, %138 : vector<128x128xf32>
    %140 = vector.broadcast %119 : vector<1x128xf32> to vector<128x128xf32>
    %141 = arith.addf %139, %140 : vector<128x128xf32>
    %142 = arith.truncf %141 : vector<128x128xf32> to vector<128x128xbf16>
    %c0_52 = arith.constant 0 : index
    %c0_53 = arith.constant 0 : index
    %143 = vector.load %arg10[%c0_52, %c0_53] : memref<128x512xbf16, #tpu.memory_space<vmem>>, vector<128x512xbf16>
    %cst_54 = arith.constant dense<0.000000e+00> : vector<128x512xf32>
    %144 = tpu.matmul %142, %143, %cst_54 {dimension_numbers = #tpu.dot_dimension_numbers<[1], [0], [0], [1], [0, 0, 1, 1], [], []>} : vector<128x128xbf16>, vector<128x512xbf16>, vector<128x512xf32> -> vector<128x512xf32>
    %c0_55 = arith.constant 0 : index
    %c0_56 = arith.constant 0 : index
    %145 = vector.load %arg11[%c0_55, %c0_56] : memref<1x512xf32, #tpu.memory_space<vmem>>, vector<1x512xf32>
    %146 = vector.broadcast %145 : vector<1x512xf32> to vector<128x512xf32>
    %147 = arith.addf %144, %146 : vector<128x512xf32>
    %cst_57 = arith.constant 0.000000e+00 : f32
    %148 = vector.broadcast %cst_57 : f32 to vector<128x512xf32>
    %149 = arith.maximumf %147, %148 : vector<128x512xf32>
    %150 = arith.truncf %149 : vector<128x512xf32> to vector<128x512xbf16>
    %c0_58 = arith.constant 0 : index
    %c0_59 = arith.constant 0 : index
    %151 = vector.load %arg12[%c0_58, %c0_59] : memref<512x128xbf16, #tpu.memory_space<vmem>>, vector<512x128xbf16>
    %cst_60 = arith.constant dense<0.000000e+00> : vector<128x128xf32>
    %152 = tpu.matmul %150, %151, %cst_60 {dimension_numbers = #tpu.dot_dimension_numbers<[1], [0], [0], [1], [0, 0, 1, 1], [], []>} : vector<128x512xbf16>, vector<512x128xbf16>, vector<128x128xf32> -> vector<128x128xf32>
    %153 = arith.addf %117, %152 : vector<128x128xf32>
    %c0_61 = arith.constant 0 : index
    %c0_62 = arith.constant 0 : index
    %154 = vector.load %arg13[%c0_61, %c0_62] : memref<1x128xf32, #tpu.memory_space<vmem>>, vector<1x128xf32>
    %155 = vector.broadcast %154 : vector<1x128xf32> to vector<128x128xf32>
    %156 = arith.addf %153, %155 : vector<128x128xf32>
    %c0_63 = arith.constant 0 : index
    %c0_64 = arith.constant 0 : index
    %157 = vector.load %arg14[%c0_63, %c0_64] : memref<1x128xf32, #tpu.memory_space<vmem>>, vector<1x128xf32>
    %c0_65 = arith.constant 0 : index
    %c0_66 = arith.constant 0 : index
    %158 = vector.load %arg15[%c0_65, %c0_66] : memref<1x128xf32, #tpu.memory_space<vmem>>, vector<1x128xf32>
    %cst_67 = arith.constant dense<0.000000e+00> : vector<128xf32>
    %159 = vector.multi_reduction <add>, %156, %cst_67 [1] : vector<128x128xf32> to vector<128xf32>
    %160 = vector.shape_cast %159 : vector<128xf32> to vector<128x1xf32>
    %cst_68 = arith.constant 1.280000e+02 : f32
    %161 = vector.broadcast %cst_68 : f32 to vector<128x1xf32>
    %162 = arith.divf %160, %161 : vector<128x1xf32>
    %163 = vector.broadcast %162 : vector<128x1xf32> to vector<128x128xf32>
    %164 = arith.subf %156, %163 : vector<128x128xf32>
    %165 = arith.mulf %164, %164 : vector<128x128xf32>
    %cst_69 = arith.constant dense<0.000000e+00> : vector<128xf32>
    %166 = vector.multi_reduction <add>, %165, %cst_69 [1] : vector<128x128xf32> to vector<128xf32>
    %167 = vector.shape_cast %166 : vector<128xf32> to vector<128x1xf32>
    %cst_70 = arith.constant 1.280000e+02 : f32
    %168 = vector.broadcast %cst_70 : f32 to vector<128x1xf32>
    %169 = arith.divf %167, %168 : vector<128x1xf32>
    %170 = vector.broadcast %162 : vector<128x1xf32> to vector<128x128xf32>
    %171 = arith.subf %156, %170 : vector<128x128xf32>
    %cst_71 = arith.constant 9.99999974E-6 : f32
    %172 = vector.broadcast %cst_71 : f32 to vector<128x1xf32>
    %173 = arith.addf %169, %172 : vector<128x1xf32>
    %174 = math.rsqrt %173 : vector<128x1xf32>
    %175 = vector.broadcast %174 : vector<128x1xf32> to vector<128x128xf32>
    %176 = arith.mulf %171, %175 : vector<128x128xf32>
    %177 = vector.broadcast %157 : vector<1x128xf32> to vector<128x128xf32>
    %178 = arith.mulf %176, %177 : vector<128x128xf32>
    %179 = vector.broadcast %158 : vector<1x128xf32> to vector<128x128xf32>
    %180 = arith.addf %178, %179 : vector<128x128xf32>
    %181 = arith.truncf %180 : vector<128x128xf32> to vector<128x128xbf16>
    %c0_72 = arith.constant 0 : index
    %c0_73 = arith.constant 0 : index
    %182 = vector.load %arg16[%c0_72, %c0_73] : memref<128x384xbf16, #tpu.memory_space<vmem>>, vector<128x384xbf16>
    %cst_74 = arith.constant dense<0.000000e+00> : vector<128x384xf32>
    %183 = tpu.matmul %181, %182, %cst_74 {dimension_numbers = #tpu.dot_dimension_numbers<[1], [0], [0], [1], [0, 0, 1, 1], [], []>} : vector<128x128xbf16>, vector<128x384xbf16>, vector<128x384xf32> -> vector<128x384xf32>
    %184 = arith.truncf %183 : vector<128x384xf32> to vector<128x384xbf16>
    %185 = vector.extract_strided_slice %184 {offsets = [0, 0], sizes = [128, 32], strides = [1, 1]} : vector<128x384xbf16> to vector<128x32xbf16>
    %186 = vector.extract_strided_slice %184 {offsets = [0, 128], sizes = [128, 32], strides = [1, 1]} : vector<128x384xbf16> to vector<128x32xbf16>
    %187 = vector.extract_strided_slice %184 {offsets = [0, 256], sizes = [128, 32], strides = [1, 1]} : vector<128x384xbf16> to vector<128x32xbf16>
    %cst_75 = arith.constant dense<0.000000e+00> : vector<128x128xf32>
    %188 = tpu.matmul %185, %186, %cst_75 {dimension_numbers = #tpu.dot_dimension_numbers<[1], [1], [0], [0], [0, 0, 1, 0], [], []>} : vector<128x32xbf16>, vector<128x32xbf16>, vector<128x128xf32> -> vector<128x128xf32>
    %cst_76 = arith.constant 0.0883883461 : f32
    %189 = vector.broadcast %cst_76 : f32 to vector<128x128xf32>
    %190 = arith.mulf %188, %189 : vector<128x128xf32>
    %cst_77 = arith.constant 0xFF800000 : f32
    %191 = vector.broadcast %cst_77 : f32 to vector<128x128xf32>
    %192 = arith.select %5, %190, %191 : vector<128x128xi1>, vector<128x128xf32>
    %cst_78 = arith.constant dense<0xFF800000> : vector<128xf32>
    %193 = vector.multi_reduction <maximumf>, %192, %cst_78 [1] : vector<128x128xf32> to vector<128xf32>
    %194 = vector.shape_cast %193 : vector<128xf32> to vector<128x1xf32>
    %195 = vector.broadcast %194 : vector<128x1xf32> to vector<128x128xf32>
    %196 = arith.subf %192, %195 : vector<128x128xf32>
    %197 = math.exp %196 : vector<128x128xf32>
    %cst_79 = arith.constant dense<0.000000e+00> : vector<128xf32>
    %198 = vector.multi_reduction <add>, %197, %cst_79 [1] : vector<128x128xf32> to vector<128xf32>
    %199 = vector.shape_cast %198 : vector<128xf32> to vector<128x1xf32>
    %200 = vector.broadcast %199 : vector<128x1xf32> to vector<128x128xf32>
    %201 = arith.divf %197, %200 : vector<128x128xf32>
    %202 = arith.truncf %201 : vector<128x128xf32> to vector<128x128xbf16>
    %cst_80 = arith.constant dense<0.000000e+00> : vector<128x32xf32>
    %203 = tpu.matmul %202, %187, %cst_80 {dimension_numbers = #tpu.dot_dimension_numbers<[1], [0], [0], [1], [0, 0, 1, 1], [], []>} : vector<128x128xbf16>, vector<128x32xbf16>, vector<128x32xf32> -> vector<128x32xf32>
    %204 = vector.extract_strided_slice %184 {offsets = [0, 32], sizes = [128, 32], strides = [1, 1]} : vector<128x384xbf16> to vector<128x32xbf16>
    %205 = vector.extract_strided_slice %184 {offsets = [0, 160], sizes = [128, 32], strides = [1, 1]} : vector<128x384xbf16> to vector<128x32xbf16>
    %206 = vector.extract_strided_slice %184 {offsets = [0, 288], sizes = [128, 32], strides = [1, 1]} : vector<128x384xbf16> to vector<128x32xbf16>
    %cst_81 = arith.constant dense<0.000000e+00> : vector<128x128xf32>
    %207 = tpu.matmul %204, %205, %cst_81 {dimension_numbers = #tpu.dot_dimension_numbers<[1], [1], [0], [0], [0, 0, 1, 0], [], []>} : vector<128x32xbf16>, vector<128x32xbf16>, vector<128x128xf32> -> vector<128x128xf32>
    %cst_82 = arith.constant 0.0883883461 : f32
    %208 = vector.broadcast %cst_82 : f32 to vector<128x128xf32>
    %209 = arith.mulf %207, %208 : vector<128x128xf32>
    %cst_83 = arith.constant 0xFF800000 : f32
    %210 = vector.broadcast %cst_83 : f32 to vector<128x128xf32>
    %211 = arith.select %5, %209, %210 : vector<128x128xi1>, vector<128x128xf32>
    %cst_84 = arith.constant dense<0xFF800000> : vector<128xf32>
    %212 = vector.multi_reduction <maximumf>, %211, %cst_84 [1] : vector<128x128xf32> to vector<128xf32>
    %213 = vector.shape_cast %212 : vector<128xf32> to vector<128x1xf32>
    %214 = vector.broadcast %213 : vector<128x1xf32> to vector<128x128xf32>
    %215 = arith.subf %211, %214 : vector<128x128xf32>
    %216 = math.exp %215 : vector<128x128xf32>
    %cst_85 = arith.constant dense<0.000000e+00> : vector<128xf32>
    %217 = vector.multi_reduction <add>, %216, %cst_85 [1] : vector<128x128xf32> to vector<128xf32>
    %218 = vector.shape_cast %217 : vector<128xf32> to vector<128x1xf32>
    %219 = vector.broadcast %218 : vector<128x1xf32> to vector<128x128xf32>
    %220 = arith.divf %216, %219 : vector<128x128xf32>
    %221 = arith.truncf %220 : vector<128x128xf32> to vector<128x128xbf16>
    %cst_86 = arith.constant dense<0.000000e+00> : vector<128x32xf32>
    %222 = tpu.matmul %221, %206, %cst_86 {dimension_numbers = #tpu.dot_dimension_numbers<[1], [0], [0], [1], [0, 0, 1, 1], [], []>} : vector<128x128xbf16>, vector<128x32xbf16>, vector<128x32xf32> -> vector<128x32xf32>
    %223 = vector.extract_strided_slice %184 {offsets = [0, 64], sizes = [128, 32], strides = [1, 1]} : vector<128x384xbf16> to vector<128x32xbf16>
    %224 = vector.extract_strided_slice %184 {offsets = [0, 192], sizes = [128, 32], strides = [1, 1]} : vector<128x384xbf16> to vector<128x32xbf16>
    %225 = vector.extract_strided_slice %184 {offsets = [0, 320], sizes = [128, 32], strides = [1, 1]} : vector<128x384xbf16> to vector<128x32xbf16>
    %cst_87 = arith.constant dense<0.000000e+00> : vector<128x128xf32>
    %226 = tpu.matmul %223, %224, %cst_87 {dimension_numbers = #tpu.dot_dimension_numbers<[1], [1], [0], [0], [0, 0, 1, 0], [], []>} : vector<128x32xbf16>, vector<128x32xbf16>, vector<128x128xf32> -> vector<128x128xf32>
    %cst_88 = arith.constant 0.0883883461 : f32
    %227 = vector.broadcast %cst_88 : f32 to vector<128x128xf32>
    %228 = arith.mulf %226, %227 : vector<128x128xf32>
    %cst_89 = arith.constant 0xFF800000 : f32
    %229 = vector.broadcast %cst_89 : f32 to vector<128x128xf32>
    %230 = arith.select %5, %228, %229 : vector<128x128xi1>, vector<128x128xf32>
    %cst_90 = arith.constant dense<0xFF800000> : vector<128xf32>
    %231 = vector.multi_reduction <maximumf>, %230, %cst_90 [1] : vector<128x128xf32> to vector<128xf32>
    %232 = vector.shape_cast %231 : vector<128xf32> to vector<128x1xf32>
    %233 = vector.broadcast %232 : vector<128x1xf32> to vector<128x128xf32>
    %234 = arith.subf %230, %233 : vector<128x128xf32>
    %235 = math.exp %234 : vector<128x128xf32>
    %cst_91 = arith.constant dense<0.000000e+00> : vector<128xf32>
    %236 = vector.multi_reduction <add>, %235, %cst_91 [1] : vector<128x128xf32> to vector<128xf32>
    %237 = vector.shape_cast %236 : vector<128xf32> to vector<128x1xf32>
    %238 = vector.broadcast %237 : vector<128x1xf32> to vector<128x128xf32>
    %239 = arith.divf %235, %238 : vector<128x128xf32>
    %240 = arith.truncf %239 : vector<128x128xf32> to vector<128x128xbf16>
    %cst_92 = arith.constant dense<0.000000e+00> : vector<128x32xf32>
    %241 = tpu.matmul %240, %225, %cst_92 {dimension_numbers = #tpu.dot_dimension_numbers<[1], [0], [0], [1], [0, 0, 1, 1], [], []>} : vector<128x128xbf16>, vector<128x32xbf16>, vector<128x32xf32> -> vector<128x32xf32>
    %242 = vector.extract_strided_slice %184 {offsets = [0, 96], sizes = [128, 32], strides = [1, 1]} : vector<128x384xbf16> to vector<128x32xbf16>
    %243 = vector.extract_strided_slice %184 {offsets = [0, 224], sizes = [128, 32], strides = [1, 1]} : vector<128x384xbf16> to vector<128x32xbf16>
    %244 = vector.extract_strided_slice %184 {offsets = [0, 352], sizes = [128, 32], strides = [1, 1]} : vector<128x384xbf16> to vector<128x32xbf16>
    %cst_93 = arith.constant dense<0.000000e+00> : vector<128x128xf32>
    %245 = tpu.matmul %242, %243, %cst_93 {dimension_numbers = #tpu.dot_dimension_numbers<[1], [1], [0], [0], [0, 0, 1, 0], [], []>} : vector<128x32xbf16>, vector<128x32xbf16>, vector<128x128xf32> -> vector<128x128xf32>
    %cst_94 = arith.constant 0.0883883461 : f32
    %246 = vector.broadcast %cst_94 : f32 to vector<128x128xf32>
    %247 = arith.mulf %245, %246 : vector<128x128xf32>
    %cst_95 = arith.constant 0xFF800000 : f32
    %248 = vector.broadcast %cst_95 : f32 to vector<128x128xf32>
    %249 = arith.select %5, %247, %248 : vector<128x128xi1>, vector<128x128xf32>
    %cst_96 = arith.constant dense<0xFF800000> : vector<128xf32>
    %250 = vector.multi_reduction <maximumf>, %249, %cst_96 [1] : vector<128x128xf32> to vector<128xf32>
    %251 = vector.shape_cast %250 : vector<128xf32> to vector<128x1xf32>
    %252 = vector.broadcast %251 : vector<128x1xf32> to vector<128x128xf32>
    %253 = arith.subf %249, %252 : vector<128x128xf32>
    %254 = math.exp %253 : vector<128x128xf32>
    %cst_97 = arith.constant dense<0.000000e+00> : vector<128xf32>
    %255 = vector.multi_reduction <add>, %254, %cst_97 [1] : vector<128x128xf32> to vector<128xf32>
    %256 = vector.shape_cast %255 : vector<128xf32> to vector<128x1xf32>
    %257 = vector.broadcast %256 : vector<128x1xf32> to vector<128x128xf32>
    %258 = arith.divf %254, %257 : vector<128x128xf32>
    %259 = arith.truncf %258 : vector<128x128xf32> to vector<128x128xbf16>
    %cst_98 = arith.constant dense<0.000000e+00> : vector<128x32xf32>
    %260 = tpu.matmul %259, %244, %cst_98 {dimension_numbers = #tpu.dot_dimension_numbers<[1], [0], [0], [1], [0, 0, 1, 1], [], []>} : vector<128x128xbf16>, vector<128x32xbf16>, vector<128x32xf32> -> vector<128x32xf32>
    %261 = tpu.concatenate %203, %222, %241, %260 in 1 : vector<128x32xf32>, vector<128x32xf32>, vector<128x32xf32>, vector<128x32xf32> -> vector<128x128xf32>
    %262 = arith.truncf %261 : vector<128x128xf32> to vector<128x128xbf16>
    %c0_99 = arith.constant 0 : index
    %c0_100 = arith.constant 0 : index
    %263 = vector.load %arg17[%c0_99, %c0_100] : memref<128x128xbf16, #tpu.memory_space<vmem>>, vector<128x128xbf16>
    %cst_101 = arith.constant dense<0.000000e+00> : vector<128x128xf32>
    %264 = tpu.matmul %262, %263, %cst_101 {dimension_numbers = #tpu.dot_dimension_numbers<[1], [0], [0], [1], [0, 0, 1, 1], [], []>} : vector<128x128xbf16>, vector<128x128xbf16>, vector<128x128xf32> -> vector<128x128xf32>
    %c0_102 = arith.constant 0 : index
    %c0_103 = arith.constant 0 : index
    %265 = vector.load %arg18[%c0_102, %c0_103] : memref<1x128xf32, #tpu.memory_space<vmem>>, vector<1x128xf32>
    %266 = vector.broadcast %265 : vector<1x128xf32> to vector<128x128xf32>
    %267 = arith.addf %264, %266 : vector<128x128xf32>
    %268 = arith.addf %156, %267 : vector<128x128xf32>
    %c0_104 = arith.constant 0 : index
    %c0_105 = arith.constant 0 : index
    %269 = vector.load %arg19[%c0_104, %c0_105] : memref<1x128xf32, #tpu.memory_space<vmem>>, vector<1x128xf32>
    %c0_106 = arith.constant 0 : index
    %c0_107 = arith.constant 0 : index
    %270 = vector.load %arg20[%c0_106, %c0_107] : memref<1x128xf32, #tpu.memory_space<vmem>>, vector<1x128xf32>
    %cst_108 = arith.constant dense<0.000000e+00> : vector<128xf32>
    %271 = vector.multi_reduction <add>, %268, %cst_108 [1] : vector<128x128xf32> to vector<128xf32>
    %272 = vector.shape_cast %271 : vector<128xf32> to vector<128x1xf32>
    %cst_109 = arith.constant 1.280000e+02 : f32
    %273 = vector.broadcast %cst_109 : f32 to vector<128x1xf32>
    %274 = arith.divf %272, %273 : vector<128x1xf32>
    %275 = vector.broadcast %274 : vector<128x1xf32> to vector<128x128xf32>
    %276 = arith.subf %268, %275 : vector<128x128xf32>
    %277 = arith.mulf %276, %276 : vector<128x128xf32>
    %cst_110 = arith.constant dense<0.000000e+00> : vector<128xf32>
    %278 = vector.multi_reduction <add>, %277, %cst_110 [1] : vector<128x128xf32> to vector<128xf32>
    %279 = vector.shape_cast %278 : vector<128xf32> to vector<128x1xf32>
    %cst_111 = arith.constant 1.280000e+02 : f32
    %280 = vector.broadcast %cst_111 : f32 to vector<128x1xf32>
    %281 = arith.divf %279, %280 : vector<128x1xf32>
    %282 = vector.broadcast %274 : vector<128x1xf32> to vector<128x128xf32>
    %283 = arith.subf %268, %282 : vector<128x128xf32>
    %cst_112 = arith.constant 9.99999974E-6 : f32
    %284 = vector.broadcast %cst_112 : f32 to vector<128x1xf32>
    %285 = arith.addf %281, %284 : vector<128x1xf32>
    %286 = math.rsqrt %285 : vector<128x1xf32>
    %287 = vector.broadcast %286 : vector<128x1xf32> to vector<128x128xf32>
    %288 = arith.mulf %283, %287 : vector<128x128xf32>
    %289 = vector.broadcast %269 : vector<1x128xf32> to vector<128x128xf32>
    %290 = arith.mulf %288, %289 : vector<128x128xf32>
    %291 = vector.broadcast %270 : vector<1x128xf32> to vector<128x128xf32>
    %292 = arith.addf %290, %291 : vector<128x128xf32>
    %293 = arith.truncf %292 : vector<128x128xf32> to vector<128x128xbf16>
    %c0_113 = arith.constant 0 : index
    %c0_114 = arith.constant 0 : index
    %294 = vector.load %arg21[%c0_113, %c0_114] : memref<128x512xbf16, #tpu.memory_space<vmem>>, vector<128x512xbf16>
    %cst_115 = arith.constant dense<0.000000e+00> : vector<128x512xf32>
    %295 = tpu.matmul %293, %294, %cst_115 {dimension_numbers = #tpu.dot_dimension_numbers<[1], [0], [0], [1], [0, 0, 1, 1], [], []>} : vector<128x128xbf16>, vector<128x512xbf16>, vector<128x512xf32> -> vector<128x512xf32>
    %c0_116 = arith.constant 0 : index
    %c0_117 = arith.constant 0 : index
    %296 = vector.load %arg22[%c0_116, %c0_117] : memref<1x512xf32, #tpu.memory_space<vmem>>, vector<1x512xf32>
    %297 = vector.broadcast %296 : vector<1x512xf32> to vector<128x512xf32>
    %298 = arith.addf %295, %297 : vector<128x512xf32>
    %cst_118 = arith.constant 0.000000e+00 : f32
    %299 = vector.broadcast %cst_118 : f32 to vector<128x512xf32>
    %300 = arith.maximumf %298, %299 : vector<128x512xf32>
    %301 = arith.truncf %300 : vector<128x512xf32> to vector<128x512xbf16>
    %c0_119 = arith.constant 0 : index
    %c0_120 = arith.constant 0 : index
    %302 = vector.load %arg23[%c0_119, %c0_120] : memref<512x128xbf16, #tpu.memory_space<vmem>>, vector<512x128xbf16>
    %cst_121 = arith.constant dense<0.000000e+00> : vector<128x128xf32>
    %303 = tpu.matmul %301, %302, %cst_121 {dimension_numbers = #tpu.dot_dimension_numbers<[1], [0], [0], [1], [0, 0, 1, 1], [], []>} : vector<128x512xbf16>, vector<512x128xbf16>, vector<128x128xf32> -> vector<128x128xf32>
    %304 = arith.addf %268, %303 : vector<128x128xf32>
    %c0_122 = arith.constant 0 : index
    %c0_123 = arith.constant 0 : index
    %305 = vector.load %arg24[%c0_122, %c0_123] : memref<1x128xf32, #tpu.memory_space<vmem>>, vector<1x128xf32>
    %306 = vector.broadcast %305 : vector<1x128xf32> to vector<128x128xf32>
    %307 = arith.addf %304, %306 : vector<128x128xf32>
    %c0_124 = arith.constant 0 : index
    %c0_125 = arith.constant 0 : index
    %308 = vector.load %arg25[%c0_124, %c0_125] : memref<1x128xf32, #tpu.memory_space<vmem>>, vector<1x128xf32>
    %c0_126 = arith.constant 0 : index
    %c0_127 = arith.constant 0 : index
    %309 = vector.load %arg26[%c0_126, %c0_127] : memref<1x128xf32, #tpu.memory_space<vmem>>, vector<1x128xf32>
    %cst_128 = arith.constant dense<0.000000e+00> : vector<128xf32>
    %310 = vector.multi_reduction <add>, %307, %cst_128 [1] : vector<128x128xf32> to vector<128xf32>
    %311 = vector.shape_cast %310 : vector<128xf32> to vector<128x1xf32>
    %cst_129 = arith.constant 1.280000e+02 : f32
    %312 = vector.broadcast %cst_129 : f32 to vector<128x1xf32>
    %313 = arith.divf %311, %312 : vector<128x1xf32>
    %314 = vector.broadcast %313 : vector<128x1xf32> to vector<128x128xf32>
    %315 = arith.subf %307, %314 : vector<128x128xf32>
    %316 = arith.mulf %315, %315 : vector<128x128xf32>
    %cst_130 = arith.constant dense<0.000000e+00> : vector<128xf32>
    %317 = vector.multi_reduction <add>, %316, %cst_130 [1] : vector<128x128xf32> to vector<128xf32>
    %318 = vector.shape_cast %317 : vector<128xf32> to vector<128x1xf32>
    %cst_131 = arith.constant 1.280000e+02 : f32
    %319 = vector.broadcast %cst_131 : f32 to vector<128x1xf32>
    %320 = arith.divf %318, %319 : vector<128x1xf32>
    %321 = vector.broadcast %313 : vector<128x1xf32> to vector<128x128xf32>
    %322 = arith.subf %307, %321 : vector<128x128xf32>
    %cst_132 = arith.constant 9.99999974E-6 : f32
    %323 = vector.broadcast %cst_132 : f32 to vector<128x1xf32>
    %324 = arith.addf %320, %323 : vector<128x1xf32>
    %325 = math.rsqrt %324 : vector<128x1xf32>
    %326 = vector.broadcast %325 : vector<128x1xf32> to vector<128x128xf32>
    %327 = arith.mulf %322, %326 : vector<128x128xf32>
    %328 = vector.broadcast %308 : vector<1x128xf32> to vector<128x128xf32>
    %329 = arith.mulf %327, %328 : vector<128x128xf32>
    %330 = vector.broadcast %309 : vector<1x128xf32> to vector<128x128xf32>
    %331 = arith.addf %329, %330 : vector<128x128xf32>
    %332 = arith.truncf %331 : vector<128x128xf32> to vector<128x128xbf16>
    %c0_133 = arith.constant 0 : index
    %c0_134 = arith.constant 0 : index
    %333 = vector.load %arg27[%c0_133, %c0_134] : memref<128x256xbf16, #tpu.memory_space<vmem>>, vector<128x256xbf16>
    %cst_135 = arith.constant dense<0.000000e+00> : vector<128x256xf32>
    %334 = tpu.matmul %332, %333, %cst_135 {dimension_numbers = #tpu.dot_dimension_numbers<[1], [0], [0], [1], [0, 0, 1, 1], [], []>} : vector<128x128xbf16>, vector<128x256xbf16>, vector<128x256xf32> -> vector<128x256xf32>
    %c0_136 = arith.constant 0 : index
    %c0_137 = arith.constant 0 : index
    %335 = vector.load %arg28[%c0_136, %c0_137] : memref<1x256xf32, #tpu.memory_space<vmem>>, vector<1x256xf32>
    %336 = vector.broadcast %335 : vector<1x256xf32> to vector<128x256xf32>
    %337 = arith.addf %334, %336 : vector<128x256xf32>
    %c0_138 = arith.constant 0 : index
    %c0_139 = arith.constant 0 : index
    %338 = vector.load %arg29[%c0_138, %c0_139] : memref<128x256xf32, #tpu.memory_space<vmem>>, vector<128x256xf32>
    tpu.vector_store %arg29[%c0_138, %c0_139], %337 {strides = array<i32>} : memref<128x256xf32, #tpu.memory_space<vmem>>, vector<128x256xf32>,
    return
  }
  func.func @transform_0(%arg0: i32) -> (i32, i32) {
    %c0_i32 = arith.constant 0 : i32
    %c0_i32_0 = arith.constant 0 : i32
    return %arg0, %c0_i32 : i32, i32
  }
  func.func @transform_1(%arg0: i32) -> (i32, i32) {
    %c0_i32 = arith.constant 0 : i32
    %c0_i32_0 = arith.constant 0 : i32
    %c0_i32_1 = arith.constant 0 : i32
    return %c0_i32, %c0_i32_0 : i32, i32
  }
  func.func @transform_2(%arg0: i32) -> (i32, i32) {
    %c0_i32 = arith.constant 0 : i32
    %c0_i32_0 = arith.constant 0 : i32
    %c0_i32_1 = arith.constant 0 : i32
    return %c0_i32, %c0_i32_0 : i32, i32
  }
  func.func @transform_3(%arg0: i32) -> (i32, i32) {
    %c0_i32 = arith.constant 0 : i32
    %c0_i32_0 = arith.constant 0 : i32
    %c0_i32_1 = arith.constant 0 : i32
    return %c0_i32, %c0_i32_0 : i32, i32
  }
  func.func @transform_4(%arg0: i32) -> (i32, i32) {
    %c0_i32 = arith.constant 0 : i32
    %c0_i32_0 = arith.constant 0 : i32
    %c0_i32_1 = arith.constant 0 : i32
    return %c0_i32, %c0_i32_0 : i32, i32
  }
  func.func @transform_5(%arg0: i32) -> (i32, i32) {
    %c0_i32 = arith.constant 0 : i32
    %c0_i32_0 = arith.constant 0 : i32
    %c0_i32_1 = arith.constant 0 : i32
    return %c0_i32, %c0_i32_0 : i32, i32
  }
  func.func @transform_6(%arg0: i32) -> (i32, i32) {
    %c0_i32 = arith.constant 0 : i32
    %c0_i32_0 = arith.constant 0 : i32
    %c0_i32_1 = arith.constant 0 : i32
    return %c0_i32, %c0_i32_0 : i32, i32
  }
  func.func @transform_7(%arg0: i32) -> (i32, i32) {
    %c0_i32 = arith.constant 0 : i32
    %c0_i32_0 = arith.constant 0 : i32
    %c0_i32_1 = arith.constant 0 : i32
    return %c0_i32, %c0_i32_0 : i32, i32
  }
  func.func @transform_8(%arg0: i32) -> (i32, i32) {
    %c0_i32 = arith.constant 0 : i32
    %c0_i32_0 = arith.constant 0 : i32
    %c0_i32_1 = arith.constant 0 : i32
    return %c0_i32, %c0_i32_0 : i32, i32
  }
  func.func @transform_9(%arg0: i32) -> (i32, i32) {
    %c0_i32 = arith.constant 0 : i32
    %c0_i32_0 = arith.constant 0 : i32
    %c0_i32_1 = arith.constant 0 : i32
    return %c0_i32, %c0_i32_0 : i32, i32
  }
  func.func @transform_10(%arg0: i32) -> (i32, i32) {
    %c0_i32 = arith.constant 0 : i32
    %c0_i32_0 = arith.constant 0 : i32
    %c0_i32_1 = arith.constant 0 : i32
    return %c0_i32, %c0_i32_0 : i32, i32
  }
  func.func @transform_11(%arg0: i32) -> (i32, i32) {
    %c0_i32 = arith.constant 0 : i32
    %c0_i32_0 = arith.constant 0 : i32
    %c0_i32_1 = arith.constant 0 : i32
    return %c0_i32, %c0_i32_0 : i32, i32
  }
  func.func @transform_12(%arg0: i32) -> (i32, i32) {
    %c0_i32 = arith.constant 0 : i32
    %c0_i32_0 = arith.constant 0 : i32
    %c0_i32_1 = arith.constant 0 : i32
    return %c0_i32, %c0_i32_0 : i32, i32
  }
  func.func @transform_13(%arg0: i32) -> (i32, i32) {
    %c0_i32 = arith.constant 0 : i32
    %c0_i32_0 = arith.constant 0 : i32
    %c0_i32_1 = arith.constant 0 : i32
    return %c0_i32, %c0_i32_0 : i32, i32
  }
  func.func @transform_14(%arg0: i32) -> (i32, i32) {
    %c0_i32 = arith.constant 0 : i32
    %c0_i32_0 = arith.constant 0 : i32
    %c0_i32_1 = arith.constant 0 : i32
    return %c0_i32, %c0_i32_0 : i32, i32
  }
  func.func @transform_15(%arg0: i32) -> (i32, i32) {
    %c0_i32 = arith.constant 0 : i32
    %c0_i32_0 = arith.constant 0 : i32
    %c0_i32_1 = arith.constant 0 : i32
    return %c0_i32, %c0_i32_0 : i32, i32
  }
  func.func @transform_16(%arg0: i32) -> (i32, i32) {
    %c0_i32 = arith.constant 0 : i32
    %c0_i32_0 = arith.constant 0 : i32
    %c0_i32_1 = arith.constant 0 : i32
    return %c0_i32, %c0_i32_0 : i32, i32
  }
  func.func @transform_17(%arg0: i32) -> (i32, i32) {
    %c0_i32 = arith.constant 0 : i32
    %c0_i32_0 = arith.constant 0 : i32
    %c0_i32_1 = arith.constant 0 : i32
    return %c0_i32, %c0_i32_0 : i32, i32
  }
  func.func @transform_18(%arg0: i32) -> (i32, i32) {
    %c0_i32 = arith.constant 0 : i32
    %c0_i32_0 = arith.constant 0 : i32
    %c0_i32_1 = arith.constant 0 : i32
    return %c0_i32, %c0_i32_0 : i32, i32
  }
  func.func @transform_19(%arg0: i32) -> (i32, i32) {
    %c0_i32 = arith.constant 0 : i32
    %c0_i32_0 = arith.constant 0 : i32
    %c0_i32_1 = arith.constant 0 : i32
    return %c0_i32, %c0_i32_0 : i32, i32
  }
  func.func @transform_20(%arg0: i32) -> (i32, i32) {
    %c0_i32 = arith.constant 0 : i32
    %c0_i32_0 = arith.constant 0 : i32
    %c0_i32_1 = arith.constant 0 : i32
    return %c0_i32, %c0_i32_0 : i32, i32
  }
  func.func @transform_21(%arg0: i32) -> (i32, i32) {
    %c0_i32 = arith.constant 0 : i32
    %c0_i32_0 = arith.constant 0 : i32
    %c0_i32_1 = arith.constant 0 : i32
    return %c0_i32, %c0_i32_0 : i32, i32
  }
  func.func @transform_22(%arg0: i32) -> (i32, i32) {
    %c0_i32 = arith.constant 0 : i32
    %c0_i32_0 = arith.constant 0 : i32
    %c0_i32_1 = arith.constant 0 : i32
    return %c0_i32, %c0_i32_0 : i32, i32
  }
  func.func @transform_23(%arg0: i32) -> (i32, i32) {
    %c0_i32 = arith.constant 0 : i32
    %c0_i32_0 = arith.constant 0 : i32
    %c0_i32_1 = arith.constant 0 : i32
    return %c0_i32, %c0_i32_0 : i32, i32
  }
  func.func @transform_24(%arg0: i32) -> (i32, i32) {
    %c0_i32 = arith.constant 0 : i32
    %c0_i32_0 = arith.constant 0 : i32
    %c0_i32_1 = arith.constant 0 : i32
    return %c0_i32, %c0_i32_0 : i32, i32
  }
  func.func @transform_25(%arg0: i32) -> (i32, i32) {
    %c0_i32 = arith.constant 0 : i32
    %c0_i32_0 = arith.constant 0 : i32
    %c0_i32_1 = arith.constant 0 : i32
    return %c0_i32, %c0_i32_0 : i32, i32
  }
  func.func @transform_26(%arg0: i32) -> (i32, i32) {
    %c0_i32 = arith.constant 0 : i32
    %c0_i32_0 = arith.constant 0 : i32
    %c0_i32_1 = arith.constant 0 : i32
    return %c0_i32, %c0_i32_0 : i32, i32
  }
  func.func @transform_27(%arg0: i32) -> (i32, i32) {
    %c0_i32 = arith.constant 0 : i32
    %c0_i32_0 = arith.constant 0 : i32
    %c0_i32_1 = arith.constant 0 : i32
    return %c0_i32, %c0_i32_0 : i32, i32
  }
  func.func @transform_28(%arg0: i32) -> (i32, i32) {
    %c0_i32 = arith.constant 0 : i32
    %c0_i32_0 = arith.constant 0 : i32
    return %arg0, %c0_i32 : i32, i32
  }
}

</mosaic_0001>

<bundles_post_ra>
// kernel: tpu_custom_call.1
= control target key start
LH: loop header
LB: loop body
LE: loop exit
PB: predicated region body
PF: predicated region fallthrough
CT: control target
= control target key end

     0   :  { %s18287_s0 = inlined_call_operand.hbm [shape: f32[256,128], index: 0, kind: input, shape index: {}]   ;;  %s18288_s1 = inlined_call_operand.hbm [shape: f32[128,128], index: 1, kind: input, shape index: {}]   ;;  %s18289_s2 = inlined_call_operand.vmem [shape: f32[1,128], index: 2, kind: input, shape index: {}]   ;;  %s18290_s3 = inlined_call_operand.hbm [shape: f32[1,128], index: 3, kind: input, shape index: {}]   ;;  %s18291_s4 = inlined_call_operand.hbm [shape: bf16[128,384], index: 4, kind: input, shape index: {}]   ;;  %s18292_s5 = inlined_call_operand.hbm [shape: bf16[128,128], index: 5, kind: input, shape index: {}]   ;;  %s18293_s6 = inlined_call_operand.vmem [shape: f32[1,128], index: 6, kind: input, shape index: {}]   ;;  %s18294_s7 = inlined_call_operand.vmem [shape: f32[1,128], index: 7, kind: input, shape index: {}]   ;;  %s18295_s8 = inlined_call_operand.vmem [shape: f32[1,128], index: 8, kind: input, shape index: {}]   ;;  %s18296_s9 = inlined_call_operand.hbm [shape: bf16[128,512], index: 9, kind: input, shape index: {}]   ;;  %s18297_s10 = inlined_call_operand.vmem [shape: f32[1,512], index: 10, kind: input, shape index: {}]   ;;  %s18298_s11 = inlined_call_operand.hbm [shape: bf16[512,128], index: 11, kind: input, shape index: {}]   ;;  %s18299_s12 = inlined_call_operand.vmem [shape: f32[1,128], index: 12, kind: input, shape index: {}]   ;;  %s18300_s13 = inlined_call_operand.vmem [shape: f32[1,128], index: 13, kind: input, shape index: {}]   ;;  %s18301_s14 = inlined_call_operand.vmem [shape: f32[1,128], index: 14, kind: input, shape index: {}]   ;;  %s18302_s15 = inlined_call_operand.hbm [shape: bf16[128,384], index: 15, kind: input, shape index: {}]   ;;  %s18303_s16 = inlined_call_operand.hbm [shape: bf16[128,128], index: 16, kind: input, shape index: {}]   ;;  %s18304_s17 = inlined_call_operand.vmem [shape: f32[1,128], index: 17, kind: input, shape index: {}]   ;;  %s18305_s18 = inlined_call_operand.vmem [shape: f32[1,128], index: 18, kind: input, shape index: {}]   ;;  %s18306_s19 = inlined_call_operand.vmem [shape: f32[1,128], index: 19, kind: input, shape index: {}]   ;;  %s18307_s20 = inlined_call_operand.hbm [shape: bf16[128,512], index: 20, kind: input, shape index: {}]   ;;  %s18308_s21 = inlined_call_operand.vmem [shape: f32[1,512], index: 21, kind: input, shape index: {}]   ;;  %s18309_s22 = inlined_call_operand.hbm [shape: bf16[512,128], index: 22, kind: input, shape index: {}]   ;;  %s18310_s23 = inlined_call_operand.vmem [shape: f32[1,128], index: 23, kind: input, shape index: {}]   ;;  %s18311_s24 = inlined_call_operand.vmem [shape: f32[1,128], index: 24, kind: input, shape index: {}]   ;;  %s18312_s25 = inlined_call_operand.vmem [shape: f32[1,128], index: 25, kind: input, shape index: {}]   ;;  %s18313_s26 = inlined_call_operand.hbm [shape: bf16[128,256], index: 26, kind: input, shape index: {}]   ;;  %s18314_s27 = inlined_call_operand.vmem [shape: f32[1,256], index: 27, kind: input, shape index: {}]   ;;  %s18315_s28 = inlined_call_operand.hbm [shape: f32[256,256], index: 28, kind: output, shape index: {}]  }
   0x1   :  { %18513 = sst [smem:[#allocation105_spill]] %s18287_s0 }
   0x2   :  { %18514 = sst [smem:[#allocation106_spill]] %s18288_s1 }
   0x3   :  { %18515 = sst [smem:[#allocation107_spill]] %s18289_s2 }
   0x4   :  { %18516 = sst [smem:[#allocation108_spill]] %s18290_s3 }
   0x5   :  { %18517 = sst [smem:[#allocation109_spill]] %s18291_s4 }
   0x6   :  { %18518 = sst [smem:[#allocation110_spill]] %s18292_s5 }
   0x7   :  { %18519 = sst [smem:[#allocation111_spill]] %s18293_s6 }
   0x8   :  { %18520 = sst [smem:[#allocation112_spill]] %s18294_s7 }
   0x9   :  { %18521 = sst [smem:[#allocation113_spill]] %s18295_s8 }
   0xa   :  { %18522 = sst [smem:[#allocation114_spill]] %s18296_s9 }
   0xb   :  { %18523 = sst [smem:[#allocation115_spill]] %s18297_s10 }
   0xc   :  { %18524 = sst [smem:[#allocation116_spill]] %s18298_s11 }
   0xd   :  { %18525 = sst [smem:[#allocation117_spill]] %s18299_s12 }
   0xe   :  { %18526 = sst [smem:[#allocation118_spill]] %s18301_s14 }
   0xf   :  { %18527 = sst [smem:[#allocation119_spill]] %s18302_s15 }
  0x10   :  { %18528 = sst [smem:[#allocation120_spill]] %s18303_s16 }
  0x11   :  { %18529 = sst [smem:[#allocation121_spill]] %s18304_s17 }
  0x12   :  { %18530 = sst [smem:[#allocation122_spill]] %s18305_s18 }
  0x13   :  { %18531 = sst [smem:[#allocation123_spill]] %s18306_s19 }
  0x14   :  { %18532 = sst [smem:[#allocation124_spill]] %s18307_s20 }
  0x15   :  { %18533 = sst [smem:[#allocation125_spill]] %s18308_s21 }
  0x16   :  { %18534 = sst [smem:[#allocation126_spill]] %s18310_s23 }
  0x17   :  { %18535 = sst [smem:[#allocation127_spill]] %s18311_s24 }
  0x18   :  { %18536 = sst [smem:[#allocation128_spill]] %s18312_s25 }
  0x19   :  { %18537 = sst [smem:[#allocation129_spill]] %s18314_s27 }
  0x1a   :  { %18538 = sst [smem:[#allocation130_spill]] %s18315_s28 }
  0x1b   :  { %33 = vsyncpa [#allocation3], 0 }
  0x1c   :  { %35 = vsyncpa [#allocation3 + $0x1], 0 }
  0x1d   :  { %36 = vsyncpa [#allocation6], 0 }
  0x1e   :  { %37 = vsyncpa [#allocation9], 0 }
  0x1f   :  { %38 = vsyncpa [#allocation12], 0 }
  0x20   :  { %39 = vsyncpa [#allocation15], 0 }
  0x21   :  { %40 = vsyncpa [#allocation18], 0 }
  0x22   :  { %41 = vsyncpa [#allocation21], 0 }
  0x23   :  { %42 = vsyncpa [#allocation4], 0 }
  0x24   :  { %44 = vsyncpa [#allocation4 + $0x1], 0  ;;  %s13757_s8 = smov 0   ;;  %s13759_s5 = smov 0  }
  0x25   :  { %s13761_s9 = smov 0   ;;  %s13763_s30 = smov 0  }
  0x26 LB: > { %s13585_s3 = smov [#allocation5]   ;;  %s13778_s10 = sadd.s32 4294967295, %s13583_s30   ;;  %s13583_s30 = sphi %s13763_s30, %s19227_s30   ;;  %s13579_s9 = sphi %s13761_s9, %s19226_s9   ;;  %s13575_s5 = sphi %s13759_s5, %s19225_s5   ;;  %s13571_s8 = sphi %s13757_s8, %s19224_s8  }
  0x27   : > { %s686_s6 = sshll.u32 %s13585_s3, 4  ;;  %p10203_p0 = scmp.ge.s32.totalorder %s13583_s30, 1  ;;  %s13783_s6 = int_to_ptr.vmem [resolvable:$true] %s686_s6 }
  0x28   : > { %p18328_p1 = scmp.eq.s32.totalorder %s13778_s10, 0  ;;  %p674_p2 = scmp.lt.s32.totalorder %s13583_s30, 3 }
  0x29   : > { %s13586_s11 = smov [#allocation8]   ;;  %s13587_s7 = smov [#allocation11]  }
  0x2a   : > { %p13785_p3 = pnand %p10203_p0, %p674_p2  ;;  %s713_s29 = sshll.u32 %s13586_s11, 4  ;;  %s13798_s29 = int_to_ptr.vmem [resolvable:$true] %s713_s29 }
  0x2b   : > { %s13800_s12 = sshll.u32 %s13587_s7, 4  ;;  %s18541_s3 = sld [smem:[#allocation106_spill]]  ;;  %s749_s12 = int_to_ptr.vmem [resolvable:$true] %s13800_s12 }
  0x2c   : > { %s18539_s0 = scalar_select %p13785_p3, 1, 0 }
  0x2d   : > { %p11856_p5 = pneg %p13785_p3 }
  0x2f   : > { %p13794_p6 = pnand %p11856_p5, %p18328_p1 }
  0x31   : > { %s13155_s28 = scalar_lea.hbm %s18541_s3, 2048  ;;  %p13810_p8 = pneg %p13794_p6 }
  0x32   : > { %p13156_p7 = scmp.ne.s32.totalorder %s18541_s3, %s13155_s28  ;;  %p13162_p11 = scmp.lt.u32.totalorder %s13155_s28, %s18541_s3 }
  0x34   : > { %p13158_p9 = pnand %p13810_p8, %p13156_p7 }
  0x36   : > { %p13159_p10 = pneg %p13158_p9 }
  0x38   : > { %p13164_p12 = pnand %p13162_p11, %p13159_p10 }
  0x3a   : > { %13167 = shalt.err (!%p13164_p12)
}
  0x3b   : > { %s13168_s25 = scalar_lea.vmem %s13783_s6, 2048  ;;  %p13176_p5 = scmp.lt.s32.totalorder %s13783_s6, %s13783_s6 }
  0x3c   : > { %p13169_p13 = scmp.ne.s32.totalorder %s13783_s6, %s13168_s25  ;;  %p13177_p4 = scmp.lt.s32.totalorder %s13168_s25, %s13168_s25 }
  0x3e   : > { %p13171_p0 = pnand %p13169_p13, %p13810_p8  ;;  %p13178_p7 = por %p13177_p4, %p13176_p5 }
  0x40   : > { %p13172_p2 = pneg %p13171_p0 }
  0x42   : > { %p13179_p9 = pnand %p13178_p7, %p13172_p2 }
  0x44   : > { %13182 = shalt.err (!%p13179_p9)
}
  0x45   : > { %s18324_s27 = smov 128   ;;  %s18326_s24 = smov 8  }
  0x46   : > { %11859 = dma.hbm_to_vmem [thread:$0]  (!%p13794_p6), %s18541_s3, 2048, %s13783_s6, [#allocation6], %s18324_s27, %s18324_s27, %s18326_s24  }
  0x47   : > { %s18543_s23 = sld [smem:[#allocation109_spill]] }
  0x4d   : > { %s13183_s25 = scalar_lea.hbm %s18543_s23, 3072 }
  0x4e   : > { %p13184_p4 = scmp.ne.s32.totalorder %s18543_s23, %s13183_s25  ;;  %p13190_p12 = scmp.lt.u32.totalorder %s13183_s25, %s18543_s23 }
  0x50   : > { %p13186_p10 = pnand %p13184_p4, %p13810_p8 }
  0x52   : > { %p13187_p11 = pneg %p13186_p10 }
  0x54   : > { %p13192_p13 = pnand %p13190_p12, %p13187_p11 }
  0x56   : > { %13195 = shalt.err (!%p13192_p13)
}
  0x57   : > { %s13196_s6 = scalar_lea.vmem %s13798_s29, 3072  ;;  %p13204_p7 = scmp.lt.s32.totalorder %s13798_s29, %s13798_s29 }
  0x58   : > { %p13197_p0 = scmp.ne.s32.totalorder %s13798_s29, %s13196_s6  ;;  %p13205_p9 = scmp.lt.s32.totalorder %s13196_s6, %s13196_s6 }
  0x5a   : > { %p13199_p2 = pnand %p13197_p0, %p13810_p8  ;;  %p13206_p4 = por %p13205_p9, %p13204_p7 }
  0x5c   : > { %p13200_p5 = pneg %p13199_p2 }
  0x5e   : > { %p13207_p10 = pnand %p13206_p4, %p13200_p5 }
  0x60   : > { %13210 = shalt.err (!%p13207_p10)
}
  0x61   : > { %s18330_s19 = smov 192   ;;  %s18331_s17 = smov 12  }
  0x62   : > { %11865 = dma.hbm_to_vmem [thread:$0]  (!%p13794_p6), %s18543_s23, 3072, %s13798_s29, [#allocation9], %s18330_s19, %s18330_s19, %s18331_s17  }
  0x63   : > { %s18544_s4 = sld [smem:[#allocation114_spill]] }
  0x69   : > { %s13211_s7 = scalar_lea.hbm %s18544_s4, 4096 }
  0x6a   : > { %p13212_p11 = scmp.ne.s32.totalorder %s18544_s4, %s13211_s7  ;;  %p13218_p0 = scmp.lt.u32.totalorder %s13211_s7, %s18544_s4 }
  0x6c   : > { %p13214_p12 = pnand %p13212_p11, %p13810_p8 }
  0x6e   : > { %p13215_p13 = pneg %p13214_p12 }
  0x70   : > { %p13220_p2 = pnand %p13218_p0, %p13215_p13 }
  0x72   : > { %13223 = shalt.err (!%p13220_p2)
}
  0x73   : > { %s13224_s18 = scalar_lea.vmem %s749_s12, 4096  ;;  %p13232_p4 = scmp.lt.s32.totalorder %s749_s12, %s749_s12 }
  0x74   : > { %p13225_p5 = scmp.ne.s32.totalorder %s749_s12, %s13224_s18  ;;  %p13233_p10 = scmp.lt.s32.totalorder %s13224_s18, %s13224_s18 }
  0x76   : > { %p13227_p7 = pnand %p13225_p5, %p13810_p8  ;;  %p13234_p1 = por %p13233_p10, %p13232_p4 }
  0x78   : > { %p13228_p9 = pneg %p13227_p7 }
  0x7a   : > { %p13235_p3 = pnand %p13234_p1, %p13228_p9 }
  0x7c   : > { %13238 = shalt.err (!%p13235_p3)
}
  0x7d   : > { %s13592_s29 = smov 256   ;;  %s13593_s21 = smov 16  }
  0x7e   : > { %11871 = dma.hbm_to_vmem [thread:$0]  (!%p13794_p6), %s18544_s4, 4096, %s749_s12, [#allocation12], %s13592_s29, %s13592_s29, %s13593_s21  }
  0x7f   : > { %s13594_s28 = smov [#allocation14]   ;;  %s13595_s7 = smov [#allocation17]  }
  0x80   : > { %s786_s1 = sshll.u32 %s13594_s28, 4  ;;  %s821_s25 = sshll.u32 %s13595_s7, 4  ;;  %s787_s1 = int_to_ptr.vmem [resolvable:$true] %s786_s1  ;;  %s822_s25 = int_to_ptr.vmem [resolvable:$true] %s821_s25 }
  0x81   : > { %s18545_s15 = sld [smem:[#allocation119_spill]] }
  0x87   : > { %s13239_s19 = scalar_lea.hbm %s18545_s15, 3072 }
  0x88   : > { %p13240_p1 = scmp.ne.s32.totalorder %s18545_s15, %s13239_s19  ;;  %p13246_p12 = scmp.lt.u32.totalorder %s13239_s19, %s18545_s15 }
  0x8a   : > { %p13242_p3 = pnand %p13240_p1, %p13810_p8 }
  0x8c   : > { %p13243_p11 = pneg %p13242_p3 }
  0x8e   : > { %p13248_p13 = pnand %p13246_p12, %p13243_p11 }
  0x90   : > { %13251 = shalt.err (!%p13248_p13)
}
  0x91   : > { %s13252_s12 = scalar_lea.vmem %s787_s1, 3072  ;;  %p13260_p7 = scmp.lt.s32.totalorder %s787_s1, %s787_s1 }
  0x92   : > { %p13253_p0 = scmp.ne.s32.totalorder %s787_s1, %s13252_s12  ;;  %p13261_p9 = scmp.lt.s32.totalorder %s13252_s12, %s13252_s12 }
  0x94   : > { %p13255_p2 = pnand %p13253_p0, %p13810_p8  ;;  %p13262_p4 = por %p13261_p9, %p13260_p7 }
  0x96   : > { %p13256_p5 = pneg %p13255_p2 }
  0x98   : > { %p13263_p10 = pnand %p13262_p4, %p13256_p5 }
  0x9a   : > { %13266 = shalt.err (!%p13263_p10)
}
  0x9b   : > { %s18546_s3 = smov 12   ;;  %s18547_s17 = smov 192  }
  0x9c   : > { %11877 = dma.hbm_to_vmem [thread:$0]  (!%p13794_p6), %s18545_s15, 3072, %s787_s1, [#allocation15], %s18547_s17, %s18547_s17, %s18546_s3  }
  0x9d   : > { %s18548_s20 = sld [smem:[#allocation124_spill]] }
  0xa3   : > { %s13267_s24 = scalar_lea.hbm %s18548_s20, 4096 }
  0xa4   : > { %p13268_p1 = scmp.ne.s32.totalorder %s18548_s20, %s13267_s24  ;;  %p13274_p12 = scmp.lt.u32.totalorder %s13267_s24, %s18548_s20 }
  0xa6   : > { %p13270_p3 = pnand %p13268_p1, %p13810_p8 }
  0xa8   : > { %p13271_p11 = pneg %p13270_p3 }
  0xaa   : > { %p13276_p13 = pnand %p13274_p12, %p13271_p11 }
  0xac   : > { %13279 = shalt.err (!%p13276_p13)
}
  0xad   : > { %s13280_s12 = scalar_lea.vmem %s822_s25, 4096  ;;  %p13288_p7 = scmp.lt.s32.totalorder %s822_s25, %s822_s25 }
  0xae   : > { %p13281_p0 = scmp.ne.s32.totalorder %s822_s25, %s13280_s12  ;;  %p13289_p9 = scmp.lt.s32.totalorder %s13280_s12, %s13280_s12 }
  0xb0   : > { %p13283_p2 = pnand %p13281_p0, %p13810_p8  ;;  %p13290_p4 = por %p13289_p9, %p13288_p7 }
  0xb2   : > { %p13284_p5 = pneg %p13283_p2 }
  0xb4   : > { %p13291_p10 = pnand %p13290_p4, %p13284_p5 }
  0xb6   : > { %13294 = shalt.err (!%p13291_p10)
}
  0xb7   : > { %11883 = dma.hbm_to_vmem [thread:$0]  (!%p13794_p6), %s18548_s20, 4096, %s822_s25, [#allocation18], %s13592_s29, %s13592_s29, %s13593_s21  }
  0xb8   : > { %s13596_s17 = smov [#allocation7]   ;;  %s13597_s23 = smov [#allocation10]  }
  0xb9   : > { %s703_s14 = sshll.u32 %s13596_s17, 4  ;;  %s726_s19 = sshll.u32 %s13597_s23, 4  ;;  %s704_s14 = int_to_ptr.vmem [resolvable:$true] %s703_s14  ;;  %s727_s19 = int_to_ptr.vmem [resolvable:$true] %s726_s19 }
  0xba   : > { %s18549_s28 = sld [smem:[#allocation108_spill]] }
  0xc0   : > { %s13295_s7 = scalar_lea.hbm %s18549_s28, 16 }
  0xc1   : > { %p13296_p1 = scmp.ne.s32.totalorder %s18549_s28, %s13295_s7  ;;  %p13302_p12 = scmp.lt.u32.totalorder %s13295_s7, %s18549_s28 }
  0xc3   : > { %p13298_p3 = pnand %p13296_p1, %p13810_p8 }
  0xc5   : > { %p13299_p11 = pneg %p13298_p3 }
  0xc7   : > { %p13304_p13 = pnand %p13302_p12, %p13299_p11 }
  0xc9   : > { %13307 = shalt.err (!%p13304_p13)
}
  0xca   : > { %s13308_s29 = scalar_lea.vmem %s704_s14, 16  ;;  %s13315_s21 = scalar_lea.vmem %s704_s14, 32 }
  0xcb   : > { %p13309_p0 = scmp.ne.s32.totalorder %s704_s14, %s13308_s29  ;;  %p13316_p7 = scmp.lt.s32.totalorder %s704_s14, %s704_s14 }
  0xcc   : > { %p13317_p9 = scmp.lt.s32.totalorder %s13315_s21, %s13308_s29 }
  0xcd   : > { %p13311_p2 = pnand %p13309_p0, %p13810_p8 }
  0xce   : > { %p13318_p4 = por %p13317_p9, %p13316_p7 }
  0xcf   : > { %p13312_p5 = pneg %p13311_p2 }
  0xd1   : > { %p13319_p10 = pnand %p13318_p4, %p13312_p5 }
  0xd3   : > { %13322 = shalt.err (!%p13319_p10)
}
  0xd4   : > { %11862 = dma.hbm_to_vmem [thread:$0]  (!%p13794_p6), %s18549_s28, 16, %s704_s14, [#allocation6]  }
  0xd5   : > { %s18550_s27 = sld [smem:[#allocation110_spill]] }
  0xdb   : > { %s13323_s24 = scalar_lea.hbm %s18550_s27, 1024 }
  0xdc   : > { %p13324_p1 = scmp.ne.s32.totalorder %s18550_s27, %s13323_s24  ;;  %p13330_p12 = scmp.lt.u32.totalorder %s13323_s24, %s18550_s27 }
  0xde   : > { %p13326_p3 = pnand %p13324_p1, %p13810_p8 }
  0xe0   : > { %p13327_p11 = pneg %p13326_p3 }
  0xe2   : > { %p13332_p13 = pnand %p13330_p12, %p13327_p11 }
  0xe4   : > { %13335 = shalt.err (!%p13332_p13)
}
  0xe5   : > { %s13336_s1 = scalar_lea.vmem %s727_s19, 1024  ;;  %p13344_p7 = scmp.lt.s32.totalorder %s727_s19, %s727_s19 }
  0xe6   : > { %p13337_p0 = scmp.ne.s32.totalorder %s727_s19, %s13336_s1  ;;  %p13345_p9 = scmp.lt.s32.totalorder %s13336_s1, %s13336_s1 }
  0xe8   : > { %p13339_p2 = pnand %p13337_p0, %p13810_p8  ;;  %p13346_p4 = por %p13345_p9, %p13344_p7 }
  0xea   : > { %p13340_p5 = pneg %p13339_p2 }
  0xec   : > { %p13347_p10 = pnand %p13346_p4, %p13340_p5 }
  0xee   : > { %13350 = shalt.err (!%p13347_p10)
}
  0xef   : > { %s13598_s14 = smov 64   ;;  %s13599_s29 = smov 4  }
  0xf0   : > { %11868 = dma.hbm_to_vmem [thread:$0]  (!%p13794_p6), %s18550_s27, 1024, %s727_s19, [#allocation9], %s13598_s14, %s13598_s14, %s13599_s29  }
  0xf1   : > { %s13600_s3 = smov [#allocation13]   ;;  %s13601_s23 = smov [#allocation16]  }
  0xf2   : > { %s764_s17 = sshll.u32 %s13600_s3, 4  ;;  %s799_s24 = sshll.u32 %s13601_s23, 4  ;;  %s765_s17 = int_to_ptr.vmem [resolvable:$true] %s764_s17  ;;  %s800_s24 = int_to_ptr.vmem [resolvable:$true] %s799_s24 }
  0xf3   : > { %s18551_s18 = sld [smem:[#allocation116_spill]] }
  0xf9   : > { %s13351_s12 = scalar_lea.hbm %s18551_s18, 4096 }
  0xfa   : > { %p13352_p1 = scmp.ne.s32.totalorder %s18551_s18, %s13351_s12  ;;  %p13358_p12 = scmp.lt.u32.totalorder %s13351_s12, %s18551_s18 }
  0xfc   : > { %p13354_p3 = pnand %p13352_p1, %p13810_p8 }
  0xfe   : > { %p13355_p11 = pneg %p13354_p3 }
 0x100   : > { %p13360_p13 = pnand %p13358_p12, %p13355_p11 }
 0x102   : > { %13363 = shalt.err (!%p13360_p13)
}
 0x103   : > { %s13364_s19 = scalar_lea.vmem %s765_s17, 4096  ;;  %p13372_p7 = scmp.lt.s32.totalorder %s765_s17, %s765_s17 }
 0x104   : > { %p13365_p0 = scmp.ne.s32.totalorder %s765_s17, %s13364_s19  ;;  %p13373_p9 = scmp.lt.s32.totalorder %s13364_s19, %s13364_s19 }
 0x106   : > { %p13367_p2 = pnand %p13365_p0, %p13810_p8  ;;  %p13374_p4 = por %p13373_p9, %p13372_p7 }
 0x108   : > { %p13368_p5 = pneg %p13367_p2 }
 0x10a   : > { %p13375_p10 = pnand %p13374_p4, %p13368_p5 }
 0x10c   : > { %13378 = shalt.err (!%p13375_p10)
}
 0x10d   : > { %11874 = dma.hbm_to_vmem [thread:$0]  (!%p13794_p6), %s18551_s18, 4096, %s765_s17, [#allocation12], %s13598_s14, %s13598_s14, %s13599_s29  }
 0x10e   : > { %s18552_s16 = sld [smem:[#allocation120_spill]] }
 0x114   : > { %s13379_s25 = scalar_lea.hbm %s18552_s16, 1024 }
 0x115   : > { %p13380_p1 = scmp.ne.s32.totalorder %s18552_s16, %s13379_s25  ;;  %p13386_p12 = scmp.lt.u32.totalorder %s13379_s25, %s18552_s16 }
 0x117   : > { %p13382_p3 = pnand %p13380_p1, %p13810_p8 }
 0x119   : > { %p13383_p11 = pneg %p13382_p3 }
 0x11b   : > { %p13388_p13 = pnand %p13386_p12, %p13383_p11 }
 0x11d   : > { %13391 = shalt.err (!%p13388_p13)
}
 0x11e   : > { %s13392_s12 = scalar_lea.vmem %s800_s24, 1024  ;;  %p13400_p7 = scmp.lt.s32.totalorder %s800_s24, %s800_s24 }
 0x11f   : > { %p13393_p0 = scmp.ne.s32.totalorder %s800_s24, %s13392_s12  ;;  %p13401_p9 = scmp.lt.s32.totalorder %s13392_s12, %s13392_s12 }
 0x121   : > { %p13395_p2 = pnand %p13393_p0, %p13810_p8  ;;  %p13402_p4 = por %p13401_p9, %p13400_p7 }
 0x123   : > { %p13396_p5 = pneg %p13395_p2 }
 0x125   : > { %p13403_p10 = pnand %p13402_p4, %p13396_p5 }
 0x127   : > { %13406 = shalt.err (!%p13403_p10)
}
 0x128   : > { %11880 = dma.hbm_to_vmem [thread:$0]  (!%p13794_p6), %s18552_s16, 1024, %s800_s24, [#allocation15], %s13598_s14, %s13598_s14, %s13599_s29  }
 0x129   : > { %s13602_s19 = smov [#allocation19]   ;;  %s13603_s20 = smov [#allocation20]  }
 0x12a   : > { %s837_s15 = sshll.u32 %s13602_s19, 4  ;;  %s859_s4 = sshll.u32 %s13603_s20, 4  ;;  %s838_s15 = int_to_ptr.vmem [resolvable:$true] %s837_s15  ;;  %s860_s4 = int_to_ptr.vmem [resolvable:$true] %s859_s4 }
 0x12b   : > { %s13407_s3 = scalar_lea.hbm %s18309_s22, 4096 }
 0x12c   : > { %p13408_p1 = scmp.ne.s32.totalorder %s18309_s22, %s13407_s3  ;;  %p13414_p12 = scmp.lt.u32.totalorder %s13407_s3, %s18309_s22 }
 0x12e   : > { %p13410_p3 = pnand %p13408_p1, %p13810_p8 }
 0x130   : > { %p13411_p11 = pneg %p13410_p3 }
 0x132   : > { %p13416_p13 = pnand %p13414_p12, %p13411_p11 }
 0x134   : > { %13419 = shalt.err (!%p13416_p13)
}
 0x135   : > { %s13420_s24 = scalar_lea.vmem %s838_s15, 4096  ;;  %p13428_p7 = scmp.lt.s32.totalorder %s838_s15, %s838_s15 }
 0x136   : > { %p13421_p0 = scmp.ne.s32.totalorder %s838_s15, %s13420_s24  ;;  %p13429_p9 = scmp.lt.s32.totalorder %s13420_s24, %s13420_s24 }
 0x138   : > { %p13423_p2 = pnand %p13421_p0, %p13810_p8  ;;  %p13430_p4 = por %p13429_p9, %p13428_p7 }
 0x13a   : > { %p13424_p5 = pneg %p13423_p2 }
 0x13c   : > { %p13431_p10 = pnand %p13430_p4, %p13424_p5 }
 0x13e   : > { %13434 = shalt.err (!%p13431_p10)
}
 0x13f   : > { %11886 = dma.hbm_to_vmem [thread:$0]  (!%p13794_p6), %s18309_s22, 4096, %s838_s15, [#allocation18], %s13598_s14, %s13598_s14, %s13599_s29  }
 0x140   : > { %s13435_s21 = scalar_lea.hbm %s18313_s26, 2048 }
 0x141   : > { %p13436_p1 = scmp.ne.s32.totalorder %s18313_s26, %s13435_s21  ;;  %p13442_p12 = scmp.lt.u32.totalorder %s13435_s21, %s18313_s26 }
 0x143   : > { %p13438_p3 = pnand %p13436_p1, %p13810_p8 }
 0x145   : > { %p13439_p11 = pneg %p13438_p3 }
 0x147   : > { %p13444_p13 = pnand %p13442_p12, %p13439_p11 }
 0x149   : > { %13447 = shalt.err (!%p13444_p13)
}
 0x14a   : > { %s13448_s6 = scalar_lea.vmem %s860_s4, 2048  ;;  %p13456_p7 = scmp.lt.s32.totalorder %s860_s4, %s860_s4 }
 0x14b   : > { %p13449_p0 = scmp.ne.s32.totalorder %s860_s4, %s13448_s6  ;;  %p13457_p9 = scmp.lt.s32.totalorder %s13448_s6, %s13448_s6 }
 0x14d   : > { %p13451_p2 = pnand %p13449_p0, %p13810_p8  ;;  %p13458_p4 = por %p13457_p9, %p13456_p7 }
 0x14f   : > { %p13452_p5 = pneg %p13451_p2 }
 0x151   : > { %p13459_p10 = pnand %p13458_p4, %p13452_p5 }
 0x153   : > { %13462 = shalt.err (!%p13459_p10)
}
 0x154   : > { %s18553_s14 = smov 8   ;;  %s18554_s29 = smov 128  }
 0x155   : > { %11889 = dma.hbm_to_vmem [thread:$0]  (!%p13794_p6), %s18313_s26, 2048, %s860_s4, [#allocation21], %s18554_s29, %s18554_s29, %s18553_s14  }
 0x156   : > { %s10202_s2 = sadd.s32 4294967294, %s13583_s30   ;;  %s14049_s11 = sadd.s32 1, %s13583_s30  }
 0x157   : > { %s57_s24 = sadd.s32 1, %s13579_s9  ;;  %s54_s17 = ssub.s32 %s13583_s30, %s14049_s11 }
 0x158   : > { %p64_p8 = scmp.ne.s32.totalorder %s13579_s9, %s13575_s5  ;;  %p55_p1 = scmp.eq.s32.totalorder %s54_s17, 0 }
 0x159   : > { %p65_p3 = scmp.eq.s32.totalorder %s13583_s30, 0  ;;  %p70_p11 = scmp.ne.s32.totalorder %s13575_s5, %s13571_s8 }
 0x15a   : > { %p661_p12 = scmp.eq.s32.totalorder %s13778_s10, 1  ;;  %p18555_p0 = scmp.eq.s32.totalorder %s13778_s10, 0 }
 0x15b   : > { %s14061_s1 = scalar_select %p55_p1, %s13579_s9, %s57_s24  }
 0x15c   : > { %p66_p13 = por %p65_p3, %p64_p8  ;;  %p14065_p2 = por %p18555_p0, %p70_p11 }
 0x15d   : > { %p14069_p6 = por %p661_p12, %p64_p8  ;;  %p667_p5 = scmp.eq.s32.totalorder %s10202_s2, 1 }
 0x15e   : > { %p11909_p7 = scmp.lt.s32.totalorder %s13583_s30, 2  ;;  %s876_s20 = sand.u32 1, %s13579_s9  }
 0x15f   : > { %s18557_s4 = scalar_select %p14069_p6, 1, 0 }
 0x160   : > { %p14075_p9 = por %p667_p5, %p70_p11  ;;  %s10216_s25 = sshll.u32 %s876_s20, 7 }
 0x161   : > { %s10525_s3 = sshll.u32 %s13583_s30, 11  ;;  %s18559_s6 = sld [smem:[#allocation105_spill]] }
 0x162   : > { %s18558_s21 = scalar_select %p14075_p9, 1, 0 }
 0x163   : > { %s880_s12 = scalar_lea.vmem [#allocation2], %s10216_s25  ;;  %p14085_p4 = pnand %p11909_p7, %p66_p13 }
 0x164   : > { %s887_s24 = sshll.u32 %s880_s12, 4  ;;  %s14091_s17 = scalar_lea.sflag [#allocation3], %s876_s20  ;;  %s14089_s24 = int_to_ptr.vmem [resolvable:$true] %s887_s24 }
 0x165   : > { %p13465_p8 = pneg %p14085_p4 }
 0x167   : > { %s14083_s15 = scalar_lea.hbm %s18559_s6, %s10525_s3  ;;  %s13468_s23 = scalar_lea.hbm %s18559_s6, 4096 }
 0x168   : > { %s13463_s16 = scalar_lea.hbm %s14083_s15, 2048  ;;  %p13469_p11 = scmp.lt.u32.totalorder %s14083_s15, %s18559_s6 }
 0x169   : > { %p13464_p10 = scmp.ne.s32.totalorder %s14083_s15, %s13463_s16  ;;  %p13470_p12 = scmp.lt.u32.totalorder %s13468_s23, %s13463_s16 }
 0x16a   : > { %p13472_p0 = scmp.lt.u32.totalorder %s13463_s16, %s14083_s15 }
 0x16b   : > { %p13466_p1 = pnand %p13465_p8, %p13464_p10  ;;  %p13471_p13 = por %p13470_p12, %p13469_p11 }
 0x16d   : > { %p13467_p3 = pneg %p13466_p1  ;;  %p13473_p5 = por %p13472_p0, %p13471_p13 }
 0x16f   : > { %p13474_p7 = pnand %p13473_p5, %p13467_p3 }
 0x171   : > { %13477 = shalt.err (!%p13474_p7)
}
 0x172   : > { %s13478_s20 = scalar_lea.vmem %s14089_s24, 2048  ;;  %s13604_s25 = smov [#allocation2]  }
 0x173   : > { %p13479_p10 = scmp.ne.s32.totalorder %s14089_s24, %s13478_s20  ;;  %s13483_s3 = sshll.u32 %s13604_s25, 4  ;;  %s13484_s3 = int_to_ptr.vmem [resolvable:$false] %s13483_s3 }
 0x174   : > { %s13485_s7 = scalar_lea.vmem %s13484_s3, 4096  ;;  %p13486_p6 = scmp.lt.s32.totalorder %s14089_s24, %s13484_s3 }
 0x175   : > { %p13481_p1 = pnand %p13479_p10, %p13465_p8  ;;  %p13487_p11 = scmp.lt.s32.totalorder %s13485_s7, %s13478_s20 }
 0x177   : > { %p13482_p9 = pneg %p13481_p1  ;;  %p13488_p12 = por %p13487_p11, %p13486_p6 }
 0x179   : > { %p13489_p13 = pnand %p13488_p12, %p13482_p9 }
 0x17b   : > { %13492 = shalt.err (!%p13489_p13)
}
 0x17c   : > { %11893 = dma.hbm_to_vmem [thread:$0]  (!%p14085_p4), %s14083_s15, 2048, %s14089_s24, %s14091_s17, %s18554_s29, %s18554_s29, %s18553_s14  }
 0x17d   : > { %p18561_p8 = scmp.ne.s32.totalorder %s18539_s0, 0 }
 0x17f   : > { %899 = sbr.rel (%p18561_p8) target bundleno = 9322 (0x246a), region = 132 }
 0x186   : > { %s14125_s16 = sand.u32 1, %s13575_s5  }
 0x187   : > { %s10220_s23 = sshll.u32 %s14125_s16, 7  ;;  %s902_s12 = scalar_lea.sflag [#allocation3], %s14125_s16 }
 0x188   : > { %s14129_s20 = scalar_lea.vmem [#allocation2], %s10220_s23 }
 0x189   : > { %13538 = dma.done.wait (%p14065_p2), %s902_s12, 2048  }
 0x18a   : > { %13540 = vsyncadd (%p14065_p2), %s902_s12, 4294965248  ;;  %p18562_p6 = scmp.eq.s32.totalorder %s13778_s10, 0 }
 0x18c   : > { %13542 = dma.done.wait (%p18562_p6), [#allocation6], 2064   ;;  %p18563_p9 = pmov %p18562_p6 }
 0x18d   : > { %p18564_p4 = pmov %p18562_p6 }
 0x18e   : > { %13544 = vsyncadd (%p18563_p9), [#allocation6], 4294965232 }
 0x18f   : > { %13546 = dma.done.wait (%p18564_p4), [#allocation9], 4096   ;;  %p18565_p3 = pmov %p18564_p4 }
 0x191   : > { %13548 = vsyncadd (%p18565_p3), [#allocation9], 4294963200  ;;  %p18566_p0 = pmov %p18565_p3 }
 0x193   : > { %13550 = dma.done.wait (%p18566_p0), [#allocation12], 8192   ;;  %p18567_p5 = pmov %p18566_p0 }
 0x194   : > { %p18568_p2 = pmov %p18566_p0 }
 0x195   : > { %13552 = vsyncadd (%p18567_p5), [#allocation12], 4294959104 }
 0x196   : > { %13554 = dma.done.wait (%p18568_p2), [#allocation15], 4096   ;;  %p18569_p7 = pmov %p18566_p0 }
 0x197   : > { %p18570_p10 = pmov %p18566_p0 }
 0x198   : > { %13556 = vsyncadd (%p18569_p7), [#allocation15], 4294963200 }
 0x199   : > { %13558 = dma.done.wait (%p18570_p10), [#allocation18], 8192   ;;  %p18571_p1 = pmov %p18566_p0 }
 0x19a   : > { %p18572_p11 = pmov %p18566_p0 }
 0x19b   : > { %13560 = vsyncadd (%p18571_p1), [#allocation18], 4294959104 }
 0x19c   : > { %13562 = dma.done.wait (%p18572_p11), [#allocation21], 2048   ;;  %p18573_p12 = pmov %p18566_p0 }
 0x19d   : > { %v1025_v0 = vld [vmem:[%s14129_s20] sm:$0xff]  ;;  %v1027_v2 = vld [vmem:[%s14129_s20 + $0x10] sm:$0xff]  ;;  %v1026_v5 = vld [vmem:[%s14129_s20 + $0x8] sm:$0xff]  ;;  %s18590_s29 = sld [smem:[#allocation107_spill]]  ;;  %vm18353_vm0 = vcmask 261120   ;;  %s13606_s19 = smov 64  }
 0x19e   : > { %13564 = vsyncadd (%p18573_p12), [#allocation21], 4294965248  ;;  %v1041_v1 = vld [vmem:[#allocation5] sm:$0xff]  ;;  %v1043_v4 = vld [vmem:[#allocation5 + $0x10] sm:$0xff]  ;;  %s13607_s15 = smov 96   ;;  %s13608_s24 = smov 32  }
 0x19f   : > { %v14161_v3 = vadd.f32 %v1041_v1, %v1025_v0  ;;  %v1042_v6 = vld [vmem:[#allocation5 + $0x8] sm:$0xff]  ;;  %v14164_v7 = vadd.f32 %v1043_v4, %v1027_v2  ;;  %v1028_v8 = vld [vmem:[%s14129_s20 + $0x18] sm:$0xff]  ;;  %v1029_v12 = vld [vmem:[%s14129_s20 + $0x20] sm:$0xff]  ;;  %s18860_s25 = sld [smem:[#allocation111_spill]]  ;;  %s18877_s23 = sld [smem:[#allocation112_spill]] }
 0x1a0   : > { %v1044_v9 = vld [vmem:[#allocation5 + $0x18] sm:$0xff]  ;;  %v14168_v10 = vadd.f32 %v1042_v6, %v1026_v5  ;;  %v1045_v13 = vld [vmem:[#allocation5 + $0x20] sm:$0xff]  ;;  %v1030_v14 = vld [vmem:[%s14129_s20 + $0x28] sm:$0xff]  ;;  %s18878_s0 = sld [smem:[#allocation113_spill]]  ;;  %s18881_s2 = sld [smem:[#allocation115_spill]] }
 0x1a1   : > { %18574 = vst [vmem:[#allocation31_spill] sm:$0xff] %v14161_v3  ;;  %18575 = vst [vmem:[#allocation32_spill] sm:$0xff] %v14164_v7  ;;  %1110 = vadd.xlane.f32.xlu0 %v14161_v3  ;;  %1114 = vadd.xlane.f32.xlu1 %v14164_v7  ;;  %v14171_v11 = vadd.f32 %v1044_v9, %v1028_v8  ;;  %v1046_v15 = vld [vmem:[#allocation5 + $0x28] sm:$0xff]  ;;  %v14176_v16 = vadd.f32 %v1045_v13, %v1029_v12  ;;  %v1031_v18 = vld [vmem:[%s14129_s20 + $0x30] sm:$0xff]  ;;  %s18883_s3 = sld [smem:[#allocation117_spill]]  ;;  %s19217_s14 = sld [smem:[#allocation127_spill]] }
 0x1a2   : > { %18576 = vst [vmem:[#allocation33_spill] sm:$0xff] %v14168_v10  ;;  %v14179_v17 = vadd.f32 %v1046_v15, %v1030_v14  ;;  %v1047_v19 = vld [vmem:[#allocation5 + $0x30] sm:$0xff]  ;;  %v1032_v20 = vld [vmem:[%s14129_s20 + $0x38] sm:$0xff]  ;;  %v1033_v22 = vld [vmem:[%s14129_s20 + $0x40] sm:$0xff]  ;;  %s19210_s12 = sld [smem:[#allocation125_spill]]  ;;  %s19218_s17 = sld [smem:[#allocation128_spill]] }
 0x1a3   : > { %18577 = vst [vmem:[#allocation34_spill] sm:$0xff] %v14171_v11  ;;  %18578 = vst [vmem:[#allocation35_spill] sm:$0xff] %v14176_v16  ;;  %v1048_v21 = vld [vmem:[#allocation5 + $0x38] sm:$0xff]  ;;  %v1049_v23 = vld [vmem:[#allocation5 + $0x40] sm:$0xff]  ;;  %v14185_v24 = vadd.f32 %v1047_v19, %v1031_v18  ;;  %s19219_s7 = sld [smem:[#allocation129_spill]]  ;;  %p19221_p8 = scmp.ne.s32.totalorder %s18557_s4, 0 }
 0x1a4   : > { %18579 = vst [vmem:[#allocation36_spill] sm:$0xff] %v14179_v17  ;;  %v1034_v25 = vld [vmem:[%s14129_s20 + $0x48] sm:$0xff]  ;;  %v14189_v27 = vadd.f32 %v1048_v21, %v1032_v20  ;;  %v1035_v28 = vld [vmem:[%s14129_s20 + $0x50] sm:$0xff]  ;;  %v14193_v30 = vadd.f32 %v1049_v23, %v1033_v22  ;;  %v1036_v31 = vld [vmem:[%s14129_s20 + $0x58] sm:$0xff] }
 0x1a5   : > { %1112 = vadd.xlane.f32.xlu0 %v14168_v10  ;;  %1116 = vadd.xlane.f32.xlu1 %v14171_v11  ;;  %18580 = vst [vmem:[#allocation37_spill] sm:$0xff] %v14185_v24  ;;  %v1050_v26 = vld [vmem:[#allocation5 + $0x48] sm:$0xff]  ;;  %v1051_v29 = vld [vmem:[#allocation5 + $0x50] sm:$0xff]  ;;  %v1052_v32 = vld [vmem:[#allocation5 + $0x58] sm:$0xff] }
 0x1a6   : > { %18581 = vst [vmem:[#allocation38_spill] sm:$0xff] %v14189_v27  ;;  %18582 = vst [vmem:[#allocation39_spill] sm:$0xff] %v14193_v30  ;;  %v14197_v33 = vadd.f32 %v1050_v26, %v1034_v25  ;;  %v1037_v34 = vld [vmem:[%s14129_s20 + $0x60] sm:$0xff]  ;;  %v14201_v36 = vadd.f32 %v1051_v29, %v1035_v28  ;;  %v1038_v37 = vld [vmem:[%s14129_s20 + $0x68] sm:$0xff]  ;;  %v14205_v39 = vadd.f32 %v1052_v32, %v1036_v31 }
 0x1a7   : > { %v1053_v35 = vld [vmem:[#allocation5 + $0x60] sm:$0xff]  ;;  %v1054_v38 = vld [vmem:[#allocation5 + $0x68] sm:$0xff]  ;;  %v1039_v40 = vld [vmem:[%s14129_s20 + $0x70] sm:$0xff] }
 0x1a8   : > { %18583 = vst [vmem:[#allocation40_spill] sm:$0xff] %v14197_v33  ;;  %18584 = vst [vmem:[#allocation41_spill] sm:$0xff] %v14201_v36  ;;  %v1055_v41 = vld [vmem:[#allocation5 + $0x70] sm:$0xff]  ;;  %v14209_v42 = vadd.f32 %v1053_v35, %v1037_v34  ;;  %v1040_v43 = vld [vmem:[%s14129_s20 + $0x78] sm:$0xff]  ;;  %v14213_v45 = vadd.f32 %v1054_v38, %v1038_v37  ;;  %s10527_s20 = sshll.u32 %s13778_s10, 12  ;;  %s10010_s10 = scalar_lea.sflag [#allocation4], %s14125_s16 }
 0x1a9   : > { %1118 = vadd.xlane.f32.xlu0 %v14176_v16  ;;  %1120 = vadd.xlane.f32.xlu1 %v14179_v17  ;;  %18585 = vst [vmem:[#allocation42_spill] sm:$0xff] %v14205_v39  ;;  %v1056_v44 = vld [vmem:[#allocation5 + $0x78] sm:$0xff]  ;;  %v14216_v46 = vadd.f32 %v1055_v41, %v1039_v40  ;;  %v12219_v48 = vld [vmem:[#allocation8 + $0x4] ss:$12 sps:$4 sm:$0xff]   ;;  %v12221_v49 = vld [vmem:[#allocation8] ss:$12 sps:$4 sm:$0xff]  }
 0x1aa   : > { %18586 = vst [vmem:[#allocation43_spill] sm:$0xff] %v14209_v42  ;;  %18587 = vst [vmem:[#allocation44_spill] sm:$0xff] %v14213_v45  ;;  %v14219_v47 = vadd.f32 %v1056_v44, %v1040_v43  ;;  %v12222_v50 = vld [vmem:[#allocation8 + $0x1c] ss:$12 sps:$4 sm:$0xff]   ;;  %1499 = vmatprep.subr.bf16.mxu0 %v12219_v48  ;;  %v12225_v35 = vld [vmem:[#allocation8 + $0x18] ss:$12 sps:$4 sm:$0xff]  }
 0x1ab   : > { %18588 = vst [vmem:[#allocation45_spill] sm:$0xff] %v14216_v46  ;;  %v12224_v51 = vld [vmem:[#allocation8 + $0x8] ss:$12 sps:$4 sm:$0xff]   ;;  %1500 = vmatpush1.bf16.msra.mxu0 %v12221_v49  ;;  %v12228_v49 = vld [vmem:[#allocation8 + $0x20] ss:$12 sps:$4 sm:$0xff]  }
 0x1ac   : > { %18589 = vst [vmem:[#allocation46_spill] sm:$0xff] %v14219_v47  ;;  %11104 = vmatprep.subr.bf16.mxu1 %v12224_v51  ;;  %1501 = vmatprep.subr.bf16.mxu0 %v12222_v50  ;;  %v12226_v48 = vld [vmem:[#allocation8 + $0x34] ss:$12 sps:$4 sm:$0xff]  }
 0x1ad   : > { %1122 = vadd.xlane.f32.xlu0 %v14185_v24  ;;  %1124 = vadd.xlane.f32.xlu1 %v14189_v27 }
 0x1ae   : > { %11105 = vmatpush3.bf16.msra.mxu1 %v12224_v51 }
 0x1af   : > { %1502 = vmatpush1.bf16.msra.mxu0 %v12225_v35  ;;  %11106 = vmatprep.subr.bf16.mxu1 %v12228_v49  ;;  %v12241_v35 = vld [vmem:[#allocation8 + $0x78] ss:$12 sps:$4 sm:$0xff]  }
 0x1b0   : > { %1503 = vmatprep.subr.bf16.mxu0 %v12226_v48  ;;  %v12249_v48 = vld [vmem:[#allocation8 + $0xa8] ss:$12 sps:$4 sm:$0xff]  }
 0x1b1   : > { %1126 = vadd.xlane.f32.xlu0 %v14193_v30  ;;  %1128 = vadd.xlane.f32.xlu1 %v14197_v33 }
 0x1b2   : > { %11107 = vmatpush3.bf16.msra.mxu1 %v12228_v49  ;;  %v12250_v49 = vld [vmem:[#allocation8 + $0xb0] ss:$12 sps:$4 sm:$0xff]  }
 0x1b5   : > { %1130 = vadd.xlane.f32.xlu0 %v14201_v36  ;;  %1132 = vadd.xlane.f32.xlu1 %v14205_v39 }
 0x1b9   : > { %1134 = vadd.xlane.f32.xlu0 %v14209_v42  ;;  %1136 = vadd.xlane.f32.xlu1 %v14213_v45 }
 0x1bd   : > { %1138 = vadd.xlane.f32.xlu0 %v14216_v46  ;;  %1140 = vadd.xlane.f32.xlu1 %v14219_v47 }
 0x22e   : > { %v1111_v52 = vpop.xlane.xlu0 %1110  ;;  %v1115_v54 = vpop.xlane.xlu1 %1114 }
 0x22f   : > { %v1143_v53 = vmul.f32 0.0078125, %v1111_v52  ;;  %v1145_v55 = vmul.f32 0.0078125, %v1115_v54  ;;  %v12229_v54 = vld [vmem:[#allocation8 + $0x30] ss:$12 sps:$4 sm:$0xff]  }
 0x230   : > { %1504 = vmatpush1.bf16.msra.mxu0 %v12229_v54 }
 0x231   : > { %v14224_v56 = vsub.f32 %v14161_v3, %v1143_v53  ;;  %v14227_v58 = vsub.f32 %v14164_v7, %v1145_v55  ;;  %v18653_v7 = vmov 0  ;;  %v18659_v3 = vmov 0 }
 0x232   : > { %v1113_v57 = vpop.xlane.xlu0 %1112  ;;  %v1117_v61 = vpop.xlane.xlu1 %1116 }
 0x233   : > { %v1144_v59 = vmul.f32 0.0078125, %v1113_v57  ;;  %v1175_v60 = vmul.f32 %v14224_v56, %v14224_v56  ;;  %v1146_v62 = vmul.f32 0.0078125, %v1117_v61  ;;  %v1177_v63 = vmul.f32 %v14227_v58, %v14227_v58 }
 0x235   : > { %1191 = vadd.xlane.f32.xlu0 %v1175_v60  ;;  %v14234_v0 = vsub.f32 %v14168_v10, %v1144_v59  ;;  %v14237_v2 = vsub.f32 %v14171_v11, %v1146_v62 }
 0x236   : > { %v1119_v1 = vpop.xlane.xlu0 %1118  ;;  %v1121_v6 = vpop.xlane.xlu1 %1120 }
 0x237   : > { %v1147_v4 = vmul.f32 0.0078125, %v1119_v1  ;;  %v1176_v5 = vmul.f32 %v14234_v0, %v14234_v0  ;;  %v1148_v8 = vmul.f32 0.0078125, %v1121_v6  ;;  %v1178_v9 = vmul.f32 %v14237_v2, %v14237_v2  ;;  %v12232_v1 = vld [vmem:[#allocation8 + $0x38] ss:$12 sps:$4 sm:$0xff]   ;;  %v12233_v6 = vld [vmem:[#allocation8 + $0x48] ss:$12 sps:$4 sm:$0xff]  }
 0x238   : > { %11108 = vmatprep.subr.bf16.mxu1 %v12232_v1 }
 0x239   : > { %1195 = vadd.xlane.f32.xlu0 %v1177_v63  ;;  %1193 = vadd.xlane.f32.xlu1 %v1176_v5  ;;  %v14244_v12 = vsub.f32 %v14176_v16, %v1147_v4  ;;  %v14247_v14 = vsub.f32 %v14179_v17, %v1148_v8  ;;  %v12230_v63 = vld [vmem:[#allocation8 + $0x4c] ss:$12 sps:$4 sm:$0xff]  }
 0x23a   : > { %v1123_v13 = vpop.xlane.xlu0 %1122  ;;  %v1125_v19 = vpop.xlane.xlu1 %1124  ;;  %1505 = vmatprep.subr.bf16.mxu0 %v12230_v63  ;;  %11109 = vmatpush3.bf16.msra.mxu1 %v12232_v1 }
 0x23b   : > { %v1149_v15 = vmul.f32 0.0078125, %v1123_v13  ;;  %v1179_v18 = vmul.f32 %v14244_v12, %v14244_v12  ;;  %v1150_v20 = vmul.f32 0.0078125, %v1125_v19  ;;  %v1180_v21 = vmul.f32 %v14247_v14, %v14247_v14  ;;  %1506 = vmatpush1.bf16.msra.mxu0 %v12233_v6 }
 0x23d   : > { %1197 = vadd.xlane.f32.xlu1 %v1178_v9  ;;  %1199 = vadd.xlane.f32.xlu0 %v1179_v18  ;;  %v14254_v22 = vsub.f32 %v14185_v24, %v1149_v15  ;;  %v14257_v25 = vsub.f32 %v14189_v27, %v1150_v20  ;;  %v12234_v20 = vld [vmem:[#allocation8 + $0x64] ss:$12 sps:$4 sm:$0xff]  }
 0x23e   : > { %v1127_v23 = vpop.xlane.xlu0 %1126  ;;  %v1129_v29 = vpop.xlane.xlu1 %1128  ;;  %1507 = vmatprep.subr.bf16.mxu0 %v12234_v20 }
 0x23f   : > { %v1151_v26 = vmul.f32 0.0078125, %v1127_v23  ;;  %v1181_v28 = vmul.f32 %v14254_v22, %v14254_v22  ;;  %v1152_v31 = vmul.f32 0.0078125, %v1129_v29  ;;  %v1182_v32 = vmul.f32 %v14257_v25, %v14257_v25 }
 0x241   : > { %1201 = vadd.xlane.f32.xlu1 %v1180_v21  ;;  %1203 = vadd.xlane.f32.xlu0 %v1181_v28  ;;  %v14264_v34 = vsub.f32 %v14193_v30, %v1151_v26  ;;  %v14267_v38 = vsub.f32 %v14197_v33, %v1152_v31  ;;  %v12236_v21 = vld [vmem:[#allocation8 + $0x50] ss:$12 sps:$4 sm:$0xff]   ;;  %v12237_v26 = vld [vmem:[#allocation8 + $0x60] ss:$12 sps:$4 sm:$0xff]  }
 0x242   : > { %v1131_v37 = vpop.xlane.xlu0 %1130  ;;  %v1133_v43 = vpop.xlane.xlu1 %1132  ;;  %11110 = vmatprep.subr.bf16.mxu1 %v12236_v21  ;;  %1508 = vmatpush1.bf16.msra.mxu0 %v12237_v26  ;;  %v12238_v31 = vld [vmem:[#allocation8 + $0x7c] ss:$12 sps:$4 sm:$0xff]  }
 0x243   : > { %v1153_v40 = vmul.f32 0.0078125, %v1131_v37  ;;  %v1183_v41 = vmul.f32 %v14264_v34, %v14264_v34  ;;  %v1154_v44 = vmul.f32 0.0078125, %v1133_v43  ;;  %v1184_v50 = vmul.f32 %v14267_v38, %v14267_v38  ;;  %11111 = vmatpush3.bf16.msra.mxu1 %v12236_v21  ;;  %1509 = vmatprep.subr.bf16.mxu0 %v12238_v31  ;;  %v12242_v37 = vld [vmem:[#allocation8 + $0x94] ss:$12 sps:$4 sm:$0xff]   ;;  %v12246_v43 = vld [vmem:[#allocation8 + $0xac] ss:$12 sps:$4 sm:$0xff]  }
 0x245   : > { %1205 = vadd.xlane.f32.xlu1 %v1182_v32  ;;  %1207 = vadd.xlane.f32.xlu0 %v1183_v41  ;;  %v14274_v51 = vsub.f32 %v14201_v36, %v1153_v40  ;;  %v14277_v53 = vsub.f32 %v14205_v39, %v1154_v44  ;;  %v12240_v32 = vld [vmem:[#allocation8 + $0x68] ss:$12 sps:$4 sm:$0xff]   ;;  %v12244_v40 = vld [vmem:[#allocation8 + $0x80] ss:$12 sps:$4 sm:$0xff]   ;;  %v12245_v41 = vld [vmem:[#allocation8 + $0x90] ss:$12 sps:$4 sm:$0xff]  }
 0x246   : > { %v1135_v52 = vpop.xlane.xlu0 %1134  ;;  %v1137_v59 = vpop.xlane.xlu1 %1136  ;;  %11112 = vmatprep.subr.bf16.mxu1 %v12240_v32  ;;  %1510 = vmatpush1.bf16.msra.mxu0 %v12241_v35  ;;  %v12248_v44 = vld [vmem:[#allocation8 + $0x98] ss:$12 sps:$4 sm:$0xff]   ;;  %v18641_v39 = vmov 0 }
 0x247   : > { %v1155_v55 = vmul.f32 0.0078125, %v1135_v52  ;;  %v1185_v57 = vmul.f32 %v14274_v51, %v14274_v51  ;;  %v1156_v60 = vmul.f32 0.0078125, %v1137_v59  ;;  %v1186_v61 = vmul.f32 %v14277_v53, %v14277_v53  ;;  %11113 = vmatpush3.bf16.msra.mxu1 %v12240_v32  ;;  %1511 = vmatprep.subr.bf16.mxu0 %v12242_v37 }
 0x248   : > { %11114 = vmatprep.subr.bf16.mxu1 %v12244_v40 }
 0x249   : > { %1209 = vadd.xlane.f32.xlu1 %v1184_v50  ;;  %1211 = vadd.xlane.f32.xlu0 %v1185_v57  ;;  %v14284_v62 = vsub.f32 %v14209_v42, %v1155_v55  ;;  %v14287_v5 = vsub.f32 %v14213_v45, %v1156_v60  ;;  %v18336_v50 = vmov 0  }
 0x24a   : > { %v1139_v4 = vpop.xlane.xlu0 %1138  ;;  %v1141_v13 = vpop.xlane.xlu1 %1140  ;;  %1512 = vmatpush1.bf16.msra.mxu0 %v12245_v41  ;;  %1531 = vmatprep.mubr.bf16.mxu0 %v18336_v50 }
 0x24b   : > { %v1157_v8 = vmul.f32 0.0078125, %v1139_v4  ;;  %v1187_v9 = vmul.f32 %v14284_v62, %v14284_v62  ;;  %v1158_v15 = vmul.f32 0.0078125, %v1141_v13  ;;  %v1188_v18 = vmul.f32 %v14287_v5, %v14287_v5  ;;  %11115 = vmatpush3.bf16.msra.mxu1 %v12244_v40  ;;  %1513 = vmatprep.subr.bf16.mxu0 %v12246_v43  ;;  %v14308_v43 = vld [vmem:[%s18590_s29] ss:$0 sm:$0xff] }
 0x24c   : > { %11116 = vmatprep.subr.bf16.mxu1 %v12248_v44 }
 0x24d   : > { %1213 = vadd.xlane.f32.xlu1 %v1186_v61  ;;  %1215 = vadd.xlane.f32.xlu0 %v1187_v9  ;;  %v14294_v19 = vsub.f32 %v14216_v46, %v1157_v8  ;;  %v14297_v23 = vsub.f32 %v14219_v47, %v1158_v15 }
 0x24e   : > { %1514 = vmatpush1.bf16.msra.mxu0 %v12249_v48 }
 0x24f   : > { %v1189_v28 = vmul.f32 %v14294_v19, %v14294_v19  ;;  %v1190_v29 = vmul.f32 %v14297_v23, %v14297_v23  ;;  %11117 = vmatpush3.bf16.msra.mxu1 %v12248_v44 }
 0x250   : > { %11118 = vmatprep.subr.bf16.mxu1 %v12250_v49 }
 0x251   : > { %1217 = vadd.xlane.f32.xlu1 %v1188_v18  ;;  %1219 = vadd.xlane.f32.xlu0 %v1189_v28 }
 0x253   : > { %11119 = vmatpush3.bf16.msra.mxu1 %v12250_v49 }
 0x255   : > { %1221 = vadd.xlane.f32.xlu1 %v1190_v29 }
 0x2c2   : > { %v1192_v52 = vpop.xlane.xlu0 %1191 }
 0x2c3   : > { %v1223_v54 = vmul.f32 0.0078125, %v1192_v52 }
 0x2c5   : > { %v1239_v55 = vadd.f32 1e-05, %v1223_v54 }
 0x2c6   : > { %v1194_v57 = vpop.xlane.xlu1 %1193  ;;  %v1196_v59 = vpop.xlane.xlu0 %1195 }
 0x2c7   : > { %12483 = vrsqrt.f32 %v1239_v55  ;;  %v1224_v60 = vmul.f32 0.0078125, %v1194_v57  ;;  %v1225_v61 = vmul.f32 0.0078125, %v1196_v59 }
 0x2c9   : > { %v1240_v63 = vadd.f32 1e-05, %v1224_v60  ;;  %v1241_v1 = vadd.f32 1e-05, %v1225_v61  ;;  %v14312_v61 = vld [vmem:[#allocation7] ss:$0 sm:$0xff] }
 0x2ca   : > { %v1198_v4 = vpop.xlane.xlu1 %1197  ;;  %v1200_v6 = vpop.xlane.xlu0 %1199 }
 0x2cb   : > { %12485 = vrsqrt.f32 %v1240_v63  ;;  %v1226_v8 = vmul.f32 0.0078125, %v1198_v4  ;;  %v1227_v9 = vmul.f32 0.0078125, %v1200_v6 }
 0x2cc   : > { %12487 = vrsqrt.f32 %v1241_v1 }
 0x2cd   : > { %v1242_v13 = vadd.f32 1e-05, %v1226_v8  ;;  %v1243_v15 = vadd.f32 1e-05, %v1227_v9 }
 0x2ce   : > { %v1202_v18 = vpop.xlane.xlu1 %1201  ;;  %v1204_v20 = vpop.xlane.xlu0 %1203 }
 0x2cf   : > { %12489 = vrsqrt.f32 %v1242_v13  ;;  %v1228_v21 = vmul.f32 0.0078125, %v1202_v18  ;;  %v1229_v26 = vmul.f32 0.0078125, %v1204_v20 }
 0x2d0   : > { %12491 = vrsqrt.f32 %v1243_v15 }
 0x2d1   : > { %v12484_v28 = vpop.eup %12483  ;;  %v1244_v29 = vadd.f32 1e-05, %v1228_v21  ;;  %v1245_v31 = vadd.f32 1e-05, %v1229_v26 }
 0x2d2   : > { %v1206_v32 = vpop.xlane.xlu1 %1205  ;;  %v1208_v35 = vpop.xlane.xlu0 %1207  ;;  %v1271_v37 = vmul.f32 %v12484_v28, %v14224_v56 }
 0x2d3   : > { %12493 = vrsqrt.f32 %v1244_v29  ;;  %v1230_v40 = vmul.f32 0.0078125, %v1206_v32  ;;  %v1231_v41 = vmul.f32 0.0078125, %v1208_v35 }
 0x2d4   : > { %12495 = vrsqrt.f32 %v1245_v31  ;;  %v1293_v59 = vmul.f32 %v14308_v43, %v1271_v37 }
 0x2d5   : > { %v12486_v44 = vpop.eup %12485  ;;  %v1246_v48 = vadd.f32 1e-05, %v1230_v40  ;;  %v1247_v49 = vadd.f32 1e-05, %v1231_v41 }
 0x2d6   : > { %v12488_v52 = vpop.eup %12487  ;;  %v1210_v54 = vpop.xlane.xlu1 %1209  ;;  %v1272_v57 = vmul.f32 %v12486_v44, %v14234_v0  ;;  %v1315_v18 = vadd.f32 %v14312_v61, %v1293_v59 }
 0x2d7   : > { %v1212_v55 = vpop.xlane.xlu0 %1211  ;;  %12497 = vrsqrt.f32 %v1246_v48  ;;  %v1232_v56 = vmul.f32 0.0078125, %v1210_v54  ;;  %v1273_v63 = vmul.f32 %v12488_v52, %v14227_v58 }
 0x2d8   : > { %v1233_v60 = vmul.f32 0.0078125, %v1212_v55  ;;  %12499 = vrsqrt.f32 %v1247_v49  ;;  %v1294_v1 = vmul.f32 %v14308_v43, %v1272_v57 }
 0x2d9   : > { %v12490_v4 = vpop.eup %12489  ;;  %v1248_v6 = vadd.f32 1e-05, %v1232_v56  ;;  %v1295_v9 = vmul.f32 %v14308_v43, %v1273_v63 }
 0x2da   : > { %v1249_v8 = vadd.f32 1e-05, %v1233_v60  ;;  %v12492_v13 = vpop.eup %12491  ;;  %v1214_v15 = vpop.xlane.xlu1 %1213  ;;  %v1316_v20 = vadd.f32 %v14312_v61, %v1294_v1  ;;  %v1274_v21 = vmul.f32 %v12490_v4, %v14237_v2 }
 0x2db   : > { %v1216_v0 = vpop.xlane.xlu0 %1215  ;;  %12501 = vrsqrt.f32 %v1248_v6  ;;  %v1234_v26 = vmul.f32 0.0078125, %v1214_v15  ;;  %v1275_v31 = vmul.f32 %v12492_v13, %v14244_v12  ;;  %v1317_v40 = vadd.f32 %v14312_v61, %v1295_v9 }
 0x2dc   : > { %v1235_v58 = vmul.f32 0.0078125, %v1216_v0  ;;  %12503 = vrsqrt.f32 %v1249_v8  ;;  %v1331_v28 = vpack.c.bf16 %v1316_v20, %v1315_v18  ;;  %v1296_v29 = vmul.f32 %v14308_v43, %v1274_v21 }
 0x2dd   : > { %v12494_v32 = vpop.eup %12493  ;;  %v1250_v35 = vadd.f32 1e-05, %v1234_v26  ;;  %v1297_v52 = vmul.f32 %v14308_v43, %v1275_v31 }
 0x2de   : > { %v1251_v37 = vadd.f32 1e-05, %v1235_v58  ;;  %v12496_v41 = vpop.eup %12495  ;;  %v1218_v44 = vpop.xlane.xlu1 %1217  ;;  %1532 = vmatmul.mubr.bf16.vlgmr.msra.gmra.mrb[0].mxu0 %v1331_v28  ;;  %11120 = vmatprep.mubr.bf16.mxu1 %v1331_v28  ;;  %v1318_v2 = vadd.f32 %v14312_v61, %v1296_v29  ;;  %v1276_v49 = vmul.f32 %v12494_v32, %v14247_v14 }
 0x2df   : > { %v1220_v48 = vpop.xlane.xlu0 %1219  ;;  %12505 = vrsqrt.f32 %v1250_v35  ;;  %v1236_v54 = vmul.f32 0.0078125, %v1218_v44  ;;  %1541 = vmatprep.mubr.bf16.mxu0 %v18336_v50  ;;  %v1277_v12 = vmul.f32 %v12496_v41, %v14254_v22  ;;  %v1319_v6 = vadd.f32 %v14312_v61, %v1297_v52 }
 0x2e0   : > { %v1237_v55 = vmul.f32 0.0078125, %v1220_v48  ;;  %12507 = vrsqrt.f32 %v1251_v37  ;;  %v1332_v57 = vpack.c.bf16 %v1318_v2, %v1317_v40  ;;  %v1298_v59 = vmul.f32 %v14308_v43, %v1276_v49 }
 0x2e1   : > { %v12498_v56 = vpop.eup %12497  ;;  %v1252_v60 = vadd.f32 1e-05, %v1236_v54  ;;  %v1299_v1 = vmul.f32 %v14308_v43, %v1277_v12 }
 0x2e2   : > { %v1253_v63 = vadd.f32 1e-05, %v1237_v55  ;;  %v12500_v4 = vpop.eup %12499  ;;  %v1222_v14 = vpop.xlane.xlu1 %1221  ;;  %11121 = vmatmul.mubr.bf16.vlgmr.msra.gmra.mrb[0].mxu1 %v1332_v57  ;;  %v1320_v8 = vadd.f32 %v14312_v61, %v1298_v59  ;;  %v1278_v9 = vmul.f32 %v12498_v56, %v14257_v25 }
 0x2e3   : > { %12509 = vrsqrt.f32 %v1252_v60  ;;  %v1238_v22 = vmul.f32 0.0078125, %v1222_v14  ;;  %v1279_v13 = vmul.f32 %v12500_v4, %v14264_v34  ;;  %v1321_v21 = vadd.f32 %v14312_v61, %v1299_v1 }
 0x2e4   : > { %12511 = vrsqrt.f32 %v1253_v63  ;;  %v1333_v15 = vpack.c.bf16 %v1320_v8, %v1319_v6  ;;  %v1300_v0 = vmul.f32 %v14308_v43, %v1278_v9 }
 0x2e5   : > { %v12502_v18 = vpop.eup %12501  ;;  %v1254_v20 = vadd.f32 1e-05, %v1238_v22  ;;  %v1301_v25 = vmul.f32 %v14308_v43, %v1279_v13 }
 0x2e6   : > { %v12504_v26 = vpop.eup %12503  ;;  %1542 = vmatmul.mubr.bf16.gmra.mrb[4].mxu0 %v1332_v57  ;;  %11124 = vmatprep.mubr.bf16.mxu1 %v1333_v15  ;;  %v1322_v58 = vadd.f32 %v14312_v61, %v1300_v0  ;;  %v1280_v28 = vmul.f32 %v12502_v18, %v14267_v38 }
 0x2e7   : > { %12513 = vrsqrt.f32 %v1254_v20  ;;  %1551 = vmatprep.mubr.bf16.mxu0 %v18336_v50  ;;  %v1281_v34 = vmul.f32 %v12504_v26, %v14274_v51  ;;  %v1323_v40 = vadd.f32 %v14312_v61, %v1301_v25 }
 0x2e8   : > { %v1334_v29 = vpack.c.bf16 %v1322_v58, %v1321_v21  ;;  %v1302_v31 = vmul.f32 %v14308_v43, %v1280_v28 }
 0x2e9   : > { %v12506_v32 = vpop.eup %12505  ;;  %v1303_v35 = vmul.f32 %v14308_v43, %v1281_v34 }
 0x2ea   : > { %v12508_v37 = vpop.eup %12507  ;;  %11125 = vmatmul.mubr.bf16.gmra.mrb[4].mxu1 %v1334_v29  ;;  %v1324_v41 = vadd.f32 %v14312_v61, %v1302_v31  ;;  %v1282_v38 = vmul.f32 %v12506_v32, %v14277_v53 }
 0x2eb   : > { %v1283_v44 = vmul.f32 %v12508_v37, %v14284_v62  ;;  %v1325_v49 = vadd.f32 %v14312_v61, %v1303_v35 }
 0x2ec   : > { %v1335_v48 = vpack.c.bf16 %v1324_v41, %v1323_v40  ;;  %v1304_v2 = vmul.f32 %v14308_v43, %v1282_v38 }
 0x2ed   : > { %v12510_v51 = vpop.eup %12509  ;;  %v1305_v12 = vmul.f32 %v14308_v43, %v1283_v44 }
 0x2ee   : > { %v12512_v52 = vpop.eup %12511  ;;  %1552 = vmatmul.mubr.bf16.gmra.mrb[8].mxu0 %v1333_v15  ;;  %11128 = vmatprep.mubr.bf16.mxu1 %v1335_v48  ;;  %v1326_v54 = vadd.f32 %v14312_v61, %v1304_v2  ;;  %v1284_v55 = vmul.f32 %v12510_v51, %v14287_v5 }
 0x2ef   : > { %1561 = vmatprep.mubr.bf16.mxu0 %v18336_v50  ;;  %v1285_v53 = vmul.f32 %v12512_v52, %v14294_v19  ;;  %v1327_v56 = vadd.f32 %v14312_v61, %v1305_v12 }
 0x2f0   : > { %v1336_v62 = vpack.c.bf16 %v1326_v54, %v1325_v49  ;;  %v1306_v57 = vmul.f32 %v14308_v43, %v1284_v55 }
 0x2f1   : > { %v12514_v59 = vpop.eup %12513  ;;  %v1307_v1 = vmul.f32 %v14308_v43, %v1285_v53 }
 0x2f2   : > { %11129 = vmatmul.mubr.bf16.gmra.mrb[8].mxu1 %v1336_v62  ;;  %v1328_v60 = vadd.f32 %v14312_v61, %v1306_v57  ;;  %v1286_v63 = vmul.f32 %v12514_v59, %v14297_v23 }
 0x2f3   : > { %v1329_v19 = vadd.f32 %v14312_v61, %v1307_v1 }
 0x2f4   : > { %v1337_v5 = vpack.c.bf16 %v1328_v60, %v1327_v56  ;;  %v1308_v4 = vmul.f32 %v14308_v43, %v1286_v63 }
 0x2f6   : > { %1562 = vmatmul.mubr.bf16.gmra.mrb[12].mxu0 %v1334_v29  ;;  %11132 = vmatprep.mubr.bf16.mxu1 %v1337_v5  ;;  %v1330_v14 = vadd.f32 %v14312_v61, %v1308_v4 }
 0x2f7   : > { %1571 = vmatprep.mubr.bf16.mxu0 %v18336_v50 }
 0x2f8   : > { %v1338_v6 = vpack.c.bf16 %v1330_v14, %v1329_v19 }
 0x2fa   : > { %11133 = vmatmul.mubr.bf16.gmra.mrb[12].mxu1 %v1338_v6 }
 0x2fe   : > { %1572 = vmatmul.mubr.bf16.gmra.mrb[16].mxu0 %v1335_v48 }
 0x2ff   : > { %1581 = vmatprep.mubr.bf16.mxu0 %v18336_v50 }
 0x306   : > { %1582 = vmatmul.mubr.bf16.gmra.mrb[20].mxu0 %v1336_v62 }
 0x307   : > { %1591 = vmatprep.mubr.bf16.mxu0 %v18336_v50 }
 0x30e   : > { %1592 = vmatmul.mubr.bf16.gmra.mrb[24].mxu0 %v1337_v5 }
 0x30f   : > { %1601 = vmatprep.mubr.bf16.mxu0 %v18336_v50 }
 0x316   : > { %1602 = vmatmul.mubr.bf16.gmra.mrb[28].mxu0 %v1338_v6 }
 0x3b1   : > { %v1533_v23 = vpop.f32.mrb[0].mxu0 }
 0x3b2   : > { %v1535_v43 = vpop.f32.mrb[1].mxu0 }
 0x3b3   : > { %v1537_v8 = vpop.f32.mrb[2].mxu0 }
 0x3b4   : > { %v14366_v9 = vpack.c.bf16 %v1537_v8, %v1533_v23  ;;  %v1539_v61 = vpop.f32.mrb[3].mxu0 }
 0x3b5   : > { %v14368_v22 = vpack.c.bf16 %v1539_v61, %v1535_v43  ;;  %v11122_v13 = vpop.f32.mrb[0].mxu1 }
 0x3b6   : > { %18591 = vst [vmem:[#allocation47_spill] sm:$0xff] %v14366_v9  ;;  %v1646_v15 = vpop.f32.mrb[1].mxu1  ;;  %11152 = vmatprep.mubr.msk.bf16.mxu0 %vm18353_vm0, %v14366_v9 }
 0x3b7   : > { %18592 = vst [vmem:[#allocation48_spill] sm:$0xff] %v14368_v22  ;;  %2682 = vrot.lane.b32.xlu1 %v14368_v22, %s13606_s19  ;;  %2192 = vrot.lane.b32.xlu0 %v14368_v22, %s13607_s15  ;;  %v11123_v0 = vpop.f32.mrb[2].mxu1  ;;  %v1759_v18 = vsel %vm18353_vm0, %v14368_v22, 0 }
 0x3b8   : > { %v14378_v20 = vpack.c.bf16 %v11123_v0, %v11122_v13  ;;  %11744 = vmatprep.subr.msk.bf16.mxu0 %vm18353_vm0, %v14368_v22  ;;  %v1649_v21 = vpop.f32.mrb[3].mxu1 }
 0x3b9   : > { %v14382_v26 = vpack.c.bf16 %v1649_v21, %v1646_v15  ;;  %11137 = vmatpush3.bf16.xpose.msra.mxu0 %v1759_v18  ;;  %v1543_v58 = vpop.f32.mrb[4].mxu0 }
 0x3ba   : > { %18593 = vst [vmem:[#allocation49_spill] sm:$0xff] %v14378_v20  ;;  %v1545_v28 = vpop.f32.mrb[5].mxu0 }
 0x3bb   : > { %18594 = vst [vmem:[#allocation50_spill] sm:$0xff] %v14382_v26  ;;  %v1547_v25 = vpop.f32.mrb[6].mxu0  ;;  %11168 = vmatprep.subr.bf16.mxu1 %v14382_v26 }
 0x3bc   : > { %v14385_v34 = vpack.c.bf16 %v1547_v25, %v1543_v58  ;;  %v1549_v29 = vpop.f32.mrb[7].mxu0  ;;  %11169 = vmatpush3.bf16.msra.mxu1 %v14382_v26 }
 0x3bd   : > { %v14388_v31 = vpack.c.bf16 %v1549_v29, %v1545_v28  ;;  %v11126_v32 = vpop.f32.mrb[4].mxu1  ;;  %11170 = vmatprep.subr.bf16.mxu1 %v14378_v20 }
 0x3be   : > { %18595 = vst [vmem:[#allocation51_spill] sm:$0xff] %v14385_v34  ;;  %v1662_v35 = vpop.f32.mrb[5].mxu1 }
 0x3bf   : > { %18596 = vst [vmem:[#allocation52_spill] sm:$0xff] %v14388_v31  ;;  %2194 = vrot.lane.b32.xlu1 %v14388_v31, %s13607_s15  ;;  %v11127_v37 = vpop.f32.mrb[6].mxu1  ;;  %11745 = vmatprep.subr.msk.bf16.mxu0 %vm18353_vm0, %v14388_v31  ;;  %v1762_v40 = vsel %vm18353_vm0, %v14388_v31, 0 }
 0x3c0   : > { %v14397_v41 = vpack.c.bf16 %v11127_v37, %v11126_v32  ;;  %v1665_v38 = vpop.f32.mrb[7].mxu1  ;;  %11171 = vmatpush3.bf16.msra.mxu1 %v14378_v20 }
 0x3c1   : > { %v14400_v44 = vpack.c.bf16 %v1665_v38, %v1662_v35  ;;  %11139 = vmatpush3.bf16.xpose.msra.mxu0 %v1762_v40  ;;  %v1553_v48 = vpop.f32.mrb[8].mxu0 }
 0x3c2   : > { %18597 = vst [vmem:[#allocation53_spill] sm:$0xff] %v14397_v41  ;;  %v1555_v2 = vpop.f32.mrb[9].mxu0 }
 0x3c3   : > { %18598 = vst [vmem:[#allocation54_spill] sm:$0xff] %v14400_v44  ;;  %v1557_v51 = vpop.f32.mrb[10].mxu0  ;;  %11172 = vmatprep.subr.bf16.mxu1 %v14400_v44 }
 0x3c4   : > { %v14403_v49 = vpack.c.bf16 %v1557_v51, %v1553_v48  ;;  %v1559_v52 = vpop.f32.mrb[11].mxu0  ;;  %11173 = vmatpush3.bf16.msra.mxu1 %v14400_v44 }
 0x3c5   : > { %v14406_v54 = vpack.c.bf16 %v1559_v52, %v1555_v2  ;;  %v11130_v55 = vpop.f32.mrb[8].mxu1  ;;  %11174 = vmatprep.subr.bf16.mxu1 %v14397_v41 }
 0x3c6   : > { %18599 = vst [vmem:[#allocation55_spill] sm:$0xff] %v14403_v49  ;;  %v1678_v12 = vpop.f32.mrb[9].mxu1 }
 0x3c7   : > { %2196 = vrot.lane.b32.xlu0 %v14406_v54, %s13607_s15  ;;  %v11131_v53 = vpop.f32.mrb[10].mxu1  ;;  %11746 = vmatprep.subr.msk.bf16.mxu0 %vm18353_vm0, %v14406_v54  ;;  %v1765_v62 = vsel %vm18353_vm0, %v14406_v54, 0 }
 0x3c8   : > { %v14415_v57 = vpack.c.bf16 %v11131_v53, %v11130_v55  ;;  %v1681_v59 = vpop.f32.mrb[11].mxu1  ;;  %11175 = vmatpush3.bf16.msra.mxu1 %v14397_v41 }
 0x3c9   : > { %v14418_v56 = vpack.c.bf16 %v1681_v59, %v1678_v12  ;;  %11141 = vmatpush3.bf16.xpose.msra.mxu0 %v1765_v62  ;;  %v1563_v60 = vpop.f32.mrb[12].mxu0 }
 0x3ca   : > { %18600 = vst [vmem:[#allocation56_spill] sm:$0xff] %v14415_v57  ;;  %v1565_v63 = vpop.f32.mrb[13].mxu0 }
 0x3cb   : > { %18601 = vst [vmem:[#allocation57_spill] sm:$0xff] %v14418_v56  ;;  %v1567_v1 = vpop.f32.mrb[14].mxu0  ;;  %11176 = vmatprep.subr.bf16.mxu1 %v14418_v56 }
 0x3cc   : > { %v14421_v5 = vpack.c.bf16 %v1567_v1, %v1563_v60  ;;  %v1569_v4 = vpop.f32.mrb[15].mxu0  ;;  %11177 = vmatpush3.bf16.msra.mxu1 %v14418_v56 }
 0x3cd   : > { %v14424_v19 = vpack.c.bf16 %v1569_v4, %v1565_v63  ;;  %v11134_v14 = vpop.f32.mrb[12].mxu1  ;;  %11178 = vmatprep.subr.bf16.mxu1 %v14415_v57 }
 0x3ce   : > { %18602 = vst [vmem:[#allocation58_spill] sm:$0xff] %v14421_v5  ;;  %v1694_v6 = vpop.f32.mrb[13].mxu1 }
 0x3cf   : > { %2198 = vrot.lane.b32.xlu1 %v14424_v19, %s13607_s15  ;;  %v11135_v23 = vpop.f32.mrb[14].mxu1  ;;  %11747 = vmatprep.subr.msk.bf16.mxu0 %vm18353_vm0, %v14424_v19  ;;  %v1768_v43 = vsel %vm18353_vm0, %v14424_v19, 0 }
 0x3d0   : > { %v14433_v8 = vpack.c.bf16 %v11135_v23, %v11134_v14  ;;  %v1697_v61 = vpop.f32.mrb[15].mxu1  ;;  %11179 = vmatpush3.bf16.msra.mxu1 %v14415_v57 }
 0x3d1   : > { %v14436_v13 = vpack.c.bf16 %v1697_v61, %v1694_v6  ;;  %11143 = vmatpush3.bf16.xpose.msra.mxu0 %v1768_v43  ;;  %v1573_v15 = vpop.f32.mrb[16].mxu0 }
 0x3d2   : > { %18603 = vst [vmem:[#allocation59_spill] sm:$0xff] %v14433_v8  ;;  %v1575_v0 = vpop.f32.mrb[17].mxu0 }
 0x3d3   : > { %18604 = vst [vmem:[#allocation60_spill] sm:$0xff] %v14436_v13  ;;  %v1577_v18 = vpop.f32.mrb[18].mxu0  ;;  %11180 = vmatprep.subr.bf16.mxu1 %v14436_v13 }
 0x3d4   : > { %v14439_v21 = vpack.c.bf16 %v1577_v18, %v1573_v15  ;;  %v1579_v58 = vpop.f32.mrb[19].mxu0  ;;  %11181 = vmatpush3.bf16.msra.mxu1 %v14436_v13  ;;  %v1073_v15 = vlaneseq }
 0x3d5   : > { %v14442_v28 = vpack.c.bf16 %v1579_v58, %v1575_v0  ;;  %11182 = vmatprep.subr.bf16.mxu1 %v14433_v8 }
 0x3d6   : > { %18605 = vst [vmem:[#allocation61_spill] sm:$0xff] %v14439_v21  ;;  %v14496_v0 = vshrl.u32 %v1073_v15, 7  ;;  %v14499_v58 = vand.u32 127, %v1073_v15 }
 0x3d7   : > { %18606 = vst [vmem:[#allocation62_spill] sm:$0xff] %v14442_v28  ;;  %2200 = vrot.lane.b32.xlu0 %v14442_v28, %s13607_s15  ;;  %11748 = vmatprep.subr.msk.bf16.mxu0 %vm18353_vm0, %v14442_v28  ;;  %v1771_v25 = vsel %vm18353_vm0, %v14442_v28, 0 }
 0x3d8   : > { %11183 = vmatpush3.bf16.msra.mxu1 %v14433_v8  ;;  %18613 = vst [vmem:[#allocation69_spill] sm:$0xff] %v14496_v0  ;;  %v1076_v18 = vadd.s32 16, %v14496_v0  ;;  %vm14520_vm3 = vcmp.le.s32.totalorder %v14499_v58, %v14496_v0 }
 0x3d9   : > { %11145 = vmatpush3.bf16.xpose.msra.mxu0 %v1771_v25  ;;  %v1583_v29 = vpop.f32.mrb[20].mxu0  ;;  %v1077_v25 = vadd.s32 24, %v14496_v0 }
 0x3da   : > { %v1585_v32 = vpop.f32.mrb[21].mxu0  ;;  %vm14503_vm1 = vcmp.le.s32.totalorder %v14499_v58, %v1076_v18 }
 0x3db   : > { %v1587_v35 = vpop.f32.mrb[22].mxu0  ;;  %vm14508_vm2 = vcmp.le.s32.totalorder %v14499_v58, %v1077_v25  ;;  %v18626_v25 = vmov 0 }
 0x3dc   : > { %v14452_v37 = vpack.c.bf16 %v1587_v35, %v1583_v29  ;;  %v1589_v40 = vpop.f32.mrb[23].mxu0 }
 0x3dd   : > { %v14454_v38 = vpack.c.bf16 %v1589_v40, %v1585_v32  ;;  %v18614_v32 = vmov 0 }
 0x3de   : > { %18607 = vst [vmem:[#allocation63_spill] sm:$0xff] %v14452_v37  ;;  %v18615_v32 = vsel %vm14503_vm1, 4294967295, %v18614_v32 }
 0x3df   : > { %18608 = vst [vmem:[#allocation64_spill] sm:$0xff] %v14454_v38  ;;  %11749 = vmatprep.subr.msk.bf16.mxu0 %vm18353_vm0, %v14454_v38  ;;  %v1774_v48 = vsel %vm18353_vm0, %v14454_v38, 0  ;;  %18616 = vst [vmem:[#allocation70_spill] sm:$0xff] %v18615_v32 }
 0x3e1   : > { %11147 = vmatpush3.bf16.xpose.msra.mxu0 %v1774_v48  ;;  %v1593_v2 = vpop.f32.mrb[24].mxu0 }
 0x3e2   : > { %v1595_v51 = vpop.f32.mrb[25].mxu0 }
 0x3e3   : > { %v1597_v52 = vpop.f32.mrb[26].mxu0 }
 0x3e4   : > { %v14460_v55 = vpack.c.bf16 %v1597_v52, %v1593_v2  ;;  %v1599_v12 = vpop.f32.mrb[27].mxu0  ;;  %v18617_v2 = vmov 0 }
 0x3e5   : > { %v14462_v53 = vpack.c.bf16 %v1599_v12, %v1595_v51  ;;  %v18618_v2 = vsel %vm14508_vm2, 4294967295, %v18617_v2  ;;  %v1075_v51 = vadd.s32 8, %v14496_v0 }
 0x3e6   : > { %18609 = vst [vmem:[#allocation65_spill] sm:$0xff] %v14460_v55  ;;  %18619 = vst [vmem:[#allocation71_spill] sm:$0xff] %v18618_v2 }
 0x3e7   : > { %18610 = vst [vmem:[#allocation66_spill] sm:$0xff] %v14462_v53  ;;  %11750 = vmatprep.subr.msk.bf16.mxu0 %vm18353_vm0, %v14462_v53  ;;  %v1777_v62 = vsel %vm18353_vm0, %v14462_v53, 0  ;;  %vm14531_vm4 = vcmp.le.s32.totalorder %v14499_v58, %v1075_v51 }
 0x3e9   : > { %11149 = vmatpush3.bf16.xpose.msra.mxu0 %v1777_v62  ;;  %v1603_v59 = vpop.f32.mrb[28].mxu0 }
 0x3ea   : > { %v1605_v60 = vpop.f32.mrb[29].mxu0 }
 0x3eb   : > { %v1607_v63 = vpop.f32.mrb[30].mxu0 }
 0x3ec   : > { %v14468_v1 = vpack.c.bf16 %v1607_v63, %v1603_v59  ;;  %v1609_v4 = vpop.f32.mrb[31].mxu0  ;;  %v1080_v63 = vadd.s32 48, %v14496_v0 }
 0x3ed   : > { %v14470_v14 = vpack.c.bf16 %v1609_v4, %v1605_v60  ;;  %v18620_v60 = vmov 0 }
 0x3ee   : > { %18611 = vst [vmem:[#allocation67_spill] sm:$0xff] %v14468_v1  ;;  %v18621_v60 = vsel %vm14520_vm3, 4294967295, %v18620_v60  ;;  %vm14542_vm5 = vcmp.le.s32.totalorder %v14499_v58, %v1080_v63 }
 0x3ef   : > { %18612 = vst [vmem:[#allocation68_spill] sm:$0xff] %v14470_v14  ;;  %11751 = vmatprep.subr.msk.bf16.mxu0 %vm18353_vm0, %v14470_v14  ;;  %v1780_v6 = vsel %vm18353_vm0, %v14470_v14, 0  ;;  %18622 = vst [vmem:[#allocation72_spill] sm:$0xff] %v18621_v60  ;;  %v18627_v25 = vsel %vm14542_vm5, 4294967295, %v18626_v25 }
 0x3f0   : > { %18628 = vst [vmem:[#allocation74_spill] sm:$0xff] %v18627_v25 }
 0x3f1   : > { %11151 = vmatpush3.bf16.xpose.msra.mxu0 %v1780_v6 }
 0x3f8   : > { %11153 = vmatmul.mubr.msk.bf16.vlgmr.msra.gmra.mrb[32].mxu0 %vm18353_vm0, %v14385_v34 }
 0x3f9   : > { %11156 = vmatprep.mubr.msk.bf16.mxu0 %vm18353_vm0, %v14403_v49 }
 0x400   : > { %11157 = vmatmul.mubr.msk.bf16.gmra.mrb[36].mxu0 %vm18353_vm0, %v14421_v5 }
 0x401   : > { %11160 = vmatprep.mubr.msk.bf16.mxu0 %vm18353_vm0, %v14439_v21 }
 0x408   : > { %11161 = vmatmul.mubr.msk.bf16.gmra.mrb[40].mxu0 %vm18353_vm0, %v14452_v37 }
 0x409   : > { %11164 = vmatprep.mubr.msk.bf16.mxu0 %vm18353_vm0, %v14460_v55 }
 0x410   : > { %11165 = vmatmul.mubr.msk.bf16.gmra.mrb[44].mxu0 %vm18353_vm0, %v14468_v1 }
 0x429   : > { %v2683_v23 = vpop.permute.xlu1 %2682  ;;  %v14490_v43 = vpop.permute.xlu0 %2192 }
 0x42a   : > { %11752 = vmatprep.subr.msk.bf16.mxu1 %vm18353_vm0, %v14490_v43  ;;  %11760 = vmatprep.subr.msk.bf16.mxu0 %vm18353_vm0, %v2683_v23  ;;  %v2723_v61 = vsel %vm18353_vm0, %v2683_v23, 0  ;;  %v18623_v23 = vmov 0 }
 0x42b   : > { %11265 = vmatpush3.bf16.xpose.msra.mxu0 %v2723_v61  ;;  %v18624_v23 = vsel %vm14531_vm4, 4294967295, %v18623_v23  ;;  %v1081_v61 = vadd.s32 56, %v14496_v0 }
 0x42c   : > { %18625 = vst [vmem:[#allocation73_spill] sm:$0xff] %v18624_v23 }
 0x42d   : > { %vm14553_vm6 = vcmp.le.s32.totalorder %v14499_v58, %v1081_v61  ;;  %v1084_v61 = vadd.s32 80, %v14496_v0 }
 0x42f   : > { %vm14586_vm9 = vcmp.le.s32.totalorder %v14499_v58, %v1084_v61  ;;  %v1083_v61 = vadd.s32 72, %v14496_v0 }
 0x431   : > { %vm14619_vm12 = vcmp.le.s32.totalorder %v14499_v58, %v1083_v61 }
 0x4cb   : > { %v11154_v29 = vpop.f32.mrb[32].mxu0 }
 0x4cc   : > { %v1816_v35 = vpop.f32.mrb[33].mxu0  ;;  %v1881_v40 = vmul.f32 0.088388346, %v11154_v29  ;;  %v1078_v29 = vadd.s32 32, %v14496_v0 }
 0x4cd   : > { %v11155_v48 = vpop.f32.mrb[34].mxu0  ;;  %v1879_v59 = vmul.f32 0.088388346, %v1816_v35 }
 0x4ce   : > { %v1819_v52 = vpop.f32.mrb[35].mxu0  ;;  %v14515_v12 = vsel %vm14503_vm1, %v1881_v40, -inf  ;;  %v1882_v62 = vmul.f32 0.088388346, %v11155_v48  ;;  %vm14564_vm7 = vcmp.le.s32.totalorder %v14499_v58, %v1078_v29 }
 0x4cf   : > { %1915 = vmax.xlane.f32.xlu0 %v14515_v12  ;;  %v1880_v6 = vmul.f32 0.088388346, %v1819_v52  ;;  %v14538_v15 = vsel %vm14520_vm3, %v1879_v59, -inf  ;;  %v18629_v52 = vmov 0 }
 0x4d0   : > { %v14527_v4 = vsel %vm14508_vm2, %v1882_v62, -inf  ;;  %v18630_v52 = vsel %vm14553_vm6, 4294967295, %v18629_v52  ;;  %v1079_v62 = vadd.s32 40, %v14496_v0 }
 0x4d1   : > { %1917 = vmax.xlane.f32.xlu1 %v14527_v4  ;;  %v14549_v40 = vsel %vm14531_vm4, %v1880_v6, -inf  ;;  %18631 = vst [vmem:[#allocation75_spill] sm:$0xff] %v18630_v52  ;;  %v18632_v6 = vmov 0 }
 0x4d2   : > { %v18633_v6 = vsel %vm14564_vm7, 4294967295, %v18632_v6  ;;  %vm14575_vm8 = vcmp.le.s32.totalorder %v14499_v58, %v1079_v62 }
 0x4d3   : > { %1911 = vmax.xlane.f32.xlu0 %v14538_v15  ;;  %v11158_v18 = vpop.f32.mrb[36].mxu0  ;;  %18634 = vst [vmem:[#allocation76_spill] sm:$0xff] %v18633_v6 }
 0x4d4   : > { %v1832_v35 = vpop.f32.mrb[37].mxu0  ;;  %v1885_v48 = vmul.f32 0.088388346, %v11158_v18 }
 0x4d5   : > { %1913 = vmax.xlane.f32.xlu1 %v14549_v40  ;;  %v11159_v51 = vpop.f32.mrb[38].mxu0  ;;  %v1883_v47 = vmul.f32 0.088388346, %v1832_v35  ;;  %v1085_v35 = vadd.s32 88, %v14496_v0 }
 0x4d6   : > { %v1835_v59 = vpop.f32.mrb[39].mxu0  ;;  %v14560_v63 = vsel %vm14542_vm5, %v1885_v48, -inf  ;;  %v1886_v50 = vmul.f32 0.088388346, %v11159_v51  ;;  %v18635_v48 = vmov 0 }
 0x4d7   : > { %1923 = vmax.xlane.f32.xlu0 %v14560_v63  ;;  %v1884_v46 = vmul.f32 0.088388346, %v1835_v59  ;;  %v18636_v48 = vsel %vm14575_vm8, 4294967295, %v18635_v48  ;;  %v14582_v29 = vsel %vm14564_vm7, %v1883_v47, -inf  ;;  %v1082_v59 = vadd.s32 64, %v14496_v0 }
 0x4d8   : > { %v14571_v18 = vsel %vm14553_vm6, %v1886_v50, -inf  ;;  %18637 = vst [vmem:[#allocation77_spill] sm:$0xff] %v18636_v48  ;;  %v18638_v50 = vmov 0  ;;  %vm14597_vm10 = vcmp.le.s32.totalorder %v14499_v58, %v1085_v35  ;;  %v1088_v35 = vadd.s32 112, %v14496_v0 }
 0x4d9   : > { %1925 = vmax.xlane.f32.xlu1 %v14571_v18  ;;  %v18639_v50 = vsel %vm14586_vm9, 4294967295, %v18638_v50  ;;  %v14593_v45 = vsel %vm14575_vm8, %v1884_v46, -inf  ;;  %v18642_v39 = vsel %vm14597_vm10, 4294967295, %v18641_v39  ;;  %vm14608_vm11 = vcmp.le.s32.totalorder %v14499_v58, %v1082_v59 }
 0x4da   : > { %18640 = vst [vmem:[#allocation78_spill] sm:$0xff] %v18639_v50  ;;  %18643 = vst [vmem:[#allocation79_spill] sm:$0xff] %v18642_v39  ;;  %v18644_v46 = vmov 0  ;;  %vm14629_vm13 = vcmp.le.s32.totalorder %v14499_v58, %v1088_v35 }
 0x4db   : > { %1919 = vmax.xlane.f32.xlu0 %v14582_v29  ;;  %v11162_v51 = vpop.f32.mrb[40].mxu0  ;;  %v18645_v46 = vsel %vm14608_vm11, 4294967295, %v18644_v46 }
 0x4dc   : > { %v1848_v62 = vpop.f32.mrb[41].mxu0  ;;  %v1889_v42 = vmul.f32 0.088388346, %v11162_v51  ;;  %18646 = vst [vmem:[#allocation80_spill] sm:$0xff] %v18645_v46 }
 0x4dd   : > { %1921 = vmax.xlane.f32.xlu1 %v14593_v45  ;;  %v11163_v47 = vpop.f32.mrb[42].mxu0  ;;  %v1887_v27 = vmul.f32 0.088388346, %v1848_v62 }
 0x4de   : > { %v1851_v36 = vpop.f32.mrb[43].mxu0  ;;  %v14604_v33 = vsel %vm14586_vm9, %v1889_v42, -inf  ;;  %v1890_v30 = vmul.f32 0.088388346, %v11163_v47  ;;  %v18647_v42 = vmov 0  ;;  %v18650_v47 = vmov 0 }
 0x4df   : > { %1931 = vmax.xlane.f32.xlu0 %v14604_v33  ;;  %v1888_v24 = vmul.f32 0.088388346, %v1851_v36  ;;  %v18648_v42 = vsel %vm14619_vm12, 4294967295, %v18647_v42  ;;  %v14625_v59 = vsel %vm14608_vm11, %v1887_v27, -inf  ;;  %v18651_v47 = vsel %vm14629_vm13, 4294967295, %v18650_v47 }
 0x4e0   : > { %v14615_v51 = vsel %vm14597_vm10, %v1890_v30, -inf  ;;  %18649 = vst [vmem:[#allocation81_spill] sm:$0xff] %v18648_v42  ;;  %18652 = vst [vmem:[#allocation82_spill] sm:$0xff] %v18651_v47  ;;  %v1086_v30 = vadd.s32 96, %v14496_v0 }
 0x4e1   : > { %1933 = vmax.xlane.f32.xlu1 %v14615_v51  ;;  %v14636_v61 = vsel %vm14619_vm12, %v1888_v24, -inf }
 0x4e2   : > { %vm14645_vm14 = vcmp.le.s32.totalorder %v14499_v58, %v1086_v30  ;;  %v18656_v30 = vmov 0 }
 0x4e3   : > { %1927 = vmax.xlane.f32.xlu0 %v14625_v59  ;;  %v11166_v62 = vpop.f32.mrb[44].mxu0  ;;  %v18654_v7 = vsel %vm14645_vm14, 4294967295, %v18653_v7 }
 0x4e4   : > { %v1864_v36 = vpop.f32.mrb[45].mxu0  ;;  %v1893_v17 = vmul.f32 0.088388346, %v11166_v62  ;;  %18655 = vst [vmem:[#allocation83_spill] sm:$0xff] %v18654_v7 }
 0x4e5   : > { %1929 = vmax.xlane.f32.xlu1 %v14636_v61  ;;  %v11167_v27 = vpop.f32.mrb[46].mxu0  ;;  %v1891_v35 = vmul.f32 0.088388346, %v1864_v36  ;;  %v1087_v36 = vadd.s32 104, %v14496_v0 }
 0x4e6   : > { %v1867_v16 = vpop.f32.mrb[47].mxu0  ;;  %v14641_v11 = vsel %vm14629_vm13, %v1893_v17, -inf  ;;  %v1089_v17 = vadd.s32 120, %v14496_v0  ;;  %v1894_v62 = vmul.f32 0.088388346, %v11167_v27  ;;  %v14682_v0 = vpop.permute.xlu1 %2194 }
 0x4e7   : > { %1939 = vmax.xlane.f32.xlu0 %v14641_v11  ;;  %v14651_v24 = vsel %vm14645_vm14, %v1891_v35, -inf  ;;  %v1892_v10 = vmul.f32 0.088388346, %v1867_v16  ;;  %vm14671_vm0 = vcmp.le.s32.totalorder %v14499_v58, %v1087_v36  ;;  %vm18662_vm14 = vcmask 261120  }
 0x4e8   : > { %vm14660_vm15 = vcmp.le.s32.totalorder %v14499_v58, %v1089_v17  ;;  %v18660_v3 = vsel %vm14671_vm0, 4294967295, %v18659_v3  ;;  %v14680_v17 = vpop.permute.xlu0 %2196  ;;  %vm18666_vm13 = vmmov %vm18662_vm14 }
 0x4e9   : > { %v18657_v30 = vsel %vm14660_vm15, 4294967295, %v18656_v30  ;;  %v14667_v35 = vsel %vm14660_vm15, %v1894_v62, -inf  ;;  %18661 = vst [vmem:[#allocation85_spill] sm:$0xff] %v18660_v3  ;;  %v14677_v27 = vsel %vm14671_vm0, %v1892_v10, -inf  ;;  %vm18663_vm15 = vmmov %vm18662_vm14 }
 0x4ea   : > { %18658 = vst [vmem:[#allocation84_spill] sm:$0xff] %v18657_v30  ;;  %v14686_v16 = vpop.permute.xlu1 %2198  ;;  %vm18667_vm0 = vmmov %vm18666_vm13 }
 0x4eb   : > { %1935 = vmax.xlane.f32.xlu0 %v14651_v24  ;;  %vm18668_vm10 = vmmov %vm18667_vm0 }
 0x4ec   : > { %v14684_v62 = vpop.permute.xlu0 %2200  ;;  %vm18674_vm9 = vmmov %vm18667_vm0 }
 0x4ed   : > { %vm18685_vm12 = vmmov %vm18667_vm0 }
 0x4ee   : > { %vm18686_vm11 = vmmov %vm18667_vm0 }
 0x4ef   : > { %vm18690_vm6 = vmmov %vm18667_vm0 }
 0x4f6   : > { %2684 = vrot.lane.b32.xlu1 %v14388_v31, %s13606_s19 }
 0x501   : > { %2202 = vrot.lane.b32.xlu0 %v14454_v38, %s13607_s15 }
 0x51a   : > { %1941 = vmax.xlane.f32.xlu1 %v14667_v35 }
 0x51e   : > { %1937 = vmax.xlane.f32.xlu1 %v14677_v27 }
 0x55c   : > { %v1916_v22 = vpop.xlane.xlu0 %1915 }
 0x55d   : > { %v1945_v58 = vsub.f32 %v14515_v12, %v1916_v22 }
 0x55e   : > { %v1918_v36 = vpop.xlane.xlu1 %1917 }
 0x55f   : > { %v1963_v31 = vmul.f32 1.442695, %v1945_v58  ;;  %v1946_v13 = vsub.f32 %v14527_v4, %v1918_v36 }
 0x560   : > { %v1912_v56 = vpop.xlane.xlu0 %1911 }
 0x561   : > { %12515 = vpow2.f32 %v1963_v31  ;;  %v1965_v10 = vmul.f32 1.442695, %v1946_v13  ;;  %v1943_v8 = vsub.f32 %v14538_v15, %v1912_v56 }
 0x562   : > { %v1914_v57 = vpop.xlane.xlu1 %1913 }
 0x563   : > { %12517 = vpow2.f32 %v1965_v10  ;;  %v1959_v41 = vmul.f32 1.442695, %v1943_v8  ;;  %v1944_v7 = vsub.f32 %v14549_v40, %v1914_v57 }
 0x564   : > { %v1924_v30 = vpop.xlane.xlu0 %1923 }
 0x565   : > { %12519 = vpow2.f32 %v1959_v41  ;;  %v1961_v47 = vmul.f32 1.442695, %v1944_v7  ;;  %v1949_v3 = vsub.f32 %v14560_v63, %v1924_v30 }
 0x566   : > { %v1926_v22 = vpop.xlane.xlu1 %1925 }
 0x567   : > { %12521 = vpow2.f32 %v1961_v47  ;;  %v1971_v12 = vmul.f32 1.442695, %v1949_v3  ;;  %v1950_v31 = vsub.f32 %v14571_v18, %v1926_v22 }
 0x568   : > { %v1920_v58 = vpop.xlane.xlu0 %1919 }
 0x569   : > { %12523 = vpow2.f32 %v1971_v12  ;;  %v1947_v13 = vsub.f32 %v14582_v29, %v1920_v58  ;;  %v1973_v15 = vmul.f32 1.442695, %v1950_v31 }
 0x56a   : > { %v1922_v56 = vpop.xlane.xlu1 %1921 }
 0x56b   : > { %v14695_v4 = vpop.eup %12515  ;;  %v1967_v8 = vmul.f32 1.442695, %v1947_v13  ;;  %v1948_v57 = vsub.f32 %v14593_v45, %v1922_v56 }
 0x56c   : > { %1995 = vadd.xlane.f32.xlu0 %v14695_v4  ;;  %v1932_v7 = vpop.xlane.xlu0 %1931 }
 0x56d   : > { %v14699_v41 = vpop.eup %12517  ;;  %12525 = vpow2.f32 %v1967_v8  ;;  %v1969_v3 = vmul.f32 1.442695, %v1948_v57  ;;  %v1953_v40 = vsub.f32 %v14604_v33, %v1932_v7 }
 0x56e   : > { %v1934_v63 = vpop.xlane.xlu1 %1933  ;;  %1997 = vadd.xlane.f32.xlu1 %v14699_v41 }
 0x56f   : > { %v14703_v18 = vpop.eup %12519  ;;  %12527 = vpow2.f32 %v1969_v3  ;;  %v1979_v47 = vmul.f32 1.442695, %v1953_v40  ;;  %v1954_v33 = vsub.f32 %v14615_v51, %v1934_v63 }
 0x570   : > { %1991 = vadd.xlane.f32.xlu0 %v14703_v18  ;;  %v1928_v29 = vpop.xlane.xlu0 %1927  ;;  %12529 = vpow2.f32 %v1973_v15 }
 0x571   : > { %v14706_v45 = vpop.eup %12521  ;;  %v1951_v30 = vsub.f32 %v14625_v59, %v1928_v29  ;;  %12531 = vpow2.f32 %v1979_v47  ;;  %v1981_v13 = vmul.f32 1.442695, %v1954_v33 }
 0x572   : > { %v1930_v36 = vpop.xlane.xlu1 %1929  ;;  %1993 = vadd.xlane.f32.xlu1 %v14706_v45 }
 0x573   : > { %v14710_v10 = vpop.eup %12523  ;;  %v1975_v22 = vmul.f32 1.442695, %v1951_v30  ;;  %v1952_v56 = vsub.f32 %v14636_v61, %v1930_v36 }
 0x574   : > { %2003 = vadd.xlane.f32.xlu0 %v14710_v10  ;;  %v1940_v3 = vpop.xlane.xlu0 %1939 }
 0x575   : > { %12533 = vpow2.f32 %v1975_v22  ;;  %v1977_v8 = vmul.f32 1.442695, %v1952_v56  ;;  %v1957_v40 = vsub.f32 %v14641_v11, %v1940_v3 }
 0x576   : > { %v2685_v12 = vpop.permute.xlu1 %2684  ;;  %12535 = vpow2.f32 %v1981_v13 }
 0x577   : > { %v14714_v58 = vpop.eup %12525  ;;  %11761 = vmatprep.subr.msk.bf16.mxu0 %vm18662_vm14, %v2685_v12  ;;  %v2726_v31 = vsel %vm18663_vm15, %v2685_v12, 0  ;;  %12537 = vpow2.f32 %v1977_v8  ;;  %v1987_v29 = vmul.f32 1.442695, %v1957_v40  ;;  %vm18664_vm15 = vmmov %vm18662_vm14 }
 0x578   : > { %11267 = vmatpush3.bf16.xpose.msra.mxu0 %v2726_v31  ;;  %1999 = vadd.xlane.f32.xlu1 %v14714_v58  ;;  %v1936_v63 = vpop.xlane.xlu0 %1935 }
 0x579   : > { %v14719_v59 = vpop.eup %12527  ;;  %v1955_v47 = vsub.f32 %v14651_v24, %v1936_v63  ;;  %12539 = vpow2.f32 %v1987_v29 }
 0x57a   : > { %2001 = vadd.xlane.f32.xlu0 %v14719_v59  ;;  %v14723_v51 = vpop.eup %12529 }
 0x57b   : > { %v14726_v57 = vpop.eup %12531  ;;  %v1983_v30 = vmul.f32 1.442695, %v1955_v47 }
 0x57c   : > { %2005 = vadd.xlane.f32.xlu1 %v14723_v51 }
 0x57d   : > { %12541 = vpow2.f32 %v1983_v30 }
 0x57f   : > { %v14729_v7 = vpop.eup %12533 }
 0x580   : > { %2011 = vadd.xlane.f32.xlu1 %v14726_v57  ;;  %v14732_v15 = vpop.eup %12535 }
 0x581   : > { %v14735_v61 = vpop.eup %12537 }
 0x583   : > { %v14745_v31 = vpop.eup %12539 }
 0x584   : > { %2007 = vadd.xlane.f32.xlu1 %v14729_v7 }
 0x587   : > { %v14749_v13 = vpop.eup %12541 }
 0x588   : > { %2013 = vadd.xlane.f32.xlu1 %v14732_v15 }
 0x58c   : > { %2009 = vadd.xlane.f32.xlu1 %v14735_v61 }
 0x590   : > { %2204 = vrot.lane.b32.xlu0 %v14462_v53, %s13607_s15 }
 0x59d   : > { %2686 = vrot.lane.b32.xlu1 %v14406_v54, %s13606_s19 }
 0x5a7   : > { %v1942_v36 = vpop.xlane.xlu1 %1941 }
 0x5a8   : > { %v1958_v33 = vsub.f32 %v14667_v35, %v1942_v36 }
 0x5aa   : > { %v1989_v22 = vmul.f32 1.442695, %v1958_v33 }
 0x5ab   : > { %v1938_v12 = vpop.xlane.xlu1 %1937 }
 0x5ac   : > { %12543 = vpow2.f32 %v1989_v22  ;;  %v1956_v11 = vsub.f32 %v14677_v27, %v1938_v12  ;;  %v14796_v27 = vpop.permute.xlu0 %2202 }
 0x5ae   : > { %v1985_v56 = vmul.f32 1.442695, %v1956_v11 }
 0x5af   : > { %2019 = vadd.xlane.f32.xlu0 %v14745_v31 }
 0x5b0   : > { %12545 = vpow2.f32 %v1985_v56 }
 0x5b3   : > { %2015 = vadd.xlane.f32.xlu0 %v14749_v13 }
 0x5b6   : > { %v14752_v24 = vpop.eup %12543 }
 0x5b7   : > { %2021 = vadd.xlane.f32.xlu0 %v14752_v24 }
 0x5ba   : > { %v14755_v35 = vpop.eup %12545 }
 0x5c1   : > { %2017 = vadd.xlane.f32.xlu1 %v14755_v35 }
 0x5cd   : > { %2206 = vrot.lane.b32.xlu0 %v14470_v14, %s13607_s15 }
 0x5d1   : > { %2168 = vrot.lane.b32.xlu0 %v14366_v9, %s13607_s15 }
 0x5d2   : > { %2688 = vrot.lane.b32.xlu1 %v14424_v19, %s13606_s19 }
 0x5d5   : > { %2690 = vrot.lane.b32.xlu0 %v14442_v28, %s13606_s19 }
 0x5d6   : > { %2170 = vrot.lane.b32.xlu1 %v14385_v34, %s13607_s15 }
 0x5d9   : > { %2174 = vrot.lane.b32.xlu0 %v14421_v5, %s13607_s15 }
 0x5da   : > { %2172 = vrot.lane.b32.xlu1 %v14403_v49, %s13607_s15 }
 0x5dd   : > { %2176 = vrot.lane.b32.xlu0 %v14439_v21, %s13607_s15 }
 0x5de   : > { %2692 = vrot.lane.b32.xlu1 %v14454_v38, %s13606_s19 }
 0x5e1   : > { %2694 = vrot.lane.b32.xlu0 %v14462_v53, %s13606_s19 }
 0x5e2   : > { %2178 = vrot.lane.b32.xlu1 %v14452_v37, %s13607_s15 }
 0x5e5   : > { %2182 = vrot.lane.b32.xlu0 %v14468_v1, %s13607_s15 }
 0x5e6   : > { %2180 = vrot.lane.b32.xlu1 %v14460_v55, %s13607_s15 }
 0x5e9   : > { %2666 = vrot.lane.b32.xlu0 %v14366_v9, %s13606_s19 }
 0x5ea   : > { %2696 = vrot.lane.b32.xlu1 %v14470_v14, %s13606_s19 }
 0x5ed   : > { %2670 = vrot.lane.b32.xlu0 %v14403_v49, %s13606_s19 }
 0x5ee   : > { %2668 = vrot.lane.b32.xlu1 %v14385_v34, %s13606_s19 }
 0x5f1   : > { %2674 = vrot.lane.b32.xlu0 %v14439_v21, %s13606_s19  ;;  %v18732_v21 = vld [vmem:[#allocation59_spill] sm:$0xff] }
 0x5f2   : > { %2672 = vrot.lane.b32.xlu1 %v14421_v5, %s13606_s19 }
 0x5f5   : > { %2678 = vrot.lane.b32.xlu0 %v14460_v55, %s13606_s19  ;;  %v18726_v55 = vld [vmem:[#allocation84_spill] sm:$0xff] }
 0x5f6   : > { %2676 = vrot.lane.b32.xlu1 %v14452_v37, %s13606_s19 }
 0x5f9   : > { %v1996_v8 = vpop.xlane.xlu0 %1995 }
 0x5fa   : > { %2680 = vrot.lane.b32.xlu1 %v14468_v1, %s13606_s19 }
 0x5fb   : > { %v1998_v3 = vpop.xlane.xlu1 %1997 }
 0x5fc   : > { %12547 = vrcp.f32 %v1998_v3 }
 0x5fd   : > { %v1992_v40 = vpop.xlane.xlu0 %1991 }
 0x5fe   : > { %12549 = vrcp.f32 %v1992_v40 }
 0x5ff   : > { %12551 = vrcp.f32 %v1996_v8  ;;  %v1994_v63 = vpop.xlane.xlu1 %1993 }
 0x600   : > { %12553 = vrcp.f32 %v1994_v63 }
 0x601   : > { %v2004_v29 = vpop.xlane.xlu0 %2003 }
 0x605   : > { %v2000_v47 = vpop.xlane.xlu1 %1999 }
 0x606   : > { %12555 = vrcp.f32 %v2000_v47  ;;  %v12548_v30 = vpop.eup %12547 }
 0x607   : > { %12557 = vrcp.f32 %v2004_v29  ;;  %v2002_v36 = vpop.xlane.xlu0 %2001  ;;  %v2030_v56 = vmul.f32 %v12548_v30, %v14699_v41 }
 0x608   : > { %v12550_v33 = vpop.eup %12549  ;;  %12559 = vrcp.f32 %v2002_v36  ;;  %v2233_v36 = vsel %vm18662_vm14, %v14490_v43, 0 }
 0x609   : > { %v12552_v22 = vpop.eup %12551  ;;  %v2006_v12 = vpop.xlane.xlu1 %2005  ;;  %v2024_v3 = vmul.f32 %v12550_v33, %v14703_v18 }
 0x60a   : > { %v12554_v11 = vpop.eup %12553  ;;  %12561 = vrcp.f32 %v2006_v12  ;;  %v2028_v40 = vmul.f32 %v12552_v22, %v14695_v4  ;;  %v2236_v12 = vsel %vm18662_vm14, %v14682_v0, 0 }
 0x60b   : > { %v2026_v8 = vmul.f32 %v12554_v11, %v14706_v45 }
 0x60c   : > { %v2056_v47 = vpack.c.bf16 %v2030_v56, %v2028_v40 }
 0x60d   : > { %v2012_v63 = vpop.xlane.xlu1 %2011  ;;  %v2055_v1 = vpack.c.bf16 %v2026_v8, %v2024_v3 }
 0x60f   : > { %11184 = vmatprep.mubr.bf16.mxu1 %v2055_v1 }
 0x610   : > { %v12556_v29 = vpop.eup %12555  ;;  %11185 = vmatmul.mubr.bf16.vlgmr.msra.gmra.mrb[16].mxu1 %v2056_v47 }
 0x611   : > { %v12558_v37 = vpop.eup %12557  ;;  %11201 = vmatpush3.bf16.xpose.msra.mxu1 %v2233_v36  ;;  %v2008_v5 = vpop.xlane.xlu1 %2007  ;;  %v2032_v18 = vmul.f32 %v12556_v29, %v14714_v58 }
 0x612   : > { %v12560_v41 = vpop.eup %12559  ;;  %11753 = vmatprep.subr.msk.bf16.mxu1 %vm18664_vm15, %v14682_v0  ;;  %v2036_v1 = vmul.f32 %v12558_v37, %v14710_v10  ;;  %vm18665_vm15 = vmmov %vm18662_vm14 }
 0x613   : > { %v2034_v4 = vmul.f32 %v12560_v41, %v14719_v59  ;;  %vm18669_vm14 = vmmov %vm18667_vm0 }
 0x614   : > { %v12562_v45 = vpop.eup %12561 }
 0x615   : > { %v2014_v30 = vpop.xlane.xlu1 %2013  ;;  %v2057_v33 = vpack.c.bf16 %v2034_v4, %v2032_v18  ;;  %v2038_v22 = vmul.f32 %v12562_v45, %v14723_v51 }
 0x616   : > { %12563 = vrcp.f32 %v2014_v30 }
 0x617   : > { %11188 = vmatprep.mubr.bf16.mxu1 %v2057_v33  ;;  %v2058_v43 = vpack.c.bf16 %v2038_v22, %v2036_v1  ;;  %12565 = vrcp.f32 %v2008_v5  ;;  %v2239_v5 = vsel %vm18668_vm10, %v14680_v17, 0  ;;  %vm18670_vm10 = vmmov %vm18667_vm0 }
 0x618   : > { %12567 = vrcp.f32 %v2012_v63 }
 0x619   : > { %11203 = vmatpush3.bf16.xpose.msra.mxu1 %v2236_v12  ;;  %v2010_v11 = vpop.xlane.xlu1 %2009 }
 0x61a   : > { %12569 = vrcp.f32 %v2010_v11  ;;  %11189 = vmatmul.mubr.bf16.gmra.mrb[20].mxu1 %v2058_v43  ;;  %11754 = vmatprep.subr.msk.bf16.mxu1 %vm18665_vm15, %v14680_v17  ;;  %v2242_v17 = vsel %vm18667_vm0, %v14686_v16, 0  ;;  %vm18672_vm15 = vmmov %vm18667_vm0 }
 0x61d   : > { %v2687_v58 = vpop.permute.xlu1 %2686 }
 0x61e   : > { %11762 = vmatprep.subr.msk.bf16.mxu0 %vm18666_vm13, %v2687_v58  ;;  %v2729_v37 = vsel %vm18667_vm0, %v2687_v58, 0  ;;  %vm18671_vm13 = vmmov %vm18667_vm0 }
 0x61f   : > { %11269 = vmatpush3.bf16.xpose.msra.mxu0 %v2729_v37 }
 0x620   : > { %v12564_v10 = vpop.eup %12563 }
 0x621   : > { %11205 = vmatpush3.bf16.xpose.msra.mxu1 %v2239_v5  ;;  %v12566_v0 = vpop.eup %12565  ;;  %v2046_v56 = vmul.f32 %v12564_v10, %v14732_v15  ;;  %v2245_v15 = vsel %vm18671_vm13, %v14684_v62, 0  ;;  %vm18676_vm13 = vmmov %vm18667_vm0 }
 0x622   : > { %11755 = vmatprep.subr.msk.bf16.mxu1 %vm18669_vm14, %v14686_v16  ;;  %v12568_v59 = vpop.eup %12567  ;;  %v2040_v3 = vmul.f32 %v12566_v0, %v14729_v7  ;;  %v2205_v7 = vpop.permute.xlu0 %2204  ;;  %vm18673_vm14 = vmmov %vm18667_vm0 }
 0x623   : > { %v2044_v40 = vmul.f32 %v12568_v59, %v14726_v57  ;;  %v2248_v57 = vsel %vm18673_vm14, %v14796_v27, 0  ;;  %vm18679_vm14 = vmmov %vm18667_vm0 }
 0x624   : > { %v12570_v51 = vpop.eup %12569 }
 0x625   : > { %v2042_v8 = vmul.f32 %v12570_v51, %v14735_v61  ;;  %v2060_v47 = vpack.c.bf16 %v2046_v56, %v2044_v40  ;;  %v2251_v61 = vsel %vm18674_vm9, %v2205_v7, 0  ;;  %vm18678_vm9 = vmmov %vm18667_vm0 }
 0x627   : > { %v2059_v63 = vpack.c.bf16 %v2042_v8, %v2040_v3 }
 0x629   : > { %11207 = vmatpush3.bf16.xpose.msra.mxu1 %v2242_v17  ;;  %11192 = vmatprep.mubr.bf16.mxu1 %v2059_v63 }
 0x62a   : > { %11756 = vmatprep.subr.msk.bf16.mxu1 %vm18670_vm10, %v14684_v62  ;;  %11193 = vmatmul.mubr.bf16.gmra.mrb[24].mxu1 %v2060_v47  ;;  %vm18675_vm10 = vmmov %vm18667_vm0 }
 0x631   : > { %11209 = vmatpush3.bf16.xpose.msra.mxu1 %v2245_v15 }
 0x632   : > { %11757 = vmatprep.subr.msk.bf16.mxu1 %vm18672_vm15, %v14796_v27  ;;  %vm18677_vm15 = vmmov %vm18667_vm0 }
 0x639   : > { %11211 = vmatpush3.bf16.xpose.msra.mxu1 %v2248_v57 }
 0x63a   : > { %11758 = vmatprep.subr.msk.bf16.mxu1 %vm18667_vm0, %v2205_v7 }
 0x63c   : > { %v2020_v16 = vpop.xlane.xlu0 %2019 }
 0x640   : > { %v2016_v29 = vpop.xlane.xlu0 %2015 }
 0x641   : > { %11213 = vmatpush3.bf16.xpose.msra.mxu1 %v2251_v61 }
 0x644   : > { %v2022_v36 = vpop.xlane.xlu0 %2021 }
 0x645   : > { %12571 = vrcp.f32 %v2022_v36 }
 0x646   : > { %12573 = vrcp.f32 %v2016_v29 }
 0x647   : > { %12575 = vrcp.f32 %v2020_v16 }
 0x648   : > { %v2207_v41 = vpop.permute.xlu0 %2206 }
 0x649   : > { %11759 = vmatprep.subr.msk.bf16.mxu1 %vm18675_vm10, %v2207_v41  ;;  %v2254_v62 = vsel %vm18676_vm13, %v2207_v41, 0  ;;  %vm18680_vm10 = vmmov %vm18667_vm0 }
 0x64a   : > { %11215 = vmatpush3.bf16.xpose.msra.mxu1 %v2254_v62  ;;  %vm18681_vm13 = vmmov %vm18667_vm0 }
 0x64c   : > { %v2169_v18 = vpop.permute.xlu0 %2168 }
 0x64e   : > { %v2018_v27 = vpop.xlane.xlu1 %2017 }
 0x64f   : > { %12577 = vrcp.f32 %v2018_v27  ;;  %v12572_v1 = vpop.eup %12571 }
 0x650   : > { %v2691_v4 = vpop.permute.xlu0 %2690  ;;  %v12574_v43 = vpop.eup %12573  ;;  %v2054_v37 = vmul.f32 %v12572_v1, %v14752_v24 }
 0x651   : > { %v12576_v12 = vpop.eup %12575  ;;  %v2048_v10 = vmul.f32 %v12574_v43, %v14749_v13  ;;  %v2735_v59 = vsel %vm18667_vm0, %v2691_v4, 0 }
 0x652   : > { %v2689_v45 = vpop.permute.xlu1 %2688  ;;  %v2052_v51 = vmul.f32 %v12576_v12, %v14745_v31 }
 0x653   : > { %11763 = vmatprep.subr.msk.bf16.mxu0 %vm18677_vm15, %v2689_v45  ;;  %v2732_v30 = vsel %vm18678_vm9, %v2689_v45, 0  ;;  %vm18682_vm15 = vmmov %vm18667_vm0 }
 0x654   : > { %11271 = vmatpush3.bf16.xpose.msra.mxu0 %v2732_v30  ;;  %v2175_v33 = vpop.permute.xlu0 %2174  ;;  %v2062_v8 = vpack.c.bf16 %v2054_v37, %v2052_v51  ;;  %vm18683_vm9 = vmmov %vm18667_vm0 }
 0x655   : > { %11764 = vmatprep.subr.msk.bf16.mxu0 %vm18679_vm14, %v2691_v4  ;;  %vm18684_vm14 = vmmov %vm18667_vm0 }
 0x656   : > { %v2171_v22 = vpop.permute.xlu1 %2170 }
 0x658   : > { %v2177_v11 = vpop.permute.xlu0 %2176 }
 0x659   : > { %v12578_v58 = vpop.eup %12577 }
 0x65a   : > { %v2173_v5 = vpop.permute.xlu1 %2172  ;;  %v2050_v0 = vmul.f32 %v12578_v58, %v14755_v35 }
 0x65c   : > { %11273 = vmatpush3.bf16.xpose.msra.mxu0 %v2735_v59  ;;  %v2695_v56 = vpop.permute.xlu0 %2694  ;;  %v2061_v3 = vpack.c.bf16 %v2050_v0, %v2048_v10 }
 0x65d   : > { %v2741_v17 = vsel %vm18686_vm11, %v2695_v56, 0  ;;  %vm18694_vm11 = vmmov %vm18667_vm0 }
 0x65e   : > { %v2693_v40 = vpop.permute.xlu1 %2692  ;;  %11196 = vmatprep.mubr.bf16.mxu1 %v2061_v3 }
 0x65f   : > { %11197 = vmatmul.mubr.bf16.gmra.mrb[28].mxu1 %v2062_v8  ;;  %11765 = vmatprep.subr.msk.bf16.mxu0 %vm18680_vm10, %v2693_v40  ;;  %v2738_v13 = vsel %vm18682_vm15, %v2693_v40, 0  ;;  %vm18687_vm10 = vmmov %vm18667_vm0 }
 0x660   : > { %11216 = vmatprep.mubr.msk.bf16.mxu1 %vm18681_vm13, %v2169_v18  ;;  %v2183_v24 = vpop.permute.xlu0 %2182  ;;  %vm18688_vm13 = vmmov %vm18667_vm0 }
 0x661   : > { %vm18689_vm15 = vmmov %vm18667_vm0 }
 0x662   : > { %v2179_v63 = vpop.permute.xlu1 %2178 }
 0x664   : > { %11275 = vmatpush3.bf16.xpose.msra.mxu0 %v2738_v13  ;;  %v2667_v35 = vpop.permute.xlu0 %2666 }
 0x665   : > { %11766 = vmatprep.subr.msk.bf16.mxu0 %vm18683_vm9, %v2695_v56  ;;  %11280 = vmatprep.mubr.msk.bf16.mxu0 %vm18684_vm14, %v2667_v35  ;;  %vm18691_vm9 = vmmov %vm18667_vm0 }
 0x666   : > { %v2181_v31 = vpop.permute.xlu1 %2180  ;;  %vm18692_vm14 = vmmov %vm18667_vm0 }
 0x667   : > { %11217 = vmatmul.mubr.msk.bf16.vlgmr.msra.gmra.mrb[32].mxu1 %vm18667_vm0, %v2171_v22 }
 0x668   : > { %11220 = vmatprep.mubr.msk.bf16.mxu1 %vm18685_vm12, %v2173_v5  ;;  %v2671_v57 = vpop.permute.xlu0 %2670  ;;  %vm18693_vm12 = vmmov %vm18667_vm0 }
 0x66a   : > { %v2697_v47 = vpop.permute.xlu1 %2696 }
 0x66b   : > { %v2744_v15 = vsel %vm18690_vm6, %v2697_v47, 0  ;;  %vm18697_vm6 = vmmov %vm18667_vm0 }
 0x66c   : > { %11277 = vmatpush3.bf16.xpose.msra.mxu0 %v2741_v17  ;;  %v2675_v61 = vpop.permute.xlu0 %2674 }
 0x66d   : > { %11767 = vmatprep.subr.msk.bf16.mxu0 %vm18687_vm10, %v2697_v47  ;;  %vm18695_vm10 = vmmov %vm18667_vm0 }
 0x66e   : > { %v2669_v7 = vpop.permute.xlu1 %2668 }
 0x66f   : > { %11221 = vmatmul.mubr.msk.bf16.gmra.mrb[36].mxu1 %vm18688_vm13, %v2175_v33  ;;  %vm18696_vm13 = vmmov %vm18667_vm0 }
 0x670   : > { %11224 = vmatprep.mubr.msk.bf16.mxu1 %vm18689_vm15, %v2177_v11  ;;  %v2679_v36 = vpop.permute.xlu0 %2678  ;;  %vm18698_vm15 = vmmov %vm18667_vm0 }
 0x672   : > { %v2673_v16 = vpop.permute.xlu1 %2672 }
 0x674   : > { %11279 = vmatpush3.bf16.xpose.msra.mxu0 %v2744_v15 }
 0x676   : > { %v2677_v29 = vpop.permute.xlu1 %2676 }
 0x677   : > { %11225 = vmatmul.mubr.msk.bf16.gmra.mrb[40].mxu1 %vm18691_vm9, %v2179_v63  ;;  %vm18699_vm9 = vmmov %vm18667_vm0 }
 0x678   : > { %11228 = vmatprep.mubr.msk.bf16.mxu1 %vm18692_vm14, %v2181_v31  ;;  %vm18716_vm14 = vnez %v18630_v52 }
 0x67a   : > { %v2681_v41 = vpop.permute.xlu1 %2680 }
 0x67b   : > { %11281 = vmatmul.mubr.msk.bf16.vlgmr.msra.gmra.mrb[48].mxu0 %vm18693_vm12, %v2669_v7  ;;  %vm18717_vm12 = vnez %v18645_v46 }
 0x67c   : > { %11284 = vmatprep.mubr.msk.bf16.mxu0 %vm18694_vm11, %v2671_v57  ;;  %vm18718_vm11 = vnez %v18648_v42 }
 0x67f   : > { %11229 = vmatmul.mubr.msk.bf16.gmra.mrb[44].mxu1 %vm18667_vm0, %v2183_v24  ;;  %vm18719_vm0 = vnez %v18639_v50 }
 0x683   : > { %11285 = vmatmul.mubr.msk.bf16.gmra.mrb[52].mxu0 %vm18695_vm10, %v2673_v16  ;;  %vm18720_vm10 = vnez %v18642_v39 }
 0x684   : > { %11288 = vmatprep.mubr.msk.bf16.mxu0 %vm18696_vm13, %v2675_v61 }
 0x68b   : > { %11289 = vmatmul.mubr.msk.bf16.gmra.mrb[56].mxu0 %vm18697_vm6, %v2677_v29 }
 0x68c   : > { %11292 = vmatprep.mubr.msk.bf16.mxu0 %vm18698_vm15, %v2679_v36  ;;  %vm18727_vm15 = vnez %v18726_v55 }
 0x693   : > { %11293 = vmatmul.mubr.msk.bf16.gmra.mrb[60].mxu0 %vm18699_vm9, %v2681_v41 }
 0x6e3   : > { %v14874_v62 = vpop.f32.mrb[16].mxu1 }
 0x6e4   : > { %18700 = vst [vmem:[#allocation86_spill] sm:$0xff] %v14874_v62  ;;  %v14876_v18 = vpop.f32.mrb[17].mxu1 }
 0x6e5   : > { %18701 = vst [vmem:[#allocation87_spill] sm:$0xff] %v14876_v18  ;;  %v14878_v27 = vpop.f32.mrb[18].mxu1 }
 0x6e6   : > { %18702 = vst [vmem:[#allocation88_spill] sm:$0xff] %v14878_v27  ;;  %v14880_v4 = vpop.f32.mrb[19].mxu1 }
 0x6e7   : > { %18703 = vst [vmem:[#allocation89_spill] sm:$0xff] %v14880_v4  ;;  %v18724_v4 = vld [vmem:[#allocation82_spill] sm:$0xff] }
 0x6e8   : > { %vm18725_vm6 = vnez %v18724_v4 }
 0x6ed   : > { %v14882_v45 = vpop.f32.mrb[20].mxu1 }
 0x6ee   : > { %18704 = vst [vmem:[#allocation90_spill] sm:$0xff] %v14882_v45  ;;  %v14884_v30 = vpop.f32.mrb[21].mxu1 }
 0x6ef   : > { %18705 = vst [vmem:[#allocation91_spill] sm:$0xff] %v14884_v30  ;;  %v14886_v33 = vpop.f32.mrb[22].mxu1 }
 0x6f0   : > { %18706 = vst [vmem:[#allocation92_spill] sm:$0xff] %v14886_v33  ;;  %v14888_v1 = vpop.f32.mrb[23].mxu1 }
 0x6f1   : > { %18707 = vst [vmem:[#allocation93_spill] sm:$0xff] %v14888_v1 }
 0x6fd   : > { %v14890_v22 = vpop.f32.mrb[24].mxu1 }
 0x6fe   : > { %18708 = vst [vmem:[#allocation94_spill] sm:$0xff] %v14890_v22  ;;  %v14892_v43 = vpop.f32.mrb[25].mxu1 }
 0x6ff   : > { %18709 = vst [vmem:[#allocation95_spill] sm:$0xff] %v14892_v43  ;;  %v14894_v12 = vpop.f32.mrb[26].mxu1 }
 0x700   : > { %18710 = vst [vmem:[#allocation96_spill] sm:$0xff] %v14894_v12  ;;  %v14896_v11 = vpop.f32.mrb[27].mxu1 }
 0x701   : > { %18711 = vst [vmem:[#allocation97_spill] sm:$0xff] %v14896_v11 }
 0x732   : > { %v14898_v58 = vpop.f32.mrb[28].mxu1 }
 0x733   : > { %18712 = vst [vmem:[#allocation98_spill] sm:$0xff] %v14898_v58  ;;  %v14900_v37 = vpop.f32.mrb[29].mxu1 }
 0x734   : > { %18713 = vst [vmem:[#allocation99_spill] sm:$0xff] %v14900_v37  ;;  %v14902_v5 = vpop.f32.mrb[30].mxu1 }
 0x735   : > { %18714 = vst [vmem:[#allocation100_spill] sm:$0xff] %v14902_v5  ;;  %v14904_v10 = vpop.f32.mrb[31].mxu1 }
 0x736   : > { %18715 = vst [vmem:[#allocation101_spill] sm:$0xff] %v14904_v10 }
 0x73a   : > { %v14906_v0 = vpop.f32.mrb[32].mxu1 }
 0x73b   : > { %v14908_v59 = vpop.f32.mrb[33].mxu1 }
 0x73c   : > { %v14910_v51 = vpop.f32.mrb[34].mxu1 }
 0x73d   : > { %v14912_v56 = vpop.f32.mrb[35].mxu1 }
 0x742   : > { %v14914_v3 = vpop.f32.mrb[36].mxu1 }
 0x743   : > { %v14916_v8 = vpop.f32.mrb[37].mxu1 }
 0x744   : > { %v14918_v40 = vpop.f32.mrb[38].mxu1 }
 0x745   : > { %v14920_v24 = vpop.f32.mrb[39].mxu1 }
 0x74a   : > { %v14922_v63 = vpop.f32.mrb[40].mxu1 }
 0x74b   : > { %v14924_v13 = vpop.f32.mrb[41].mxu1 }
 0x74c   : > { %v14926_v35 = vpop.f32.mrb[42].mxu1 }
 0x74d   : > { %v14928_v31 = vpop.f32.mrb[43].mxu1 }
 0x74e   : > { %v11282_v17 = vpop.f32.mrb[48].mxu0 }
 0x74f   : > { %v2780_v47 = vpop.f32.mrb[49].mxu0  ;;  %v2845_v36 = vmul.f32 0.088388346, %v11282_v17 }
 0x750   : > { %v11283_v15 = vpop.f32.mrb[50].mxu0  ;;  %v2843_v7 = vmul.f32 0.088388346, %v2780_v47 }
 0x751   : > { %v2783_v57 = vpop.f32.mrb[51].mxu0  ;;  %v2846_v37 = vmul.f32 0.088388346, %v11283_v15 }
 0x752   : > { %v2844_v16 = vmul.f32 0.088388346, %v2783_v57  ;;  %v14930_v61 = vpop.f32.mrb[44].mxu1  ;;  %v14934_v29 = vsel %vm14520_vm3, %v2843_v7, -inf  ;;  %v14950_v7 = vsel %vm14503_vm1, %v2845_v36, -inf }
 0x753   : > { %v14936_v41 = vpop.f32.mrb[45].mxu1  ;;  %2875 = vmax.xlane.f32.xlu0 %v14934_v29  ;;  %v14955_v43 = vsel %vm14508_vm2, %v2846_v37, -inf }
 0x754   : > { %v14939_v10 = vpop.f32.mrb[46].mxu1  ;;  %v14943_v58 = vsel %vm14531_vm4, %v2844_v16, -inf }
 0x755   : > { %v14945_v47 = vpop.f32.mrb[47].mxu1  ;;  %2877 = vmax.xlane.f32.xlu1 %v14943_v58 }
 0x756   : > { %v11286_v57 = vpop.f32.mrb[52].mxu0 }
 0x757   : > { %2879 = vmax.xlane.f32.xlu0 %v14950_v7  ;;  %v2796_v17 = vpop.f32.mrb[53].mxu0  ;;  %v2849_v11 = vmul.f32 0.088388346, %v11286_v57 }
 0x758   : > { %v2847_v5 = vmul.f32 0.088388346, %v2796_v17  ;;  %v11287_v15 = vpop.f32.mrb[54].mxu0 }
 0x759   : > { %2881 = vmax.xlane.f32.xlu1 %v14955_v43  ;;  %v2799_v16 = vpop.f32.mrb[55].mxu0  ;;  %v2850_v36 = vmul.f32 0.088388346, %v11287_v15  ;;  %v14970_v30 = vsel %vm14542_vm5, %v2849_v11, -inf }
 0x75a   : > { %v2848_v22 = vmul.f32 0.088388346, %v2799_v16  ;;  %v14960_v12 = vsel %vm14564_vm7, %v2847_v5, -inf }
 0x75b   : > { %2883 = vmax.xlane.f32.xlu0 %v14960_v12  ;;  %v14975_v1 = vsel %vm18716_vm14, %v2850_v36, -inf }
 0x75c   : > { %v14965_v17 = vsel %vm14575_vm8, %v2848_v22, -inf }
 0x75d   : > { %2885 = vmax.xlane.f32.xlu1 %v14965_v17 }
 0x75e   : > { %v11290_v37 = vpop.f32.mrb[56].mxu0 }
 0x75f   : > { %2887 = vmax.xlane.f32.xlu0 %v14970_v30  ;;  %v2812_v57 = vpop.f32.mrb[57].mxu0  ;;  %v2853_v62 = vmul.f32 0.088388346, %v11290_v37 }
 0x760   : > { %v2851_v16 = vmul.f32 0.088388346, %v2812_v57  ;;  %v11291_v5 = vpop.f32.mrb[58].mxu0 }
 0x761   : > { %2889 = vmax.xlane.f32.xlu1 %v14975_v1  ;;  %v2815_v22 = vpop.f32.mrb[59].mxu0  ;;  %v2854_v18 = vmul.f32 0.088388346, %v11291_v5  ;;  %v18721_v5 = vld [vmem:[#allocation85_spill] sm:$0xff] }
 0x762   : > { %v2852_v15 = vmul.f32 0.088388346, %v2815_v22  ;;  %v14980_v45 = vsel %vm18717_vm12, %v2851_v16, -inf  ;;  %v14990_v22 = vsel %vm18719_vm0, %v2853_v62, -inf  ;;  %vm18722_vm13 = vnez %v18721_v5 }
 0x763   : > { %v14995_v16 = vsel %vm18720_vm10, %v2854_v18, -inf }
 0x764   : > { %v14985_v57 = vsel %vm18718_vm11, %v2852_v15, -inf }
 0x765   : > { %2891 = vmax.xlane.f32.xlu1 %v14980_v45 }
 0x766   : > { %v11294_v11 = vpop.f32.mrb[60].mxu0 }
 0x767   : > { %v2828_v33 = vpop.f32.mrb[61].mxu0  ;;  %v2857_v62 = vmul.f32 0.088388346, %v11294_v11 }
 0x768   : > { %v11295_v27 = vpop.f32.mrb[62].mxu0  ;;  %v2855_v11 = vmul.f32 0.088388346, %v2828_v33  ;;  %v18734_v33 = vld [vmem:[#allocation60_spill] sm:$0xff] }
 0x769   : > { %2893 = vmax.xlane.f32.xlu1 %v14985_v57  ;;  %v2831_v36 = vpop.f32.mrb[63].mxu0  ;;  %v2858_v18 = vmul.f32 0.088388346, %v11295_v27  ;;  %v15011_v34 = vsel %vm18725_vm6, %v2857_v62, -inf  ;;  %v18730_v27 = vld [vmem:[#allocation53_spill] sm:$0xff]  ;;  %v18731_v62 = vld [vmem:[#allocation56_spill] sm:$0xff] }
 0x76a   : > { %v2856_v37 = vmul.f32 0.088388346, %v2831_v36  ;;  %v18728_v36 = vld [vmem:[#allocation83_spill] sm:$0xff] }
 0x76b   : > { %v15016_v14 = vsel %vm18727_vm15, %v2858_v18, -inf  ;;  %vm18729_vm9 = vnez %v18728_v36  ;;  %v18733_v18 = vld [vmem:[#allocation57_spill] sm:$0xff] }
 0x76c   : > { %v15006_v15 = vsel %vm18722_vm13, %v2856_v37, -inf  ;;  %v15021_v37 = vsel %vm18729_vm9, %v2855_v11, -inf }
 0x76d   : > { %2895 = vmax.xlane.f32.xlu1 %v14990_v22  ;;  %18723 = vst [vmem:[#allocation102_spill] sm:$0xff] %v15006_v15 }
 0x771   : > { %2897 = vmax.xlane.f32.xlu1 %v14995_v16 }
 0x775   : > { %2545 = vrot.lane.b32.xlu0 %v14382_v26, %s13607_s15 }
 0x782   : > { %2547 = vrot.lane.b32.xlu1 %v14378_v20, %s13607_s15 }
 0x786   : > { %2549 = vrot.lane.b32.xlu1 %v14400_v44, %s13607_s15 }
 0x794   : > { %2901 = vmax.xlane.f32.xlu0 %v15006_v15 }
 0x798   : > { %2903 = vmax.xlane.f32.xlu0 %v15011_v34 }
 0x79c   : > { %2905 = vmax.xlane.f32.xlu0 %v15016_v14 }
 0x7aa   : > { %2899 = vmax.xlane.f32.xlu1 %v15021_v37 }
 0x7b2   : > { %2551 = vrot.lane.b32.xlu0 %v18730_v27, %s13607_s15 }
 0x7b6   : > { %2555 = vrot.lane.b32.xlu0 %v18731_v62, %s13607_s15 }
 0x7ba   : > { %2559 = vrot.lane.b32.xlu0 %v18732_v21, %s13607_s15 }
 0x7bb   : > { %2553 = vrot.lane.b32.xlu1 %v18733_v18, %s13607_s15 }
 0x7be   : > { %3029 = vrot.lane.b32.xlu0 %v14378_v20, %s13606_s19 }
 0x7bf   : > { %2557 = vrot.lane.b32.xlu1 %v18734_v33, %s13607_s15 }
 0x7c2   : > { %3033 = vrot.lane.b32.xlu0 %v18730_v27, %s13606_s19 }
 0x7c3   : > { %3027 = vrot.lane.b32.xlu1 %v14382_v26, %s13606_s19 }
 0x7c6   : > { %3037 = vrot.lane.b32.xlu0 %v18731_v62, %s13606_s19 }
 0x7c7   : > { %3031 = vrot.lane.b32.xlu1 %v14400_v44, %s13606_s19 }
 0x7ca   : > { %3039 = vrot.lane.b32.xlu0 %v18734_v33, %s13606_s19 }
 0x7cb   : > { %3035 = vrot.lane.b32.xlu1 %v18733_v18, %s13606_s19 }
 0x7ce   : > { %3041 = vrot.lane.b32.xlu0 %v18732_v21, %s13606_s19 }
 0x7e0   : > { %v2876_v11 = vpop.xlane.xlu0 %2875 }
 0x7e1   : > { %v2907_v26 = vsub.f32 %v14934_v29, %v2876_v11  ;;  %v2356_v11 = vmul.f32 0.088388346, %v14910_v51 }
 0x7e2   : > { %v2878_v20 = vpop.xlane.xlu1 %2877 }
 0x7e3   : > { %v2908_v49 = vsub.f32 %v14943_v58, %v2878_v20  ;;  %v2923_v53 = vmul.f32 1.442695, %v2907_v26  ;;  %v2360_v58 = vmul.f32 0.088388346, %v14918_v40  ;;  %v15117_v51 = vsel %vm14508_vm2, %v2356_v11, -inf }
 0x7e4   : > { %v2880_v27 = vpop.xlane.xlu0 %2879  ;;  %v2368_v11 = vmul.f32 0.088388346, %v14939_v10  ;;  %v2361_v10 = vmul.f32 0.088388346, %v14924_v13  ;;  %v2365_v13 = vmul.f32 0.088388346, %v14936_v41 }
 0x7e5   : > { %v2909_v38 = vsub.f32 %v14950_v7, %v2880_v27  ;;  %v2925_v21 = vmul.f32 1.442695, %v2908_v49  ;;  %v2354_v49 = vmul.f32 0.088388346, %v14912_v56  ;;  %v2353_v56 = vmul.f32 0.088388346, %v14908_v59 }
 0x7e6   : > { %v2882_v62 = vpop.xlane.xlu1 %2881  ;;  %v15099_v40 = vsel %vm18716_vm14, %v2360_v58, -inf }
 0x7e7   : > { %v2927_v44 = vmul.f32 1.442695, %v2909_v38  ;;  %v2910_v9 = vsub.f32 %v14955_v43, %v2882_v62  ;;  %v15085_v27 = vsel %vm14531_vm4, %v2354_v49, -inf  ;;  %v15105_v59 = vsel %vm14520_vm3, %v2353_v56, -inf }
 0x7e8   : > { %v15054_v33 = vpop.xlane.xlu0 %2883  ;;  %v2364_v49 = vmul.f32 0.088388346, %v14926_v35  ;;  %v2362_v56 = vmul.f32 0.088388346, %v14928_v31 }
 0x7e9   : > { %12579 = vpow2.f32 %v2927_v44  ;;  %v2929_v18 = vmul.f32 1.442695, %v2910_v9 }
 0x7ea   : > { %v15056_v28 = vpop.xlane.xlu1 %2885  ;;  %v15123_v35 = vsel %vm18720_vm10, %v2364_v49, -inf  ;;  %v15135_v31 = vsel %vm18718_vm11, %v2362_v56, -inf  ;;  %v15164_v56 = vsel %vm18717_vm12, %v2361_v10, -inf }
 0x7eb   : > { %12581 = vpow2.f32 %v2929_v18 }
 0x7ec   : > { %v15058_v15 = vpop.xlane.xlu0 %2887  ;;  %12583 = vpow2.f32 %v2923_v53  ;;  %v2355_v53 = vmul.f32 0.088388346, %v14906_v0  ;;  %v2358_v0 = vmul.f32 0.088388346, %v14920_v24 }
 0x7ed   : > { %12585 = vpow2.f32 %v2925_v21 }
 0x7ee   : > { %v15060_v29 = vpop.xlane.xlu1 %2889  ;;  %v15091_v62 = vsel %vm14503_vm1, %v2355_v53, -inf  ;;  %v15111_v24 = vsel %vm14575_vm8, %v2358_v0, -inf  ;;  %v2359_v53 = vmul.f32 0.088388346, %v14914_v3  ;;  %v2357_v0 = vmul.f32 0.088388346, %v14916_v8 }
 0x7ef   : > { %v2366_v8 = vmul.f32 0.088388346, %v14945_v47  ;;  %v2367_v47 = vmul.f32 0.088388346, %v14930_v61 }
 0x7f0   : > { %v2546_v7 = vpop.permute.xlu0 %2545  ;;  %v15129_v3 = vsel %vm14542_vm5, %v2359_v53, -inf  ;;  %v15141_v49 = vsel %vm14564_vm7, %v2357_v0, -inf  ;;  %v15147_v53 = vsel %vm18727_vm15, %v2368_v11, -inf  ;;  %v15175_v11 = vsel %vm18729_vm9, %v2365_v13, -inf }
 0x7f1   : > { %11232 = vmatprep.subr.bf16.mxu1 %v2546_v7  ;;  %v15170_v0 = vsel %vm18725_vm6, %v2367_v47, -inf  ;;  %v18737_v47 = vld [vmem:[#allocation48_spill] sm:$0xff]  ;;  %v2912_v13 = vsub.f32 %v14965_v17, %v15056_v28 }
 0x7f2   : > { %v15062_v20 = vpop.xlane.xlu1 %2891  ;;  %11233 = vmatpush3.bf16.msra.mxu1 %v2546_v7 }
 0x7f3   : > { %v15064_v38 = vpop.eup %12579  ;;  %v2933_v55 = vmul.f32 1.442695, %v2912_v13 }
 0x7f4   : > { %18735 = vst [vmem:[#allocation103_spill] sm:$0xff] %v15064_v38  ;;  %2959 = vadd.xlane.f32.xlu1 %v15064_v38 }
 0x7f5   : > { %v15067_v9 = vpop.eup %12581  ;;  %12587 = vpow2.f32 %v2933_v55  ;;  %v2914_v55 = vsub.f32 %v14975_v1, %v15060_v29 }
 0x7f6   : > { %v15069_v26 = vpop.xlane.xlu1 %2893  ;;  %2961 = vadd.xlane.f32.xlu0 %v15067_v9  ;;  %v15072_v44 = vpop.eup %12583 }
 0x7f7   : > { %v15076_v21 = vpop.eup %12585 }
 0x7f8   : > { %2955 = vadd.xlane.f32.xlu1 %v15072_v44 }
 0x7fa   : > { %v15079_v43 = vpop.xlane.xlu1 %2895  ;;  %2957 = vadd.xlane.f32.xlu0 %v15076_v21 }
 0x7fc   : > { %2387 = vmax.xlane.f32.xlu1 %v15085_v27 }
 0x7fe   : > { %v15093_v18 = vpop.xlane.xlu1 %2897  ;;  %2389 = vmax.xlane.f32.xlu0 %v15091_v62 }
 0x7ff   : > { %v15196_v17 = vpop.eup %12587 }
 0x800   : > { %2399 = vmax.xlane.f32.xlu1 %v15099_v40 }
 0x802   : > { %v2548_v7 = vpop.permute.xlu1 %2547  ;;  %2385 = vmax.xlane.f32.xlu0 %v15105_v59 }
 0x803   : > { %11234 = vmatprep.subr.bf16.mxu1 %v2548_v7 }
 0x804   : > { %2395 = vmax.xlane.f32.xlu1 %v15111_v24  ;;  %11235 = vmatpush3.bf16.msra.mxu1 %v2548_v7  ;;  %v2363_v7 = vmul.f32 0.088388346, %v14922_v63  ;;  %v15158_v63 = vsel %vm18722_vm13, %v2366_v8, -inf  ;;  %vm18760_vm13 = vcmask 261120  }
 0x805   : > { %vm18763_vm15 = vmmov %vm18760_vm13 }
 0x806   : > { %v2550_v58 = vpop.permute.xlu1 %2549  ;;  %2391 = vmax.xlane.f32.xlu0 %v15117_v51  ;;  %vm18764_vm9 = vmmov %vm18760_vm13 }
 0x807   : > { %11236 = vmatprep.subr.bf16.mxu1 %v2550_v58  ;;  %vm18767_vm6 = vmmov %vm18764_vm9 }
 0x808   : > { %2407 = vmax.xlane.f32.xlu1 %v15123_v35  ;;  %11237 = vmatpush3.bf16.msra.mxu1 %v2550_v58  ;;  %v15153_v58 = vsel %vm18719_vm0, %v2363_v7, -inf  ;;  %v18736_v7 = vld [vmem:[#allocation52_spill] sm:$0xff]  ;;  %vm18768_vm12 = vmmov %vm18767_vm6 }
 0x809   : > { %18738 = vst [vmem:[#allocation52_spill] sm:$0xff] %v15196_v17  ;;  %vm18769_vm11 = vmmov %vm18767_vm6 }
 0x80a   : > { %2397 = vmax.xlane.f32.xlu0 %v15129_v3  ;;  %vm18781_vm0 = vmmov %vm18767_vm6 }
 0x80c   : > { %2403 = vmax.xlane.f32.xlu1 %v15135_v31 }
 0x80e   : > { %2393 = vmax.xlane.f32.xlu0 %v15141_v49 }
 0x810   : > { %2415 = vmax.xlane.f32.xlu1 %v15147_v53 }
 0x812   : > { %2405 = vmax.xlane.f32.xlu0 %v15153_v58 }
 0x814   : > { %2411 = vmax.xlane.f32.xlu1 %v15158_v63 }
 0x816   : > { %2401 = vmax.xlane.f32.xlu0 %v15164_v56 }
 0x81a   : > { %2413 = vmax.xlane.f32.xlu0 %v15170_v0 }
 0x81e   : > { %2409 = vmax.xlane.f32.xlu0 %v15175_v11 }
 0x821   : > { %v15178_v61 = vpop.xlane.xlu0 %2901 }
 0x825   : > { %3166 = vrot.lane.b32.xlu1 %v18736_v7, %s13608_s24  ;;  %v15182_v8 = vpop.xlane.xlu0 %2903  ;;  %v2911_v7 = vsub.f32 %v14960_v12, %v15054_v33 }
 0x829   : > { %v15184_v41 = vpop.xlane.xlu0 %2905 }
 0x82d   : > { %v2552_v10 = vpop.permute.xlu0 %2551 }
 0x82e   : > { %11238 = vmatprep.subr.bf16.mxu1 %v2552_v10 }
 0x82f   : > { %11239 = vmatpush3.bf16.msra.mxu1 %v2552_v10  ;;  %v2931_v10 = vmul.f32 1.442695, %v2911_v7 }
 0x831   : > { %v2556_v4 = vpop.permute.xlu0 %2555  ;;  %12589 = vpow2.f32 %v2931_v10 }
 0x834   : > { %3164 = vrot.lane.b32.xlu0 %v18737_v47, %s13608_s24  ;;  %v2913_v47 = vsub.f32 %v14970_v30, %v15058_v15 }
 0x835   : > { %v2560_v28 = vpop.permute.xlu0 %2559 }
 0x836   : > { %v2935_v13 = vmul.f32 1.442695, %v2913_v47 }
 0x837   : > { %v15190_v5 = vpop.xlane.xlu1 %2899 }
 0x838   : > { %12591 = vpow2.f32 %v2935_v13 }
 0x839   : > { %v15213_v1 = vpop.permute.xlu0 %3029 }
 0x83b   : > { %v2554_v36 = vpop.permute.xlu1 %2553  ;;  %v15204_v30 = vpop.eup %12589 }
 0x83c   : > { %11240 = vmatprep.subr.bf16.mxu1 %v2554_v36 }
 0x83d   : > { %11241 = vmatpush3.bf16.msra.mxu1 %v2554_v36  ;;  %v15215_v15 = vpop.permute.xlu0 %3033 }
 0x83e   : > { %11242 = vmatprep.subr.bf16.mxu1 %v2556_v4 }
 0x83f   : > { %v2558_v46 = vpop.permute.xlu1 %2557 }
 0x841   : > { %11243 = vmatpush3.bf16.msra.mxu1 %v2556_v4  ;;  %v2937_v4 = vmul.f32 1.442695, %v2914_v55  ;;  %v15217_v33 = vpop.permute.xlu0 %3037 }
 0x842   : > { %11244 = vmatprep.subr.bf16.mxu1 %v2558_v46 }
 0x843   : > { %v15200_v36 = vpop.permute.xlu1 %3027  ;;  %12593 = vpow2.f32 %v2937_v4 }
 0x845   : > { %11245 = vmatpush3.bf16.msra.mxu1 %v2558_v46  ;;  %v15207_v46 = vpop.eup %12591  ;;  %v15221_v7 = vpop.permute.xlu0 %3039 }
 0x846   : > { %11246 = vmatprep.subr.bf16.mxu1 %v2560_v28  ;;  %18739 = vst [vmem:[#allocation48_spill] sm:$0xff] %v15207_v46 }
 0x847   : > { %v15219_v29 = vpop.permute.xlu1 %3031 }
 0x849   : > { %2965 = vadd.xlane.f32.xlu1 %v15196_v17  ;;  %11247 = vmatpush3.bf16.msra.mxu1 %v2560_v28  ;;  %v15225_v47 = vpop.permute.xlu0 %3041 }
 0x84a   : > { %11296 = vmatprep.subr.bf16.mxu1 %v15200_v36 }
 0x84b   : > { %v15223_v10 = vpop.permute.xlu1 %3035 }
 0x84d   : > { %v15210_v12 = vpop.eup %12593 }
 0x84e   : > { %18740 = vst [vmem:[#allocation104_spill] sm:$0xff] %v15210_v12 }
 0x853   : > { %2963 = vadd.xlane.f32.xlu0 %v15204_v30 }
 0x857   : > { %2967 = vadd.xlane.f32.xlu0 %v15207_v46 }
 0x85b   : > { %2969 = vadd.xlane.f32.xlu0 %v15210_v12 }
 0x881   : > { %v15227_v28 = vpop.xlane.xlu1 %2959 }
 0x883   : > { %v15229_v13 = vpop.xlane.xlu0 %2961 }
 0x885   : > { %v15231_v55 = vpop.xlane.xlu1 %2955 }
 0x887   : > { %v15233_v4 = vpop.xlane.xlu0 %2957 }
 0x889   : > { %v2388_v42 = vpop.xlane.xlu1 %2387 }
 0x88a   : > { %v2418_v12 = vsub.f32 %v15085_v27, %v2388_v42 }
 0x88b   : > { %v2390_v50 = vpop.xlane.xlu0 %2389 }
 0x88c   : > { %v2419_v39 = vsub.f32 %v15091_v62, %v2390_v50 }
 0x88d   : > { %v2400_v6 = vpop.xlane.xlu1 %2399 }
 0x88e   : > { %v2437_v48 = vmul.f32 1.442695, %v2419_v39  ;;  %v2424_v25 = vsub.f32 %v15099_v40, %v2400_v6 }
 0x88f   : > { %v2386_v52 = vpop.xlane.xlu0 %2385 }
 0x890   : > { %12595 = vpow2.f32 %v2437_v48  ;;  %v2447_v2 = vmul.f32 1.442695, %v2424_v25  ;;  %v2417_v60 = vsub.f32 %v15105_v59, %v2386_v52  ;;  %v2435_v48 = vmul.f32 1.442695, %v2418_v12 }
 0x891   : > { %v2396_v23 = vpop.xlane.xlu1 %2395 }
 0x892   : > { %v2433_v32 = vmul.f32 1.442695, %v2417_v60  ;;  %v2422_v46 = vsub.f32 %v15111_v24, %v2396_v23  ;;  %12597 = vpow2.f32 %v2447_v2 }
 0x893   : > { %v2392_v17 = vpop.xlane.xlu0 %2391 }
 0x894   : > { %12599 = vpow2.f32 %v2433_v32  ;;  %v2443_v38 = vmul.f32 1.442695, %v2422_v46  ;;  %v2420_v50 = vsub.f32 %v15117_v51, %v2392_v17 }
 0x895   : > { %v2408_v39 = vpop.xlane.xlu1 %2407 }
 0x896   : > { %v2439_v62 = vmul.f32 1.442695, %v2420_v50  ;;  %v2428_v6 = vsub.f32 %v15123_v35, %v2408_v39  ;;  %12601 = vpow2.f32 %v2443_v38 }
 0x897   : > { %v2398_v25 = vpop.xlane.xlu0 %2397 }
 0x898   : > { %12603 = vpow2.f32 %v2439_v62  ;;  %v2455_v52 = vmul.f32 1.442695, %v2428_v6  ;;  %v2423_v60 = vsub.f32 %v15129_v3, %v2398_v25 }
 0x899   : > { %v2404_v23 = vpop.xlane.xlu1 %2403  ;;  %12605 = vpow2.f32 %v2435_v48 }
 0x89a   : > { %v15243_v40 = vpop.eup %12595  ;;  %v2426_v2 = vsub.f32 %v15135_v31, %v2404_v23  ;;  %v2445_v32 = vmul.f32 1.442695, %v2423_v60  ;;  %12607 = vpow2.f32 %v2455_v52 }
 0x89b   : > { %2469 = vadd.xlane.f32.xlu0 %v15243_v40  ;;  %v2394_v42 = vpop.xlane.xlu0 %2393 }
 0x89c   : > { %v2451_v27 = vmul.f32 1.442695, %v2426_v2  ;;  %v2421_v59 = vsub.f32 %v15141_v49, %v2394_v42  ;;  %v15248_v38 = vpop.eup %12597  ;;  %12609 = vpow2.f32 %v2445_v32 }
 0x89d   : > { %v2416_v24 = vpop.xlane.xlu1 %2415 }
 0x89e   : > { %v15250_v51 = vpop.eup %12599  ;;  %v2432_v35 = vsub.f32 %v15147_v53, %v2416_v24  ;;  %v2441_v3 = vmul.f32 1.442695, %v2421_v59  ;;  %12611 = vpow2.f32 %v2451_v27 }
 0x89f   : > { %2479 = vadd.xlane.f32.xlu0 %v15248_v38  ;;  %2465 = vadd.xlane.f32.xlu1 %v15250_v51  ;;  %v2406_v31 = vpop.xlane.xlu0 %2405 }
 0x8a0   : > { %v2463_v17 = vmul.f32 1.442695, %v2432_v35  ;;  %v2427_v46 = vsub.f32 %v15153_v58, %v2406_v31  ;;  %v15256_v12 = vpop.eup %12601  ;;  %12613 = vpow2.f32 %v2441_v3  ;;  %v2916_v31 = vsub.f32 %v14985_v57, %v15069_v26 }
 0x8a1   : > { %v2412_v49 = vpop.xlane.xlu1 %2411 }
 0x8a2   : > { %v15258_v50 = vpop.eup %12603  ;;  %v2430_v39 = vsub.f32 %v15158_v63, %v2412_v49  ;;  %v2453_v53 = vmul.f32 1.442695, %v2427_v46  ;;  %12615 = vpow2.f32 %v2463_v17 }
 0x8a3   : > { %2475 = vadd.xlane.f32.xlu0 %v15256_v12  ;;  %2471 = vadd.xlane.f32.xlu1 %v15258_v50  ;;  %v2402_v62 = vpop.xlane.xlu0 %2401  ;;  %v15264_v25 = vpop.eup %12605 }
 0x8a4   : > { %v2459_v6 = vmul.f32 1.442695, %v2430_v39  ;;  %v2425_v48 = vsub.f32 %v15164_v56, %v2402_v62  ;;  %v15266_v58 = vpop.eup %12607  ;;  %12617 = vpow2.f32 %v2453_v53  ;;  %v2918_v39 = vsub.f32 %v14995_v16, %v15093_v18 }
 0x8a5   : > { %v2919_v18 = vsub.f32 %v15021_v37, %v15190_v5  ;;  %v2921_v62 = vsub.f32 %v15011_v34, %v15182_v8 }
 0x8a6   : > { %12619 = vpow2.f32 %v2459_v6  ;;  %v2449_v52 = vmul.f32 1.442695, %v2425_v48  ;;  %v15271_v23 = vpop.eup %12609  ;;  %v2945_v26 = vmul.f32 1.442695, %v2918_v39  ;;  %v18752_v39 = vld [vmem:[#allocation58_spill] sm:$0xff] }
 0x8a7   : > { %2487 = vadd.xlane.f32.xlu0 %v15266_v58  ;;  %2467 = vadd.xlane.f32.xlu1 %v15264_v25  ;;  %v2414_v63 = vpop.xlane.xlu0 %2413  ;;  %v2947_v6 = vmul.f32 1.442695, %v2919_v18  ;;  %v2951_v48 = vmul.f32 1.442695, %v2921_v62  ;;  %v15373_v18 = vpop.permute.xlu1 %3166 }
 0x8a8   : > { %v2431_v60 = vsub.f32 %v15170_v0, %v2414_v63  ;;  %v15273_v2 = vpop.eup %12611  ;;  %12621 = vpow2.f32 %v2449_v52  ;;  %v2915_v0 = vsub.f32 %v14980_v45, %v15062_v20  ;;  %v2941_v45 = vmul.f32 1.442695, %v2916_v31  ;;  %v18749_v31 = vld [vmem:[#allocation65_spill] sm:$0xff] }
 0x8a9   : > { %v2917_v20 = vsub.f32 %v14990_v22, %v15079_v43  ;;  %v2922_v63 = vsub.f32 %v15016_v14, %v15184_v41  ;;  %v18741_v14 = vld [vmem:[#allocation102_spill] sm:$0xff] }
 0x8aa   : > { %v2461_v32 = vmul.f32 1.442695, %v2431_v60  ;;  %v15278_v27 = vpop.eup %12613  ;;  %v2920_v37 = vsub.f32 %v18741_v14, %v15178_v61  ;;  %v18742_v41 = vld [vmem:[#allocation62_spill] sm:$0xff]  ;;  %v18746_v61 = vld [vmem:[#allocation64_spill] sm:$0xff]  ;;  %v18756_v14 = vld [vmem:[#allocation67_spill] sm:$0xff] }
 0x8ab   : > { %2483 = vadd.xlane.f32.xlu0 %v15273_v2  ;;  %2477 = vadd.xlane.f32.xlu1 %v15271_v23  ;;  %v2410_v56 = vpop.xlane.xlu0 %2409  ;;  %v2943_v49 = vmul.f32 1.442695, %v2917_v20  ;;  %v18743_v60 = vld [vmem:[#allocation66_spill] sm:$0xff] }
 0x8ac   : > { %v2429_v42 = vsub.f32 %v15175_v11, %v2410_v56  ;;  %v15280_v59 = vpop.eup %12615  ;;  %12623 = vpow2.f32 %v2461_v32  ;;  %v2939_v11 = vmul.f32 1.442695, %v2915_v0  ;;  %v2949_v8 = vmul.f32 1.442695, %v2920_v37  ;;  %v18744_v56 = vld [vmem:[#allocation47_spill] sm:$0xff]  ;;  %v18747_v0 = vld [vmem:[#allocation61_spill] sm:$0xff] }
 0x8ad   : > { %v18745_v32 = vld [vmem:[#allocation55_spill] sm:$0xff] }
 0x8ae   : > { %v2457_v24 = vmul.f32 1.442695, %v2429_v42  ;;  %v15286_v35 = vpop.eup %12617 }
 0x8af   : > { %2495 = vadd.xlane.f32.xlu0 %v15280_v59  ;;  %2473 = vadd.xlane.f32.xlu1 %v15278_v27  ;;  %v15351_v42 = vpop.permute.xlu0 %3164 }
 0x8b0   : > { %v15288_v3 = vpop.eup %12619  ;;  %12625 = vpow2.f32 %v2457_v24 }
 0x8b1   : > { %12627 = vpow2.f32 %v2939_v11  ;;  %v18748_v11 = vld [vmem:[#allocation68_spill] sm:$0xff] }
 0x8b2   : > { %v15294_v17 = vpop.eup %12621  ;;  %12629 = vpow2.f32 %v2941_v45  ;;  %v18750_v45 = vld [vmem:[#allocation51_spill] sm:$0xff] }
 0x8b3   : > { %2491 = vadd.xlane.f32.xlu0 %v15288_v3  ;;  %2485 = vadd.xlane.f32.xlu1 %v15286_v35  ;;  %12631 = vpow2.f32 %v2943_v49  ;;  %v18751_v49 = vld [vmem:[#allocation50_spill] sm:$0xff] }
 0x8b4   : > { %12633 = vpow2.f32 %v2945_v26  ;;  %v18753_v26 = vld [vmem:[#allocation54_spill] sm:$0xff] }
 0x8b5   : > { %12635 = vpow2.f32 %v2947_v6  ;;  %v18754_v6 = vld [vmem:[#allocation63_spill] sm:$0xff] }
 0x8b6   : > { %v15299_v46 = vpop.eup %12623  ;;  %12637 = vpow2.f32 %v2951_v48  ;;  %v18755_v48 = vld [vmem:[#allocation53_spill] sm:$0xff] }
 0x8b7   : > { %2481 = vadd.xlane.f32.xlu1 %v15294_v17 }
 0x8ba   : > { %v15304_v57 = vpop.eup %12625 }
 0x8bb   : > { %2493 = vadd.xlane.f32.xlu1 %v15299_v46  ;;  %v15307_v53 = vpop.eup %12627 }
 0x8bc   : > { %v15310_v22 = vpop.eup %12629 }
 0x8bd   : > { %v15315_v43 = vpop.eup %12631 }
 0x8be   : > { %v15318_v16 = vpop.eup %12633 }
 0x8bf   : > { %2489 = vadd.xlane.f32.xlu1 %v15304_v57  ;;  %v15329_v52 = vpop.eup %12635 }
 0x8c0   : > { %v15332_v5 = vpop.eup %12637 }
 0x8c3   : > { %2971 = vadd.xlane.f32.xlu1 %v15307_v53 }
 0x8c7   : > { %2973 = vadd.xlane.f32.xlu1 %v15310_v22 }
 0x8c9   : > { %3168 = vrot.lane.b32.xlu0 %v14406_v54, %s13608_s24  ;;  %v2953_v54 = vmul.f32 1.442695, %v2922_v63 }
 0x8cb   : > { %2975 = vadd.xlane.f32.xlu1 %v15315_v43  ;;  %12639 = vpow2.f32 %v2953_v54 }
 0x8cc   : > { %12641 = vpow2.f32 %v2949_v8 }
 0x8cf   : > { %2977 = vadd.xlane.f32.xlu1 %v15318_v16 }
 0x8d5   : > { %v15335_v34 = vpop.eup %12639 }
 0x8d6   : > { %v15381_v63 = vpop.xlane.xlu1 %2965 }
 0x8e0   : > { %3170 = vrot.lane.b32.xlu1 %v14424_v19, %s13608_s24  ;;  %v15340_v19 = vpop.eup %12641  ;;  %v15357_v24 = vpop.xlane.xlu0 %2963 }
 0x8e4   : > { %v15365_v20 = vpop.xlane.xlu0 %2967 }
 0x8e8   : > { %2979 = vadd.xlane.f32.xlu0 %v15329_v52  ;;  %v15375_v62 = vpop.xlane.xlu0 %2969 }
 0x8ec   : > { %2983 = vadd.xlane.f32.xlu0 %v15332_v5 }
 0x8f0   : > { %2985 = vadd.xlane.f32.xlu0 %v15335_v34 }
 0x904   : > { %2981 = vadd.xlane.f32.xlu1 %v15340_v19 }
 0x906   : > { %3172 = vrot.lane.b32.xlu0 %v18742_v41, %s13608_s24  ;;  %v18757_v41 = vld [vmem:[#allocation49_spill] sm:$0xff] }
 0x90a   : > { %3176 = vrot.lane.b32.xlu0 %v18743_v60, %s13608_s24 }
 0x90e   : > { %3148 = vrot.lane.b32.xlu0 %v18744_v56, %s13608_s24 }
 0x912   : > { %3152 = vrot.lane.b32.xlu0 %v18745_v32, %s13608_s24 }
 0x915   : > { %3174 = vrot.lane.b32.xlu1 %v18746_v61, %s13608_s24 }
 0x916   : > { %3156 = vrot.lane.b32.xlu0 %v18747_v0, %s13608_s24 }
 0x919   : > { %3178 = vrot.lane.b32.xlu1 %v18748_v11, %s13608_s24 }
 0x91a   : > { %3160 = vrot.lane.b32.xlu0 %v18749_v31, %s13608_s24 }
 0x91d   : > { %3150 = vrot.lane.b32.xlu1 %v18750_v45, %s13608_s24 }
 0x91e   : > { %3509 = vrot.lane.b32.xlu0 %v18751_v49, %s13608_s24 }
 0x921   : > { %3154 = vrot.lane.b32.xlu1 %v18752_v39, %s13608_s24 }
 0x922   : > { %3513 = vrot.lane.b32.xlu0 %v18753_v26, %s13608_s24 }
 0x925   : > { %3158 = vrot.lane.b32.xlu1 %v18754_v6, %s13608_s24 }
 0x926   : > { %3515 = vrot.lane.b32.xlu0 %v18755_v48, %s13608_s24 }
 0x928   : > { %v2470_v54 = vpop.xlane.xlu0 %2469 }
 0x929   : > { %3162 = vrot.lane.b32.xlu1 %v18756_v14, %s13608_s24 }
 0x92c   : > { %v2466_v37 = vpop.xlane.xlu1 %2465  ;;  %v2480_v8 = vpop.xlane.xlu0 %2479 }
 0x92d   : > { %3511 = vrot.lane.b32.xlu1 %v18757_v41, %s13608_s24 }
 0x930   : > { %v2472_v60 = vpop.xlane.xlu1 %2471  ;;  %v2476_v56 = vpop.xlane.xlu0 %2475 }
 0x931   : > { %12643 = vrcp.f32 %v2472_v60 }
 0x932   : > { %12645 = vrcp.f32 %v2466_v37 }
 0x933   : > { %12647 = vrcp.f32 %v2470_v54 }
 0x934   : > { %v2468_v32 = vpop.xlane.xlu1 %2467  ;;  %v2488_v61 = vpop.xlane.xlu0 %2487 }
 0x935   : > { %12649 = vrcp.f32 %v2468_v32 }
 0x938   : > { %v2478_v0 = vpop.xlane.xlu1 %2477  ;;  %v2484_v31 = vpop.xlane.xlu0 %2483 }
 0x939   : > { %12651 = vrcp.f32 %v2478_v0 }
 0x93a   : > { %12653 = vrcp.f32 %v2476_v56 }
 0x93b   : > { %v12644_v11 = vpop.eup %12643  ;;  %12655 = vrcp.f32 %v2480_v8 }
 0x93c   : > { %v2474_v45 = vpop.xlane.xlu1 %2473  ;;  %v12646_v49 = vpop.eup %12645  ;;  %v2504_v6 = vmul.f32 %v12644_v11, %v15258_v50 }
 0x93d   : > { %12657 = vrcp.f32 %v2474_v45  ;;  %v12648_v39 = vpop.eup %12647  ;;  %v2498_v14 = vmul.f32 %v12646_v49, %v15250_v51  ;;  %v2496_v41 = vpop.xlane.xlu0 %2495 }
 0x93e   : > { %v2502_v37 = vmul.f32 %v12648_v39, %v15243_v40 }
 0x93f   : > { %v12650_v26 = vpop.eup %12649 }
 0x940   : > { %v2486_v48 = vpop.xlane.xlu1 %2485  ;;  %v2500_v54 = vmul.f32 %v12650_v26, %v15264_v25  ;;  %v2530_v8 = vpack.c.bf16 %v2504_v6, %v2502_v37 }
 0x941   : > { %12659 = vrcp.f32 %v2486_v48  ;;  %v2492_v25 = vpop.xlane.xlu0 %2491 }
 0x942   : > { %v2529_v60 = vpack.c.bf16 %v2500_v54, %v2498_v14  ;;  %12661 = vrcp.f32 %v2484_v31 }
 0x943   : > { %v12652_v56 = vpop.eup %12651  ;;  %12663 = vrcp.f32 %v2488_v61 }
 0x944   : > { %11248 = vmatprep.mubr.bf16.mxu1 %v2529_v60  ;;  %v2482_v32 = vpop.xlane.xlu1 %2481  ;;  %v12654_v0 = vpop.eup %12653  ;;  %v2510_v40 = vmul.f32 %v12652_v56, %v15271_v23  ;;  %v18758_v56 = vld [vmem:[#allocation103_spill] sm:$0xff] }
 0x945   : > { %12665 = vrcp.f32 %v2482_v32  ;;  %11249 = vmatmul.mubr.bf16.vlgmr.msra.gmra.mrb[48].mxu1 %v2530_v8  ;;  %v12656_v50 = vpop.eup %12655  ;;  %v2508_v61 = vmul.f32 %v12654_v0, %v15256_v12 }
 0x946   : > { %11297 = vmatpush3.bf16.msra.mxu1 %v15200_v36  ;;  %12667 = vrcp.f32 %v15231_v55  ;;  %v2512_v45 = vmul.f32 %v12656_v50, %v15248_v38 }
 0x947   : > { %v12658_v51 = vpop.eup %12657  ;;  %11298 = vmatprep.subr.bf16.mxu1 %v15213_v1  ;;  %12669 = vrcp.f32 %v15233_v4 }
 0x948   : > { %v2494_v11 = vpop.xlane.xlu1 %2493  ;;  %v2506_v31 = vmul.f32 %v12658_v51, %v15278_v27  ;;  %v2532_v23 = vpack.c.bf16 %v2512_v45, %v2510_v40  ;;  %v3205_v45 = vsel %vm18763_vm15, %v15351_v42, 0  ;;  %vm18765_vm15 = vmmov %vm18764_vm9 }
 0x949   : > { %12671 = vrcp.f32 %v2494_v11 }
 0x94a   : > { %11299 = vmatpush3.bf16.msra.mxu1 %v15213_v1  ;;  %v2531_v36 = vpack.c.bf16 %v2508_v61, %v2506_v31  ;;  %12673 = vrcp.f32 %v2492_v25  ;;  %v18762_v61 = vld [vmem:[#allocation48_spill] sm:$0xff] }
 0x94b   : > { %11300 = vmatprep.subr.bf16.mxu1 %v15219_v29  ;;  %v12660_v49 = vpop.eup %12659  ;;  %12675 = vrcp.f32 %v2496_v41 }
 0x94c   : > { %v2490_v55 = vpop.xlane.xlu1 %2489  ;;  %11252 = vmatprep.mubr.bf16.mxu1 %v2531_v36  ;;  %v12662_v39 = vpop.eup %12661  ;;  %v2518_v1 = vmul.f32 %v12660_v49, %v15286_v35 }
 0x94d   : > { %12677 = vrcp.f32 %v2490_v55  ;;  %11253 = vmatmul.mubr.bf16.gmra.mrb[52].mxu1 %v2532_v23  ;;  %v12664_v12 = vpop.eup %12663  ;;  %v2516_v26 = vmul.f32 %v12662_v39, %v15273_v2 }
 0x94e   : > { %11301 = vmatpush3.bf16.msra.mxu1 %v15219_v29  ;;  %v2520_v6 = vmul.f32 %v12664_v12, %v15266_v58  ;;  %12679 = vrcp.f32 %v15229_v13 }
 0x94f   : > { %v12666_v4 = vpop.eup %12665  ;;  %11302 = vmatprep.subr.bf16.mxu1 %v15215_v15  ;;  %12681 = vrcp.f32 %v15357_v24 }
 0x950   : > { %v2972_v38 = vpop.xlane.xlu1 %2971  ;;  %v2514_v27 = vmul.f32 %v12666_v4, %v15294_v17  ;;  %v12668_v48 = vpop.eup %12667  ;;  %v2534_v29 = vpack.c.bf16 %v2520_v6, %v2518_v1  ;;  %12683 = vrcp.f32 %v15227_v28 }
 0x951   : > { %v12670_v54 = vpop.eup %12669  ;;  %12685 = vrcp.f32 %v15381_v63 }
 0x952   : > { %11303 = vmatpush3.bf16.msra.mxu1 %v15215_v15  ;;  %v2533_v14 = vpack.c.bf16 %v2516_v26, %v2514_v27  ;;  %v2990_v28 = vmul.f32 %v12670_v54, %v15076_v21  ;;  %12687 = vrcp.f32 %v15375_v62 }
 0x953   : > { %11304 = vmatprep.subr.bf16.mxu1 %v15223_v10  ;;  %v12672_v35 = vpop.eup %12671 }
 0x954   : > { %v2974_v17 = vpop.xlane.xlu1 %2973  ;;  %11256 = vmatprep.mubr.bf16.mxu1 %v2533_v14  ;;  %v12674_v2 = vpop.eup %12673  ;;  %v2526_v13 = vmul.f32 %v12672_v35, %v15299_v46 }
 0x955   : > { %11257 = vmatmul.mubr.bf16.gmra.mrb[56].mxu1 %v2534_v29  ;;  %v12676_v58 = vpop.eup %12675  ;;  %v2524_v37 = vmul.f32 %v12674_v2, %v15288_v3  ;;  %12689 = vrcp.f32 %v2974_v17 }
 0x956   : > { %11305 = vmatpush3.bf16.msra.mxu1 %v15223_v10  ;;  %v2528_v60 = vmul.f32 %v12676_v58, %v15280_v59  ;;  %v2988_v10 = vmul.f32 %v12668_v48, %v15072_v44  ;;  %12691 = vrcp.f32 %v15365_v20  ;;  %v18759_v20 = vld [vmem:[#allocation52_spill] sm:$0xff] }
 0x957   : > { %v12678_v15 = vpop.eup %12677  ;;  %11306 = vmatprep.subr.bf16.mxu1 %v15217_v33  ;;  %12693 = vrcp.f32 %v2972_v38 }
 0x958   : > { %v2522_v24 = vmul.f32 %v12678_v15, %v15304_v57  ;;  %v2976_v41 = vpop.xlane.xlu1 %2975  ;;  %v2536_v46 = vpack.c.bf16 %v2528_v60, %v2526_v13  ;;  %v12680_v8 = vpop.eup %12679  ;;  %v3019_v3 = vpack.c.bf16 %v2990_v28, %v2988_v10 }
 0x959   : > { %v12682_v21 = vpop.eup %12681  ;;  %v2994_v57 = vmul.f32 %v12680_v8, %v15067_v9 }
 0x95a   : > { %11307 = vmatpush3.bf16.msra.mxu1 %v15217_v33  ;;  %v2535_v63 = vpack.c.bf16 %v2524_v37, %v2522_v24  ;;  %v12684_v59 = vpop.eup %12683  ;;  %v2996_v62 = vmul.f32 %v12682_v21, %v15204_v30  ;;  %v18761_v30 = vld [vmem:[#allocation104_spill] sm:$0xff] }
 0x95b   : > { %11308 = vmatprep.subr.bf16.mxu1 %v15221_v7  ;;  %v12686_v33 = vpop.eup %12685  ;;  %v2992_v32 = vmul.f32 %v12684_v59, %v18758_v56 }
 0x95c   : > { %11260 = vmatprep.mubr.bf16.mxu1 %v2535_v63  ;;  %v2978_v44 = vpop.xlane.xlu1 %2977  ;;  %v2998_v0 = vmul.f32 %v12686_v33, %v18759_v20  ;;  %v12688_v50 = vpop.eup %12687 }
 0x95d   : > { %11261 = vmatmul.mubr.bf16.gmra.mrb[60].mxu1 %v2536_v46  ;;  %12695 = vrcp.f32 %v2978_v44  ;;  %v3002_v11 = vmul.f32 %v12688_v50, %v18761_v30 }
 0x95e   : > { %11309 = vmatpush3.bf16.msra.mxu1 %v15221_v7  ;;  %11312 = vmatprep.mubr.bf16.mxu1 %v3019_v3  ;;  %v3020_v7 = vpack.c.bf16 %v2994_v57, %v2992_v32  ;;  %12697 = vrcp.f32 %v2976_v41  ;;  %v3021_v51 = vpack.c.bf16 %v2998_v0, %v2996_v62  ;;  %v18782_v62 = vmov 0  }
 0x95f   : > { %11310 = vmatprep.subr.bf16.mxu1 %v15225_v47  ;;  %v12690_v9 = vpop.eup %12689 }
 0x960   : > { %v12692_v40 = vpop.eup %12691  ;;  %v3006_v31 = vmul.f32 %v12690_v9, %v15310_v22  ;;  %v3169_v22 = vpop.permute.xlu0 %3168 }
 0x961   : > { %v12694_v25 = vpop.eup %12693  ;;  %v3171_v26 = vpop.permute.xlu1 %3170 }
 0x962   : > { %11311 = vmatpush3.bf16.msra.mxu1 %v15225_v47  ;;  %v3000_v47 = vmul.f32 %v12692_v40, %v18762_v61  ;;  %v3004_v36 = vmul.f32 %v12694_v25, %v15307_v53  ;;  %v18798_v25 = vld [vmem:[#allocation80_spill] sm:$0xff] }
 0x963   : > { %11768 = vmatprep.subr.msk.bf16.mxu1 %vm18760_vm13, %v15351_v42  ;;  %v3208_v42 = vsel %vm18764_vm9, %v15373_v18, 0 }
 0x964   : > { %v3022_v23 = vpack.c.bf16 %v3002_v11, %v3000_v47  ;;  %v3023_v55 = vpack.c.bf16 %v3006_v31, %v3004_v36 }
 0x965   : > { %11313 = vmatmul.mubr.bf16.vlgmr.msra.gmra.mrb[64].mxu1 %v3020_v7 }
 0x966   : > { %11316 = vmatprep.mubr.bf16.mxu1 %v3021_v51 }
 0x967   : > { %v12696_v49 = vpop.eup %12695 }
 0x968   : > { %v12698_v39 = vpop.eup %12697  ;;  %v3010_v12 = vmul.f32 %v12696_v49, %v15318_v16 }
 0x969   : > { %v3008_v4 = vmul.f32 %v12698_v39, %v15315_v43  ;;  %v3214_v43 = vsel %vm18768_vm12, %v3171_v26, 0  ;;  %vm18771_vm12 = vmmov %vm18767_vm6 }
 0x96b   : > { %11329 = vmatpush3.bf16.xpose.msra.mxu1 %v3205_v45  ;;  %v3024_v53 = vpack.c.bf16 %v3010_v12, %v3008_v4 }
 0x96c   : > { %11769 = vmatprep.subr.msk.bf16.mxu1 %vm18760_vm13, %v15373_v18  ;;  %vm18766_vm13 = vmmov %vm18764_vm9 }
 0x96d   : > { %11317 = vmatmul.mubr.bf16.gmra.mrb[68].mxu1 %v3022_v23  ;;  %v3211_v27 = vsel %vm18766_vm13, %v3169_v22, 0  ;;  %vm18770_vm9 = vmmov %vm18767_vm6 }
 0x96e   : > { %11320 = vmatprep.mubr.bf16.mxu1 %v3023_v55  ;;  %vm18774_vm13 = vmmov %vm18767_vm6 }
 0x973   : > { %11331 = vmatpush3.bf16.xpose.msra.mxu1 %v3208_v42 }
 0x974   : > { %11770 = vmatprep.subr.msk.bf16.mxu1 %vm18765_vm15, %v3169_v22  ;;  %vm18773_vm15 = vmmov %vm18767_vm6 }
 0x975   : > { %11321 = vmatmul.mubr.bf16.gmra.mrb[72].mxu1 %v3024_v53  ;;  %v2980_v1 = vpop.xlane.xlu0 %2979 }
 0x979   : > { %v2984_v38 = vpop.xlane.xlu0 %2983 }
 0x97b   : > { %11333 = vmatpush3.bf16.xpose.msra.mxu1 %v3211_v27 }
 0x97c   : > { %11771 = vmatprep.subr.msk.bf16.mxu1 %vm18767_vm6, %v3171_v26  ;;  %v18796_v26 = vld [vmem:[#allocation81_spill] sm:$0xff] }
 0x97d   : > { %v2986_v16 = vpop.xlane.xlu0 %2985 }
 0x97e   : > { %12699 = vrcp.f32 %v2986_v16 }
 0x97f   : > { %12701 = vrcp.f32 %v2980_v1 }
 0x980   : > { %12703 = vrcp.f32 %v2984_v38 }
 0x981   : > { %v3173_v6 = vpop.permute.xlu0 %3172 }
 0x982   : > { %v3217_v14 = vsel %vm18770_vm9, %v3173_v6, 0  ;;  %vm18775_vm9 = vmmov %vm18767_vm6 }
 0x983   : > { %11335 = vmatpush3.bf16.xpose.msra.mxu1 %v3214_v43 }
 0x984   : > { %11772 = vmatprep.subr.msk.bf16.mxu1 %vm18769_vm11, %v3173_v6  ;;  %vm18772_vm11 = vmmov %vm18767_vm6 }
 0x985   : > { %v3177_v18 = vpop.permute.xlu0 %3176 }
 0x986   : > { %v3223_v8 = vsel %vm18773_vm15, %v3177_v18, 0  ;;  %vm18778_vm15 = vmmov %vm18767_vm6 }
 0x988   : > { %v12700_v15 = vpop.eup %12699 }
 0x989   : > { %v3149_v48 = vpop.permute.xlu0 %3148  ;;  %v12702_v37 = vpop.eup %12701  ;;  %v3018_v60 = vmul.f32 %v12700_v15, %v15335_v34 }
 0x98a   : > { %v12704_v28 = vpop.eup %12703  ;;  %v3012_v10 = vmul.f32 %v12702_v37, %v15329_v52 }
 0x98b   : > { %11337 = vmatpush3.bf16.xpose.msra.mxu1 %v3217_v14  ;;  %v3016_v3 = vmul.f32 %v12704_v28, %v15332_v5 }
 0x98d   : > { %v3153_v54 = vpop.permute.xlu0 %3152  ;;  %v3026_v59 = vpack.c.bf16 %v3018_v60, %v3016_v3 }
 0x991   : > { %v2982_v29 = vpop.xlane.xlu1 %2981  ;;  %v3157_v35 = vpop.permute.xlu0 %3156 }
 0x992   : > { %12705 = vrcp.f32 %v2982_v29 }
 0x995   : > { %v3175_v17 = vpop.permute.xlu1 %3174  ;;  %v3161_v2 = vpop.permute.xlu0 %3160 }
 0x996   : > { %11773 = vmatprep.subr.msk.bf16.mxu1 %vm18767_vm6, %v3175_v17  ;;  %v3220_v58 = vsel %vm18771_vm12, %v3175_v17, 0  ;;  %vm18776_vm12 = vmmov %vm18767_vm6 }
 0x997   : > { %11339 = vmatpush3.bf16.xpose.msra.mxu1 %v3220_v58 }
 0x998   : > { %11774 = vmatprep.subr.msk.bf16.mxu1 %vm18772_vm11, %v3177_v18  ;;  %vm18777_vm11 = vmmov %vm18767_vm6  ;;  %v18806_v18 = vld [vmem:[#allocation84_spill] sm:$0xff] }
 0x999   : > { %v3179_v13 = vpop.permute.xlu1 %3178  ;;  %v3510_v24 = vpop.permute.xlu0 %3509 }
 0x99a   : > { %11360 = vmatprep.subr.bf16.mxu0 %v3510_v24  ;;  %v3226_v57 = vsel %vm18767_vm6, %v3179_v13, 0 }
 0x99b   : > { %11361 = vmatpush3.bf16.msra.mxu0 %v3510_v24 }
 0x99c   : > { %v12706_v41 = vpop.eup %12705 }
 0x99d   : > { %v3151_v63 = vpop.permute.xlu1 %3150  ;;  %v3014_v46 = vmul.f32 %v12706_v41, %v15340_v19  ;;  %v3514_v19 = vpop.permute.xlu0 %3513 }
 0x99f   : > { %11341 = vmatpush3.bf16.xpose.msra.mxu1 %v3223_v8  ;;  %v3025_v21 = vpack.c.bf16 %v3014_v46, %v3012_v10 }
 0x9a0   : > { %11775 = vmatprep.subr.msk.bf16.mxu1 %vm18774_vm13, %v3179_v13  ;;  %vm18779_vm13 = vmmov %vm18767_vm6 }
 0x9a1   : > { %v3155_v33 = vpop.permute.xlu1 %3154  ;;  %11324 = vmatprep.mubr.bf16.mxu1 %v3025_v21  ;;  %v3516_v5 = vpop.permute.xlu0 %3515 }
 0x9a2   : > { %11325 = vmatmul.mubr.bf16.gmra.mrb[76].mxu1 %v3026_v59 }
 0x9a3   : > { %11344 = vmatprep.mubr.msk.bf16.mxu1 %vm18775_vm9, %v3149_v48  ;;  %vm18780_vm9 = vmmov %vm18767_vm6 }
 0x9a5   : > { %v3159_v34 = vpop.permute.xlu1 %3158 }
 0x9a7   : > { %11343 = vmatpush3.bf16.xpose.msra.mxu1 %v3226_v57 }
 0x9a9   : > { %v3163_v52 = vpop.permute.xlu1 %3162 }
 0x9ad   : > { %v3512_v44 = vpop.permute.xlu1 %3511 }
 0x9ae   : > { %11345 = vmatmul.mubr.msk.bf16.vlgmr.msra.gmra.mrb[80].mxu1 %vm18776_vm12, %v3151_v63  ;;  %11362 = vmatprep.subr.bf16.mxu0 %v3512_v44  ;;  %vm18797_vm12 = vnez %v18796_v26 }
 0x9af   : > { %11348 = vmatprep.mubr.msk.bf16.mxu1 %vm18777_vm11, %v3153_v54  ;;  %11363 = vmatpush3.bf16.msra.mxu0 %v3512_v44  ;;  %vm18799_vm11 = vnez %v18798_v25 }
 0x9b0   : > { %11364 = vmatprep.subr.bf16.mxu0 %v3514_v19 }
 0x9b3   : > { %11365 = vmatpush3.bf16.msra.mxu0 %v3514_v19 }
 0x9b4   : > { %11366 = vmatprep.subr.bf16.mxu0 %v3516_v5 }
 0x9b6   : > { %11349 = vmatmul.mubr.msk.bf16.gmra.mrb[84].mxu1 %vm18778_vm15, %v3155_v33 }
 0x9b7   : > { %11352 = vmatprep.mubr.msk.bf16.mxu1 %vm18779_vm13, %v3157_v35  ;;  %11367 = vmatpush3.bf16.msra.mxu0 %v3516_v5 }
 0x9be   : > { %11353 = vmatmul.mubr.msk.bf16.gmra.mrb[88].mxu1 %vm18780_vm9, %v3159_v34  ;;  %vm18807_vm9 = vnez %v18806_v18 }
 0x9bf   : > { %11356 = vmatprep.mubr.msk.bf16.mxu1 %vm18767_vm6, %v3161_v2 }
 0x9c6   : > { %11357 = vmatmul.mubr.msk.bf16.gmra.mrb[92].mxu1 %vm18781_vm0, %v3163_v52 }
 0x9c7   : > { %4540 = vmatprep.mubr.bf16.mxu1 %v18782_v62 }
 0xa18   : > { %v15471_v56 = vpop.f32.mrb[48].mxu1 }
 0xa19   : > { %v15473_v32 = vpop.f32.mrb[49].mxu1 }
 0xa1a   : > { %v15475_v20 = vpop.f32.mrb[50].mxu1 }
 0xa1b   : > { %v15479_v7 = vpop.f32.mrb[51].mxu1 }
 0xa20   : > { %v15483_v51 = vpop.f32.mrb[52].mxu1 }
 0xa21   : > { %v15485_v9 = vpop.f32.mrb[53].mxu1 }
 0xa22   : > { %v15487_v40 = vpop.f32.mrb[54].mxu1 }
 0xa23   : > { %v15491_v30 = vpop.f32.mrb[55].mxu1 }
 0xa28   : > { %v15495_v31 = vpop.f32.mrb[56].mxu1 }
 0xa29   : > { %v15497_v61 = vpop.f32.mrb[57].mxu1 }
 0xa2a   : > { %v15499_v47 = vpop.f32.mrb[58].mxu1 }
 0xa2b   : > { %v15503_v36 = vpop.f32.mrb[59].mxu1 }
 0xa30   : > { %v15507_v49 = vpop.f32.mrb[60].mxu1 }
 0xa31   : > { %v15509_v55 = vpop.f32.mrb[61].mxu1 }
 0xa32   : > { %v15511_v39 = vpop.f32.mrb[62].mxu1 }
 0xa33   : > { %v15515_v22 = vpop.f32.mrb[63].mxu1 }
 0xa38   : > { %v15519_v42 = vpop.f32.mrb[64].mxu1 }
 0xa39   : > { %v15521_v53 = vpop.f32.mrb[65].mxu1 }
 0xa3a   : > { %v15523_v1 = vpop.f32.mrb[66].mxu1 }
 0xa3b   : > { %v15527_v27 = vpop.f32.mrb[67].mxu1 }
 0xa40   : > { %v15531_v16 = vpop.f32.mrb[68].mxu1 }
 0xa41   : > { %v15533_v6 = vpop.f32.mrb[69].mxu1 }
 0xa42   : > { %v15535_v43 = vpop.f32.mrb[70].mxu1 }
 0xa43   : > { %v15539_v48 = vpop.f32.mrb[71].mxu1 }
 0xa48   : > { %v15543_v54 = vpop.f32.mrb[72].mxu1 }
 0xa49   : > { %v15545_v29 = vpop.f32.mrb[73].mxu1 }
 0xa4a   : > { %v15547_v35 = vpop.f32.mrb[74].mxu1 }
 0xa4b   : > { %v15551_v2 = vpop.f32.mrb[75].mxu1 }
 0xa75   : > { %v15555_v15 = vpop.f32.mrb[76].mxu1 }
 0xa76   : > { %v15557_v13 = vpop.f32.mrb[77].mxu1 }
 0xa77   : > { %18783 = vst [vmem:[#allocation102_spill] sm:$0xff] %v15557_v13  ;;  %v15559_v24 = vpop.f32.mrb[78].mxu1 }
 0xa78   : > { %v15563_v28 = vpop.f32.mrb[79].mxu1 }
 0xa79   : > { %18784 = vst [vmem:[#allocation62_spill] sm:$0xff] %v15563_v28 }
 0xa81   : > { %v11346_v60 = vpop.f32.mrb[80].mxu1 }
 0xa82   : > { %v3327_v63 = vmul.f32 0.088388346, %v11346_v60  ;;  %v3262_v10 = vpop.f32.mrb[81].mxu1 }
 0xa83   : > { %v11347_v46 = vpop.f32.mrb[82].mxu1  ;;  %v3325_v8 = vmul.f32 0.088388346, %v3262_v10 }
 0xa84   : > { %v3265_v3 = vpop.f32.mrb[83].mxu1  ;;  %v3343_v59 = vsel %vm14503_vm1, %v3327_v63, -inf  ;;  %v3328_v52 = vmul.f32 0.088388346, %v11347_v46 }
 0xa85   : > { %v3326_v33 = vmul.f32 0.088388346, %v3265_v3  ;;  %3361 = vmax.xlane.f32.xlu0 %v3343_v59  ;;  %v3341_v44 = vsel %vm14520_vm3, %v3325_v8, -inf }
 0xa86   : > { %v3344_v3 = vsel %vm14508_vm2, %v3328_v52, -inf }
 0xa87   : > { %v15571_v57 = vsel %vm14531_vm4, %v3326_v33, -inf }
 0xa88   : > { %3359 = vmax.xlane.f32.xlu1 %v15571_v57 }
 0xa89   : > { %3357 = vmax.xlane.f32.xlu0 %v3341_v44  ;;  %v11350_v5 = vpop.f32.mrb[84].mxu1 }
 0xa8a   : > { %v3278_v60 = vpop.f32.mrb[85].mxu1  ;;  %v3331_v41 = vmul.f32 0.088388346, %v11350_v5 }
 0xa8b   : > { %v11351_v10 = vpop.f32.mrb[86].mxu1  ;;  %v3329_v58 = vmul.f32 0.088388346, %v3278_v60 }
 0xa8c   : > { %v3332_v37 = vmul.f32 0.088388346, %v11351_v10  ;;  %v3281_v4 = vpop.f32.mrb[87].mxu1  ;;  %v3347_v17 = vsel %vm14542_vm5, %v3331_v41, -inf }
 0xa8d   : > { %3363 = vmax.xlane.f32.xlu0 %v3344_v3  ;;  %v3330_v12 = vmul.f32 0.088388346, %v3281_v4  ;;  %v3345_v11 = vsel %vm14564_vm7, %v3329_v58, -inf }
 0xa8e   : > { %v15580_v46 = vsel %vm18716_vm14, %v3332_v37, -inf }
 0xa8f   : > { %3371 = vmax.xlane.f32.xlu1 %v15580_v46  ;;  %v15587_v45 = vsel %vm14575_vm8, %v3330_v12, -inf  ;;  %v18794_v12 = vld [vmem:[#allocation78_spill] sm:$0xff] }
 0xa90   : > { %vm18795_vm0 = vnez %v18794_v12  ;;  %v18800_v12 = vld [vmem:[#allocation82_spill] sm:$0xff] }
 0xa91   : > { %3369 = vmax.xlane.f32.xlu0 %v3347_v17  ;;  %v11354_v23 = vpop.f32.mrb[88].mxu1  ;;  %vm18801_vm15 = vnez %v18800_v12  ;;  %v18808_v12 = vld [vmem:[#allocation85_spill] sm:$0xff] }
 0xa92   : > { %v3294_v5 = vpop.f32.mrb[89].mxu1  ;;  %v3335_v52 = vmul.f32 0.088388346, %v11354_v23  ;;  %vm18809_vm6 = vnez %v18808_v12 }
 0xa93   : > { %3367 = vmax.xlane.f32.xlu1 %v15587_v45  ;;  %v11355_v4 = vpop.f32.mrb[90].mxu1  ;;  %v3333_v38 = vmul.f32 0.088388346, %v3294_v5 }
 0xa94   : > { %v3336_v14 = vmul.f32 0.088388346, %v11355_v4  ;;  %v3297_v37 = vpop.f32.mrb[91].mxu1  ;;  %v15599_v50 = vsel %vm18795_vm0, %v3335_v52, -inf }
 0xa95   : > { %3365 = vmax.xlane.f32.xlu0 %v3345_v11  ;;  %v3334_v60 = vmul.f32 0.088388346, %v3297_v37  ;;  %v15609_v5 = vsel %vm18799_vm11, %v3333_v38, -inf  ;;  %v18805_v38 = vld [vmem:[#allocation57_spill] sm:$0xff] }
 0xa96   : > { %v15594_v41 = vsel %vm18720_vm10, %v3336_v14, -inf }
 0xa97   : > { %3379 = vmax.xlane.f32.xlu1 %v15594_v41  ;;  %v15604_v58 = vsel %vm18797_vm12, %v3334_v60, -inf  ;;  %v18802_v60 = vld [vmem:[#allocation83_spill] sm:$0xff] }
 0xa98   : > { %vm18803_vm13 = vnez %v18802_v60 }
 0xa99   : > { %3377 = vmax.xlane.f32.xlu0 %v15599_v50  ;;  %v11358_v23 = vpop.f32.mrb[92].mxu1 }
 0xa9a   : > { %v3310_v4 = vpop.f32.mrb[93].mxu1  ;;  %v3339_v14 = vmul.f32 0.088388346, %v11358_v23  ;;  %v18804_v23 = vld [vmem:[#allocation56_spill] sm:$0xff] }
 0xa9b   : > { %3375 = vmax.xlane.f32.xlu1 %v15604_v58  ;;  %v11359_v37 = vpop.f32.mrb[94].mxu1  ;;  %v3337_v52 = vmul.f32 0.088388346, %v3310_v4 }
 0xa9c   : > { %v3313_v0 = vpop.f32.mrb[95].mxu1  ;;  %v15614_v10 = vsel %vm18801_vm15, %v3339_v14, -inf  ;;  %v3340_v25 = vmul.f32 0.088388346, %v11359_v37  ;;  %vm18457_vm15 = vcmask 785408  }
 0xa9d   : > { %3373 = vmax.xlane.f32.xlu0 %v15609_v5  ;;  %v15619_v26 = vsel %vm18803_vm13, %v3337_v52, -inf  ;;  %v3338_v4 = vmul.f32 0.088388346, %v3313_v0  ;;  %vm18458_vm13 = vcmask 523264  }
 0xa9e   : > { %v15628_v14 = vsel %vm18807_vm9, %v3340_v25, -inf }
 0xa9f   : > { %v15633_v52 = vsel %vm18809_vm6, %v3338_v4, -inf  ;;  %vm18831_vm6 = vcmask 261120  }
 0xaa0   : > { %vm18833_vm9 = vmmov %vm18831_vm6 }
 0xaa1   : > { %3385 = vmax.xlane.f32.xlu0 %v15614_v10  ;;  %vm18835_vm12 = vmmov %vm18831_vm6 }
 0xaa2   : > { %vm18837_vm11 = vmmov %vm18831_vm6 }
 0xaa3   : > { %vm18927_vm10 = vmmov %vm18831_vm6 }
 0xaa5   : > { %3381 = vmax.xlane.f32.xlu0 %v15619_v26 }
 0xaac   : > { %3519 = vrot.lane.b32.xlu1 %v18804_v23, %s13608_s24 }
 0xabb   : > { %3517 = vrot.lane.b32.xlu0 %v18805_v38, %s13608_s24 }
 0xad0   : > { %3387 = vmax.xlane.f32.xlu1 %v15628_v14 }
 0xad4   : > { %3383 = vmax.xlane.f32.xlu1 %v15633_v52 }
 0xb12   : > { %v3362_v60 = vpop.xlane.xlu0 %3361 }
 0xb13   : > { %v3391_v33 = vsub.f32 %v3343_v59, %v3362_v60 }
 0xb15   : > { %v3409_v23 = vmul.f32 1.442695, %v3391_v33  ;;  %v3360_v38 = vpop.xlane.xlu1 %3359 }
 0xb16   : > { %v3358_v8 = vpop.xlane.xlu0 %3357  ;;  %v3390_v18 = vsub.f32 %v15571_v57, %v3360_v38 }
 0xb17   : > { %12707 = vpow2.f32 %v3409_v23  ;;  %v3389_v37 = vsub.f32 %v3341_v44, %v3358_v8 }
 0xb18   : > { %v3407_v12 = vmul.f32 1.442695, %v3390_v18 }
 0xb19   : > { %v3405_v0 = vmul.f32 1.442695, %v3389_v37 }
 0xb1a   : > { %v3364_v25 = vpop.xlane.xlu0 %3363 }
 0xb1b   : > { %12709 = vpow2.f32 %v3405_v0  ;;  %v3392_v34 = vsub.f32 %v3344_v3, %v3364_v25 }
 0xb1c   : > { %v3372_v19 = vpop.xlane.xlu1 %3371 }
 0xb1d   : > { %v3411_v63 = vmul.f32 1.442695, %v3392_v34  ;;  %v3396_v4 = vsub.f32 %v15580_v46, %v3372_v19 }
 0xb1e   : > { %v3370_v21 = vpop.xlane.xlu0 %3369 }
 0xb1f   : > { %12711 = vpow2.f32 %v3411_v63  ;;  %v3395_v62 = vsub.f32 %v3347_v17, %v3370_v21  ;;  %v3419_v44 = vmul.f32 1.442695, %v3396_v4 }
 0xb20   : > { %v3368_v59 = vpop.xlane.xlu1 %3367  ;;  %12713 = vpow2.f32 %v3407_v12 }
 0xb21   : > { %v15638_v33 = vpop.eup %12707  ;;  %v3417_v60 = vmul.f32 1.442695, %v3395_v62  ;;  %v3394_v3 = vsub.f32 %v15587_v45, %v3368_v59  ;;  %v18810_v59 = vld [vmem:[#allocation59_spill] sm:$0xff] }
 0xb22   : > { %3441 = vadd.xlane.f32.xlu1 %v15638_v33  ;;  %v3366_v57 = vpop.xlane.xlu0 %3365 }
 0xb23   : > { %12715 = vpow2.f32 %v3417_v60  ;;  %v3393_v8 = vsub.f32 %v3345_v11, %v3366_v57  ;;  %v3415_v21 = vmul.f32 1.442695, %v3394_v3  ;;  %v18811_v60 = vld [vmem:[#allocation60_spill] sm:$0xff] }
 0xb24   : > { %12717 = vpow2.f32 %v3419_v44  ;;  %v3380_v46 = vpop.xlane.xlu1 %3379 }
 0xb25   : > { %v15642_v34 = vpop.eup %12709  ;;  %v3413_v18 = vmul.f32 1.442695, %v3393_v8  ;;  %v3400_v57 = vsub.f32 %v15594_v41, %v3380_v46 }
 0xb26   : > { %3437 = vadd.xlane.f32.xlu1 %v15642_v34  ;;  %v3378_v17 = vpop.xlane.xlu0 %3377 }
 0xb27   : > { %12719 = vpow2.f32 %v3413_v18  ;;  %v3427_v18 = vmul.f32 1.442695, %v3400_v57  ;;  %v18815_v57 = vpack.i.bf16 %v15523_v1, %v15519_v42 }
 0xb28   : > { %12721 = vpow2.f32 %v3415_v21  ;;  %v3376_v38 = vpop.xlane.xlu1 %3375  ;;  %v3399_v21 = vsub.f32 %v15599_v50, %v3378_v17 }
 0xb29   : > { %v15645_v19 = vpop.eup %12711  ;;  %v3398_v3 = vsub.f32 %v15604_v58, %v3376_v38  ;;  %v18812_v38 = vpack.i.bf16 %v15475_v20, %v15471_v56 }
 0xb2a   : > { %3443 = vadd.xlane.f32.xlu1 %v15645_v19  ;;  %v3374_v62 = vpop.xlane.xlu0 %3373  ;;  %v15648_v63 = vpop.eup %12713 }
 0xb2b   : > { %v3397_v44 = vsub.f32 %v15609_v5, %v3374_v62  ;;  %v3423_v13 = vmul.f32 1.442695, %v3398_v3 }
 0xb2c   : > { %v3520_v4 = vpop.permute.xlu1 %3519 }
 0xb2d   : > { %v15650_v45 = vpop.eup %12715  ;;  %v3421_v8 = vmul.f32 1.442695, %v3397_v44  ;;  %v18814_v44 = vpack.i.bf16 %v15479_v7, %v15473_v32 }
 0xb2e   : > { %3439 = vadd.xlane.f32.xlu1 %v15648_v63  ;;  %3449 = vadd.xlane.f32.xlu0 %v15650_v45  ;;  %v3386_v11 = vpop.xlane.xlu0 %3385  ;;  %v15654_v12 = vpop.eup %12717 }
 0xb2f   : > { %12723 = vpow2.f32 %v3421_v8  ;;  %v3403_v41 = vsub.f32 %v15614_v10, %v3386_v11 }
 0xb30   : > { %12725 = vpow2.f32 %v3427_v18 }
 0xb31   : > { %v15656_v23 = vpop.eup %12719  ;;  %12727 = vpow2.f32 %v3423_v13  ;;  %v3433_v17 = vmul.f32 1.442695, %v3403_v41 }
 0xb32   : > { %3451 = vadd.xlane.f32.xlu0 %v15654_v12  ;;  %3445 = vadd.xlane.f32.xlu1 %v15656_v23  ;;  %v3382_v37 = vpop.xlane.xlu0 %3381  ;;  %v15660_v0 = vpop.eup %12721 }
 0xb36   : > { %3447 = vadd.xlane.f32.xlu0 %v15660_v0  ;;  %v3518_v25 = vpop.permute.xlu0 %3517 }
 0xb37   : > { %11368 = vmatprep.subr.bf16.mxu0 %v3518_v25 }
 0xb38   : > { %11369 = vmatpush3.bf16.msra.mxu0 %v3518_v25 }
 0xb39   : > { %11370 = vmatprep.subr.bf16.mxu0 %v3520_v4  ;;  %v15675_v46 = vpop.eup %12723 }
 0xb3a   : > { %v15678_v13 = vpop.eup %12725 }
 0xb3c   : > { %11371 = vmatpush3.bf16.msra.mxu0 %v3520_v4  ;;  %v3425_v4 = vmul.f32 1.442695, %v3399_v21 }
 0xb3e   : > { %12729 = vpow2.f32 %v3425_v4 }
 0xb43   : > { %3523 = vrot.lane.b32.xlu1 %v18810_v59, %s13608_s24  ;;  %v3401_v59 = vsub.f32 %v15619_v26, %v3382_v37  ;;  %v15680_v26 = vpop.eup %12727  ;;  %v18813_v37 = vpack.i.bf16 %v15527_v27, %v15521_v53 }
 0xb45   : > { %v3429_v58 = vmul.f32 1.442695, %v3401_v59 }
 0xb4c   : > { %3521 = vrot.lane.b32.xlu0 %v18811_v60, %s13608_s24 }
 0xb5d   : > { %v3388_v25 = vpop.xlane.xlu1 %3387 }
 0xb5e   : > { %v3404_v60 = vsub.f32 %v15628_v14, %v3388_v25 }
 0xb60   : > { %v3435_v50 = vmul.f32 1.442695, %v3404_v60 }
 0xb61   : > { %v3384_v28 = vpop.xlane.xlu1 %3383 }
 0xb62   : > { %v3402_v5 = vsub.f32 %v15633_v52, %v3384_v28  ;;  %v15684_v28 = vpop.eup %12729 }
 0xb64   : > { %v3431_v62 = vmul.f32 1.442695, %v3402_v5 }
 0xb66   : > { %12731 = vpow2.f32 %v3431_v62 }
 0xb67   : > { %3453 = vadd.xlane.f32.xlu1 %v15675_v46  ;;  %12733 = vpow2.f32 %v3429_v58 }
 0xb68   : > { %12735 = vpow2.f32 %v3435_v50 }
 0xb69   : > { %12737 = vpow2.f32 %v3433_v17 }
 0xb6b   : > { %3455 = vadd.xlane.f32.xlu0 %v15680_v26  ;;  %3459 = vadd.xlane.f32.xlu1 %v15678_v13 }
 0xb6f   : > { %3457 = vadd.xlane.f32.xlu0 %v15684_v28 }
 0xb70   : > { %v15687_v10 = vpop.eup %12731 }
 0xb71   : > { %3463 = vadd.xlane.f32.xlu1 %v15687_v10  ;;  %v15690_v14 = vpop.eup %12733 }
 0xb72   : > { %v15693_v52 = vpop.eup %12735 }
 0xb73   : > { %3461 = vadd.xlane.f32.xlu0 %v15690_v14  ;;  %v15696_v11 = vpop.eup %12737 }
 0xb75   : > { %3467 = vadd.xlane.f32.xlu1 %v15693_v52 }
 0xb77   : > { %3465 = vadd.xlane.f32.xlu0 %v15696_v11 }
 0xb86   : > { %11985 = vrot.lane.b32.xlu1 %v18812_v38, %s13608_s24 }
 0xb8a   : > { %11990 = vrot.lane.b32.xlu1 %v18813_v37, %s13606_s19 }
 0xb8d   : > { %11980 = vrot.lane.b32.xlu0 %v18814_v44, %s13608_s24 }
 0xb8e   : > { %11995 = vrot.lane.b32.xlu1 %v18815_v57, %s13606_s19 }
 0xbaf   : > { %v3442_v3 = vpop.xlane.xlu1 %3441 }
 0xbb3   : > { %v3438_v8 = vpop.xlane.xlu1 %3437 }
 0xbb4   : > { %12739 = vrcp.f32 %v3438_v8 }
 0xbb7   : > { %v3444_v18 = vpop.xlane.xlu1 %3443 }
 0xbbb   : > { %v3440_v56 = vpop.xlane.xlu1 %3439  ;;  %v3450_v20 = vpop.xlane.xlu0 %3449 }
 0xbbc   : > { %12741 = vrcp.f32 %v3440_v56 }
 0xbbd   : > { %12743 = vrcp.f32 %v3444_v18 }
 0xbbe   : > { %12745 = vrcp.f32 %v3442_v3  ;;  %v12740_v32 = vpop.eup %12739 }
 0xbbf   : > { %v3446_v53 = vpop.xlane.xlu1 %3445  ;;  %v3452_v27 = vpop.xlane.xlu0 %3451  ;;  %v3470_v1 = vmul.f32 %v12740_v32, %v15642_v34 }
 0xbc0   : > { %12747 = vrcp.f32 %v3446_v53 }
 0xbc3   : > { %v3448_v21 = vpop.xlane.xlu0 %3447  ;;  %v3524_v60 = vpop.permute.xlu1 %3523 }
 0xbc4   : > { %12749 = vrcp.f32 %v3448_v21 }
 0xbc5   : > { %12751 = vrcp.f32 %v3452_v27 }
 0xbc6   : > { %v12742_v7 = vpop.eup %12741  ;;  %12753 = vrcp.f32 %v3450_v20 }
 0xbc7   : > { %v12744_v25 = vpop.eup %12743  ;;  %v3522_v42 = vpop.permute.xlu0 %3521  ;;  %v3472_v4 = vmul.f32 %v12742_v7, %v15648_v63 }
 0xbc8   : > { %11372 = vmatprep.subr.bf16.mxu0 %v3522_v42  ;;  %v12746_v59 = vpop.eup %12745  ;;  %v3476_v41 = vmul.f32 %v12744_v25, %v15645_v19 }
 0xbc9   : > { %11373 = vmatpush3.bf16.msra.mxu0 %v3522_v42  ;;  %v3501_v5 = vpack.c.bf16 %v3472_v4, %v3470_v1  ;;  %v3474_v62 = vmul.f32 %v12746_v59, %v15638_v33 }
 0xbca   : > { %11374 = vmatprep.subr.bf16.mxu0 %v3524_v60  ;;  %v12748_v58 = vpop.eup %12747 }
 0xbcb   : > { %11376 = vmatprep.mubr.bf16.mxu0 %v3501_v5  ;;  %v3502_v17 = vpack.c.bf16 %v3476_v41, %v3474_v62  ;;  %v3478_v34 = vmul.f32 %v12748_v58, %v15656_v23 }
 0xbcd   : > { %11375 = vmatpush3.bf16.msra.mxu0 %v3524_v60 }
 0xbce   : > { %v12750_v50 = vpop.eup %12749 }
 0xbcf   : > { %v12752_v38 = vpop.eup %12751  ;;  %v3480_v63 = vmul.f32 %v12750_v50, %v15660_v0 }
 0xbd0   : > { %11377 = vmatmul.mubr.bf16.vlgmr.msra.gmra.mrb[64].mxu0 %v3502_v17  ;;  %v12754_v37 = vpop.eup %12753  ;;  %v3484_v57 = vmul.f32 %v12752_v38, %v15654_v12  ;;  %v12252_v17 = vld [vmem:[#allocation10 + $0x8] sm:$0xff]   ;;  %v12253_v38 = vld [vmem:[#allocation10 + $0x10] sm:$0xff]  }
 0xbd1   : > { %v3503_v44 = vpack.c.bf16 %v3480_v63, %v3478_v34  ;;  %v3482_v19 = vmul.f32 %v12754_v37, %v15650_v45  ;;  %v12256_v34 = vld [vmem:[#allocation10 + $0x28] sm:$0xff]  }
 0xbd3   : > { %11380 = vmatprep.mubr.bf16.mxu0 %v3503_v44  ;;  %v3504_v3 = vpack.c.bf16 %v3484_v57, %v3482_v19 }
 0xbd8   : > { %11381 = vmatmul.mubr.bf16.gmra.mrb[68].mxu0 %v3504_v3 }
 0xbf4   : > { %v3454_v8 = vpop.xlane.xlu1 %3453 }
 0xbf5   : > { %12755 = vrcp.f32 %v3454_v8 }
 0xbf8   : > { %v3460_v33 = vpop.xlane.xlu1 %3459  ;;  %v3456_v18 = vpop.xlane.xlu0 %3455 }
 0xbf9   : > { %12757 = vrcp.f32 %v3456_v18 }
 0xbfa   : > { %12759 = vrcp.f32 %v3460_v33  ;;  %v18816_v33 = vpack.i.bf16 %v15487_v40, %v15483_v51  ;;  %v18819_v51 = vpack.i.bf16 %v15539_v48, %v15533_v6  ;;  %v18821_v40 = vpack.i.bf16 %v15503_v36, %v15497_v61 }
 0xbfb   : > { %v18824_v36 = vpack.i.bf16 %v15511_v39, %v15507_v49 }
 0xbfc   : > { %v3458_v56 = vpop.xlane.xlu0 %3457 }
 0xbfd   : > { %12761 = vrcp.f32 %v3458_v56  ;;  %v18817_v56 = vpack.i.bf16 %v15491_v30, %v15485_v9  ;;  %v18820_v9 = vpack.i.bf16 %v15499_v47, %v15495_v31  ;;  %v18822_v30 = vpack.i.bf16 %v15547_v35, %v15543_v54 }
 0xbfe   : > { %v3464_v23 = vpop.xlane.xlu1 %3463 }
 0xbff   : > { %12763 = vrcp.f32 %v3464_v23  ;;  %v12756_v20 = vpop.eup %12755 }
 0xc00   : > { %v3462_v0 = vpop.xlane.xlu0 %3461  ;;  %v3486_v21 = vmul.f32 %v12756_v20, %v15675_v46 }
 0xc01   : > { %12765 = vrcp.f32 %v3462_v0 }
 0xc02   : > { %v3468_v53 = vpop.xlane.xlu1 %3467 }
 0xc03   : > { %12767 = vrcp.f32 %v3468_v53  ;;  %v12758_v12 = vpop.eup %12757 }
 0xc04   : > { %v3466_v27 = vpop.xlane.xlu0 %3465  ;;  %v12760_v45 = vpop.eup %12759  ;;  %v3488_v32 = vmul.f32 %v12758_v12, %v15680_v26  ;;  %v18818_v12 = vpack.i.bf16 %v15535_v43, %v15531_v16  ;;  %v18823_v16 = vpack.i.bf16 %v15551_v2, %v15545_v29  ;;  %v18825_v29 = vpack.i.bf16 %v15515_v22, %v15509_v55 }
 0xc05   : > { %12769 = vrcp.f32 %v3466_v27  ;;  %v3492_v1 = vmul.f32 %v12760_v45, %v15678_v13  ;;  %v12251_v13 = vld [vmem:[#allocation10] sm:$0xff]  }
 0xc06   : > { %v3505_v25 = vpack.c.bf16 %v3488_v32, %v3486_v21  ;;  %11392 = vmatprep.subr.bf16.mxu0 %v12251_v13  ;;  %v18826_v32 = vpack.i.bf16 %v15559_v24, %v15555_v15  ;;  %v11986_v55 = vpop.permute.xlu1 %11985 }
 0xc07   : > { %v12762_v7 = vpop.eup %12761  ;;  %11393 = vmatpush3.bf16.msra.mxu0 %v12251_v13 }
 0xc08   : > { %v3490_v42 = vmul.f32 %v12762_v7, %v15684_v28  ;;  %11384 = vmatprep.mubr.bf16.mxu0 %v3505_v25  ;;  %11394 = vmatprep.subr.bf16.mxu0 %v12252_v17  ;;  %v18827_v7 = vld [vmem:[#allocation62_spill] sm:$0xff]  ;;  %v11981_v22 = vpop.permute.xlu0 %11980 }
 0xc09   : > { %v12764_v4 = vpop.eup %12763  ;;  %v18828_v25 = vld [vmem:[#allocation102_spill] sm:$0xff] }
 0xc0a   : > { %v3506_v59 = vpack.c.bf16 %v3492_v1, %v3490_v42  ;;  %v3496_v41 = vmul.f32 %v12764_v4, %v15687_v10  ;;  %v12255_v10 = vld [vmem:[#allocation10 + $0x20] sm:$0xff]   ;;  %v18829_v49 = vpack.i.bf16 %v18827_v7, %v18828_v25  ;;  %v11991_v39 = vpop.permute.xlu1 %11990  ;;  %v11983_v1 = vunpack.i.h.bf16 %v11981_v22 }
 0xc0b   : > { %v12766_v60 = vpop.eup %12765  ;;  %11395 = vmatpush3.bf16.msra.mxu0 %v12252_v17  ;;  %v11982_v4 = vunpack.i.l.bf16 %v11981_v22  ;;  %v11993_v24 = vunpack.i.h.bf16 %v11991_v39  ;;  %v18836_v17 = vld [vmem:[#allocation86_spill] sm:$0xff] }
 0xc0c   : > { %11385 = vmatmul.mubr.bf16.gmra.mrb[72].mxu0 %v3506_v59  ;;  %v3494_v5 = vmul.f32 %v12766_v60, %v15690_v14  ;;  %11396 = vmatprep.subr.bf16.mxu0 %v12253_v38  ;;  %v12254_v14 = vld [vmem:[#allocation10 + $0x18] sm:$0xff]   ;;  %v11988_v59 = vunpack.i.h.bf16 %v11986_v55  ;;  %v11987_v60 = vunpack.i.l.bf16 %v11986_v55 }
 0xc0d   : > { %v12768_v58 = vpop.eup %12767 }
 0xc0e   : > { %v3507_v62 = vpack.c.bf16 %v3496_v41, %v3494_v5  ;;  %v3500_v50 = vmul.f32 %v12768_v58, %v15693_v52  ;;  %v12257_v52 = vld [vmem:[#allocation10 + $0x30] sm:$0xff]   ;;  %v11996_v42 = vpop.permute.xlu1 %11995  ;;  %v11992_v41 = vunpack.i.l.bf16 %v11991_v39 }
 0xc0f   : > { %v12770_v46 = vpop.eup %12769  ;;  %11397 = vmatpush3.bf16.msra.mxu0 %v12253_v38  ;;  %v11998_v5 = vunpack.i.h.bf16 %v11996_v42  ;;  %v11997_v15 = vunpack.i.l.bf16 %v11996_v42  ;;  %v18830_v58 = vld [vmem:[#allocation89_spill] sm:$0xff]  ;;  %v3824_v38 = vsel %vm18837_vm11, %v18836_v17, %v11987_v60  ;;  %vm18841_vm11 = vmmov %vm18831_vm6 }
 0xc10   : > { %11388 = vmatprep.mubr.bf16.mxu0 %v3507_v62  ;;  %v3498_v26 = vmul.f32 %v12770_v46, %v15696_v11  ;;  %11398 = vmatprep.subr.bf16.mxu0 %v12254_v14  ;;  %v12258_v11 = vld [vmem:[#allocation10 + $0x38] sm:$0xff]   ;;  %v3823_v62 = vsel %vm18831_vm6, %v18830_v58, %v11983_v1  ;;  %v18832_v46 = vld [vmem:[#allocation87_spill] sm:$0xff] }
 0xc12   : > { %v3508_v28 = vpack.c.bf16 %v3500_v50, %v3498_v26  ;;  %v3822_v26 = vsel %vm18833_vm9, %v18832_v46, %v11982_v4  ;;  %vm18843_vm9 = vmmov %vm18831_vm6 }
 0xc13   : > { %11399 = vmatpush3.bf16.msra.mxu0 %v12254_v14 }
 0xc14   : > { %11389 = vmatmul.mubr.bf16.gmra.mrb[76].mxu0 %v3508_v28  ;;  %11400 = vmatprep.subr.bf16.mxu0 %v12255_v10  ;;  %v18834_v28 = vld [vmem:[#allocation88_spill] sm:$0xff] }
 0xc15   : > { %v3825_v13 = vsel %vm18835_vm12, %v18834_v28, %v11988_v59  ;;  %vm18839_vm12 = vmmov %vm18831_vm6 }
 0xc17   : > { %11401 = vmatpush3.bf16.msra.mxu0 %v12255_v10 }
 0xc18   : > { %11402 = vmatprep.subr.bf16.mxu0 %v12256_v34 }
 0xc1b   : > { %11403 = vmatpush3.bf16.msra.mxu0 %v12256_v34 }
 0xc1c   : > { %11404 = vmatprep.subr.bf16.mxu0 %v12257_v52 }
 0xc1f   : > { %11405 = vmatpush3.bf16.msra.mxu0 %v12257_v52  ;;  %v3841_v52 = vsel %vm18458_vm13, %v3824_v38, %v11997_v15  ;;  %v18845_v38 = vld [vmem:[#allocation96_spill] sm:$0xff] }
 0xc20   : > { %11406 = vmatprep.subr.bf16.mxu0 %v12258_v11 }
 0xc23   : > { %11407 = vmatpush3.bf16.msra.mxu0 %v12258_v11  ;;  %v3842_v11 = vsel %vm18458_vm13, %v3825_v13, %v11998_v5 }
 0xca3   : > { %v11378_v63 = vpop.f32.mrb[64].mxu0 }
 0xca4   : > { %v3567_v37 = vpop.f32.mrb[65].mxu0 }
 0xca5   : > { %v11379_v44 = vpop.f32.mrb[66].mxu0 }
 0xca6   : > { %v12004_v57 = vpack.i.bf16 %v11379_v44, %v11378_v63  ;;  %v3570_v19 = vpop.f32.mrb[67].mxu0 }
 0xca7   : > { %v11999_v3 = vpack.i.bf16 %v3570_v19, %v3567_v37  ;;  %v3839_v19 = vsel %vm18458_vm13, %v3822_v26, %v11992_v41 }
 0xca8   : > { %12005 = vrot.lane.b32.xlu1 %v12004_v57, %s13607_s15 }
 0xca9   : > { %12000 = vrot.lane.b32.xlu0 %v11999_v3, %s13607_s15  ;;  %v3840_v3 = vsel %vm18458_vm13, %v3823_v62, %v11993_v24 }
 0xcab   : > { %v11382_v8 = vpop.f32.mrb[68].mxu0 }
 0xcac   : > { %12015 = vrot.lane.b32.xlu1 %v18816_v33, %s13608_s24  ;;  %v3583_v18 = vpop.f32.mrb[69].mxu0 }
 0xcad   : > { %12010 = vrot.lane.b32.xlu0 %v18817_v56, %s13608_s24  ;;  %v11383_v23 = vpop.f32.mrb[70].mxu0 }
 0xcae   : > { %v12034_v0 = vpack.i.bf16 %v11383_v23, %v11382_v8  ;;  %v3586_v20 = vpop.f32.mrb[71].mxu0 }
 0xcaf   : > { %v12029_v53 = vpack.i.bf16 %v3586_v20, %v3583_v18 }
 0xcb0   : > { %12025 = vrot.lane.b32.xlu1 %v18818_v12, %s13606_s19 }
 0xcb1   : > { %12020 = vrot.lane.b32.xlu0 %v18819_v51, %s13606_s19 }
 0xcb4   : > { %12035 = vrot.lane.b32.xlu1 %v12034_v0, %s13607_s15 }
 0xcb5   : > { %12030 = vrot.lane.b32.xlu0 %v12029_v53, %s13607_s15 }
 0xcb8   : > { %12045 = vrot.lane.b32.xlu1 %v18820_v9, %s13608_s24 }
 0xcb9   : > { %12040 = vrot.lane.b32.xlu0 %v18821_v40, %s13608_s24 }
 0xcbc   : > { %12055 = vrot.lane.b32.xlu1 %v18822_v30, %s13606_s19 }
 0xcbd   : > { %12050 = vrot.lane.b32.xlu0 %v18823_v16, %s13606_s19 }
 0xcdf   : > { %v11386_v6 = vpop.f32.mrb[72].mxu0 }
 0xce0   : > { %v3599_v43 = vpop.f32.mrb[73].mxu0 }
 0xce1   : > { %v11387_v48 = vpop.f32.mrb[74].mxu0 }
 0xce2   : > { %v12064_v31 = vpack.i.bf16 %v11387_v48, %v11386_v6  ;;  %v3602_v47 = vpop.f32.mrb[75].mxu0  ;;  %v18838_v48 = vld [vmem:[#allocation92_spill] sm:$0xff] }
 0xce3   : > { %v12059_v27 = vpack.i.bf16 %v3602_v47, %v3599_v43  ;;  %v18840_v47 = vld [vmem:[#allocation90_spill] sm:$0xff] }
 0xce4   : > { %12065 = vrot.lane.b32.xlu1 %v12064_v31, %s13607_s15 }
 0xce5   : > { %12060 = vrot.lane.b32.xlu0 %v12059_v27, %s13607_s15 }
 0xce7   : > { %v11390_v61 = vpop.f32.mrb[76].mxu0 }
 0xce8   : > { %12075 = vrot.lane.b32.xlu1 %v18824_v36, %s13608_s24  ;;  %v3615_v54 = vpop.f32.mrb[77].mxu0  ;;  %v18842_v36 = vld [vmem:[#allocation93_spill] sm:$0xff] }
 0xce9   : > { %12070 = vrot.lane.b32.xlu0 %v18825_v29, %s13608_s24  ;;  %v11391_v35 = vpop.f32.mrb[78].mxu0  ;;  %v18844_v29 = vld [vmem:[#allocation91_spill] sm:$0xff] }
 0xcea   : > { %v12094_v2 = vpack.i.bf16 %v11391_v35, %v11390_v61  ;;  %v3618_v45 = vpop.f32.mrb[79].mxu0 }
 0xceb   : > { %v12089_v21 = vpack.i.bf16 %v3618_v45, %v3615_v54 }
 0xcec   : > { %12085 = vrot.lane.b32.xlu1 %v18826_v32, %s13606_s19 }
 0xced   : > { %12080 = vrot.lane.b32.xlu0 %v18829_v49, %s13606_s19 }
 0xcf0   : > { %12095 = vrot.lane.b32.xlu1 %v12094_v2, %s13607_s15 }
 0xcf1   : > { %12090 = vrot.lane.b32.xlu0 %v12089_v21, %s13607_s15 }
 0xd1a   : > { %v12006_v50 = vpop.permute.xlu1 %12005 }
 0xd1b   : > { %v12008_v14 = vunpack.i.h.bf16 %v12006_v50  ;;  %v12007_v10 = vunpack.i.l.bf16 %v12006_v50  ;;  %v12001_v34 = vpop.permute.xlu0 %12000 }
 0xd1c   : > { %v12003_v63 = vunpack.i.h.bf16 %v12001_v34  ;;  %v12002_v37 = vunpack.i.l.bf16 %v12001_v34 }
 0xd1d   : > { %v3859_v44 = vsel %vm18457_vm15, %v3842_v11, %v12008_v14  ;;  %v3858_v57 = vsel %vm18457_vm15, %v3841_v52, %v12007_v10  ;;  %v18847_v10 = vld [vmem:[#allocation94_spill] sm:$0xff]  ;;  %v18849_v11 = vld [vmem:[#allocation97_spill] sm:$0xff] }
 0xd1e   : > { %v3873_v8 = vpack.c.bf16 %v3859_v44, %v3858_v57  ;;  %v12016_v33 = vpop.permute.xlu1 %12015  ;;  %v3856_v18 = vsel %vm18457_vm15, %v3839_v19, %v12002_v37  ;;  %v3857_v56 = vsel %vm18457_vm15, %v3840_v3, %v12003_v63  ;;  %v18851_v37 = vld [vmem:[#allocation95_spill] sm:$0xff] }
 0xd1f   : > { %v12011_v23 = vpop.permute.xlu0 %12010  ;;  %v3872_v0 = vpack.c.bf16 %v3857_v56, %v3856_v18  ;;  %v12018_v20 = vunpack.i.h.bf16 %v12016_v33  ;;  %v12017_v53 = vunpack.i.l.bf16 %v12016_v33 }
 0xd20   : > { %v12013_v51 = vunpack.i.h.bf16 %v12011_v23  ;;  %v12012_v9 = vunpack.i.l.bf16 %v12011_v23 }
 0xd21   : > { %11408 = vmatprep.mubr.bf16.mxu0 %v3872_v0  ;;  %v3829_v31 = vsel %vm18839_vm12, %v18838_v48, %v12018_v20  ;;  %v3828_v27 = vsel %vm18841_vm11, %v18840_v47, %v12017_v53  ;;  %vm18846_vm12 = vmmov %vm18831_vm6 }
 0xd22   : > { %v12026_v12 = vpop.permute.xlu1 %12025  ;;  %11409 = vmatmul.mubr.bf16.vlgmr.msra.gmra.mrb[80].mxu0 %v3873_v8  ;;  %v3827_v54 = vsel %vm18843_vm9, %v18842_v36, %v12013_v51  ;;  %v3826_v35 = vsel %vm18831_vm6, %v18844_v29, %v12012_v9  ;;  %vm18848_vm11 = vmmov %vm18831_vm6 }
 0xd23   : > { %v12021_v40 = vpop.permute.xlu0 %12020  ;;  %v12028_v30 = vunpack.i.h.bf16 %v12026_v12  ;;  %v12027_v16 = vunpack.i.l.bf16 %v12026_v12  ;;  %vm18850_vm9 = vmmov %vm18831_vm6 }
 0xd24   : > { %v12023_v6 = vunpack.i.h.bf16 %v12021_v40  ;;  %v12022_v43 = vunpack.i.l.bf16 %v12021_v40 }
 0xd25   : > { %v3845_v25 = vsel %vm18458_vm13, %v3828_v27, %v12027_v16  ;;  %v3846_v49 = vsel %vm18458_vm13, %v3829_v31, %v12028_v30 }
 0xd26   : > { %v12036_v61 = vpop.permute.xlu1 %12035  ;;  %v3843_v55 = vsel %vm18458_vm13, %v3826_v35, %v12022_v43  ;;  %v3844_v39 = vsel %vm18458_vm13, %v3827_v54, %v12023_v6  ;;  %v18852_v35 = vld [vmem:[#allocation100_spill] sm:$0xff] }
 0xd27   : > { %v12038_v2 = vunpack.i.h.bf16 %v12036_v61  ;;  %v12037_v45 = vunpack.i.l.bf16 %v12036_v61  ;;  %v12031_v21 = vpop.permute.xlu0 %12030 }
 0xd28   : > { %v12033_v32 = vunpack.i.h.bf16 %v12031_v21  ;;  %v12032_v7 = vunpack.i.l.bf16 %v12031_v21 }
 0xd29   : > { %v3862_v22 = vsel %vm18457_vm15, %v3845_v25, %v12037_v45  ;;  %v3863_v42 = vsel %vm18457_vm15, %v3846_v49, %v12038_v2  ;;  %v18854_v45 = vld [vmem:[#allocation98_spill] sm:$0xff]  ;;  %v18858_v49 = vld [vmem:[#allocation99_spill] sm:$0xff] }
 0xd2a   : > { %v3860_v1 = vsel %vm18457_vm15, %v3843_v55, %v12032_v7  ;;  %v3861_v4 = vsel %vm18457_vm15, %v3844_v39, %v12033_v32  ;;  %v3875_v59 = vpack.c.bf16 %v3863_v42, %v3862_v22  ;;  %v12046_v5 = vpop.permute.xlu1 %12045  ;;  %v18856_v7 = vld [vmem:[#allocation101_spill] sm:$0xff] }
 0xd2b   : > { %v3874_v60 = vpack.c.bf16 %v3861_v4, %v3860_v1  ;;  %v12041_v15 = vpop.permute.xlu0 %12040  ;;  %v12048_v41 = vunpack.i.h.bf16 %v12046_v5  ;;  %v12047_v58 = vunpack.i.l.bf16 %v12046_v5 }
 0xd2c   : > { %v12043_v46 = vunpack.i.h.bf16 %v12041_v15  ;;  %v12042_v26 = vunpack.i.l.bf16 %v12041_v15 }
 0xd2d   : > { %11412 = vmatprep.mubr.bf16.mxu0 %v3874_v60  ;;  %v3833_v14 = vsel %vm18846_vm12, %v18845_v38, %v12048_v41  ;;  %v3832_v34 = vsel %vm18848_vm11, %v18847_v10, %v12047_v58  ;;  %vm18853_vm12 = vmmov %vm18831_vm6 }
 0xd2e   : > { %11413 = vmatmul.mubr.bf16.gmra.mrb[84].mxu0 %v3875_v59  ;;  %v12056_v24 = vpop.permute.xlu1 %12055  ;;  %v3831_v63 = vsel %vm18850_vm9, %v18849_v11, %v12043_v46  ;;  %v3830_v44 = vsel %vm18831_vm6, %v18851_v37, %v12042_v26  ;;  %vm18855_vm11 = vmmov %vm18831_vm6  ;;  %v18862_v37 = vld [vmem:[#allocation33_spill] sm:$0xff] }
 0xd2f   : > { %v12051_v62 = vpop.permute.xlu0 %12050  ;;  %v12058_v50 = vunpack.i.h.bf16 %v12056_v24  ;;  %v12057_v28 = vunpack.i.l.bf16 %v12056_v24  ;;  %vm18857_vm9 = vmmov %vm18831_vm6 }
 0xd30   : > { %v12053_v13 = vunpack.i.h.bf16 %v12051_v62  ;;  %v12052_v17 = vunpack.i.l.bf16 %v12051_v62 }
 0xd31   : > { %v3849_v18 = vsel %vm18458_vm13, %v3832_v34, %v12057_v28  ;;  %v3850_v56 = vsel %vm18458_vm13, %v3833_v14, %v12058_v50  ;;  %v18859_v50 = vmov 0   ;;  %v10291_v28 = vld [vmem:[%s18860_s25] ss:$0 sm:$0xff] }
 0xd32   : > { %v3847_v23 = vsel %vm18458_vm13, %v3830_v44, %v12052_v17  ;;  %v3848_v0 = vsel %vm18458_vm13, %v3831_v63, %v12053_v13 }
 0xd56   : > { %v12066_v52 = vpop.permute.xlu1 %12065 }
 0xd57   : > { %v12068_v57 = vunpack.i.h.bf16 %v12066_v52  ;;  %v12067_v19 = vunpack.i.l.bf16 %v12066_v52  ;;  %v12061_v3 = vpop.permute.xlu0 %12060  ;;  %v18861_v52 = vld [vmem:[#allocation31_spill] sm:$0xff] }
 0xd58   : > { %v12063_v8 = vunpack.i.h.bf16 %v12061_v3  ;;  %v12062_v33 = vunpack.i.l.bf16 %v12061_v3 }
 0xd59   : > { %v3866_v20 = vsel %vm18457_vm15, %v3849_v18, %v12067_v19  ;;  %v3867_v53 = vsel %vm18457_vm15, %v3850_v56, %v12068_v57  ;;  %v18863_v57 = vld [vmem:[#allocation32_spill] sm:$0xff] }
 0xd5a   : > { %v12076_v12 = vpop.permute.xlu1 %12075  ;;  %v3864_v51 = vsel %vm18457_vm15, %v3847_v23, %v12062_v33  ;;  %v3865_v9 = vsel %vm18457_vm15, %v3848_v0, %v12063_v8  ;;  %v3877_v40 = vpack.c.bf16 %v3867_v53, %v3866_v20  ;;  %v18864_v8 = vld [vmem:[#allocation34_spill] sm:$0xff] }
 0xd5b   : > { %v12071_v30 = vpop.permute.xlu0 %12070  ;;  %v3876_v16 = vpack.c.bf16 %v3865_v9, %v3864_v51  ;;  %v12078_v6 = vunpack.i.h.bf16 %v12076_v12  ;;  %v12077_v43 = vunpack.i.l.bf16 %v12076_v12  ;;  %v18865_v12 = vld [vmem:[#allocation35_spill] sm:$0xff] }
 0xd5c   : > { %v12073_v31 = vunpack.i.h.bf16 %v12071_v30  ;;  %v12072_v47 = vunpack.i.l.bf16 %v12071_v30  ;;  %v18866_v30 = vld [vmem:[#allocation36_spill] sm:$0xff] }
 0xd5d   : > { %11416 = vmatprep.mubr.bf16.mxu0 %v3876_v16  ;;  %v3837_v2 = vsel %vm18853_vm12, %v18852_v35, %v12078_v6  ;;  %v3836_v21 = vsel %vm18855_vm11, %v18854_v45, %v12077_v43  ;;  %v18867_v6 = vld [vmem:[#allocation37_spill] sm:$0xff]  ;;  %v18869_v35 = vld [vmem:[#allocation39_spill] sm:$0xff]  ;;  %vm18901_vm12 = vmmov %vm18831_vm6 }
 0xd5e   : > { %v12086_v48 = vpop.permute.xlu1 %12085  ;;  %11417 = vmatmul.mubr.bf16.gmra.mrb[88].mxu0 %v3877_v40  ;;  %v3835_v25 = vsel %vm18857_vm9, %v18856_v7, %v12073_v31  ;;  %v3834_v55 = vsel %vm18831_vm6, %v18858_v49, %v12072_v47  ;;  %vm18902_vm11 = vmmov %vm18831_vm6 }
 0xd5f   : > { %v12081_v27 = vpop.permute.xlu0 %12080  ;;  %v12088_v61 = vunpack.i.h.bf16 %v12086_v48  ;;  %v12087_v36 = vunpack.i.l.bf16 %v12086_v48  ;;  %v18868_v48 = vld [vmem:[#allocation38_spill] sm:$0xff]  ;;  %vm18903_vm9 = vmmov %vm18831_vm6 }
 0xd60   : > { %v12083_v54 = vunpack.i.h.bf16 %v12081_v27  ;;  %v12082_v29 = vunpack.i.l.bf16 %v12081_v27 }
 0xd61   : > { %v3853_v59 = vsel %vm18458_vm13, %v3836_v21, %v12087_v36  ;;  %v3854_v60 = vsel %vm18458_vm13, %v3837_v2, %v12088_v61 }
 0xd62   : > { %v12096_v32 = vpop.permute.xlu1 %12095  ;;  %v3851_v5 = vsel %vm18458_vm13, %v3834_v55, %v12082_v29  ;;  %v3852_v15 = vsel %vm18458_vm13, %v3835_v25, %v12083_v54  ;;  %v18871_v25 = vld [vmem:[#allocation41_spill] sm:$0xff]  ;;  %v18872_v55 = vld [vmem:[#allocation42_spill] sm:$0xff]  ;;  %vm18926_vm13 = vmmov %vm18831_vm6 }
 0xd63   : > { %v12098_v39 = vunpack.i.h.bf16 %v12096_v32  ;;  %v12097_v22 = vunpack.i.l.bf16 %v12096_v32  ;;  %v12091_v42 = vpop.permute.xlu0 %12090  ;;  %v18870_v32 = vld [vmem:[#allocation40_spill] sm:$0xff] }
 0xd64   : > { %v12093_v1 = vunpack.i.h.bf16 %v12091_v42  ;;  %v12092_v4 = vunpack.i.l.bf16 %v12091_v42 }
 0xd65   : > { %v3870_v24 = vsel %vm18457_vm15, %v3853_v59, %v12097_v22  ;;  %v3871_v41 = vsel %vm18457_vm15, %v3854_v60, %v12098_v39 }
 0xd66   : > { %v3868_v58 = vsel %vm18457_vm15, %v3851_v5, %v12092_v4  ;;  %v3869_v62 = vsel %vm18457_vm15, %v3852_v15, %v12093_v1  ;;  %v3879_v46 = vpack.c.bf16 %v3871_v41, %v3870_v24  ;;  %v18873_v5 = vld [vmem:[#allocation43_spill] sm:$0xff]  ;;  %vm18924_vm15 = vmmov %vm18831_vm6 }
 0xd67   : > { %v3878_v26 = vpack.c.bf16 %v3869_v62, %v3868_v58  ;;  %v18874_v58 = vld [vmem:[#allocation44_spill] sm:$0xff] }
 0xd69   : > { %11420 = vmatprep.mubr.bf16.mxu0 %v3878_v26 }
 0xd6a   : > { %11421 = vmatmul.mubr.bf16.gmra.mrb[92].mxu0 %v3879_v46  ;;  %v18875_v46 = vld [vmem:[#allocation45_spill] sm:$0xff] }
 0xd6b   : > { %4653 = vmatprep.mubr.bf16.mxu0 %v18859_v50 }
 0xdf5   : > { %v11410_v13 = vpop.f32.mrb[80].mxu0 }
 0xdf6   : > { %v3985_v17 = vpop.f32.mrb[81].mxu0  ;;  %v3994_v34 = vadd.f32 %v11410_v13, %v10291_v28  ;;  %v18876_v13 = vld [vmem:[#allocation46_spill] sm:$0xff] }
 0xdf7   : > { %v3986_v38 = vadd.f32 %v10291_v28, %v3985_v17  ;;  %v11411_v14 = vpop.f32.mrb[82].mxu0 }
 0xdf8   : > { %v3988_v10 = vpop.f32.mrb[83].mxu0  ;;  %v15863_v19 = vadd.f32 %v3994_v34, %v18863_v57  ;;  %v3997_v3 = vadd.f32 %v11411_v14, %v10291_v28  ;;  %v12261_v14 = vld [vmem:[#allocation11 + $0x4] ss:$16 sps:$4 sm:$0xff]  }
 0xdf9   : > { %v15856_v11 = vadd.f32 %v3986_v38, %v18861_v52  ;;  %v3989_v63 = vadd.f32 %v10291_v28, %v3988_v10  ;;  %v12259_v38 = vld [vmem:[#allocation11] ss:$16 sps:$4 sm:$0xff]   ;;  %v12264_v10 = vld [vmem:[#allocation11 + $0xc] ss:$16 sps:$4 sm:$0xff]   ;;  %v12267_v34 = vld [vmem:[#allocation11 + $0x24] ss:$16 sps:$4 sm:$0xff]   ;;  %4508 = vmatprep.subr.bf16.mxu1 %v12261_v14 }
 0xdfa   : > { %v15868_v33 = vadd.f32 %v3997_v3, %v18864_v8  ;;  %v12270_v52 = vld [vmem:[#allocation11 + $0x2c] ss:$16 sps:$4 sm:$0xff]   ;;  %4621 = vmatprep.subr.bf16.mxu0 %v12264_v10  ;;  %4509 = vmatpush1.bf16.msra.mxu1 %v12259_v38  ;;  %v12280_v38 = vld [vmem:[#allocation11 + $0x68] ss:$16 sps:$4 sm:$0xff]   ;;  %v12285_v14 = vld [vmem:[#allocation11 + $0x84] ss:$16 sps:$4 sm:$0xff]  }
 0xdfb   : > { %v15859_v44 = vadd.f32 %v3989_v63, %v18862_v37  ;;  %4066 = vadd.xlane.f32.xlu0 %v15856_v11  ;;  %v12265_v63 = vld [vmem:[#allocation11 + $0x20] ss:$16 sps:$4 sm:$0xff]   ;;  %4510 = vmatprep.subr.bf16.mxu1 %v12267_v34  ;;  %v12268_v37 = vld [vmem:[#allocation11 + $0x28] ss:$16 sps:$4 sm:$0xff]  }
 0xdfc   : > { %v12283_v10 = vld [vmem:[#allocation11 + $0x80] ss:$16 sps:$4 sm:$0xff]   ;;  %v12286_v34 = vld [vmem:[#allocation11 + $0x88] ss:$16 sps:$4 sm:$0xff]  }
 0xdfd   : > { %4068 = vadd.xlane.f32.xlu1 %v15859_v44 }
 0xdfe   : > { %4511 = vmatpush1.bf16.msra.mxu1 %v12265_v63  ;;  %v12294_v63 = vld [vmem:[#allocation11 + $0xac] ss:$16 sps:$4 sm:$0xff]  }
 0xdff   : > { %4070 = vadd.xlane.f32.xlu0 %v15863_v19 }
 0xe01   : > { %v11414_v18 = vpop.f32.mrb[84].mxu0 }
 0xe02   : > { %v4001_v56 = vpop.f32.mrb[85].mxu0  ;;  %v4010_v53 = vadd.f32 %v11414_v18, %v10291_v28 }
 0xe03   : > { %v4002_v23 = vadd.f32 %v10291_v28, %v4001_v56  ;;  %v11415_v0 = vpop.f32.mrb[86].mxu0  ;;  %4072 = vadd.xlane.f32.xlu0 %v15868_v33 }
 0xe04   : > { %v4004_v20 = vpop.f32.mrb[87].mxu0  ;;  %v4013_v40 = vadd.f32 %v11415_v0, %v10291_v28  ;;  %v15879_v43 = vadd.f32 %v4010_v53, %v18867_v6 }
 0xe05   : > { %v15872_v51 = vadd.f32 %v4002_v23, %v18865_v12  ;;  %v4005_v9 = vadd.f32 %v10291_v28, %v4004_v20 }
 0xe06   : > { %v15883_v31 = vadd.f32 %v4013_v40, %v18868_v48 }
 0xe07   : > { %v15875_v16 = vadd.f32 %v4005_v9, %v18866_v30  ;;  %4074 = vadd.xlane.f32.xlu0 %v15872_v51 }
 0xe09   : > { %4076 = vadd.xlane.f32.xlu1 %v15875_v16 }
 0xe0b   : > { %4078 = vadd.xlane.f32.xlu0 %v15879_v43 }
 0xe0d   : > { %4080 = vadd.xlane.f32.xlu1 %v15883_v31 }
 0xe31   : > { %v11418_v47 = vpop.f32.mrb[88].mxu0 }
 0xe32   : > { %v4017_v27 = vpop.f32.mrb[89].mxu0  ;;  %v4026_v29 = vadd.f32 %v11418_v47, %v10291_v28 }
 0xe33   : > { %v4018_v61 = vadd.f32 %v10291_v28, %v4017_v27  ;;  %v11419_v36 = vpop.f32.mrb[90].mxu0 }
 0xe34   : > { %v4020_v54 = vpop.f32.mrb[91].mxu0  ;;  %v4029_v21 = vadd.f32 %v11419_v36, %v10291_v28  ;;  %v15895_v49 = vadd.f32 %v4026_v29, %v18871_v25 }
 0xe35   : > { %v15888_v2 = vadd.f32 %v4018_v61, %v18869_v35  ;;  %v4021_v45 = vadd.f32 %v10291_v28, %v4020_v54 }
 0xe36   : > { %v15899_v39 = vadd.f32 %v4029_v21, %v18872_v55 }
 0xe37   : > { %v15891_v7 = vadd.f32 %v4021_v45, %v18870_v32  ;;  %4082 = vadd.xlane.f32.xlu0 %v15888_v2 }
 0xe39   : > { %4084 = vadd.xlane.f32.xlu1 %v15891_v7 }
 0xe3b   : > { %4086 = vadd.xlane.f32.xlu0 %v15895_v49 }
 0xe3d   : > { %v11422_v22 = vpop.f32.mrb[92].mxu0  ;;  %4088 = vadd.xlane.f32.xlu1 %v15899_v39 }
 0xe3e   : > { %v4033_v42 = vpop.f32.mrb[93].mxu0  ;;  %v4042_v60 = vadd.f32 %v11422_v22, %v10291_v28 }
 0xe3f   : > { %v4034_v1 = vadd.f32 %v10291_v28, %v4033_v42  ;;  %v11423_v4 = vpop.f32.mrb[94].mxu0 }
 0xe40   : > { %v4036_v59 = vpop.f32.mrb[95].mxu0  ;;  %v4045_v41 = vadd.f32 %v11423_v4, %v10291_v28  ;;  %v15911_v26 = vadd.f32 %v4042_v60, %v18875_v46  ;;  %v12276_v60 = vld [vmem:[#allocation11 + $0x4c] ss:$16 sps:$4 sm:$0xff]  }
 0xe41   : > { %v15904_v15 = vadd.f32 %v4034_v1, %v18873_v5  ;;  %v4037_v24 = vadd.f32 %v10291_v28, %v4036_v59  ;;  %v12262_v28 = vld [vmem:[#allocation11 + $0x8] ss:$16 sps:$4 sm:$0xff]   ;;  %v12273_v59 = vld [vmem:[#allocation11 + $0x44] ss:$16 sps:$4 sm:$0xff]   ;;  %v12271_v5 = vld [vmem:[#allocation11 + $0x40] ss:$16 sps:$4 sm:$0xff]  }
 0xe42   : > { %v15915_v17 = vadd.f32 %v4045_v41, %v18876_v13  ;;  %4622 = vmatpush1.bf16.msra.mxu0 %v12262_v28  ;;  %4512 = vmatprep.subr.bf16.mxu1 %v12273_v59  ;;  %v12282_v46 = vld [vmem:[#allocation11 + $0x6c] ss:$16 sps:$4 sm:$0xff]   ;;  %v12277_v13 = vld [vmem:[#allocation11 + $0x60] ss:$16 sps:$4 sm:$0xff]  }
 0xe43   : > { %v15907_v62 = vadd.f32 %v4037_v24, %v18874_v58  ;;  %4090 = vadd.xlane.f32.xlu0 %v15904_v15  ;;  %4623 = vmatprep.subr.bf16.mxu0 %v12270_v52  ;;  %v12274_v24 = vld [vmem:[#allocation11 + $0x48] ss:$16 sps:$4 sm:$0xff]   ;;  %v12279_v58 = vld [vmem:[#allocation11 + $0x64] ss:$16 sps:$4 sm:$0xff]   ;;  %v12288_v28 = vld [vmem:[#allocation11 + $0x8c] ss:$16 sps:$4 sm:$0xff]  }
 0xe44   : > { %4513 = vmatpush1.bf16.msra.mxu1 %v12271_v5  ;;  %v12291_v52 = vld [vmem:[#allocation11 + $0xa4] ss:$16 sps:$4 sm:$0xff]  }
 0xe45   : > { %4092 = vadd.xlane.f32.xlu1 %v15907_v62  ;;  %4514 = vmatprep.subr.bf16.mxu1 %v12279_v58 }
 0xe46   : > { %4624 = vmatpush1.bf16.msra.mxu0 %v12268_v37  ;;  %v12289_v37 = vld [vmem:[#allocation11 + $0xa0] ss:$16 sps:$4 sm:$0xff]  }
 0xe47   : > { %4094 = vadd.xlane.f32.xlu0 %v15911_v26  ;;  %4625 = vmatprep.subr.bf16.mxu0 %v12276_v60 }
 0xe48   : > { %4515 = vmatpush1.bf16.msra.mxu1 %v12277_v13 }
 0xe49   : > { %4096 = vadd.xlane.f32.xlu1 %v15915_v17  ;;  %4516 = vmatprep.subr.bf16.mxu1 %v12285_v14 }
 0xe4a   : > { %4626 = vmatpush1.bf16.msra.mxu0 %v12274_v24 }
 0xe4b   : > { %4627 = vmatprep.subr.bf16.mxu0 %v12282_v46 }
 0xe4c   : > { %4517 = vmatpush1.bf16.msra.mxu1 %v12283_v10 }
 0xe4d   : > { %4518 = vmatprep.subr.bf16.mxu1 %v12291_v52 }
 0xe4e   : > { %4628 = vmatpush1.bf16.msra.mxu0 %v12280_v38 }
 0xe4f   : > { %4629 = vmatprep.subr.bf16.mxu0 %v12288_v28 }
 0xe50   : > { %4519 = vmatpush1.bf16.msra.mxu1 %v12289_v37 }
 0xe52   : > { %4630 = vmatpush1.bf16.msra.mxu0 %v12286_v34 }
 0xe53   : > { %4631 = vmatprep.subr.bf16.mxu0 %v12294_v63 }
 0xe88   : > { %v4067_v57 = vpop.xlane.xlu0 %4066 }
 0xe89   : > { %v4098_v3 = vmul.f32 0.0078125, %v4067_v57  ;;  %v12292_v57 = vld [vmem:[#allocation11 + $0xa8] ss:$16 sps:$4 sm:$0xff]  }
 0xe8a   : > { %v4069_v8 = vpop.xlane.xlu1 %4068  ;;  %4632 = vmatpush1.bf16.msra.mxu0 %v12292_v57 }
 0xe8b   : > { %v15920_v18 = vsub.f32 %v15856_v11, %v4098_v3  ;;  %v4099_v56 = vmul.f32 0.0078125, %v4069_v8  ;;  %v12297_v3 = vld [vmem:[#allocation11 + $0xc4] ss:$16 sps:$4 sm:$0xff]   ;;  %v12300_v8 = vld [vmem:[#allocation11 + $0xcc] ss:$16 sps:$4 sm:$0xff]  }
 0xe8c   : > { %v4071_v23 = vpop.xlane.xlu0 %4070  ;;  %4520 = vmatprep.subr.bf16.mxu1 %v12297_v3  ;;  %4633 = vmatprep.subr.bf16.mxu0 %v12300_v8  ;;  %v12307_v8 = vld [vmem:[#allocation13 + $0x40] sm:$0xff]  }
 0xe8d   : > { %v15923_v0 = vsub.f32 %v15859_v44, %v4099_v56  ;;  %v4100_v20 = vmul.f32 0.0078125, %v4071_v23  ;;  %v4130_v53 = vmul.f32 %v15920_v18, %v15920_v18  ;;  %v12295_v56 = vld [vmem:[#allocation11 + $0xc0] ss:$16 sps:$4 sm:$0xff]   ;;  %v12298_v23 = vld [vmem:[#allocation11 + $0xc8] ss:$16 sps:$4 sm:$0xff]  }
 0xe8e   : > { %4521 = vmatpush1.bf16.msra.mxu1 %v12295_v56  ;;  %4634 = vmatpush1.bf16.msra.mxu0 %v12298_v23  ;;  %v12308_v56 = vld [vmem:[#allocation13 + $0xc0] sm:$0xff]  }
 0xe8f   : > { %v15928_v12 = vsub.f32 %v15863_v19, %v4100_v20  ;;  %4146 = vadd.xlane.f32.xlu0 %v4130_v53  ;;  %v4131_v9 = vmul.f32 %v15923_v0, %v15923_v0  ;;  %v12303_v20 = vld [vmem:[#allocation11 + $0xe4] ss:$16 sps:$4 sm:$0xff]   ;;  %v12306_v53 = vld [vmem:[#allocation11 + $0xec] ss:$16 sps:$4 sm:$0xff]  }
 0xe90   : > { %v4073_v40 = vpop.xlane.xlu0 %4072  ;;  %4522 = vmatprep.subr.bf16.mxu1 %v12303_v20  ;;  %4635 = vmatprep.subr.bf16.mxu0 %v12306_v53 }
 0xe91   : > { %v4101_v30 = vmul.f32 0.0078125, %v4073_v40  ;;  %4148 = vadd.xlane.f32.xlu1 %v4131_v9  ;;  %v4132_v6 = vmul.f32 %v15928_v12, %v15928_v12  ;;  %v12301_v9 = vld [vmem:[#allocation11 + $0xe0] ss:$16 sps:$4 sm:$0xff]   ;;  %v12304_v40 = vld [vmem:[#allocation11 + $0xe8] ss:$16 sps:$4 sm:$0xff]  }
 0xe92   : > { %4523 = vmatpush1.bf16.msra.mxu1 %v12301_v9  ;;  %4636 = vmatpush1.bf16.msra.mxu0 %v12304_v40 }
 0xe93   : > { %v15935_v48 = vsub.f32 %v15868_v33, %v4101_v30  ;;  %4150 = vadd.xlane.f32.xlu0 %v4132_v6  ;;  %10688 = vmatprep.subr.bf16.mxu1 %v12307_v8  ;;  %v16010_v8 = vld [vmem:[%s18878_s0] ss:$0 sm:$0xff]  ;;  %s18900_s0 = sld [smem:[#allocation118_spill]] }
 0xe94   : > { %v4075_v47 = vpop.xlane.xlu0 %4074  ;;  %10752 = vmatprep.subr.bf16.mxu0 %v12308_v56 }
 0xe95   : > { %v4102_v27 = vmul.f32 0.0078125, %v4075_v47  ;;  %v4133_v61 = vmul.f32 %v15935_v48, %v15935_v48 }
 0xe96   : > { %v4077_v36 = vpop.xlane.xlu1 %4076 }
 0xe97   : > { %v15940_v54 = vsub.f32 %v15872_v51, %v4102_v27  ;;  %v4103_v29 = vmul.f32 0.0078125, %v4077_v36  ;;  %4152 = vadd.xlane.f32.xlu1 %v4133_v61 }
 0xe98   : > { %v4079_v35 = vpop.xlane.xlu0 %4078 }
 0xe99   : > { %v15943_v45 = vsub.f32 %v15875_v16, %v4103_v29  ;;  %v4104_v21 = vmul.f32 0.0078125, %v4079_v35  ;;  %v4134_v32 = vmul.f32 %v15940_v54, %v15940_v54 }
 0xe9a   : > { %v4081_v25 = vpop.xlane.xlu1 %4080 }
 0xe9b   : > { %v15948_v55 = vsub.f32 %v15879_v43, %v4104_v21  ;;  %v4105_v22 = vmul.f32 0.0078125, %v4081_v25  ;;  %4154 = vadd.xlane.f32.xlu0 %v4134_v32  ;;  %v4135_v42 = vmul.f32 %v15943_v45, %v15943_v45 }
 0xe9d   : > { %v15953_v1 = vsub.f32 %v15883_v31, %v4105_v22  ;;  %4156 = vadd.xlane.f32.xlu1 %v4135_v42  ;;  %v4136_v4 = vmul.f32 %v15948_v55, %v15948_v55 }
 0xe9f   : > { %4158 = vadd.xlane.f32.xlu0 %v4136_v4  ;;  %v4137_v41 = vmul.f32 %v15953_v1, %v15953_v1 }
 0xea1   : > { %4160 = vadd.xlane.f32.xlu1 %v4137_v41 }
 0xec4   : > { %v4083_v30 = vpop.xlane.xlu0 %4082 }
 0xec5   : > { %v4106_v6 = vmul.f32 0.0078125, %v4083_v30 }
 0xec6   : > { %v4085_v47 = vpop.xlane.xlu1 %4084 }
 0xec7   : > { %v15960_v27 = vsub.f32 %v15888_v2, %v4106_v6  ;;  %v4107_v61 = vmul.f32 0.0078125, %v4085_v47 }
 0xec8   : > { %v4087_v36 = vpop.xlane.xlu0 %4086 }
 0xec9   : > { %v15963_v29 = vsub.f32 %v15891_v7, %v4107_v61  ;;  %v4108_v35 = vmul.f32 0.0078125, %v4087_v36  ;;  %v4138_v21 = vmul.f32 %v15960_v27, %v15960_v27 }
 0xeca   : > { %v4089_v32 = vpop.xlane.xlu1 %4088 }
 0xecb   : > { %v15968_v25 = vsub.f32 %v15895_v49, %v4108_v35  ;;  %v4109_v22 = vmul.f32 0.0078125, %v4089_v32  ;;  %4162 = vadd.xlane.f32.xlu0 %v4138_v21  ;;  %v4139_v42 = vmul.f32 %v15963_v29, %v15963_v29 }
 0xecd   : > { %v15973_v4 = vsub.f32 %v15899_v39, %v4109_v22  ;;  %4164 = vadd.xlane.f32.xlu1 %v4139_v42  ;;  %v4140_v59 = vmul.f32 %v15968_v25, %v15968_v25 }
 0xecf   : > { %4166 = vadd.xlane.f32.xlu0 %v4140_v59  ;;  %v4141_v60 = vmul.f32 %v15973_v4, %v15973_v4 }
 0xed0   : > { %v4091_v5 = vpop.xlane.xlu0 %4090 }
 0xed1   : > { %v4110_v24 = vmul.f32 0.0078125, %v4091_v5  ;;  %4168 = vadd.xlane.f32.xlu1 %v4141_v60  ;;  %v16002_v60 = vld [vmem:[%s18877_s23] ss:$0 sm:$0xff]  ;;  %s10232_s23 = sshll.u32 %s14125_s16, 8 }
 0xed2   : > { %v4093_v41 = vpop.xlane.xlu1 %4092 }
 0xed3   : > { %v15980_v58 = vsub.f32 %v15904_v15, %v4110_v24  ;;  %v4111_v46 = vmul.f32 0.0078125, %v4093_v41 }
 0xed4   : > { %v4095_v13 = vpop.xlane.xlu0 %4094 }
 0xed5   : > { %v15983_v38 = vsub.f32 %v15907_v62, %v4111_v46  ;;  %v4112_v14 = vmul.f32 0.0078125, %v4095_v13  ;;  %v4142_v28 = vmul.f32 %v15980_v58, %v15980_v58 }
 0xed6   : > { %v4097_v10 = vpop.xlane.xlu1 %4096 }
 0xed7   : > { %v15988_v34 = vsub.f32 %v15911_v26, %v4112_v14  ;;  %v4113_v52 = vmul.f32 0.0078125, %v4097_v10  ;;  %4170 = vadd.xlane.f32.xlu0 %v4142_v28  ;;  %v4143_v63 = vmul.f32 %v15983_v38, %v15983_v38 }
 0xed9   : > { %v15993_v37 = vsub.f32 %v15915_v17, %v4113_v52  ;;  %4172 = vadd.xlane.f32.xlu1 %v4143_v63  ;;  %v4144_v57 = vmul.f32 %v15988_v34, %v15988_v34 }
 0xedb   : > { %4174 = vadd.xlane.f32.xlu0 %v4144_v57  ;;  %v4145_v3 = vmul.f32 %v15993_v37, %v15993_v37 }
 0xedd   : > { %4176 = vadd.xlane.f32.xlu1 %v4145_v3 }
 0xf1c   : > { %v4147_v23 = vpop.xlane.xlu0 %4146 }
 0xf1d   : > { %v4178_v20 = vmul.f32 0.0078125, %v4147_v23 }
 0xf1e   : > { %v4149_v53 = vpop.xlane.xlu1 %4148 }
 0xf1f   : > { %v4194_v9 = vadd.f32 1e-05, %v4178_v20  ;;  %v4179_v40 = vmul.f32 0.0078125, %v4149_v53 }
 0xf20   : > { %v4151_v30 = vpop.xlane.xlu0 %4150 }
 0xf21   : > { %12771 = vrsqrt.f32 %v4194_v9  ;;  %v4195_v6 = vadd.f32 1e-05, %v4179_v40  ;;  %v4180_v47 = vmul.f32 0.0078125, %v4151_v30 }
 0xf23   : > { %12773 = vrsqrt.f32 %v4195_v6  ;;  %v4196_v61 = vadd.f32 1e-05, %v4180_v47  ;;  %v12309_v6 = vld [vmem:[#allocation13] sm:$0xff]  }
 0xf24   : > { %v4153_v36 = vpop.xlane.xlu1 %4152  ;;  %v12310_v47 = vld [vmem:[#allocation13 + $0x80] sm:$0xff]  }
 0xf25   : > { %12775 = vrsqrt.f32 %v4196_v61  ;;  %v4181_v35 = vmul.f32 0.0078125, %v4153_v36  ;;  %v12311_v61 = vld [vmem:[#allocation13 + $0x48] sm:$0xff]  }
 0xf26   : > { %v12312_v36 = vld [vmem:[#allocation13 + $0xc8] sm:$0xff]  }
 0xf27   : > { %v4197_v21 = vadd.f32 1e-05, %v4181_v35 }
 0xf28   : > { %v4155_v32 = vpop.xlane.xlu0 %4154 }
 0xf29   : > { %12777 = vrsqrt.f32 %v4197_v21  ;;  %v4182_v22 = vmul.f32 0.0078125, %v4155_v32 }
 0xf2a   : > { %v4157_v42 = vpop.xlane.xlu1 %4156 }
 0xf2b   : > { %v12772_v59 = vpop.eup %12771  ;;  %v4198_v5 = vadd.f32 1e-05, %v4182_v22  ;;  %v4183_v24 = vmul.f32 0.0078125, %v4157_v42  ;;  %v12314_v22 = vld [vmem:[#allocation13 + $0x88] sm:$0xff]  }
 0xf2c   : > { %v4226_v41 = vmul.f32 %v12772_v59, %v15920_v18  ;;  %v4159_v46 = vpop.xlane.xlu0 %4158  ;;  %v12315_v59 = vld [vmem:[#allocation13 + $0x50] sm:$0xff]  }
 0xf2d   : > { %v12774_v13 = vpop.eup %12773  ;;  %12779 = vrsqrt.f32 %v4198_v5  ;;  %v4199_v14 = vadd.f32 1e-05, %v4183_v24  ;;  %v4184_v28 = vmul.f32 0.0078125, %v4159_v46  ;;  %v12316_v5 = vld [vmem:[#allocation13 + $0xd0] sm:$0xff]  }
 0xf2e   : > { %v4248_v10 = vmul.f32 %v16002_v60, %v4226_v41  ;;  %v4227_v52 = vmul.f32 %v12774_v13, %v15923_v0  ;;  %v4161_v63 = vpop.xlane.xlu1 %4160 }
 0xf2f   : > { %v12776_v57 = vpop.eup %12775  ;;  %12781 = vrsqrt.f32 %v4199_v14  ;;  %v4185_v3 = vmul.f32 0.0078125, %v4161_v63  ;;  %v4200_v56 = vadd.f32 1e-05, %v4184_v28  ;;  %v12317_v28 = vld [vmem:[#allocation13 + $0x10] sm:$0xff]   ;;  %v12319_v63 = vld [vmem:[#allocation13 + $0x58] sm:$0xff]  }
 0xf30   : > { %v4249_v18 = vmul.f32 %v16002_v60, %v4227_v52  ;;  %v4270_v20 = vadd.f32 %v16010_v8, %v4248_v10  ;;  %v4228_v9 = vmul.f32 %v12776_v57, %v15928_v12  ;;  %v12318_v10 = vld [vmem:[#allocation13 + $0x90] sm:$0xff]   ;;  %v12320_v57 = vld [vmem:[#allocation13 + $0xd8] sm:$0xff]  }
 0xf31   : > { %v4201_v23 = vadd.f32 1e-05, %v4185_v3 }
 0xf32   : > { %v4271_v53 = vadd.f32 %v16010_v8, %v4249_v18  ;;  %v4250_v35 = vmul.f32 %v16002_v60, %v4228_v9 }
 0xf33   : > { %v12778_v0 = vpop.eup %12777  ;;  %12783 = vrsqrt.f32 %v4201_v23  ;;  %v12322_v23 = vld [vmem:[#allocation13 + $0x98] sm:$0xff]  }
 0xf34   : > { %v4286_v40 = vpack.c.bf16 %v4271_v53, %v4270_v20  ;;  %v4229_v30 = vmul.f32 %v12778_v0, %v15935_v48  ;;  %12785 = vrsqrt.f32 %v4200_v56  ;;  %v12313_v48 = vld [vmem:[#allocation13 + $0x8] sm:$0xff]   ;;  %v4272_v24 = vadd.f32 %v16010_v8, %v4250_v35  ;;  %v12321_v56 = vld [vmem:[#allocation13 + $0x18] sm:$0xff]   ;;  %v12323_v20 = vld [vmem:[#allocation13 + $0x60] sm:$0xff]  }
 0xf35   : > { %v12324_v53 = vld [vmem:[#allocation13 + $0xe0] sm:$0xff]  }
 0xf36   : > { %4541 = vmatmul.mubr.bf16.vlgmr.msra.gmra.mrb[96].mxu1 %v4286_v40  ;;  %4654 = vmatmul.mubr.bf16.vlgmr.msra.gmra.mrb[96].mxu0 %v4286_v40  ;;  %v4251_v21 = vmul.f32 %v16002_v60, %v4229_v30 }
 0xf37   : > { %v12780_v32 = vpop.eup %12779  ;;  %4550 = vmatprep.mubr.bf16.mxu1 %v18859_v50  ;;  %4663 = vmatprep.mubr.bf16.mxu0 %v18859_v50 }
 0xf38   : > { %v4273_v12 = vadd.f32 %v16010_v8, %v4251_v21  ;;  %10689 = vmatpush3.bf16.msra.mxu1 %v12309_v6  ;;  %10753 = vmatpush3.bf16.msra.mxu0 %v12310_v47  ;;  %v4230_v41 = vmul.f32 %v12780_v32, %v15940_v54  ;;  %v12325_v6 = vld [vmem:[#allocation13 + $0x20] sm:$0xff]  }
 0xf39   : > { %v12782_v42 = vpop.eup %12781  ;;  %10690 = vmatprep.subr.bf16.mxu1 %v12311_v61  ;;  %10754 = vmatprep.subr.bf16.mxu0 %v12312_v36  ;;  %v12326_v47 = vld [vmem:[#allocation13 + $0xa0] sm:$0xff]   ;;  %v12328_v61 = vld [vmem:[#allocation13 + $0xe8] sm:$0xff]  }
 0xf3a   : > { %v4231_v46 = vmul.f32 %v12782_v42, %v15943_v45  ;;  %v4287_v13 = vpack.c.bf16 %v4273_v12, %v4272_v24  ;;  %v4252_v3 = vmul.f32 %v16002_v60, %v4230_v41 }
 0xf3c   : > { %v4253_v14 = vmul.f32 %v16002_v60, %v4231_v46  ;;  %10691 = vmatpush3.bf16.msra.mxu1 %v12313_v48  ;;  %10755 = vmatpush3.bf16.msra.mxu0 %v12314_v22  ;;  %v4274_v9 = vadd.f32 %v16010_v8, %v4252_v3 }
 0xf3d   : > { %v12784_v52 = vpop.eup %12783  ;;  %10692 = vmatprep.subr.bf16.mxu1 %v12315_v59  ;;  %10756 = vmatprep.subr.bf16.mxu0 %v12316_v5 }
 0xf3e   : > { %4551 = vmatmul.mubr.bf16.gmra.mrb[100].mxu1 %v4287_v13  ;;  %4664 = vmatmul.mubr.bf16.gmra.mrb[100].mxu0 %v4287_v13  ;;  %v12786_v18 = vpop.eup %12785  ;;  %v4275_v54 = vadd.f32 %v16010_v8, %v4253_v14  ;;  %v4233_v45 = vmul.f32 %v12784_v52, %v15953_v1  ;;  %v12327_v1 = vld [vmem:[#allocation13 + $0x68] sm:$0xff]  }
 0xf3f   : > { %4560 = vmatprep.mubr.bf16.mxu1 %v18859_v50  ;;  %4673 = vmatprep.mubr.bf16.mxu0 %v18859_v50  ;;  %v4232_v0 = vmul.f32 %v12786_v18, %v15948_v55 }
 0xf40   : > { %10693 = vmatpush3.bf16.msra.mxu1 %v12317_v28  ;;  %10757 = vmatpush3.bf16.msra.mxu0 %v12318_v10  ;;  %v4288_v40 = vpack.c.bf16 %v4275_v54, %v4274_v9  ;;  %v4255_v30 = vmul.f32 %v16002_v60, %v4233_v45 }
 0xf41   : > { %10694 = vmatprep.subr.bf16.mxu1 %v12319_v63  ;;  %10758 = vmatprep.subr.bf16.mxu0 %v12320_v57  ;;  %v4254_v36 = vmul.f32 %v16002_v60, %v4232_v0 }
 0xf42   : > { %v4277_v55 = vadd.f32 %v16010_v8, %v4255_v30 }
 0xf43   : > { %v4276_v35 = vadd.f32 %v16010_v8, %v4254_v36 }
 0xf44   : > { %10695 = vmatpush3.bf16.msra.mxu1 %v12321_v56  ;;  %10759 = vmatpush3.bf16.msra.mxu0 %v12322_v23 }
 0xf45   : > { %10696 = vmatprep.subr.bf16.mxu1 %v12323_v20  ;;  %10760 = vmatprep.subr.bf16.mxu0 %v12324_v53  ;;  %v4289_v21 = vpack.c.bf16 %v4277_v55, %v4276_v35 }
 0xf46   : > { %4561 = vmatmul.mubr.bf16.gmra.mrb[104].mxu1 %v4288_v40  ;;  %4674 = vmatmul.mubr.bf16.gmra.mrb[104].mxu0 %v4288_v40 }
 0xf47   : > { %4570 = vmatprep.mubr.bf16.mxu1 %v18859_v50  ;;  %4683 = vmatprep.mubr.bf16.mxu0 %v18859_v50 }
 0xf48   : > { %10697 = vmatpush3.bf16.msra.mxu1 %v12325_v6  ;;  %10761 = vmatpush3.bf16.msra.mxu0 %v12326_v47 }
 0xf49   : > { %10698 = vmatprep.subr.bf16.mxu1 %v12327_v1  ;;  %10762 = vmatprep.subr.bf16.mxu0 %v12328_v61 }
 0xf4e   : > { %4571 = vmatmul.mubr.bf16.gmra.mrb[108].mxu1 %v4289_v21  ;;  %4684 = vmatmul.mubr.bf16.gmra.mrb[108].mxu0 %v4289_v21 }
 0xf4f   : > { %4580 = vmatprep.mubr.bf16.mxu1 %v18859_v50  ;;  %4693 = vmatprep.mubr.bf16.mxu0 %v18859_v50 }
 0xf58   : > { %v4163_v32 = vpop.xlane.xlu0 %4162 }
 0xf59   : > { %v4186_v12 = vmul.f32 0.0078125, %v4163_v32 }
 0xf5a   : > { %v4165_v48 = vpop.xlane.xlu1 %4164 }
 0xf5b   : > { %v4202_v22 = vadd.f32 1e-05, %v4186_v12  ;;  %v4187_v42 = vmul.f32 0.0078125, %v4165_v48 }
 0xf5c   : > { %v4167_v59 = vpop.xlane.xlu0 %4166 }
 0xf5d   : > { %12787 = vrsqrt.f32 %v4202_v22  ;;  %v4203_v5 = vadd.f32 1e-05, %v4187_v42  ;;  %v4188_v24 = vmul.f32 0.0078125, %v4167_v59 }
 0xf5e   : > { %v4169_v41 = vpop.xlane.xlu1 %4168 }
 0xf5f   : > { %12789 = vrsqrt.f32 %v4203_v5  ;;  %v4204_v46 = vadd.f32 1e-05, %v4188_v24  ;;  %v4189_v13 = vmul.f32 0.0078125, %v4169_v41 }
 0xf61   : > { %12791 = vrsqrt.f32 %v4204_v46  ;;  %v4205_v14 = vadd.f32 1e-05, %v4189_v13 }
 0xf63   : > { %12793 = vrsqrt.f32 %v4205_v14 }
 0xf64   : > { %v4171_v28 = vpop.xlane.xlu0 %4170 }
 0xf65   : > { %v4190_v10 = vmul.f32 0.0078125, %v4171_v28 }
 0xf66   : > { %v4173_v52 = vpop.xlane.xlu1 %4172 }
 0xf67   : > { %v12788_v63 = vpop.eup %12787  ;;  %v4206_v57 = vadd.f32 1e-05, %v4190_v10  ;;  %v4191_v3 = vmul.f32 0.0078125, %v4173_v52 }
 0xf68   : > { %v4175_v18 = vpop.xlane.xlu0 %4174  ;;  %v4234_v54 = vmul.f32 %v12788_v63, %v15960_v27 }
 0xf69   : > { %v12790_v45 = vpop.eup %12789  ;;  %12795 = vrsqrt.f32 %v4206_v57  ;;  %v4207_v56 = vadd.f32 1e-05, %v4191_v3  ;;  %v4192_v23 = vmul.f32 0.0078125, %v4175_v18  ;;  %v12329_v57 = vld [vmem:[#allocation13 + $0x28] sm:$0xff]   ;;  %v12332_v18 = vld [vmem:[#allocation13 + $0xf0] sm:$0xff]  }
 0xf6a   : > { %v4177_v20 = vpop.xlane.xlu1 %4176  ;;  %v4235_v53 = vmul.f32 %v12790_v45, %v15963_v29  ;;  %v4256_v9 = vmul.f32 %v16002_v60, %v4234_v54  ;;  %v12330_v3 = vld [vmem:[#allocation13 + $0xa8] sm:$0xff]   ;;  %10699 = vmatpush3.bf16.msra.mxu1 %v12329_v57  ;;  %v12333_v54 = vld [vmem:[#allocation13 + $0x30] sm:$0xff]  }
 0xf6b   : > { %v12792_v0 = vpop.eup %12791  ;;  %12797 = vrsqrt.f32 %v4207_v56  ;;  %v4193_v40 = vmul.f32 0.0078125, %v4177_v20  ;;  %v4208_v47 = vadd.f32 1e-05, %v4192_v23  ;;  %10763 = vmatpush3.bf16.msra.mxu0 %v12330_v3  ;;  %v12334_v45 = vld [vmem:[#allocation13 + $0xb0] sm:$0xff]   ;;  %v12336_v56 = vld [vmem:[#allocation13 + $0xf8] sm:$0xff]  }
 0xf6c   : > { %v4257_v30 = vmul.f32 %v16002_v60, %v4235_v53  ;;  %v4278_v61 = vadd.f32 %v16010_v8, %v4256_v9  ;;  %v4236_v36 = vmul.f32 %v12792_v0, %v15968_v25  ;;  %10764 = vmatprep.subr.bf16.mxu0 %v12332_v18  ;;  %v12337_v23 = vld [vmem:[#allocation13 + $0x38] sm:$0xff]  }
 0xf6d   : > { %v12794_v6 = vpop.eup %12793  ;;  %v4209_v1 = vadd.f32 1e-05, %v4193_v40  ;;  %v12338_v20 = vld [vmem:[#allocation13 + $0xb8] sm:$0xff]  }
 0xf6e   : > { %v4279_v27 = vadd.f32 %v16010_v8, %v4257_v30  ;;  %v4237_v55 = vmul.f32 %v12794_v6, %v15973_v4  ;;  %v4258_v21 = vmul.f32 %v16002_v60, %v4236_v36  ;;  %v4326_v0 = vld [vmem:[%s18881_s2] sm:$0xf]  ;;  %s19208_s2 = sld [smem:[#allocation122_spill]] }
 0xf6f   : > { %12799 = vrsqrt.f32 %v4209_v1  ;;  %10765 = vmatpush3.bf16.msra.mxu0 %v12334_v45 }
 0xf70   : > { %v4290_v29 = vpack.c.bf16 %v4279_v27, %v4278_v61  ;;  %v4259_v35 = vmul.f32 %v16002_v60, %v4237_v55  ;;  %12801 = vrsqrt.f32 %v4208_v47  ;;  %v4280_v25 = vadd.f32 %v16010_v8, %v4258_v21  ;;  %10766 = vmatprep.subr.bf16.mxu0 %v12336_v56 }
 0xf72   : > { %4581 = vmatmul.mubr.bf16.gmra.mrb[112].mxu1 %v4290_v29  ;;  %4694 = vmatmul.mubr.bf16.gmra.mrb[112].mxu0 %v4290_v29  ;;  %v4281_v12 = vadd.f32 %v16010_v8, %v4259_v35 }
 0xf73   : > { %v12796_v32 = vpop.eup %12795  ;;  %4590 = vmatprep.mubr.bf16.mxu1 %v18859_v50  ;;  %4703 = vmatprep.mubr.bf16.mxu0 %v18859_v50 }
 0xf74   : > { %v4238_v4 = vmul.f32 %v12796_v32, %v15980_v58  ;;  %v4291_v42 = vpack.c.bf16 %v4281_v12, %v4280_v25  ;;  %10767 = vmatpush3.bf16.msra.mxu0 %v12338_v20 }
 0xf75   : > { %v12798_v48 = vpop.eup %12797 }
 0xf76   : > { %v4239_v22 = vmul.f32 %v12798_v48, %v15983_v38  ;;  %v4260_v24 = vmul.f32 %v16002_v60, %v4238_v4 }
 0xf78   : > { %v4261_v59 = vmul.f32 %v16002_v60, %v4239_v22  ;;  %v4282_v58 = vadd.f32 %v16010_v8, %v4260_v24 }
 0xf79   : > { %v12800_v5 = vpop.eup %12799 }
 0xf7a   : > { %4591 = vmatmul.mubr.bf16.gmra.mrb[116].mxu1 %v4291_v42  ;;  %4704 = vmatmul.mubr.bf16.gmra.mrb[116].mxu0 %v4291_v42  ;;  %v12802_v41 = vpop.eup %12801  ;;  %v4283_v46 = vadd.f32 %v16010_v8, %v4261_v59  ;;  %v4241_v13 = vmul.f32 %v12800_v5, %v15993_v37 }
 0xf7b   : > { %4600 = vmatprep.mubr.bf16.mxu1 %v18859_v50  ;;  %4713 = vmatprep.mubr.bf16.mxu0 %v18859_v50  ;;  %v4240_v38 = vmul.f32 %v12802_v41, %v15988_v34  ;;  %v12331_v34 = vld [vmem:[#allocation13 + $0x70] sm:$0xff]  }
 0xf7c   : > { %v4292_v14 = vpack.c.bf16 %v4283_v46, %v4282_v58  ;;  %v4263_v28 = vmul.f32 %v16002_v60, %v4241_v13  ;;  %10700 = vmatprep.subr.bf16.mxu1 %v12331_v34 }
 0xf7d   : > { %v4262_v10 = vmul.f32 %v16002_v60, %v4240_v38  ;;  %10701 = vmatpush3.bf16.msra.mxu1 %v12333_v54  ;;  %v12335_v60 = vld [vmem:[#allocation13 + $0x78] sm:$0xff]  }
 0xf7e   : > { %v4285_v52 = vadd.f32 %v16010_v8, %v4263_v28  ;;  %10702 = vmatprep.subr.bf16.mxu1 %v12335_v60 }
 0xf7f   : > { %v4284_v63 = vadd.f32 %v16010_v8, %v4262_v10  ;;  %v18879_v8 = vld [vmem:[#allocation69_spill] sm:$0xff] }
 0xf80   : > { %v16072_v53 = vsub.s32 0, %v18879_v8  ;;  %v18461_v9 = vsub.s32 2, %v18879_v8  ;;  %v16079_v40 = vsub.s32 1, %v18879_v8  ;;  %v18460_v30 = vsub.s32 3, %v18879_v8 }
 0xf81   : > { %v4293_v37 = vpack.c.bf16 %v4285_v52, %v4284_v63  ;;  %10703 = vmatpush3.bf16.msra.mxu1 %v12337_v23 }
 0xf82   : > { %4601 = vmatmul.mubr.bf16.gmra.mrb[120].mxu1 %v4292_v14  ;;  %4714 = vmatmul.mubr.bf16.gmra.mrb[120].mxu0 %v4292_v14  ;;  %18880 = vst [vmem:[#allocation66_spill] sm:$0xff] %v16072_v53  ;;  %18882 = vst [vmem:[#allocation47_spill] sm:$0xff] %v16079_v40  ;;  %v16083_v6 = vrot.slane %v4326_v0, %v16072_v53  ;;  %v16087_v47 = vrot.slane %v4326_v0, %v18461_v9 }
 0xf83   : > { %4610 = vmatprep.mubr.bf16.mxu1 %v18859_v50  ;;  %4723 = vmatprep.mubr.bf16.mxu0 %v18859_v50  ;;  %v16090_v1 = vrot.slane %v4326_v0, %v16079_v40  ;;  %v16094_v61 = vrot.slane %v4326_v0, %v18460_v30 }
 0xf8a   : > { %4611 = vmatmul.mubr.bf16.gmra.mrb[124].mxu1 %v4293_v37  ;;  %4724 = vmatmul.mubr.bf16.gmra.mrb[124].mxu0 %v4293_v37 }
0x1009   : > { %v4542_v27 = vpop.f32.mrb[96].mxu1  ;;  %v4655_v36 = vpop.f32.mrb[96].mxu0 }
0x100a   : > { %v4543_v55 = vadd.f32 %v4542_v27, %v16083_v6  ;;  %v4656_v29 = vadd.f32 %v4655_v36, %v16087_v47  ;;  %v4544_v35 = vpop.f32.mrb[97].mxu1  ;;  %v4657_v21 = vpop.f32.mrb[97].mxu0 }
0x100b   : > { %v4545_v32 = vadd.f32 %v4544_v35, %v16090_v1  ;;  %v4658_v12 = vadd.f32 %v4657_v21, %v16094_v61  ;;  %v4546_v48 = vpop.f32.mrb[98].mxu1  ;;  %v4659_v25 = vpop.f32.mrb[98].mxu0 }
0x100c   : > { %v4547_v4 = vadd.f32 %v4546_v48, %v16083_v6  ;;  %v4660_v22 = vadd.f32 %v4659_v25, %v16087_v47  ;;  %v4548_v42 = vpop.f32.mrb[99].mxu1  ;;  %v4661_v59 = vpop.f32.mrb[99].mxu0  ;;  %v4734_v41 = vmax.f32 %v4543_v55, 0.0  ;;  %v4736_v46 = vmax.f32 %v4656_v29, 0.0 }
0x100d   : > { %v4549_v5 = vadd.f32 %v4548_v42, %v16090_v1  ;;  %v4662_v24 = vadd.f32 %v4661_v59, %v16094_v61  ;;  %v4735_v38 = vmax.f32 %v4545_v32, 0.0  ;;  %v4737_v14 = vmax.f32 %v4658_v12, 0.0 }
0x100e   : > { %v4738_v13 = vmax.f32 %v4547_v4, 0.0  ;;  %v4740_v58 = vmax.f32 %v4660_v22, 0.0 }
0x100f   : > { %v4739_v28 = vmax.f32 %v4549_v5, 0.0  ;;  %v4741_v10 = vmax.f32 %v4662_v24, 0.0 }
0x1010   : > { %v4798_v52 = vpack.c.bf16 %v4738_v13, %v4734_v41  ;;  %v4800_v63 = vpack.c.bf16 %v4740_v58, %v4736_v46 }
0x1011   : > { %v4799_v37 = vpack.c.bf16 %v4739_v28, %v4735_v38  ;;  %v4801_v57 = vpack.c.bf16 %v4741_v10, %v4737_v14  ;;  %v4552_v3 = vpop.f32.mrb[100].mxu1  ;;  %v4665_v34 = vpop.f32.mrb[100].mxu0 }
0x1012   : > { %v4553_v18 = vadd.f32 %v4552_v3, %v16083_v6  ;;  %v4666_v54 = vadd.f32 %v4665_v34, %v16087_v47  ;;  %v4554_v45 = vpop.f32.mrb[101].mxu1  ;;  %v4667_v60 = vpop.f32.mrb[101].mxu0 }
0x1013   : > { %v4555_v56 = vadd.f32 %v4554_v45, %v16090_v1  ;;  %v4668_v23 = vadd.f32 %v4667_v60, %v16094_v61  ;;  %v4556_v20 = vpop.f32.mrb[102].mxu1  ;;  %v4669_v0 = vpop.f32.mrb[102].mxu0  ;;  %5118 = vmatprep.mubr.bf16.mxu1 %v4799_v37  ;;  %5215 = vmatprep.mubr.bf16.mxu0 %v4801_v57 }
0x1014   : > { %v4557_v27 = vadd.f32 %v4556_v20, %v16083_v6  ;;  %v4670_v36 = vadd.f32 %v4669_v0, %v16087_v47  ;;  %v4558_v55 = vpop.f32.mrb[103].mxu1  ;;  %v4671_v29 = vpop.f32.mrb[103].mxu0  ;;  %5119 = vmatmul.mubr.bf16.vlgmr.msra.gmra.mrb[128].mxu1 %v4798_v52  ;;  %5216 = vmatmul.mubr.bf16.vlgmr.msra.gmra.mrb[128].mxu0 %v4800_v63  ;;  %v4742_v32 = vmax.f32 %v4553_v18, 0.0  ;;  %v4744_v12 = vmax.f32 %v4666_v54, 0.0 }
0x1015   : > { %v4559_v35 = vadd.f32 %v4558_v55, %v16090_v1  ;;  %v4672_v21 = vadd.f32 %v4671_v29, %v16094_v61  ;;  %v4743_v4 = vmax.f32 %v4555_v56, 0.0  ;;  %v4745_v22 = vmax.f32 %v4668_v23, 0.0 }
0x1016   : > { %v4746_v48 = vmax.f32 %v4557_v27, 0.0  ;;  %v4748_v25 = vmax.f32 %v4670_v36, 0.0 }
0x1017   : > { %v4747_v42 = vmax.f32 %v4559_v35, 0.0  ;;  %v4749_v59 = vmax.f32 %v4672_v21, 0.0 }
0x1018   : > { %v4802_v5 = vpack.c.bf16 %v4746_v48, %v4742_v32  ;;  %v4804_v24 = vpack.c.bf16 %v4748_v25, %v4744_v12 }
0x1019   : > { %v4803_v41 = vpack.c.bf16 %v4747_v42, %v4743_v4  ;;  %v4805_v46 = vpack.c.bf16 %v4749_v59, %v4745_v22  ;;  %v4562_v13 = vpop.f32.mrb[104].mxu1  ;;  %v4675_v58 = vpop.f32.mrb[104].mxu0 }
0x101a   : > { %v4563_v38 = vadd.f32 %v4562_v13, %v16083_v6  ;;  %v4676_v14 = vadd.f32 %v4675_v58, %v16087_v47  ;;  %v4564_v28 = vpop.f32.mrb[105].mxu1  ;;  %v4677_v10 = vpop.f32.mrb[105].mxu0 }
0x101b   : > { %v4565_v52 = vadd.f32 %v4564_v28, %v16090_v1  ;;  %v4678_v63 = vadd.f32 %v4677_v10, %v16094_v61  ;;  %v4566_v37 = vpop.f32.mrb[106].mxu1  ;;  %v4679_v57 = vpop.f32.mrb[106].mxu0  ;;  %5126 = vmatprep.mubr.bf16.mxu1 %v4803_v41  ;;  %5223 = vmatprep.mubr.bf16.mxu0 %v4805_v46 }
0x101c   : > { %v4567_v3 = vadd.f32 %v4566_v37, %v16083_v6  ;;  %v4680_v34 = vadd.f32 %v4679_v57, %v16087_v47  ;;  %v4568_v18 = vpop.f32.mrb[107].mxu1  ;;  %v4681_v54 = vpop.f32.mrb[107].mxu0  ;;  %5127 = vmatmul.mubr.bf16.gmra.mrb[132].mxu1 %v4802_v5  ;;  %5224 = vmatmul.mubr.bf16.gmra.mrb[132].mxu0 %v4804_v24  ;;  %v4750_v56 = vmax.f32 %v4563_v38, 0.0  ;;  %v4752_v23 = vmax.f32 %v4676_v14, 0.0 }
0x101d   : > { %v4569_v45 = vadd.f32 %v4568_v18, %v16090_v1  ;;  %v4682_v60 = vadd.f32 %v4681_v54, %v16094_v61  ;;  %v4751_v27 = vmax.f32 %v4565_v52, 0.0  ;;  %v4753_v36 = vmax.f32 %v4678_v63, 0.0 }
0x101e   : > { %v4754_v20 = vmax.f32 %v4567_v3, 0.0  ;;  %v4756_v0 = vmax.f32 %v4680_v34, 0.0 }
0x101f   : > { %v4755_v55 = vmax.f32 %v4569_v45, 0.0  ;;  %v4757_v29 = vmax.f32 %v4682_v60, 0.0 }
0x1020   : > { %v4806_v35 = vpack.c.bf16 %v4754_v20, %v4750_v56  ;;  %v4808_v21 = vpack.c.bf16 %v4756_v0, %v4752_v23 }
0x1021   : > { %v4807_v32 = vpack.c.bf16 %v4755_v55, %v4751_v27  ;;  %v4809_v12 = vpack.c.bf16 %v4757_v29, %v4753_v36  ;;  %v4572_v48 = vpop.f32.mrb[108].mxu1  ;;  %v4685_v25 = vpop.f32.mrb[108].mxu0 }
0x1022   : > { %v4573_v4 = vadd.f32 %v4572_v48, %v16083_v6  ;;  %v4686_v22 = vadd.f32 %v4685_v25, %v16087_v47  ;;  %v4574_v42 = vpop.f32.mrb[109].mxu1  ;;  %v4687_v59 = vpop.f32.mrb[109].mxu0 }
0x1023   : > { %v4575_v5 = vadd.f32 %v4574_v42, %v16090_v1  ;;  %v4688_v24 = vadd.f32 %v4687_v59, %v16094_v61  ;;  %v4576_v41 = vpop.f32.mrb[110].mxu1  ;;  %v4689_v46 = vpop.f32.mrb[110].mxu0  ;;  %5134 = vmatprep.mubr.bf16.mxu1 %v4807_v32  ;;  %5231 = vmatprep.mubr.bf16.mxu0 %v4809_v12 }
0x1024   : > { %v4577_v13 = vadd.f32 %v4576_v41, %v16083_v6  ;;  %v4690_v58 = vadd.f32 %v4689_v46, %v16087_v47  ;;  %v4578_v38 = vpop.f32.mrb[111].mxu1  ;;  %v4691_v14 = vpop.f32.mrb[111].mxu0  ;;  %5135 = vmatmul.mubr.bf16.gmra.mrb[136].mxu1 %v4806_v35  ;;  %5232 = vmatmul.mubr.bf16.gmra.mrb[136].mxu0 %v4808_v21  ;;  %v4758_v52 = vmax.f32 %v4573_v4, 0.0  ;;  %v4760_v63 = vmax.f32 %v4686_v22, 0.0 }
0x1025   : > { %v4579_v28 = vadd.f32 %v4578_v38, %v16090_v1  ;;  %v4692_v10 = vadd.f32 %v4691_v14, %v16094_v61  ;;  %v4759_v3 = vmax.f32 %v4575_v5, 0.0  ;;  %v4761_v34 = vmax.f32 %v4688_v24, 0.0 }
0x1026   : > { %v4762_v37 = vmax.f32 %v4577_v13, 0.0  ;;  %v4764_v57 = vmax.f32 %v4690_v58, 0.0 }
0x1027   : > { %v4763_v18 = vmax.f32 %v4579_v28, 0.0  ;;  %v4765_v54 = vmax.f32 %v4692_v10, 0.0 }
0x1028   : > { %v4810_v45 = vpack.c.bf16 %v4762_v37, %v4758_v52  ;;  %v4812_v60 = vpack.c.bf16 %v4764_v57, %v4760_v63 }
0x1029   : > { %v4811_v56 = vpack.c.bf16 %v4763_v18, %v4759_v3  ;;  %v4813_v23 = vpack.c.bf16 %v4765_v54, %v4761_v34 }
0x102b   : > { %5142 = vmatprep.mubr.bf16.mxu1 %v4811_v56  ;;  %5239 = vmatprep.mubr.bf16.mxu0 %v4813_v23 }
0x102c   : > { %5143 = vmatmul.mubr.bf16.gmra.mrb[140].mxu1 %v4810_v45  ;;  %5240 = vmatmul.mubr.bf16.gmra.mrb[140].mxu0 %v4812_v60 }
0x1045   : > { %v4582_v20 = vpop.f32.mrb[112].mxu1  ;;  %v4695_v0 = vpop.f32.mrb[112].mxu0 }
0x1046   : > { %v4583_v27 = vadd.f32 %v4582_v20, %v16083_v6  ;;  %v4696_v36 = vadd.f32 %v4695_v0, %v16087_v47  ;;  %v4584_v55 = vpop.f32.mrb[113].mxu1  ;;  %v4697_v29 = vpop.f32.mrb[113].mxu0 }
0x1047   : > { %v4585_v35 = vadd.f32 %v4584_v55, %v16090_v1  ;;  %v4698_v21 = vadd.f32 %v4697_v29, %v16094_v61  ;;  %v4586_v32 = vpop.f32.mrb[114].mxu1  ;;  %v4699_v12 = vpop.f32.mrb[114].mxu0 }
0x1048   : > { %v4587_v48 = vadd.f32 %v4586_v32, %v16083_v6  ;;  %v4700_v25 = vadd.f32 %v4699_v12, %v16087_v47  ;;  %v4588_v4 = vpop.f32.mrb[115].mxu1  ;;  %v4701_v22 = vpop.f32.mrb[115].mxu0  ;;  %v4766_v5 = vmax.f32 %v4583_v27, 0.0  ;;  %v4768_v24 = vmax.f32 %v4696_v36, 0.0 }
0x1049   : > { %v4589_v42 = vadd.f32 %v4588_v4, %v16090_v1  ;;  %v4702_v59 = vadd.f32 %v4701_v22, %v16094_v61  ;;  %v4767_v13 = vmax.f32 %v4585_v35, 0.0  ;;  %v4769_v58 = vmax.f32 %v4698_v21, 0.0 }
0x104a   : > { %v4770_v41 = vmax.f32 %v4587_v48, 0.0  ;;  %v4772_v46 = vmax.f32 %v4700_v25, 0.0 }
0x104b   : > { %v4771_v38 = vmax.f32 %v4589_v42, 0.0  ;;  %v4773_v14 = vmax.f32 %v4702_v59, 0.0 }
0x104c   : > { %v4814_v28 = vpack.c.bf16 %v4770_v41, %v4766_v5  ;;  %v4816_v10 = vpack.c.bf16 %v4772_v46, %v4768_v24 }
0x104d   : > { %v4815_v52 = vpack.c.bf16 %v4771_v38, %v4767_v13  ;;  %v4817_v63 = vpack.c.bf16 %v4773_v14, %v4769_v58  ;;  %v4592_v37 = vpop.f32.mrb[116].mxu1  ;;  %v4705_v57 = vpop.f32.mrb[116].mxu0 }
0x104e   : > { %v4593_v3 = vadd.f32 %v4592_v37, %v16083_v6  ;;  %v4706_v34 = vadd.f32 %v4705_v57, %v16087_v47  ;;  %v4594_v18 = vpop.f32.mrb[117].mxu1  ;;  %v4707_v54 = vpop.f32.mrb[117].mxu0 }
0x104f   : > { %v4595_v45 = vadd.f32 %v4594_v18, %v16090_v1  ;;  %v4708_v60 = vadd.f32 %v4707_v54, %v16094_v61  ;;  %v4596_v56 = vpop.f32.mrb[118].mxu1  ;;  %v4709_v23 = vpop.f32.mrb[118].mxu0  ;;  %5150 = vmatprep.mubr.bf16.mxu1 %v4815_v52  ;;  %5247 = vmatprep.mubr.bf16.mxu0 %v4817_v63 }
0x1050   : > { %v4597_v20 = vadd.f32 %v4596_v56, %v16083_v6  ;;  %v4710_v0 = vadd.f32 %v4709_v23, %v16087_v47  ;;  %v4598_v27 = vpop.f32.mrb[119].mxu1  ;;  %v4711_v36 = vpop.f32.mrb[119].mxu0  ;;  %5151 = vmatmul.mubr.bf16.gmra.mrb[144].mxu1 %v4814_v28  ;;  %5248 = vmatmul.mubr.bf16.gmra.mrb[144].mxu0 %v4816_v10  ;;  %v4774_v35 = vmax.f32 %v4593_v3, 0.0  ;;  %v4776_v21 = vmax.f32 %v4706_v34, 0.0 }
0x1051   : > { %v4599_v55 = vadd.f32 %v4598_v27, %v16090_v1  ;;  %v4712_v29 = vadd.f32 %v4711_v36, %v16094_v61  ;;  %v4775_v48 = vmax.f32 %v4595_v45, 0.0  ;;  %v4777_v25 = vmax.f32 %v4708_v60, 0.0 }
0x1052   : > { %v4778_v32 = vmax.f32 %v4597_v20, 0.0  ;;  %v4780_v12 = vmax.f32 %v4710_v0, 0.0 }
0x1053   : > { %v4779_v4 = vmax.f32 %v4599_v55, 0.0  ;;  %v4781_v22 = vmax.f32 %v4712_v29, 0.0 }
0x1054   : > { %v4818_v42 = vpack.c.bf16 %v4778_v32, %v4774_v35  ;;  %v4820_v59 = vpack.c.bf16 %v4780_v12, %v4776_v21 }
0x1055   : > { %v4819_v5 = vpack.c.bf16 %v4779_v4, %v4775_v48  ;;  %v4821_v24 = vpack.c.bf16 %v4781_v22, %v4777_v25  ;;  %v4602_v41 = vpop.f32.mrb[120].mxu1  ;;  %v4715_v46 = vpop.f32.mrb[120].mxu0 }
0x1056   : > { %v4603_v13 = vadd.f32 %v4602_v41, %v16083_v6  ;;  %v4716_v58 = vadd.f32 %v4715_v46, %v16087_v47  ;;  %v4604_v38 = vpop.f32.mrb[121].mxu1  ;;  %v4717_v14 = vpop.f32.mrb[121].mxu0 }
0x1057   : > { %v4605_v28 = vadd.f32 %v4604_v38, %v16090_v1  ;;  %v4718_v10 = vadd.f32 %v4717_v14, %v16094_v61  ;;  %v4606_v52 = vpop.f32.mrb[122].mxu1  ;;  %v4719_v63 = vpop.f32.mrb[122].mxu0  ;;  %5158 = vmatprep.mubr.bf16.mxu1 %v4819_v5  ;;  %5255 = vmatprep.mubr.bf16.mxu0 %v4821_v24 }
0x1058   : > { %v4607_v37 = vadd.f32 %v4606_v52, %v16083_v6  ;;  %v4720_v57 = vadd.f32 %v4719_v63, %v16087_v47  ;;  %v4608_v3 = vpop.f32.mrb[123].mxu1  ;;  %v4721_v34 = vpop.f32.mrb[123].mxu0  ;;  %5159 = vmatmul.mubr.bf16.gmra.mrb[148].mxu1 %v4818_v42  ;;  %5256 = vmatmul.mubr.bf16.gmra.mrb[148].mxu0 %v4820_v59  ;;  %v4782_v45 = vmax.f32 %v4603_v13, 0.0  ;;  %v4784_v60 = vmax.f32 %v4716_v58, 0.0 }
0x1059   : > { %v4609_v18 = vadd.f32 %v4608_v3, %v16090_v1  ;;  %v4722_v54 = vadd.f32 %v4721_v34, %v16094_v61  ;;  %v4783_v20 = vmax.f32 %v4605_v28, 0.0  ;;  %v4785_v0 = vmax.f32 %v4718_v10, 0.0 }
0x105a   : > { %v4786_v56 = vmax.f32 %v4607_v37, 0.0  ;;  %v4788_v23 = vmax.f32 %v4720_v57, 0.0 }
0x105b   : > { %v4787_v27 = vmax.f32 %v4609_v18, 0.0  ;;  %v4789_v36 = vmax.f32 %v4722_v54, 0.0 }
0x105c   : > { %v4822_v55 = vpack.c.bf16 %v4786_v56, %v4782_v45  ;;  %v4824_v29 = vpack.c.bf16 %v4788_v23, %v4784_v60 }
0x105d   : > { %v4823_v35 = vpack.c.bf16 %v4787_v27, %v4783_v20  ;;  %v4825_v21 = vpack.c.bf16 %v4789_v36, %v4785_v0  ;;  %v4612_v32 = vpop.f32.mrb[124].mxu1  ;;  %v4725_v12 = vpop.f32.mrb[124].mxu0 }
0x105e   : > { %v4613_v48 = vadd.f32 %v4612_v32, %v16083_v6  ;;  %v4726_v25 = vadd.f32 %v4725_v12, %v16087_v47  ;;  %v4614_v4 = vpop.f32.mrb[125].mxu1  ;;  %v4727_v22 = vpop.f32.mrb[125].mxu0 }
0x105f   : > { %v4615_v42 = vadd.f32 %v4614_v4, %v16090_v1  ;;  %v4728_v59 = vadd.f32 %v4727_v22, %v16094_v61  ;;  %v4616_v5 = vpop.f32.mrb[126].mxu1  ;;  %v4729_v24 = vpop.f32.mrb[126].mxu0  ;;  %5166 = vmatprep.mubr.bf16.mxu1 %v4823_v35  ;;  %5263 = vmatprep.mubr.bf16.mxu0 %v4825_v21  ;;  %v16164_v21 = vld [vmem:[%s18883_s3] ss:$0 sm:$0xff]  ;;  %s19209_s3 = sld [smem:[#allocation123_spill]] }
0x1060   : > { %v4617_v41 = vadd.f32 %v4616_v5, %v16083_v6  ;;  %v4730_v46 = vadd.f32 %v4729_v24, %v16087_v47  ;;  %v4618_v13 = vpop.f32.mrb[127].mxu1  ;;  %v4731_v58 = vpop.f32.mrb[127].mxu0  ;;  %5167 = vmatmul.mubr.bf16.gmra.mrb[152].mxu1 %v4822_v55  ;;  %5264 = vmatmul.mubr.bf16.gmra.mrb[152].mxu0 %v4824_v29  ;;  %v4790_v28 = vmax.f32 %v4613_v48, 0.0  ;;  %v4792_v10 = vmax.f32 %v4726_v25, 0.0 }
0x1061   : > { %v4619_v38 = vadd.f32 %v4618_v13, %v16090_v1  ;;  %v4732_v14 = vadd.f32 %v4731_v58, %v16094_v61  ;;  %v4791_v37 = vmax.f32 %v4615_v42, 0.0  ;;  %v4793_v57 = vmax.f32 %v4728_v59, 0.0 }
0x1062   : > { %v4794_v52 = vmax.f32 %v4617_v41, 0.0  ;;  %v4796_v63 = vmax.f32 %v4730_v46, 0.0 }
0x1063   : > { %v4795_v3 = vmax.f32 %v4619_v38, 0.0  ;;  %v4797_v34 = vmax.f32 %v4732_v14, 0.0 }
0x1064   : > { %v4826_v18 = vpack.c.bf16 %v4794_v52, %v4790_v28  ;;  %v4828_v6 = vpack.c.bf16 %v4796_v63, %v4792_v10 }
0x1065   : > { %v4827_v54 = vpack.c.bf16 %v4795_v3, %v4791_v37  ;;  %v4829_v47 = vpack.c.bf16 %v4797_v34, %v4793_v57 }
0x1067   : > { %5174 = vmatprep.mubr.bf16.mxu1 %v4827_v54  ;;  %5271 = vmatprep.mubr.bf16.mxu0 %v4829_v47 }
0x1068   : > { %5175 = vmatmul.mubr.bf16.gmra.mrb[156].mxu1 %v4826_v18  ;;  %5272 = vmatmul.mubr.bf16.gmra.mrb[156].mxu0 %v4828_v6 }
0x1069   : > { %5741 = vmatprep.mubr.bf16.mxu1 %v18859_v50 }
0x10e7   : > { %v10704_v1 = vpop.f32.mrb[128].mxu1  ;;  %v10768_v61 = vpop.f32.mrb[128].mxu0 }
0x10e8   : > { %v10705_v45 = vpop.f32.mrb[129].mxu1  ;;  %v10769_v60 = vpop.f32.mrb[129].mxu0 }
0x10e9   : > { %v10706_v56 = vadd.f32 %v10705_v45, %v10704_v1  ;;  %v10770_v23 = vadd.f32 %v10769_v60, %v10768_v61  ;;  %v10707_v20 = vpop.f32.mrb[130].mxu1  ;;  %v10771_v0 = vpop.f32.mrb[130].mxu0 }
0x10ea   : > { %v10708_v27 = vpop.f32.mrb[131].mxu1  ;;  %v10772_v36 = vpop.f32.mrb[131].mxu0 }
0x10eb   : > { %v5218_v55 = vadd.f32 %v10770_v23, %v10706_v56  ;;  %v10709_v29 = vadd.f32 %v10708_v27, %v10707_v20  ;;  %v10773_v35 = vadd.f32 %v10772_v36, %v10771_v0 }
0x10ed   : > { %v5280_v32 = vadd.f32 %v5218_v55, %v15856_v11  ;;  %v5221_v12 = vadd.f32 %v10773_v35, %v10709_v29 }
0x10ef   : > { %v5281_v48 = vadd.f32 %v5221_v12, %v15859_v44  ;;  %v10710_v25 = vpop.f32.mrb[132].mxu1  ;;  %v10774_v4 = vpop.f32.mrb[132].mxu0  ;;  %v16169_v22 = vadd.f32 %v16164_v21, %v5280_v32 }
0x10f0   : > { %v10711_v42 = vpop.f32.mrb[133].mxu1  ;;  %v10775_v59 = vpop.f32.mrb[133].mxu0 }
0x10f1   : > { %18884 = vst [vmem:[#allocation55_spill] sm:$0xff] %v16169_v22  ;;  %v10712_v5 = vadd.f32 %v10711_v42, %v10710_v25  ;;  %v10776_v24 = vadd.f32 %v10775_v59, %v10774_v4  ;;  %v10713_v41 = vpop.f32.mrb[134].mxu1  ;;  %v10777_v46 = vpop.f32.mrb[134].mxu0  ;;  %5321 = vadd.xlane.f32.xlu0 %v16169_v22  ;;  %v16173_v13 = vadd.f32 %v16164_v21, %v5281_v48 }
0x10f2   : > { %v10714_v11 = vpop.f32.mrb[135].mxu1  ;;  %v10778_v58 = vpop.f32.mrb[135].mxu0 }
0x10f3   : > { %18885 = vst [vmem:[#allocation64_spill] sm:$0xff] %v16173_v13  ;;  %v5226_v38 = vadd.f32 %v10776_v24, %v10712_v5  ;;  %v10715_v44 = vadd.f32 %v10714_v11, %v10713_v41  ;;  %v10779_v14 = vadd.f32 %v10778_v58, %v10777_v46  ;;  %5323 = vadd.xlane.f32.xlu1 %v16173_v13 }
0x10f5   : > { %v5282_v28 = vadd.f32 %v5226_v38, %v15863_v19  ;;  %v5229_v10 = vadd.f32 %v10779_v14, %v10715_v44 }
0x10f7   : > { %v5283_v52 = vadd.f32 %v5229_v10, %v15868_v33  ;;  %v10716_v63 = vpop.f32.mrb[136].mxu1  ;;  %v10780_v37 = vpop.f32.mrb[136].mxu0  ;;  %v16179_v57 = vadd.f32 %v16164_v21, %v5282_v28 }
0x10f8   : > { %v10717_v3 = vpop.f32.mrb[137].mxu1  ;;  %v10781_v34 = vpop.f32.mrb[137].mxu0 }
0x10f9   : > { %18886 = vst [vmem:[#allocation61_spill] sm:$0xff] %v16179_v57  ;;  %v10718_v18 = vadd.f32 %v10717_v3, %v10716_v63  ;;  %v10782_v6 = vadd.f32 %v10781_v34, %v10780_v37  ;;  %v10719_v54 = vpop.f32.mrb[138].mxu1  ;;  %v10783_v47 = vpop.f32.mrb[138].mxu0  ;;  %5325 = vadd.xlane.f32.xlu0 %v16179_v57  ;;  %v16183_v1 = vadd.f32 %v16164_v21, %v5283_v52 }
0x10fa   : > { %v10720_v19 = vpop.f32.mrb[139].mxu1  ;;  %v10784_v61 = vpop.f32.mrb[139].mxu0 }
0x10fb   : > { %18887 = vst [vmem:[#allocation68_spill] sm:$0xff] %v16183_v1  ;;  %v5234_v45 = vadd.f32 %v10782_v6, %v10718_v18  ;;  %v10721_v33 = vadd.f32 %v10720_v19, %v10719_v54  ;;  %v10785_v60 = vadd.f32 %v10784_v61, %v10783_v47  ;;  %5327 = vadd.xlane.f32.xlu1 %v16183_v1 }
0x10fd   : > { %v5284_v56 = vadd.f32 %v5234_v45, %v15872_v51  ;;  %v5237_v23 = vadd.f32 %v10785_v60, %v10721_v33 }
0x10ff   : > { %v5285_v20 = vadd.f32 %v5237_v23, %v15875_v16  ;;  %v10722_v0 = vpop.f32.mrb[140].mxu1  ;;  %v10786_v27 = vpop.f32.mrb[140].mxu0  ;;  %v16189_v36 = vadd.f32 %v16164_v21, %v5284_v56 }
0x1100   : > { %v10723_v55 = vpop.f32.mrb[141].mxu1  ;;  %v10787_v29 = vpop.f32.mrb[141].mxu0 }
0x1101   : > { %18888 = vst [vmem:[#allocation65_spill] sm:$0xff] %v16189_v36  ;;  %v10724_v35 = vadd.f32 %v10723_v55, %v10722_v0  ;;  %v10788_v32 = vadd.f32 %v10787_v29, %v10786_v27  ;;  %v10725_v12 = vpop.f32.mrb[142].mxu1  ;;  %v10789_v48 = vpop.f32.mrb[142].mxu0  ;;  %5329 = vadd.xlane.f32.xlu0 %v16189_v36  ;;  %v16193_v25 = vadd.f32 %v16164_v21, %v5285_v20 }
0x1102   : > { %v10726_v51 = vpop.f32.mrb[143].mxu1  ;;  %v10790_v4 = vpop.f32.mrb[143].mxu0 }
0x1103   : > { %18889 = vst [vmem:[#allocation51_spill] sm:$0xff] %v16193_v25  ;;  %v5242_v42 = vadd.f32 %v10788_v32, %v10724_v35  ;;  %v10727_v16 = vadd.f32 %v10726_v51, %v10725_v12  ;;  %v10791_v59 = vadd.f32 %v10790_v4, %v10789_v48  ;;  %5331 = vadd.xlane.f32.xlu1 %v16193_v25 }
0x1105   : > { %v5286_v5 = vadd.f32 %v5242_v42, %v15879_v43  ;;  %v5245_v24 = vadd.f32 %v10791_v59, %v10727_v16 }
0x1107   : > { %v5287_v41 = vadd.f32 %v5245_v24, %v15883_v31  ;;  %v16199_v46 = vadd.f32 %v16164_v21, %v5286_v5 }
0x1109   : > { %18890 = vst [vmem:[#allocation50_spill] sm:$0xff] %v16199_v46  ;;  %5333 = vadd.xlane.f32.xlu0 %v16199_v46  ;;  %v16203_v11 = vadd.f32 %v16164_v21, %v5287_v41 }
0x110b   : > { %18891 = vst [vmem:[#allocation58_spill] sm:$0xff] %v16203_v11  ;;  %5335 = vadd.xlane.f32.xlu1 %v16203_v11 }
0x1123   : > { %v10728_v58 = vpop.f32.mrb[144].mxu1  ;;  %v10792_v38 = vpop.f32.mrb[144].mxu0 }
0x1124   : > { %v10729_v44 = vpop.f32.mrb[145].mxu1  ;;  %v10793_v14 = vpop.f32.mrb[145].mxu0 }
0x1125   : > { %v10730_v28 = vadd.f32 %v10729_v44, %v10728_v58  ;;  %v10794_v10 = vadd.f32 %v10793_v14, %v10792_v38  ;;  %v10731_v43 = vpop.f32.mrb[146].mxu1  ;;  %v10795_v52 = vpop.f32.mrb[146].mxu0 }
0x1126   : > { %v10732_v63 = vpop.f32.mrb[147].mxu1  ;;  %v10796_v31 = vpop.f32.mrb[147].mxu0 }
0x1127   : > { %v5250_v37 = vadd.f32 %v10794_v10, %v10730_v28  ;;  %v10733_v3 = vadd.f32 %v10732_v63, %v10731_v43  ;;  %v10797_v34 = vadd.f32 %v10796_v31, %v10795_v52 }
0x1129   : > { %v5288_v18 = vadd.f32 %v5250_v37, %v15888_v2  ;;  %v5253_v6 = vadd.f32 %v10797_v34, %v10733_v3 }
0x112b   : > { %v5289_v54 = vadd.f32 %v5253_v6, %v15891_v7  ;;  %v10734_v47 = vpop.f32.mrb[148].mxu1  ;;  %v10798_v19 = vpop.f32.mrb[148].mxu0  ;;  %v16209_v61 = vadd.f32 %v16164_v21, %v5288_v18 }
0x112c   : > { %v10735_v45 = vpop.f32.mrb[149].mxu1  ;;  %v10799_v33 = vpop.f32.mrb[149].mxu0 }
0x112d   : > { %18892 = vst [vmem:[#allocation54_spill] sm:$0xff] %v16209_v61  ;;  %v10736_v60 = vadd.f32 %v10735_v45, %v10734_v47  ;;  %v10800_v56 = vadd.f32 %v10799_v33, %v10798_v19  ;;  %v10737_v23 = vpop.f32.mrb[150].mxu1  ;;  %v10801_v20 = vpop.f32.mrb[150].mxu0  ;;  %5337 = vadd.xlane.f32.xlu0 %v16209_v61  ;;  %v16213_v0 = vadd.f32 %v16164_v21, %v5289_v54 }
0x112e   : > { %v10738_v2 = vpop.f32.mrb[151].mxu1  ;;  %v10802_v27 = vpop.f32.mrb[151].mxu0 }
0x112f   : > { %18893 = vst [vmem:[#allocation63_spill] sm:$0xff] %v16213_v0  ;;  %v5258_v55 = vadd.f32 %v10800_v56, %v10736_v60  ;;  %v10739_v7 = vadd.f32 %v10738_v2, %v10737_v23  ;;  %v10803_v29 = vadd.f32 %v10802_v27, %v10801_v20  ;;  %5339 = vadd.xlane.f32.xlu1 %v16213_v0  ;;  %v12339_v27 = vld [vmem:[#allocation14] ss:$12 sps:$4 sm:$0xff]  }
0x1131   : > { %v5290_v35 = vadd.f32 %v5258_v55, %v15895_v49  ;;  %v5261_v32 = vadd.f32 %v10803_v29, %v10739_v7  ;;  %v12341_v55 = vld [vmem:[#allocation14 + $0x4] ss:$12 sps:$4 sm:$0xff]   ;;  %v12344_v7 = vld [vmem:[#allocation14 + $0x1c] ss:$12 sps:$4 sm:$0xff]  }
0x1132   : > { %5709 = vmatprep.subr.bf16.mxu1 %v12341_v55  ;;  %v12342_v29 = vld [vmem:[#allocation14 + $0x18] ss:$12 sps:$4 sm:$0xff]   ;;  %v12353_v55 = vld [vmem:[#allocation14 + $0x60] ss:$12 sps:$4 sm:$0xff]  }
0x1133   : > { %v5291_v12 = vadd.f32 %v5261_v32, %v15899_v39  ;;  %v10740_v48 = vpop.f32.mrb[152].mxu1  ;;  %v10804_v51 = vpop.f32.mrb[152].mxu0  ;;  %v16219_v4 = vadd.f32 %v16164_v21, %v5290_v35  ;;  %5710 = vmatpush1.bf16.msra.mxu1 %v12339_v27  ;;  %v12356_v27 = vld [vmem:[#allocation14 + $0x38] ss:$12 sps:$4 sm:$0xff]  }
0x1134   : > { %v10741_v42 = vpop.f32.mrb[153].mxu1  ;;  %v10805_v16 = vpop.f32.mrb[153].mxu0  ;;  %5711 = vmatprep.subr.bf16.mxu1 %v12344_v7 }
0x1135   : > { %18894 = vst [vmem:[#allocation53_spill] sm:$0xff] %v16219_v4  ;;  %v10742_v59 = vadd.f32 %v10741_v42, %v10740_v48  ;;  %v10806_v5 = vadd.f32 %v10805_v16, %v10804_v51  ;;  %v10743_v24 = vpop.f32.mrb[154].mxu1  ;;  %v10807_v41 = vpop.f32.mrb[154].mxu0  ;;  %5341 = vadd.xlane.f32.xlu0 %v16219_v4  ;;  %v16223_v58 = vadd.f32 %v16164_v21, %v5291_v12 }
0x1136   : > { %v10744_v49 = vpop.f32.mrb[155].mxu1  ;;  %v10808_v38 = vpop.f32.mrb[155].mxu0 }
0x1137   : > { %18895 = vst [vmem:[#allocation67_spill] sm:$0xff] %v16223_v58  ;;  %v5266_v44 = vadd.f32 %v10806_v5, %v10742_v59  ;;  %v10745_v39 = vadd.f32 %v10744_v49, %v10743_v24  ;;  %v10809_v14 = vadd.f32 %v10808_v38, %v10807_v41  ;;  %5343 = vadd.xlane.f32.xlu1 %v16223_v58 }
0x1138   : > { %5712 = vmatpush1.bf16.msra.mxu1 %v12342_v29  ;;  %v12359_v29 = vld [vmem:[#allocation14 + $0x7c] ss:$12 sps:$4 sm:$0xff]  }
0x1139   : > { %v5292_v28 = vadd.f32 %v5266_v44, %v15904_v15  ;;  %v5269_v10 = vadd.f32 %v10809_v14, %v10745_v39 }
0x113b   : > { %v5293_v43 = vadd.f32 %v5269_v10, %v15907_v62  ;;  %v10746_v52 = vpop.f32.mrb[156].mxu1  ;;  %v10810_v63 = vpop.f32.mrb[156].mxu0  ;;  %v16229_v31 = vadd.f32 %v16164_v21, %v5292_v28 }
0x113c   : > { %v10747_v37 = vpop.f32.mrb[157].mxu1  ;;  %v10811_v3 = vpop.f32.mrb[157].mxu0 }
0x113d   : > { %18896 = vst [vmem:[#allocation49_spill] sm:$0xff] %v16229_v31  ;;  %v10748_v34 = vadd.f32 %v10747_v37, %v10746_v52  ;;  %v10812_v18 = vadd.f32 %v10811_v3, %v10810_v63  ;;  %v10813_v6 = vpop.f32.mrb[158].mxu0  ;;  %5345 = vadd.xlane.f32.xlu0 %v16229_v31  ;;  %v10749_v54 = vpop.f32.mrb[158].mxu1  ;;  %v16233_v47 = vadd.f32 %v16164_v21, %v5293_v43  ;;  %v12347_v63 = vld [vmem:[#allocation14 + $0x34] ss:$12 sps:$4 sm:$0xff]  }
0x113e   : > { %v10750_v15 = vpop.f32.mrb[159].mxu1  ;;  %v10814_v19 = vpop.f32.mrb[159].mxu0  ;;  %v12348_v37 = vld [vmem:[#allocation14 + $0x8] ss:$12 sps:$4 sm:$0xff]   ;;  %v12345_v3 = vld [vmem:[#allocation14 + $0x30] ss:$12 sps:$4 sm:$0xff]   ;;  %5713 = vmatprep.subr.bf16.mxu1 %v12347_v63 }
0x113f   : > { %18897 = vst [vmem:[#allocation103_spill] sm:$0xff] %v16233_v47  ;;  %v5274_v45 = vadd.f32 %v10812_v18, %v10748_v34  ;;  %v10751_v62 = vadd.f32 %v10750_v15, %v10749_v54  ;;  %v10815_v33 = vadd.f32 %v10814_v19, %v10813_v6  ;;  %5347 = vadd.xlane.f32.xlu1 %v16233_v47  ;;  %v12351_v54 = vld [vmem:[#allocation14 + $0x4c] ss:$12 sps:$4 sm:$0xff]  }
0x1140   : > { %11424 = vmatprep.subr.bf16.mxu0 %v12348_v37  ;;  %5714 = vmatpush1.bf16.msra.mxu1 %v12345_v3  ;;  %v12352_v15 = vld [vmem:[#allocation14 + $0x20] ss:$12 sps:$4 sm:$0xff]  }
0x1141   : > { %v5294_v60 = vadd.f32 %v5274_v45, %v15911_v26  ;;  %v5277_v56 = vadd.f32 %v10815_v33, %v10751_v62  ;;  %11425 = vmatpush3.bf16.msra.mxu0 %v12348_v37  ;;  %v12349_v45 = vld [vmem:[#allocation14 + $0x48] ss:$12 sps:$4 sm:$0xff]   ;;  %5715 = vmatprep.subr.bf16.mxu1 %v12351_v54 }
0x1142   : > { %11426 = vmatprep.subr.bf16.mxu0 %v12352_v15 }
0x1143   : > { %v5295_v23 = vadd.f32 %v5277_v56, %v15915_v17  ;;  %v16239_v20 = vadd.f32 %v16164_v21, %v5294_v60 }
0x1144   : > { %5716 = vmatpush1.bf16.msra.mxu1 %v12349_v45 }
0x1145   : > { %18898 = vst [vmem:[#allocation52_spill] sm:$0xff] %v16239_v20  ;;  %5349 = vadd.xlane.f32.xlu0 %v16239_v20  ;;  %v16243_v2 = vadd.f32 %v16164_v21, %v5295_v23  ;;  %11427 = vmatpush3.bf16.msra.mxu0 %v12352_v15  ;;  %v12355_v23 = vld [vmem:[#allocation14 + $0x64] ss:$12 sps:$4 sm:$0xff]  }
0x1146   : > { %5717 = vmatprep.subr.bf16.mxu1 %v12355_v23  ;;  %11428 = vmatprep.subr.bf16.mxu0 %v12356_v27 }
0x1147   : > { %18899 = vst [vmem:[#allocation104_spill] sm:$0xff] %v16243_v2  ;;  %5351 = vadd.xlane.f32.xlu1 %v16243_v2 }
0x1148   : > { %5718 = vmatpush1.bf16.msra.mxu1 %v12353_v55 }
0x1149   : > { %11429 = vmatpush3.bf16.msra.mxu0 %v12356_v27  ;;  %5719 = vmatprep.subr.bf16.mxu1 %v12359_v29 }
0x117e   : > { %v5322_v26 = vpop.xlane.xlu0 %5321 }
0x117f   : > { %v5353_v17 = vmul.f32 0.0078125, %v5322_v26  ;;  %v12360_v26 = vld [vmem:[#allocation14 + $0x50] ss:$12 sps:$4 sm:$0xff]  }
0x1180   : > { %v5324_v35 = vpop.xlane.xlu1 %5323  ;;  %11430 = vmatprep.subr.bf16.mxu0 %v12360_v26 }
0x1181   : > { %v16247_v32 = vsub.f32 %v16169_v22, %v5353_v17  ;;  %v5354_v12 = vmul.f32 0.0078125, %v5324_v35  ;;  %v12357_v17 = vld [vmem:[#allocation14 + $0x78] ss:$12 sps:$4 sm:$0xff]   ;;  %11431 = vmatpush3.bf16.msra.mxu0 %v12360_v26  ;;  %v12363_v35 = vld [vmem:[#allocation14 + $0x94] ss:$12 sps:$4 sm:$0xff]  }
0x1182   : > { %5720 = vmatpush1.bf16.msra.mxu1 %v12357_v17 }
0x1183   : > { %v16250_v21 = vsub.f32 %v16173_v13, %v5354_v12  ;;  %v5385_v48 = vmul.f32 %v16247_v32, %v16247_v32  ;;  %v12364_v12 = vld [vmem:[#allocation14 + $0x68] ss:$12 sps:$4 sm:$0xff]   ;;  %5721 = vmatprep.subr.bf16.mxu1 %v12363_v35 }
0x1184   : > { %11432 = vmatprep.subr.bf16.mxu0 %v12364_v12 }
0x1185   : > { %5401 = vadd.xlane.f32.xlu0 %v5385_v48  ;;  %v5386_v51 = vmul.f32 %v16250_v21, %v16250_v21  ;;  %v12361_v48 = vld [vmem:[#allocation14 + $0x90] ss:$12 sps:$4 sm:$0xff]   ;;  %11433 = vmatpush3.bf16.msra.mxu0 %v12364_v12 }
0x1186   : > { %v5326_v42 = vpop.xlane.xlu0 %5325  ;;  %5722 = vmatpush1.bf16.msra.mxu1 %v12361_v48 }
0x1187   : > { %v5355_v16 = vmul.f32 0.0078125, %v5326_v42  ;;  %5403 = vadd.xlane.f32.xlu1 %v5386_v51  ;;  %v12367_v51 = vld [vmem:[#allocation14 + $0xac] ss:$12 sps:$4 sm:$0xff]  }
0x1188   : > { %v5328_v59 = vpop.xlane.xlu1 %5327  ;;  %v12368_v42 = vld [vmem:[#allocation14 + $0x80] ss:$12 sps:$4 sm:$0xff]   ;;  %5723 = vmatprep.subr.bf16.mxu1 %v12367_v51 }
0x1189   : > { %v16257_v5 = vsub.f32 %v16179_v57, %v5355_v16  ;;  %v5356_v24 = vmul.f32 0.0078125, %v5328_v59  ;;  %v12365_v16 = vld [vmem:[#allocation14 + $0xa8] ss:$12 sps:$4 sm:$0xff]   ;;  %11434 = vmatprep.subr.bf16.mxu0 %v12368_v42  ;;  %v12369_v59 = vld [vmem:[#allocation14 + $0x98] ss:$12 sps:$4 sm:$0xff]  }
0x118a   : > { %5724 = vmatpush1.bf16.msra.mxu1 %v12365_v16  ;;  %11435 = vmatpush3.bf16.msra.mxu0 %v12368_v42 }
0x118b   : > { %v16260_v41 = vsub.f32 %v16183_v1, %v5356_v24  ;;  %v5387_v49 = vmul.f32 %v16257_v5, %v16257_v5  ;;  %11436 = vmatprep.subr.bf16.mxu0 %v12369_v59  ;;  %v12370_v24 = vld [vmem:[#allocation14 + $0xb0] ss:$12 sps:$4 sm:$0xff]  }
0x118d   : > { %5405 = vadd.xlane.f32.xlu0 %v5387_v49  ;;  %v5388_v38 = vmul.f32 %v16260_v41, %v16260_v41 }
0x118e   : > { %v5330_v44 = vpop.xlane.xlu0 %5329  ;;  %11437 = vmatpush3.bf16.msra.mxu0 %v12369_v59 }
0x118f   : > { %v5357_v39 = vmul.f32 0.0078125, %v5330_v44  ;;  %5407 = vadd.xlane.f32.xlu1 %v5388_v38  ;;  %11438 = vmatprep.subr.bf16.mxu0 %v12370_v24 }
0x1190   : > { %v5332_v14 = vpop.xlane.xlu1 %5331 }
0x1191   : > { %v16267_v28 = vsub.f32 %v16189_v36, %v5357_v39  ;;  %v5358_v10 = vmul.f32 0.0078125, %v5332_v14 }
0x1192   : > { %11439 = vmatpush3.bf16.msra.mxu0 %v12370_v24 }
0x1193   : > { %v16270_v43 = vsub.f32 %v16193_v25, %v5358_v10  ;;  %v5389_v52 = vmul.f32 %v16267_v28, %v16267_v28  ;;  %v18944_v25 = vld [vmem:[#allocation82_spill] sm:$0xff] }
0x1195   : > { %5409 = vadd.xlane.f32.xlu0 %v5389_v52  ;;  %v5390_v34 = vmul.f32 %v16270_v43, %v16270_v43 }
0x1196   : > { %v5334_v18 = vpop.xlane.xlu0 %5333 }
0x1197   : > { %v5359_v6 = vmul.f32 0.0078125, %v5334_v18  ;;  %5411 = vadd.xlane.f32.xlu1 %v5390_v34 }
0x1198   : > { %v5336_v19 = vpop.xlane.xlu1 %5335 }
0x1199   : > { %v16277_v62 = vsub.f32 %v16199_v46, %v5359_v6  ;;  %v5360_v33 = vmul.f32 0.0078125, %v5336_v19 }
0x119b   : > { %v16280_v60 = vsub.f32 %v16203_v11, %v5360_v33  ;;  %v5391_v56 = vmul.f32 %v16277_v62, %v16277_v62 }
0x119d   : > { %5413 = vadd.xlane.f32.xlu0 %v5391_v56  ;;  %v5392_v7 = vmul.f32 %v16280_v60, %v16280_v60 }
0x119f   : > { %5415 = vadd.xlane.f32.xlu1 %v5392_v7 }
0x11ba   : > { %v5338_v49 = vpop.xlane.xlu0 %5337 }
0x11bb   : > { %v5361_v38 = vmul.f32 0.0078125, %v5338_v49 }
0x11bc   : > { %v5340_v44 = vpop.xlane.xlu1 %5339 }
0x11bd   : > { %v16287_v39 = vsub.f32 %v16209_v61, %v5361_v38  ;;  %v5362_v14 = vmul.f32 0.0078125, %v5340_v44 }
0x11bf   : > { %v16290_v10 = vsub.f32 %v16213_v0, %v5362_v14  ;;  %v5393_v52 = vmul.f32 %v16287_v39, %v16287_v39 }
0x11c1   : > { %5417 = vadd.xlane.f32.xlu0 %v5393_v52  ;;  %v5394_v63 = vmul.f32 %v16290_v10, %v16290_v10 }
0x11c2   : > { %v5342_v37 = vpop.xlane.xlu0 %5341 }
0x11c3   : > { %v5363_v3 = vmul.f32 0.0078125, %v5342_v37  ;;  %5419 = vadd.xlane.f32.xlu1 %v5394_v63 }
0x11c4   : > { %v5344_v34 = vpop.xlane.xlu1 %5343 }
0x11c5   : > { %v16297_v18 = vsub.f32 %v16219_v4, %v5363_v3  ;;  %v5364_v6 = vmul.f32 0.0078125, %v5344_v34  ;;  %v18938_v4 = vld [vmem:[#allocation79_spill] sm:$0xff] }
0x11c7   : > { %v16300_v54 = vsub.f32 %v16223_v58, %v5364_v6  ;;  %v5395_v15 = vmul.f32 %v16297_v18, %v16297_v18 }
0x11c9   : > { %5421 = vadd.xlane.f32.xlu0 %v5395_v15  ;;  %v5396_v19 = vmul.f32 %v16300_v54, %v16300_v54 }
0x11ca   : > { %v5346_v45 = vpop.xlane.xlu0 %5345 }
0x11cb   : > { %v5365_v33 = vmul.f32 0.0078125, %v5346_v45  ;;  %5423 = vadd.xlane.f32.xlu1 %v5396_v19  ;;  %v16329_v19 = vld [vmem:[%s18300_s13] ss:$0 sm:$0xff] }
0x11cc   : > { %v5348_v56 = vpop.xlane.xlu1 %5347 }
0x11cd   : > { %v16307_v23 = vsub.f32 %v16229_v31, %v5365_v33  ;;  %v5366_v27 = vmul.f32 0.0078125, %v5348_v56 }
0x11cf   : > { %v16310_v55 = vsub.f32 %v16233_v47, %v5366_v27  ;;  %v5397_v7 = vmul.f32 %v16307_v23, %v16307_v23 }
0x11d1   : > { %5425 = vadd.xlane.f32.xlu0 %v5397_v7  ;;  %v5398_v29 = vmul.f32 %v16310_v55, %v16310_v55 }
0x11d2   : > { %v5350_v26 = vpop.xlane.xlu0 %5349 }
0x11d3   : > { %v5367_v17 = vmul.f32 0.0078125, %v5350_v26  ;;  %5427 = vadd.xlane.f32.xlu1 %v5398_v29 }
0x11d4   : > { %v5352_v35 = vpop.xlane.xlu1 %5351 }
0x11d5   : > { %v16317_v12 = vsub.f32 %v16239_v20, %v5367_v17  ;;  %v5368_v48 = vmul.f32 0.0078125, %v5352_v35 }
0x11d7   : > { %v16320_v51 = vsub.f32 %v16243_v2, %v5368_v48  ;;  %v5399_v42 = vmul.f32 %v16317_v12, %v16317_v12  ;;  %v16337_v48 = vld [vmem:[%s18900_s0] ss:$0 sm:$0xff] }
0x11d9   : > { %5429 = vadd.xlane.f32.xlu0 %v5399_v42  ;;  %v5400_v16 = vmul.f32 %v16320_v51, %v16320_v51 }
0x11db   : > { %5431 = vadd.xlane.f32.xlu1 %v5400_v16 }
0x1212   : > { %v5402_v59 = vpop.xlane.xlu0 %5401 }
0x1213   : > { %v5433_v24 = vmul.f32 0.0078125, %v5402_v59 }
0x1214   : > { %v5404_v49 = vpop.xlane.xlu1 %5403 }
0x1215   : > { %v5449_v38 = vadd.f32 1e-05, %v5433_v24  ;;  %v5434_v44 = vmul.f32 0.0078125, %v5404_v49 }
0x1217   : > { %12803 = vrsqrt.f32 %v5449_v38  ;;  %v5450_v14 = vadd.f32 1e-05, %v5434_v44 }
0x1219   : > { %12805 = vrsqrt.f32 %v5450_v14 }
0x121a   : > { %v5406_v52 = vpop.xlane.xlu0 %5405 }
0x121b   : > { %v5435_v63 = vmul.f32 0.0078125, %v5406_v52 }
0x121c   : > { %v5408_v37 = vpop.xlane.xlu1 %5407 }
0x121d   : > { %v5451_v3 = vadd.f32 1e-05, %v5435_v63  ;;  %v5436_v34 = vmul.f32 0.0078125, %v5408_v37 }
0x121f   : > { %12807 = vrsqrt.f32 %v5451_v3  ;;  %v5452_v6 = vadd.f32 1e-05, %v5436_v34 }
0x1221   : > { %v12804_v15 = vpop.eup %12803  ;;  %12809 = vrsqrt.f32 %v5452_v6 }
0x1222   : > { %v5481_v45 = vmul.f32 %v12804_v15, %v16247_v32  ;;  %v5410_v33 = vpop.xlane.xlu0 %5409 }
0x1223   : > { %v12806_v56 = vpop.eup %12805  ;;  %v5437_v27 = vmul.f32 0.0078125, %v5410_v33 }
0x1224   : > { %v5503_v7 = vmul.f32 %v16329_v19, %v5481_v45  ;;  %v5482_v29 = vmul.f32 %v12806_v56, %v16250_v21  ;;  %v5412_v26 = vpop.xlane.xlu1 %5411 }
0x1225   : > { %v5453_v17 = vadd.f32 1e-05, %v5437_v27  ;;  %v5438_v35 = vmul.f32 0.0078125, %v5412_v26 }
0x1226   : > { %v5504_v42 = vmul.f32 %v16329_v19, %v5482_v29  ;;  %v5525_v32 = vadd.f32 %v16337_v48, %v5503_v7 }
0x1227   : > { %12811 = vrsqrt.f32 %v5453_v17  ;;  %v5454_v16 = vadd.f32 1e-05, %v5438_v35 }
0x1228   : > { %v5526_v59 = vadd.f32 %v16337_v48, %v5504_v42 }
0x1229   : > { %v12808_v24 = vpop.eup %12807  ;;  %12813 = vrsqrt.f32 %v5454_v16 }
0x122a   : > { %v5414_v49 = vpop.xlane.xlu0 %5413  ;;  %v5541_v21 = vpack.c.bf16 %v5526_v59, %v5525_v32  ;;  %v5483_v38 = vmul.f32 %v12808_v24, %v16257_v5 }
0x122b   : > { %v12810_v44 = vpop.eup %12809  ;;  %v5439_v14 = vmul.f32 0.0078125, %v5414_v49 }
0x122c   : > { %v5416_v52 = vpop.xlane.xlu1 %5415  ;;  %5742 = vmatmul.mubr.bf16.vlgmr.msra.gmra.mrb[160].mxu1 %v5541_v21  ;;  %11440 = vmatprep.mubr.bf16.mxu0 %v5541_v21  ;;  %v5484_v63 = vmul.f32 %v12810_v44, %v16260_v41  ;;  %v5505_v37 = vmul.f32 %v16329_v19, %v5483_v38 }
0x122d   : > { %v5455_v3 = vadd.f32 1e-05, %v5439_v14  ;;  %v5440_v34 = vmul.f32 0.0078125, %v5416_v52  ;;  %5751 = vmatprep.mubr.bf16.mxu1 %v18859_v50 }
0x122e   : > { %v5506_v6 = vmul.f32 %v16329_v19, %v5484_v63  ;;  %v5527_v45 = vadd.f32 %v16337_v48, %v5505_v37 }
0x122f   : > { %12815 = vrsqrt.f32 %v5455_v3  ;;  %v5456_v15 = vadd.f32 1e-05, %v5440_v34 }
0x1230   : > { %v5528_v5 = vadd.f32 %v16337_v48, %v5506_v6 }
0x1231   : > { %v12812_v33 = vpop.eup %12811  ;;  %12817 = vrsqrt.f32 %v5456_v15 }
0x1232   : > { %v5542_v56 = vpack.c.bf16 %v5528_v5, %v5527_v45  ;;  %v5485_v27 = vmul.f32 %v12812_v33, %v16267_v28 }
0x1233   : > { %v12814_v41 = vpop.eup %12813 }
0x1234   : > { %5752 = vmatmul.mubr.bf16.gmra.mrb[164].mxu1 %v5542_v56  ;;  %11441 = vmatmul.mubr.bf16.vlgmr.msra.gmra.mrb[160].mxu0 %v5542_v56  ;;  %v5486_v7 = vmul.f32 %v12814_v41, %v16270_v43  ;;  %v5507_v29 = vmul.f32 %v16329_v19, %v5485_v27 }
0x1235   : > { %5761 = vmatprep.mubr.bf16.mxu1 %v18859_v50 }
0x1236   : > { %v5508_v26 = vmul.f32 %v16329_v19, %v5486_v7  ;;  %v5529_v17 = vadd.f32 %v16337_v48, %v5507_v29 }
0x1238   : > { %v5530_v35 = vadd.f32 %v16337_v48, %v5508_v26 }
0x1239   : > { %v12816_v42 = vpop.eup %12815 }
0x123a   : > { %v5543_v16 = vpack.c.bf16 %v5530_v35, %v5529_v17  ;;  %v5487_v32 = vmul.f32 %v12816_v42, %v16277_v62 }
0x123b   : > { %v12818_v28 = vpop.eup %12817 }
0x123c   : > { %5762 = vmatmul.mubr.bf16.gmra.mrb[168].mxu1 %v5543_v16  ;;  %11444 = vmatprep.mubr.bf16.mxu0 %v5543_v16  ;;  %v5488_v59 = vmul.f32 %v12818_v28, %v16280_v60  ;;  %v5509_v43 = vmul.f32 %v16329_v19, %v5487_v32 }
0x123d   : > { %5771 = vmatprep.mubr.bf16.mxu1 %v18859_v50 }
0x123e   : > { %v5510_v24 = vmul.f32 %v16329_v19, %v5488_v59  ;;  %v5531_v49 = vadd.f32 %v16337_v48, %v5509_v43 }
0x1240   : > { %v5532_v21 = vadd.f32 %v16337_v48, %v5510_v24 }
0x1242   : > { %v5544_v38 = vpack.c.bf16 %v5532_v21, %v5531_v49 }
0x1244   : > { %5772 = vmatmul.mubr.bf16.gmra.mrb[172].mxu1 %v5544_v38  ;;  %11445 = vmatmul.mubr.bf16.gmra.mrb[164].mxu0 %v5544_v38 }
0x1245   : > { %5781 = vmatprep.mubr.bf16.mxu1 %v18859_v50 }
0x124e   : > { %v5418_v62 = vpop.xlane.xlu0 %5417 }
0x124f   : > { %v5441_v44 = vmul.f32 0.0078125, %v5418_v62 }
0x1250   : > { %v5420_v14 = vpop.xlane.xlu1 %5419 }
0x1251   : > { %v5457_v52 = vadd.f32 1e-05, %v5441_v44  ;;  %v5442_v60 = vmul.f32 0.0078125, %v5420_v14 }
0x1253   : > { %12819 = vrsqrt.f32 %v5457_v52  ;;  %v5458_v63 = vadd.f32 1e-05, %v5442_v60 }
0x1255   : > { %12821 = vrsqrt.f32 %v5458_v63 }
0x1256   : > { %v5422_v37 = vpop.xlane.xlu0 %5421 }
0x1257   : > { %v5443_v3 = vmul.f32 0.0078125, %v5422_v37 }
0x1258   : > { %v5424_v34 = vpop.xlane.xlu1 %5423 }
0x1259   : > { %v5459_v6 = vadd.f32 1e-05, %v5443_v3  ;;  %v5444_v15 = vmul.f32 0.0078125, %v5424_v34 }
0x125b   : > { %12823 = vrsqrt.f32 %v5459_v6  ;;  %v5460_v45 = vadd.f32 1e-05, %v5444_v15 }
0x125d   : > { %v12820_v5 = vpop.eup %12819  ;;  %12825 = vrsqrt.f32 %v5460_v45 }
0x125e   : > { %v5426_v33 = vpop.xlane.xlu0 %5425  ;;  %v5489_v56 = vmul.f32 %v12820_v5, %v16287_v39 }
0x125f   : > { %v12822_v27 = vpop.eup %12821  ;;  %v5445_v41 = vmul.f32 0.0078125, %v5426_v33 }
0x1260   : > { %v5428_v7 = vpop.xlane.xlu1 %5427  ;;  %v5490_v29 = vmul.f32 %v12822_v27, %v16290_v10  ;;  %v5511_v26 = vmul.f32 %v16329_v19, %v5489_v56 }
0x1261   : > { %v5461_v17 = vadd.f32 1e-05, %v5445_v41  ;;  %v5446_v35 = vmul.f32 0.0078125, %v5428_v7 }
0x1262   : > { %v5512_v42 = vmul.f32 %v16329_v19, %v5490_v29  ;;  %v5533_v32 = vadd.f32 %v16337_v48, %v5511_v26 }
0x1263   : > { %12827 = vrsqrt.f32 %v5461_v17  ;;  %v5462_v16 = vadd.f32 1e-05, %v5446_v35 }
0x1264   : > { %v5534_v28 = vadd.f32 %v16337_v48, %v5512_v42 }
0x1265   : > { %v12824_v59 = vpop.eup %12823  ;;  %12829 = vrsqrt.f32 %v5462_v16 }
0x1266   : > { %v5430_v39 = vpop.xlane.xlu0 %5429  ;;  %v5545_v43 = vpack.c.bf16 %v5534_v28, %v5533_v32  ;;  %v5491_v24 = vmul.f32 %v12824_v59, %v16297_v18 }
0x1267   : > { %v12826_v49 = vpop.eup %12825  ;;  %v5447_v10 = vmul.f32 0.0078125, %v5430_v39 }
0x1268   : > { %v5432_v21 = vpop.xlane.xlu1 %5431  ;;  %5782 = vmatmul.mubr.bf16.gmra.mrb[176].mxu1 %v5545_v43  ;;  %11448 = vmatprep.mubr.bf16.mxu0 %v5545_v43  ;;  %v5492_v38 = vmul.f32 %v12826_v49, %v16300_v54  ;;  %v5513_v62 = vmul.f32 %v16329_v19, %v5491_v24 }
0x1269   : > { %v5463_v44 = vadd.f32 1e-05, %v5447_v10  ;;  %v5448_v14 = vmul.f32 0.0078125, %v5432_v21  ;;  %5791 = vmatprep.mubr.bf16.mxu1 %v18859_v50 }
0x126a   : > { %v5514_v52 = vmul.f32 %v16329_v19, %v5492_v38  ;;  %v5535_v63 = vadd.f32 %v16337_v48, %v5513_v62 }
0x126b   : > { %12831 = vrsqrt.f32 %v5463_v44  ;;  %v5464_v60 = vadd.f32 1e-05, %v5448_v14 }
0x126c   : > { %v5536_v18 = vadd.f32 %v16337_v48, %v5514_v52 }
0x126d   : > { %v12828_v37 = vpop.eup %12827  ;;  %12833 = vrsqrt.f32 %v5464_v60 }
0x126e   : > { %v5546_v3 = vpack.c.bf16 %v5536_v18, %v5535_v63  ;;  %v5493_v34 = vmul.f32 %v12828_v37, %v16307_v23 }
0x126f   : > { %v12830_v54 = vpop.eup %12829 }
0x1270   : > { %5792 = vmatmul.mubr.bf16.gmra.mrb[180].mxu1 %v5546_v3  ;;  %11449 = vmatmul.mubr.bf16.gmra.mrb[168].mxu0 %v5546_v3  ;;  %v5494_v6 = vmul.f32 %v12830_v54, %v16310_v55  ;;  %v5515_v15 = vmul.f32 %v16329_v19, %v5493_v34 }
0x1271   : > { %5801 = vmatprep.mubr.bf16.mxu1 %v18859_v50 }
0x1272   : > { %v5516_v45 = vmul.f32 %v16329_v19, %v5494_v6  ;;  %v5537_v5 = vadd.f32 %v16337_v48, %v5515_v15 }
0x1274   : > { %v5538_v33 = vadd.f32 %v16337_v48, %v5516_v45 }
0x1275   : > { %v12832_v56 = vpop.eup %12831 }
0x1276   : > { %v5547_v27 = vpack.c.bf16 %v5538_v33, %v5537_v5  ;;  %v5495_v41 = vmul.f32 %v12832_v56, %v16317_v12 }
0x1277   : > { %v12834_v23 = vpop.eup %12833 }
0x1278   : > { %5802 = vmatmul.mubr.bf16.gmra.mrb[184].mxu1 %v5547_v27  ;;  %11452 = vmatprep.mubr.bf16.mxu0 %v5547_v27  ;;  %v5496_v7 = vmul.f32 %v12834_v23, %v16320_v51  ;;  %v5517_v55 = vmul.f32 %v16329_v19, %v5495_v41 }
0x1279   : > { %5811 = vmatprep.mubr.bf16.mxu1 %v18859_v50 }
0x127a   : > { %v5518_v29 = vmul.f32 %v16329_v19, %v5496_v7  ;;  %v5539_v26 = vadd.f32 %v16337_v48, %v5517_v55 }
0x127c   : > { %v5540_v17 = vadd.f32 %v16337_v48, %v5518_v29 }
0x127e   : > { %v5548_v35 = vpack.c.bf16 %v5540_v17, %v5539_v26 }
0x1280   : > { %5812 = vmatmul.mubr.bf16.gmra.mrb[188].mxu1 %v5548_v35  ;;  %11453 = vmatmul.mubr.bf16.gmra.mrb[172].mxu0 %v5548_v35 }
0x12ff   : > { %v5743_v42 = vpop.f32.mrb[160].mxu1 }
0x1300   : > { %v5745_v12 = vpop.f32.mrb[161].mxu1 }
0x1301   : > { %v5747_v16 = vpop.f32.mrb[162].mxu1 }
0x1302   : > { %v16391_v32 = vpack.c.bf16 %v5747_v16, %v5743_v42  ;;  %v5749_v28 = vpop.f32.mrb[163].mxu1 }
0x1303   : > { %v16393_v51 = vpack.c.bf16 %v5749_v28, %v5745_v12 }
0x1304   : > { %11472 = vmatprep.mubr.msk.bf16.mxu1 %vm18901_vm12, %v16391_v32  ;;  %vm18904_vm12 = vmmov %vm18831_vm6 }
0x1305   : > { %6401 = vrot.lane.b32.xlu0 %v16393_v51, %s13607_s15  ;;  %11776 = vmatprep.subr.msk.bf16.mxu1 %vm18902_vm11, %v16393_v51  ;;  %v5968_v19 = vsel %vm18903_vm9, %v16393_v51, 0  ;;  %vm18906_vm11 = vmmov %vm18831_vm6 }
0x1306   : > { %11457 = vmatpush3.bf16.xpose.msra.mxu1 %v5968_v19  ;;  %vm18907_vm9 = vmmov %vm18831_vm6 }
0x1307   : > { %v5753_v48 = vpop.f32.mrb[164].mxu1  ;;  %v11442_v59 = vpop.f32.mrb[160].mxu0 }
0x1308   : > { %v5755_v39 = vpop.f32.mrb[165].mxu1  ;;  %v5856_v43 = vpop.f32.mrb[161].mxu0 }
0x1309   : > { %v5757_v24 = vpop.f32.mrb[166].mxu1  ;;  %v11443_v49 = vpop.f32.mrb[162].mxu0 }
0x130a   : > { %v16403_v10 = vpack.c.bf16 %v5757_v24, %v5753_v48  ;;  %v16405_v21 = vpack.c.bf16 %v11443_v49, %v11442_v59  ;;  %v5759_v38 = vpop.f32.mrb[167].mxu1  ;;  %v5859_v62 = vpop.f32.mrb[163].mxu0 }
0x130b   : > { %v16407_v44 = vpack.c.bf16 %v5759_v38, %v5755_v39  ;;  %v16409_v14 = vpack.c.bf16 %v5859_v62, %v5856_v43 }
0x130d   : > { %11488 = vmatprep.subr.bf16.mxu0 %v16409_v14  ;;  %6403 = vrot.lane.b32.xlu1 %v16407_v44, %s13607_s15  ;;  %v5971_v52 = vsel %vm18831_vm6, %v16407_v44, 0 }
0x130e   : > { %11777 = vmatprep.subr.msk.bf16.mxu1 %vm18904_vm12, %v16407_v44  ;;  %11489 = vmatpush3.bf16.msra.mxu0 %v16409_v14  ;;  %vm18909_vm12 = vmmov %vm18831_vm6 }
0x130f   : > { %11459 = vmatpush3.bf16.xpose.msra.mxu1 %v5971_v52  ;;  %v5763_v60 = vpop.f32.mrb[168].mxu1  ;;  %11490 = vmatprep.subr.bf16.mxu0 %v16405_v21 }
0x1310   : > { %v5765_v63 = vpop.f32.mrb[169].mxu1 }
0x1311   : > { %v5767_v18 = vpop.f32.mrb[170].mxu1 }
0x1312   : > { %v16420_v37 = vpack.c.bf16 %v5767_v18, %v5763_v60  ;;  %v5769_v3 = vpop.f32.mrb[171].mxu1  ;;  %11491 = vmatpush3.bf16.msra.mxu0 %v16405_v21 }
0x1313   : > { %v16423_v34 = vpack.c.bf16 %v5769_v3, %v5765_v63 }
0x1315   : > { %18905 = vst [vmem:[#allocation48_spill] sm:$0xff] %v16423_v34  ;;  %11778 = vmatprep.subr.msk.bf16.mxu1 %vm18906_vm11, %v16423_v34  ;;  %v5974_v54 = vsel %vm18907_vm9, %v16423_v34, 0  ;;  %vm18911_vm11 = vmmov %vm18831_vm6 }
0x1316   : > { %vm18912_vm9 = vmmov %vm18831_vm6 }
0x1317   : > { %11461 = vmatpush3.bf16.xpose.msra.mxu1 %v5974_v54  ;;  %v5773_v6 = vpop.f32.mrb[172].mxu1  ;;  %v11446_v15 = vpop.f32.mrb[164].mxu0 }
0x1318   : > { %v5775_v45 = vpop.f32.mrb[173].mxu1  ;;  %v5872_v5 = vpop.f32.mrb[165].mxu0 }
0x1319   : > { %v5777_v33 = vpop.f32.mrb[174].mxu1  ;;  %v11447_v56 = vpop.f32.mrb[166].mxu0 }
0x131a   : > { %v16429_v27 = vpack.c.bf16 %v5777_v33, %v5773_v6  ;;  %v16431_v41 = vpack.c.bf16 %v11447_v56, %v11446_v15  ;;  %v5779_v23 = vpop.f32.mrb[175].mxu1  ;;  %v5875_v7 = vpop.f32.mrb[167].mxu0 }
0x131b   : > { %v16433_v55 = vpack.c.bf16 %v5779_v23, %v5775_v45  ;;  %v16435_v29 = vpack.c.bf16 %v5875_v7, %v5872_v5 }
0x131d   : > { %18908 = vst [vmem:[#allocation56_spill] sm:$0xff] %v16433_v55  ;;  %11779 = vmatprep.subr.msk.bf16.mxu1 %vm18831_vm6, %v16433_v55  ;;  %11492 = vmatprep.subr.bf16.mxu0 %v16435_v29  ;;  %v5977_v26 = vsel %vm18909_vm12, %v16433_v55, 0  ;;  %vm18916_vm12 = vmmov %vm18831_vm6 }
0x131e   : > { %11493 = vmatpush3.bf16.msra.mxu0 %v16435_v29 }
0x131f   : > { %11463 = vmatpush3.bf16.xpose.msra.mxu1 %v5977_v26  ;;  %11494 = vmatprep.subr.bf16.mxu0 %v16431_v41 }
0x1322   : > { %11495 = vmatpush3.bf16.msra.mxu0 %v16431_v41 }
0x133b   : > { %v5783_v17 = vpop.f32.mrb[176].mxu1 }
0x133c   : > { %v5785_v35 = vpop.f32.mrb[177].mxu1 }
0x133d   : > { %v5787_v42 = vpop.f32.mrb[178].mxu1 }
0x133e   : > { %v16445_v12 = vpack.c.bf16 %v5787_v42, %v5783_v17  ;;  %v5789_v16 = vpop.f32.mrb[179].mxu1 }
0x133f   : > { %v16447_v28 = vpack.c.bf16 %v5789_v16, %v5785_v35 }
0x1341   : > { %18910 = vst [vmem:[#allocation57_spill] sm:$0xff] %v16447_v28  ;;  %11780 = vmatprep.subr.msk.bf16.mxu1 %vm18911_vm11, %v16447_v28  ;;  %v5980_v19 = vsel %vm18912_vm9, %v16447_v28, 0  ;;  %vm18917_vm11 = vmmov %vm18831_vm6 }
0x1342   : > { %11465 = vmatpush3.bf16.xpose.msra.mxu1 %v5980_v19  ;;  %vm18918_vm9 = vmmov %vm18831_vm6 }
0x1343   : > { %v5793_v48 = vpop.f32.mrb[180].mxu1  ;;  %v11450_v59 = vpop.f32.mrb[168].mxu0 }
0x1344   : > { %v5795_v39 = vpop.f32.mrb[181].mxu1  ;;  %v5888_v43 = vpop.f32.mrb[169].mxu0 }
0x1345   : > { %v5797_v24 = vpop.f32.mrb[182].mxu1  ;;  %v11451_v49 = vpop.f32.mrb[170].mxu0 }
0x1346   : > { %v16453_v38 = vpack.c.bf16 %v5797_v24, %v5793_v48  ;;  %v16455_v62 = vpack.c.bf16 %v11451_v49, %v11450_v59  ;;  %v5799_v52 = vpop.f32.mrb[183].mxu1  ;;  %v5891_v60 = vpop.f32.mrb[171].mxu0 }
0x1347   : > { %v16457_v63 = vpack.c.bf16 %v5799_v52, %v5795_v39  ;;  %v16459_v18 = vpack.c.bf16 %v5891_v60, %v5888_v43 }
0x1348   : > { %18913 = vst [vmem:[#allocation59_spill] sm:$0xff] %v16455_v62 }
0x1349   : > { %18914 = vst [vmem:[#allocation60_spill] sm:$0xff] %v16457_v63  ;;  %18915 = vst [vmem:[#allocation62_spill] sm:$0xff] %v16459_v18  ;;  %11781 = vmatprep.subr.msk.bf16.mxu1 %vm18831_vm6, %v16457_v63  ;;  %11496 = vmatprep.subr.bf16.mxu0 %v16459_v18  ;;  %v5983_v3 = vsel %vm18916_vm12, %v16457_v63, 0 }
0x134a   : > { %11467 = vmatpush3.bf16.xpose.msra.mxu1 %v5983_v3  ;;  %11497 = vmatpush3.bf16.msra.mxu0 %v16459_v18  ;;  %vm18921_vm12 = vmmov %vm18831_vm6 }
0x134b   : > { %v5803_v54 = vpop.f32.mrb[184].mxu1  ;;  %11498 = vmatprep.subr.bf16.mxu0 %v16455_v62 }
0x134c   : > { %v5805_v6 = vpop.f32.mrb[185].mxu1 }
0x134d   : > { %v5807_v15 = vpop.f32.mrb[186].mxu1 }
0x134e   : > { %v16468_v45 = vpack.c.bf16 %v5807_v15, %v5803_v54  ;;  %v5809_v5 = vpop.f32.mrb[187].mxu1  ;;  %11499 = vmatpush3.bf16.msra.mxu0 %v16455_v62 }
0x134f   : > { %v16471_v33 = vpack.c.bf16 %v5809_v5, %v5805_v6 }
0x1351   : > { %11782 = vmatprep.subr.msk.bf16.mxu1 %vm18917_vm11, %v16471_v33  ;;  %v5986_v56 = vsel %vm18918_vm9, %v16471_v33, 0  ;;  %vm18922_vm11 = vmmov %vm18831_vm6 }
0x1352   : > { %11469 = vmatpush3.bf16.xpose.msra.mxu1 %v5986_v56  ;;  %vm18923_vm9 = vmmov %vm18831_vm6 }
0x1353   : > { %v5813_v23 = vpop.f32.mrb[188].mxu1  ;;  %v11454_v7 = vpop.f32.mrb[172].mxu0 }
0x1354   : > { %v5815_v26 = vpop.f32.mrb[189].mxu1  ;;  %v5904_v17 = vpop.f32.mrb[173].mxu0 }
0x1355   : > { %v5817_v35 = vpop.f32.mrb[190].mxu1  ;;  %v11455_v42 = vpop.f32.mrb[174].mxu0 }
0x1356   : > { %v16477_v16 = vpack.c.bf16 %v5817_v35, %v5813_v23  ;;  %v16479_v19 = vpack.c.bf16 %v11455_v42, %v11454_v7  ;;  %v5819_v48 = vpop.f32.mrb[191].mxu1  ;;  %v5907_v59 = vpop.f32.mrb[175].mxu0 }
0x1357   : > { %v16481_v39 = vpack.c.bf16 %v5819_v48, %v5815_v26  ;;  %v16483_v43 = vpack.c.bf16 %v5907_v59, %v5904_v17 }
0x1358   : > { %18919 = vst [vmem:[#allocation102_spill] sm:$0xff] %v16479_v19 }
0x1359   : > { %18920 = vst [vmem:[#allocation89_spill] sm:$0xff] %v16483_v43  ;;  %11783 = vmatprep.subr.msk.bf16.mxu1 %vm18831_vm6, %v16481_v39  ;;  %11500 = vmatprep.subr.bf16.mxu0 %v16483_v43  ;;  %v5989_v24 = vsel %vm18921_vm12, %v16481_v39, 0  ;;  %vm18925_vm12 = vmmov %vm18831_vm6 }
0x135a   : > { %11471 = vmatpush3.bf16.xpose.msra.mxu1 %v5989_v24  ;;  %11501 = vmatpush3.bf16.msra.mxu0 %v16483_v43 }
0x135b   : > { %11502 = vmatprep.subr.bf16.mxu0 %v16479_v19 }
0x135e   : > { %11503 = vmatpush3.bf16.msra.mxu0 %v16479_v19 }
0x1361   : > { %11473 = vmatmul.mubr.msk.bf16.vlgmr.msra.gmra.mrb[192].mxu1 %vm18922_vm11, %v16403_v10  ;;  %vm18928_vm11 = vmmov %vm18831_vm6 }
0x1362   : > { %11476 = vmatprep.mubr.msk.bf16.mxu1 %vm18923_vm9, %v16420_v37  ;;  %vm18945_vm9 = vnez %v18944_v25 }
0x1369   : > { %11477 = vmatmul.mubr.msk.bf16.gmra.mrb[196].mxu1 %vm18831_vm6, %v16429_v27 }
0x136a   : > { %11480 = vmatprep.mubr.msk.bf16.mxu1 %vm18924_vm15, %v16445_v12 }
0x1371   : > { %11481 = vmatmul.mubr.msk.bf16.gmra.mrb[200].mxu1 %vm18925_vm12, %v16453_v38 }
0x1372   : > { %11484 = vmatprep.mubr.msk.bf16.mxu1 %vm18926_vm13, %v16468_v45 }
0x1377   : > { %v16505_v49 = vpop.permute.xlu0 %6401 }
0x1378   : > { %11784 = vmatprep.subr.msk.bf16.mxu0 %vm18927_vm10, %v16505_v49  ;;  %vm18939_vm10 = vnez %v18938_v4 }
0x1379   : > { %11485 = vmatmul.mubr.msk.bf16.gmra.mrb[204].mxu1 %vm18928_vm11, %v16477_v16 }
0x137f   : > { %v16592_v13 = vpop.permute.xlu1 %6403 }
0x1434   : > { %v11474_v52 = vpop.f32.mrb[192].mxu1 }
0x1435   : > { %v6090_v60 = vmul.f32 0.088388346, %v11474_v52  ;;  %v6025_v3 = vpop.f32.mrb[193].mxu1 }
0x1436   : > { %v11475_v54 = vpop.f32.mrb[194].mxu1  ;;  %v6088_v6 = vmul.f32 0.088388346, %v6025_v3 }
0x1437   : > { %v6091_v15 = vmul.f32 0.088388346, %v11475_v54  ;;  %v6028_v5 = vpop.f32.mrb[195].mxu1  ;;  %v16513_v23 = vsel %vm14503_vm1, %v6090_v60, -inf }
0x1438   : > { %6124 = vmax.xlane.f32.xlu0 %v16513_v23  ;;  %v6089_v7 = vmul.f32 0.088388346, %v6028_v5  ;;  %v16523_v42 = vsel %vm14520_vm3, %v6088_v6, -inf }
0x1439   : > { %v16518_v17 = vsel %vm14508_vm2, %v6091_v15, -inf }
0x143a   : > { %6126 = vmax.xlane.f32.xlu1 %v16518_v17  ;;  %v16528_v60 = vsel %vm14531_vm4, %v6089_v7, -inf }
0x143c   : > { %6120 = vmax.xlane.f32.xlu0 %v16523_v42  ;;  %v11478_v48 = vpop.f32.mrb[196].mxu1 }
0x143d   : > { %v6094_v59 = vmul.f32 0.088388346, %v11478_v48  ;;  %v6041_v24 = vpop.f32.mrb[197].mxu1 }
0x143e   : > { %6122 = vmax.xlane.f32.xlu1 %v16528_v60  ;;  %v11479_v3 = vpop.f32.mrb[198].mxu1  ;;  %v6092_v54 = vmul.f32 0.088388346, %v6041_v24 }
0x143f   : > { %v6095_v15 = vmul.f32 0.088388346, %v11479_v3  ;;  %v6044_v5 = vpop.f32.mrb[199].mxu1  ;;  %v16533_v9 = vsel %vm14542_vm5, %v6094_v59, -inf }
0x1440   : > { %6132 = vmax.xlane.f32.xlu0 %v16533_v9  ;;  %v6093_v6 = vmul.f32 0.088388346, %v6044_v5  ;;  %v16543_v8 = vsel %vm14564_vm7, %v6092_v54, -inf }
0x1441   : > { %v16538_v48 = vsel %vm18716_vm14, %v6095_v15, -inf }
0x1442   : > { %6134 = vmax.xlane.f32.xlu1 %v16538_v48  ;;  %v16548_v2 = vsel %vm14575_vm8, %v6093_v6, -inf  ;;  %v18940_v6 = vld [vmem:[#allocation80_spill] sm:$0xff] }
0x1443   : > { %vm18941_vm15 = vnez %v18940_v6 }
0x1444   : > { %6128 = vmax.xlane.f32.xlu0 %v16543_v8  ;;  %v11482_v24 = vpop.f32.mrb[200].mxu1 }
0x1445   : > { %v6098_v3 = vmul.f32 0.088388346, %v11482_v24  ;;  %v6057_v53 = vpop.f32.mrb[201].mxu1 }
0x1446   : > { %6130 = vmax.xlane.f32.xlu1 %v16548_v2  ;;  %v11483_v5 = vpop.f32.mrb[202].mxu1  ;;  %v6096_v15 = vmul.f32 0.088388346, %v6057_v53 }
0x1447   : > { %v6099_v20 = vmul.f32 0.088388346, %v11483_v5  ;;  %v6060_v47 = vpop.f32.mrb[203].mxu1  ;;  %v16553_v58 = vsel %vm18795_vm0, %v6098_v3, -inf  ;;  %v18942_v3 = vld [vmem:[#allocation81_spill] sm:$0xff] }
0x1448   : > { %6140 = vmax.xlane.f32.xlu0 %v16553_v58  ;;  %v6097_v54 = vmul.f32 0.088388346, %v6060_v47  ;;  %v16563_v0 = vsel %vm18941_vm15, %v6096_v15, -inf  ;;  %vm18943_vm13 = vnez %v18942_v3  ;;  %v18946_v15 = vld [vmem:[#allocation83_spill] sm:$0xff] }
0x1449   : > { %v16558_v24 = vsel %vm18939_vm10, %v6099_v20, -inf  ;;  %vm18947_vm6 = vnez %v18946_v15 }
0x144a   : > { %6142 = vmax.xlane.f32.xlu1 %v16558_v24  ;;  %v16568_v11 = vsel %vm18943_vm13, %v6097_v54, -inf }
0x144c   : > { %6136 = vmax.xlane.f32.xlu0 %v16563_v0  ;;  %v11486_v53 = vpop.f32.mrb[204].mxu1 }
0x144d   : > { %v6102_v5 = vmul.f32 0.088388346, %v11486_v53  ;;  %v6073_v61 = vpop.f32.mrb[205].mxu1 }
0x144e   : > { %6138 = vmax.xlane.f32.xlu1 %v16568_v11  ;;  %v11487_v47 = vpop.f32.mrb[206].mxu1  ;;  %v6100_v20 = vmul.f32 0.088388346, %v6073_v61  ;;  %v18948_v61 = vld [vmem:[#allocation84_spill] sm:$0xff] }
0x144f   : > { %v6076_v46 = vpop.f32.mrb[207].mxu1  ;;  %v6118_v36 = vsel %vm18945_vm9, %v6102_v5, -inf  ;;  %v6103_v54 = vmul.f32 0.088388346, %v11487_v47  ;;  %vm18949_vm12 = vnez %v18948_v61  ;;  %v18950_v5 = vld [vmem:[#allocation85_spill] sm:$0xff] }
0x1450   : > { %6148 = vmax.xlane.f32.xlu0 %v6118_v36  ;;  %v16575_v1 = vsel %vm18947_vm6, %v6100_v20, -inf  ;;  %v6101_v53 = vmul.f32 0.088388346, %v6076_v46  ;;  %vm18951_vm11 = vnez %v18950_v5 }
0x1451   : > { %v16584_v57 = vsel %vm18949_vm12, %v6103_v54, -inf }
0x1452   : > { %v16589_v20 = vsel %vm18951_vm11, %v6101_v53, -inf  ;;  %vm18952_vm11 = vcmask 261120  }
0x1453   : > { %vm18953_vm12 = vmmov %vm18952_vm11 }
0x1454   : > { %6144 = vmax.xlane.f32.xlu0 %v16575_v1  ;;  %vm18954_vm6 = vmmov %vm18952_vm11 }
0x1455   : > { %vm18955_vm9 = vmmov %vm18954_vm6 }
0x1456   : > { %vm18956_vm15 = vmmov %vm18954_vm6 }
0x1457   : > { %vm18957_vm13 = vmmov %vm18954_vm6 }
0x1458   : > { %vm18958_vm0 = vmmov %vm18954_vm6 }
0x145f   : > { %6407 = vrot.lane.b32.xlu1 %v16433_v55, %s13607_s15 }
0x146a   : > { %6405 = vrot.lane.b32.xlu0 %v16423_v34, %s13607_s15 }
0x1483   : > { %6150 = vmax.xlane.f32.xlu1 %v16584_v57 }
0x1487   : > { %6146 = vmax.xlane.f32.xlu1 %v16589_v20 }
0x14c5   : > { %v6125_v22 = vpop.xlane.xlu0 %6124 }
0x14c6   : > { %v6154_v50 = vsub.f32 %v16513_v23, %v6125_v22 }
0x14c7   : > { %v6127_v34 = vpop.xlane.xlu1 %6126 }
0x14c8   : > { %v6172_v47 = vmul.f32 1.442695, %v6154_v50  ;;  %v6155_v46 = vsub.f32 %v16518_v17, %v6127_v34 }
0x14c9   : > { %v6121_v61 = vpop.xlane.xlu0 %6120 }
0x14ca   : > { %12835 = vpow2.f32 %v6172_v47  ;;  %v6174_v54 = vmul.f32 1.442695, %v6155_v46  ;;  %v6152_v55 = vsub.f32 %v16523_v42, %v6121_v61 }
0x14cb   : > { %v6123_v15 = vpop.xlane.xlu1 %6122 }
0x14cc   : > { %12837 = vpow2.f32 %v6174_v54  ;;  %v6168_v53 = vmul.f32 1.442695, %v6152_v55  ;;  %v6153_v5 = vsub.f32 %v16528_v60, %v6123_v15 }
0x14cd   : > { %v6133_v55 = vpop.xlane.xlu0 %6132 }
0x14ce   : > { %12839 = vpow2.f32 %v6168_v53  ;;  %v6170_v25 = vmul.f32 1.442695, %v6153_v5  ;;  %v6158_v15 = vsub.f32 %v16533_v9, %v6133_v55 }
0x14cf   : > { %v6135_v17 = vpop.xlane.xlu1 %6134 }
0x14d0   : > { %12841 = vpow2.f32 %v6170_v25  ;;  %v6180_v47 = vmul.f32 1.442695, %v6158_v15  ;;  %v6159_v53 = vsub.f32 %v16538_v48, %v6135_v17 }
0x14d1   : > { %v6129_v23 = vpop.xlane.xlu0 %6128 }
0x14d2   : > { %v6156_v61 = vsub.f32 %v16543_v8, %v6129_v23  ;;  %12843 = vpow2.f32 %v6180_v47  ;;  %v6182_v4 = vmul.f32 1.442695, %v6159_v53 }
0x14d3   : > { %v6131_v60 = vpop.xlane.xlu1 %6130 }
0x14d4   : > { %v16598_v6 = vpop.eup %12835  ;;  %v6157_v46 = vsub.f32 %v16548_v2, %v6131_v60  ;;  %v6176_v3 = vmul.f32 1.442695, %v6156_v61 }
0x14d5   : > { %6204 = vadd.xlane.f32.xlu0 %v16598_v6  ;;  %v6141_v25 = vpop.xlane.xlu0 %6140 }
0x14d6   : > { %v16601_v50 = vpop.eup %12837  ;;  %12845 = vpow2.f32 %v6176_v3  ;;  %v6162_v7 = vsub.f32 %v16553_v58, %v6141_v25 }
0x14d7   : > { %6206 = vadd.xlane.f32.xlu1 %v16601_v50  ;;  %v6143_v54 = vpop.xlane.xlu1 %6142 }
0x14d8   : > { %v16604_v22 = vpop.eup %12839  ;;  %v6188_v55 = vmul.f32 1.442695, %v6162_v7  ;;  %v6163_v23 = vsub.f32 %v16558_v24, %v6143_v54 }
0x14d9   : > { %6200 = vadd.xlane.f32.xlu0 %v16604_v22  ;;  %v6137_v42 = vpop.xlane.xlu0 %6136 }
0x14da   : > { %v16607_v34 = vpop.eup %12841  ;;  %v6160_v2 = vsub.f32 %v16563_v0, %v6137_v42 }
0x14db   : > { %6202 = vadd.xlane.f32.xlu1 %v16607_v34  ;;  %v6139_v59 = vpop.xlane.xlu1 %6138 }
0x14dc   : > { %v6184_v3 = vmul.f32 1.442695, %v6160_v2 }
0x14dd   : > { %v6149_v5 = vpop.xlane.xlu0 %6148 }
0x14de   : > { %v6166_v31 = vsub.f32 %v6118_v36, %v6149_v5  ;;  %v16624_v36 = vpop.eup %12843 }
0x14df   : > { %v16622_v17 = vpop.permute.xlu1 %6407 }
0x14e0   : > { %v6196_v9 = vmul.f32 1.442695, %v6166_v31  ;;  %v16627_v58 = vpop.eup %12845  ;;  %v6161_v31 = vsub.f32 %v16568_v11, %v6139_v59 }
0x14e2   : > { %v6186_v42 = vmul.f32 1.442695, %v6161_v31 }
0x14ec   : > { %6411 = vrot.lane.b32.xlu1 %v16457_v63, %s13607_s15  ;;  %v6178_v63 = vmul.f32 1.442695, %v6157_v46 }
0x14ee   : > { %12847 = vpow2.f32 %v6178_v63 }
0x14ef   : > { %6409 = vrot.lane.b32.xlu0 %v16447_v28, %s13607_s15  ;;  %v6145_v28 = vpop.xlane.xlu0 %6144  ;;  %12849 = vpow2.f32 %v6182_v4 }
0x14f0   : > { %v6164_v8 = vsub.f32 %v16575_v1, %v6145_v28  ;;  %12851 = vpow2.f32 %v6196_v9  ;;  %v6190_v1 = vmul.f32 1.442695, %v6163_v23 }
0x14f1   : > { %12853 = vpow2.f32 %v6188_v55 }
0x14f2   : > { %v6192_v48 = vmul.f32 1.442695, %v6164_v8 }
0x14f3   : > { %v6406_v46 = vpop.permute.xlu0 %6405 }
0x14f4   : > { %12855 = vpow2.f32 %v6192_v48 }
0x14f5   : > { %12857 = vpow2.f32 %v6184_v3 }
0x14f6   : > { %12859 = vpow2.f32 %v6190_v1 }
0x14f8   : > { %v16630_v0 = vpop.eup %12847 }
0x14f9   : > { %v16635_v63 = vpop.eup %12849 }
0x14fa   : > { %v16638_v25 = vpop.eup %12851 }
0x14fb   : > { %v16642_v11 = vpop.eup %12853 }
0x150e   : > { %6212 = vadd.xlane.f32.xlu0 %v16624_v36 }
0x1510   : > { %v6151_v4 = vpop.xlane.xlu1 %6150  ;;  %6208 = vadd.xlane.f32.xlu1 %v16627_v58 }
0x1511   : > { %v6167_v28 = vsub.f32 %v16584_v57, %v6151_v4  ;;  %v16645_v57 = vpop.eup %12855 }
0x1512   : > { %6210 = vadd.xlane.f32.xlu0 %v16630_v0  ;;  %v16648_v15 = vpop.eup %12857 }
0x1513   : > { %v6198_v7 = vmul.f32 1.442695, %v6167_v28  ;;  %v16651_v61 = vpop.eup %12859 }
0x1514   : > { %v6147_v24 = vpop.xlane.xlu1 %6146  ;;  %6214 = vadd.xlane.f32.xlu1 %v16635_v63 }
0x1515   : > { %12861 = vpow2.f32 %v6198_v7  ;;  %v6165_v60 = vsub.f32 %v16589_v20, %v6147_v24  ;;  %v6442_v24 = vsel %vm18952_vm11, %v16505_v49, 0  ;;  %vm18959_vm11 = vmmov %vm18958_vm0 }
0x1516   : > { %6228 = vadd.xlane.f32.xlu0 %v16638_v25  ;;  %12863 = vpow2.f32 %v6186_v42 }
0x1517   : > { %v6194_v59 = vmul.f32 1.442695, %v6165_v60 }
0x1518   : > { %6220 = vadd.xlane.f32.xlu1 %v16642_v11 }
0x1519   : > { %12865 = vpow2.f32 %v6194_v59 }
0x151a   : > { %6224 = vadd.xlane.f32.xlu0 %v16645_v57 }
0x151c   : > { %6216 = vadd.xlane.f32.xlu1 %v16648_v15 }
0x151f   : > { %v16653_v20 = vpop.eup %12861 }
0x1520   : > { %6222 = vadd.xlane.f32.xlu1 %v16651_v61  ;;  %6230 = vadd.xlane.f32.xlu0 %v16653_v20  ;;  %v16657_v5 = vpop.eup %12863 }
0x1523   : > { %v16660_v47 = vpop.eup %12865 }
0x1524   : > { %6218 = vadd.xlane.f32.xlu1 %v16657_v5 }
0x1528   : > { %6226 = vadd.xlane.f32.xlu1 %v16660_v47 }
0x1536   : > { %6413 = vrot.lane.b32.xlu0 %v16471_v33, %s13607_s15 }
0x1539   : > { %6415 = vrot.lane.b32.xlu1 %v16481_v39, %s13607_s15 }
0x153a   : > { %6377 = vrot.lane.b32.xlu0 %v16391_v32, %s13607_s15 }
0x153d   : > { %6379 = vrot.lane.b32.xlu1 %v16403_v10, %s13607_s15 }
0x153e   : > { %6381 = vrot.lane.b32.xlu0 %v16420_v37, %s13607_s15 }
0x1541   : > { %6383 = vrot.lane.b32.xlu1 %v16429_v27, %s13607_s15 }
0x1542   : > { %6385 = vrot.lane.b32.xlu0 %v16445_v12, %s13607_s15 }
0x1545   : > { %6387 = vrot.lane.b32.xlu1 %v16453_v38, %s13607_s15 }
0x1546   : > { %6389 = vrot.lane.b32.xlu0 %v16468_v45, %s13607_s15 }
0x1549   : > { %6391 = vrot.lane.b32.xlu1 %v16477_v16, %s13607_s15 }
0x154a   : > { %6754 = vrot.lane.b32.xlu0 %v16409_v14, %s13607_s15 }
0x154d   : > { %6756 = vrot.lane.b32.xlu1 %v16405_v21, %s13607_s15 }
0x154e   : > { %6758 = vrot.lane.b32.xlu0 %v16435_v29, %s13607_s15 }
0x1551   : > { %6760 = vrot.lane.b32.xlu1 %v16431_v41, %s13607_s15 }
0x1552   : > { %6762 = vrot.lane.b32.xlu0 %v16459_v18, %s13607_s15 }
0x1555   : > { %6764 = vrot.lane.b32.xlu1 %v16455_v62, %s13607_s15 }
0x1556   : > { %6766 = vrot.lane.b32.xlu0 %v16483_v43, %s13607_s15 }
0x1559   : > { %6768 = vrot.lane.b32.xlu1 %v16479_v19, %s13607_s15 }
0x155a   : > { %6891 = vrot.lane.b32.xlu0 %v16393_v51, %s13606_s19 }
0x155d   : > { %6893 = vrot.lane.b32.xlu1 %v16407_v44, %s13606_s19 }
0x1562   : > { %v6205_v54 = vpop.xlane.xlu0 %6204 }
0x1564   : > { %v6207_v53 = vpop.xlane.xlu1 %6206 }
0x1565   : > { %12867 = vrcp.f32 %v6207_v53 }
0x1566   : > { %v6201_v9 = vpop.xlane.xlu0 %6200 }
0x1567   : > { %12869 = vrcp.f32 %v6201_v9 }
0x1568   : > { %12871 = vrcp.f32 %v6205_v54  ;;  %v6203_v8 = vpop.xlane.xlu1 %6202 }
0x1569   : > { %12873 = vrcp.f32 %v6203_v8 }
0x156a   : > { %v6410_v49 = vpop.permute.xlu0 %6409 }
0x156f   : > { %v12868_v55 = vpop.eup %12867 }
0x1570   : > { %v6239_v3 = vmul.f32 %v12868_v55, %v16601_v50  ;;  %v6445_v50 = vsel %vm18954_vm6, %v16592_v13, 0  ;;  %vm18961_vm6 = vmmov %vm18958_vm0 }
0x1571   : > { %v12870_v2 = vpop.eup %12869 }
0x1572   : > { %v12872_v48 = vpop.eup %12871  ;;  %v6233_v1 = vmul.f32 %v12870_v2, %v16604_v22  ;;  %v6448_v22 = vsel %vm18956_vm15, %v6406_v46, 0  ;;  %vm18962_vm15 = vmmov %vm18958_vm0 }
0x1573   : > { %v12874_v23 = vpop.eup %12873  ;;  %v6237_v31 = vmul.f32 %v12872_v48, %v16598_v6  ;;  %v6451_v6 = vsel %vm18958_vm0, %v16622_v17, 0 }
0x1574   : > { %v6235_v4 = vmul.f32 %v12874_v23, %v16607_v34  ;;  %v6412_v34 = vpop.permute.xlu1 %6411 }
0x1575   : > { %v6265_v7 = vpack.c.bf16 %v6239_v3, %v6237_v31  ;;  %v6457_v54 = vsel %vm18962_vm15, %v6412_v34, 0  ;;  %vm18968_vm15 = vmmov %vm18958_vm0 }
0x1576   : > { %v6264_v28 = vpack.c.bf16 %v6235_v4, %v6233_v1 }
0x1578   : > { %11504 = vmatprep.mubr.bf16.mxu0 %v6264_v28 }
0x1579   : > { %11505 = vmatmul.mubr.bf16.vlgmr.msra.gmra.mrb[176].mxu0 %v6265_v7 }
0x157a   : > { %11521 = vmatpush3.bf16.xpose.msra.mxu0 %v6442_v24 }
0x157b   : > { %11785 = vmatprep.subr.msk.bf16.mxu0 %vm18953_vm12, %v16592_v13  ;;  %vm18960_vm12 = vmmov %vm18958_vm0 }
0x157c   : > { %v6454_v42 = vsel %vm18960_vm12, %v6410_v49, 0  ;;  %vm18966_vm12 = vmmov %vm18958_vm0 }
0x1582   : > { %11523 = vmatpush3.bf16.xpose.msra.mxu0 %v6445_v50 }
0x1583   : > { %11786 = vmatprep.subr.msk.bf16.mxu0 %vm18955_vm9, %v6406_v46  ;;  %vm18964_vm9 = vmmov %vm18958_vm0 }
0x158a   : > { %11525 = vmatpush3.bf16.xpose.msra.mxu0 %v6448_v22 }
0x158b   : > { %11787 = vmatprep.subr.msk.bf16.mxu0 %vm18957_vm13, %v16622_v17  ;;  %vm18963_vm13 = vmmov %vm18958_vm0 }
0x1592   : > { %11527 = vmatpush3.bf16.xpose.msra.mxu0 %v6451_v6 }
0x1593   : > { %11788 = vmatprep.subr.msk.bf16.mxu0 %vm18959_vm11, %v6410_v49  ;;  %vm18965_vm11 = vmmov %vm18958_vm0 }
0x159a   : > { %11529 = vmatpush3.bf16.xpose.msra.mxu0 %v6454_v42 }
0x159b   : > { %11789 = vmatprep.subr.msk.bf16.mxu0 %vm18961_vm6, %v6412_v34  ;;  %v6213_v13 = vpop.xlane.xlu0 %6212  ;;  %vm18967_vm6 = vmmov %vm18958_vm0 }
0x159d   : > { %v6209_v60 = vpop.xlane.xlu1 %6208 }
0x159e   : > { %12875 = vrcp.f32 %v6209_v60 }
0x159f   : > { %12877 = vrcp.f32 %v6213_v13  ;;  %v6211_v59 = vpop.xlane.xlu0 %6210 }
0x15a0   : > { %12879 = vrcp.f32 %v6211_v59 }
0x15a1   : > { %v6215_v46 = vpop.xlane.xlu1 %6214 }
0x15a2   : > { %12881 = vrcp.f32 %v6215_v46  ;;  %11531 = vmatpush3.bf16.xpose.msra.mxu0 %v6457_v54 }
0x15a3   : > { %v6229_v17 = vpop.xlane.xlu0 %6228 }
0x15a5   : > { %v6221_v53 = vpop.xlane.xlu1 %6220 }
0x15a7   : > { %v6225_v55 = vpop.xlane.xlu0 %6224 }
0x15a8   : > { %v12876_v9 = vpop.eup %12875 }
0x15a9   : > { %v12878_v8 = vpop.eup %12877  ;;  %v6217_v2 = vpop.xlane.xlu1 %6216  ;;  %v6241_v23 = vmul.f32 %v12876_v9, %v16627_v58 }
0x15aa   : > { %v12880_v48 = vpop.eup %12879  ;;  %v6245_v7 = vmul.f32 %v12878_v8, %v16624_v36 }
0x15ab   : > { %v6243_v3 = vmul.f32 %v12880_v48, %v16630_v0 }
0x15ac   : > { %v12882_v1 = vpop.eup %12881 }
0x15ad   : > { %v6223_v4 = vpop.xlane.xlu1 %6222  ;;  %v6231_v31 = vpop.xlane.xlu0 %6230  ;;  %v6266_v28 = vpack.c.bf16 %v6243_v3, %v6241_v23  ;;  %v6247_v24 = vmul.f32 %v12882_v1, %v16635_v63 }
0x15ae   : > { %12883 = vrcp.f32 %v6223_v4 }
0x15af   : > { %11508 = vmatprep.mubr.bf16.mxu0 %v6266_v28  ;;  %v6267_v50 = vpack.c.bf16 %v6247_v24, %v6245_v7  ;;  %12885 = vrcp.f32 %v6217_v2 }
0x15b0   : > { %12887 = vrcp.f32 %v6221_v53 }
0x15b1   : > { %v6219_v22 = vpop.xlane.xlu1 %6218  ;;  %11509 = vmatmul.mubr.bf16.gmra.mrb[180].mxu0 %v6267_v50  ;;  %v6414_v6 = vpop.permute.xlu0 %6413 }
0x15b2   : > { %12889 = vrcp.f32 %v6219_v22  ;;  %11790 = vmatprep.subr.msk.bf16.mxu0 %vm18958_vm0, %v6414_v6  ;;  %v6460_v58 = vsel %vm18963_vm13, %v6414_v6, 0  ;;  %vm18969_vm13 = vmmov %vm18958_vm0 }
0x15b3   : > { %11533 = vmatpush3.bf16.xpose.msra.mxu0 %v6460_v58  ;;  %12891 = vrcp.f32 %v6225_v55 }
0x15b5   : > { %v6227_v0 = vpop.xlane.xlu1 %6226  ;;  %v6378_v49 = vpop.permute.xlu0 %6377 }
0x15b6   : > { %12893 = vrcp.f32 %v6227_v0 }
0x15b7   : > { %12895 = vrcp.f32 %v6231_v31 }
0x15b8   : > { %v12884_v36 = vpop.eup %12883  ;;  %12897 = vrcp.f32 %v6229_v17 }
0x15b9   : > { %v6416_v63 = vpop.permute.xlu1 %6415  ;;  %v6382_v34 = vpop.permute.xlu0 %6381  ;;  %v6255_v46 = vmul.f32 %v12884_v36, %v16651_v61 }
0x15ba   : > { %v12886_v42 = vpop.eup %12885  ;;  %11791 = vmatprep.subr.msk.bf16.mxu0 %vm18964_vm9, %v6416_v63  ;;  %v6463_v13 = vsel %vm18965_vm11, %v6416_v63, 0  ;;  %vm18970_vm9 = vmmov %vm18958_vm0 }
0x15bb   : > { %v12888_v60 = vpop.eup %12887  ;;  %11535 = vmatpush3.bf16.xpose.msra.mxu0 %v6463_v13  ;;  %v6249_v9 = vmul.f32 %v12886_v42, %v16648_v15  ;;  %vm18971_vm11 = vmmov %vm18958_vm0 }
0x15bc   : > { %v12890_v59 = vpop.eup %12889  ;;  %v6253_v17 = vmul.f32 %v12888_v60, %v16642_v11 }
0x15bd   : > { %v6380_v54 = vpop.permute.xlu1 %6379  ;;  %v6386_v53 = vpop.permute.xlu0 %6385  ;;  %v6251_v8 = vmul.f32 %v12890_v59, %v16657_v5 }
0x15be   : > { %v12892_v55 = vpop.eup %12891  ;;  %v6269_v23 = vpack.c.bf16 %v6255_v46, %v6253_v17 }
0x15bf   : > { %v6268_v2 = vpack.c.bf16 %v6251_v8, %v6249_v9  ;;  %v6257_v31 = vmul.f32 %v12892_v55, %v16645_v57 }
0x15c0   : > { %v12894_v48 = vpop.eup %12893 }
0x15c1   : > { %v12896_v3 = vpop.eup %12895  ;;  %v6384_v1 = vpop.permute.xlu1 %6383  ;;  %11512 = vmatprep.mubr.bf16.mxu0 %v6268_v2  ;;  %v6259_v61 = vmul.f32 %v12894_v48, %v16660_v47 }
0x15c2   : > { %v6390_v4 = vpop.permute.xlu0 %6389  ;;  %11513 = vmatmul.mubr.bf16.gmra.mrb[184].mxu0 %v6269_v23  ;;  %v12898_v28 = vpop.eup %12897  ;;  %v6263_v15 = vmul.f32 %v12896_v3, %v16653_v20 }
0x15c3   : > { %v6270_v7 = vpack.c.bf16 %v6259_v61, %v6257_v31  ;;  %v6261_v11 = vmul.f32 %v12898_v28, %v16638_v25 }
0x15c5   : > { %v6388_v5 = vpop.permute.xlu1 %6387  ;;  %11516 = vmatprep.mubr.bf16.mxu0 %v6270_v7  ;;  %v6271_v50 = vpack.c.bf16 %v6263_v15, %v6261_v11 }
0x15c6   : > { %v6755_v24 = vpop.permute.xlu0 %6754 }
0x15c7   : > { %11552 = vmatprep.subr.bf16.mxu1 %v6755_v24 }
0x15c8   : > { %11553 = vmatpush3.bf16.msra.mxu1 %v6755_v24 }
0x15c9   : > { %v6392_v22 = vpop.permute.xlu1 %6391 }
0x15ca   : > { %11517 = vmatmul.mubr.bf16.gmra.mrb[188].mxu0 %v6271_v50  ;;  %v6759_v47 = vpop.permute.xlu0 %6758 }
0x15cb   : > { %11536 = vmatprep.mubr.msk.bf16.mxu0 %vm18966_vm12, %v6378_v49  ;;  %vm18972_vm12 = vmmov %vm18958_vm0 }
0x15cd   : > { %v6757_v57 = vpop.permute.xlu1 %6756 }
0x15ce   : > { %11554 = vmatprep.subr.bf16.mxu1 %v6757_v57  ;;  %v6763_v6 = vpop.permute.xlu0 %6762 }
0x15cf   : > { %11555 = vmatpush3.bf16.msra.mxu1 %v6757_v57 }
0x15d0   : > { %11556 = vmatprep.subr.bf16.mxu1 %v6759_v47 }
0x15d1   : > { %v6761_v20 = vpop.permute.xlu1 %6760 }
0x15d2   : > { %11537 = vmatmul.mubr.msk.bf16.vlgmr.msra.gmra.mrb[192].mxu0 %vm18967_vm6, %v6380_v54  ;;  %v6767_v58 = vpop.permute.xlu0 %6766  ;;  %vm18973_vm6 = vmmov %vm18958_vm0 }
0x15d3   : > { %11540 = vmatprep.mubr.msk.bf16.mxu0 %vm18968_vm15, %v6382_v34  ;;  %11557 = vmatpush3.bf16.msra.mxu1 %v6759_v47 }
0x15d4   : > { %11558 = vmatprep.subr.bf16.mxu1 %v6761_v20 }
0x15d5   : > { %v6765_v25 = vpop.permute.xlu1 %6764 }
0x15d6   : > { %v16746_v49 = vpop.permute.xlu0 %6891 }
0x15d7   : > { %11559 = vmatpush3.bf16.msra.mxu1 %v6761_v20 }
0x15d8   : > { %11560 = vmatprep.subr.bf16.mxu1 %v6763_v6 }
0x15d9   : > { %v6769_v0 = vpop.permute.xlu1 %6768 }
0x15da   : > { %11541 = vmatmul.mubr.msk.bf16.gmra.mrb[196].mxu0 %vm18958_vm0, %v6384_v1 }
0x15db   : > { %11544 = vmatprep.mubr.msk.bf16.mxu0 %vm18969_vm13, %v6386_v53  ;;  %11561 = vmatpush3.bf16.msra.mxu1 %v6763_v6 }
0x15dc   : > { %11562 = vmatprep.subr.bf16.mxu1 %v6765_v25 }
0x15df   : > { %11563 = vmatpush3.bf16.msra.mxu1 %v6765_v25 }
0x15e0   : > { %11564 = vmatprep.subr.bf16.mxu1 %v6767_v58 }
0x15e2   : > { %11545 = vmatmul.mubr.msk.bf16.gmra.mrb[200].mxu0 %vm18970_vm9, %v6388_v5 }
0x15e3   : > { %11548 = vmatprep.mubr.msk.bf16.mxu0 %vm18971_vm11, %v6390_v4  ;;  %11565 = vmatpush3.bf16.msra.mxu1 %v6767_v58 }
0x15e4   : > { %11566 = vmatprep.subr.bf16.mxu1 %v6769_v0 }
0x15e7   : > { %11567 = vmatpush3.bf16.msra.mxu1 %v6769_v0 }
0x15e8   : > { %11792 = vmatprep.subr.msk.bf16.mxu1 %vm18972_vm12, %v16746_v49 }
0x15ea   : > { %11549 = vmatmul.mubr.msk.bf16.gmra.mrb[204].mxu0 %vm18973_vm6, %v6392_v22 }
0x164c   : > { %v16751_v36 = vpop.f32.mrb[176].mxu0 }
0x164d   : > { %18974 = vst [vmem:[#allocation87_spill] sm:$0xff] %v16751_v36  ;;  %v16753_v63 = vpop.f32.mrb[177].mxu0 }
0x164e   : > { %18975 = vst [vmem:[#allocation88_spill] sm:$0xff] %v16753_v63  ;;  %v16755_v34 = vpop.f32.mrb[178].mxu0 }
0x164f   : > { %18976 = vst [vmem:[#allocation86_spill] sm:$0xff] %v16755_v34  ;;  %v16757_v42 = vpop.f32.mrb[179].mxu0 }
0x1650   : > { %18977 = vst [vmem:[#allocation92_spill] sm:$0xff] %v16757_v42 }
0x1684   : > { %v16759_v13 = vpop.f32.mrb[180].mxu0 }
0x1685   : > { %18978 = vst [vmem:[#allocation90_spill] sm:$0xff] %v16759_v13  ;;  %v16761_v60 = vpop.f32.mrb[181].mxu0  ;;  %v19007_v13 = vld [vmem:[#allocation85_spill] sm:$0xff] }
0x1686   : > { %18979 = vst [vmem:[#allocation93_spill] sm:$0xff] %v16761_v60  ;;  %v16763_v59 = vpop.f32.mrb[182].mxu0  ;;  %vm19008_vm6 = vnez %v19007_v13 }
0x1687   : > { %18980 = vst [vmem:[#allocation91_spill] sm:$0xff] %v16763_v59  ;;  %v16765_v46 = vpop.f32.mrb[183].mxu0  ;;  %v16864_v59 = vpop.permute.xlu1 %6893 }
0x1688   : > { %18981 = vst [vmem:[#allocation96_spill] sm:$0xff] %v16765_v46  ;;  %v19005_v46 = vld [vmem:[#allocation84_spill] sm:$0xff] }
0x1689   : > { %vm19006_vm12 = vnez %v19005_v46 }
0x1695   : > { %v16767_v54 = vpop.f32.mrb[184].mxu0 }
0x1696   : > { %18982 = vst [vmem:[#allocation94_spill] sm:$0xff] %v16767_v54  ;;  %v16769_v53 = vpop.f32.mrb[185].mxu0 }
0x1697   : > { %18983 = vst [vmem:[#allocation97_spill] sm:$0xff] %v16769_v53  ;;  %v16771_v9 = vpop.f32.mrb[186].mxu0  ;;  %v18997_v53 = vld [vmem:[#allocation80_spill] sm:$0xff] }
0x1698   : > { %18984 = vst [vmem:[#allocation95_spill] sm:$0xff] %v16771_v9  ;;  %v16773_v8 = vpop.f32.mrb[187].mxu0  ;;  %vm18998_vm13 = vnez %v18997_v53 }
0x1699   : > { %18985 = vst [vmem:[#allocation100_spill] sm:$0xff] %v16773_v8  ;;  %v18999_v8 = vld [vmem:[#allocation82_spill] sm:$0xff] }
0x169a   : > { %vm19000_vm9 = vnez %v18999_v8 }
0x169d   : > { %v16775_v55 = vpop.f32.mrb[188].mxu0 }
0x169e   : > { %18986 = vst [vmem:[#allocation98_spill] sm:$0xff] %v16775_v55  ;;  %v16777_v17 = vpop.f32.mrb[189].mxu0 }
0x169f   : > { %18987 = vst [vmem:[#allocation101_spill] sm:$0xff] %v16777_v17  ;;  %v16779_v2 = vpop.f32.mrb[190].mxu0  ;;  %v18993_v17 = vld [vmem:[#allocation78_spill] sm:$0xff] }
0x16a0   : > { %18988 = vst [vmem:[#allocation99_spill] sm:$0xff] %v16779_v2  ;;  %v16781_v48 = vpop.f32.mrb[191].mxu0  ;;  %vm18994_vm15 = vnez %v18993_v17 }
0x16a1   : > { %18989 = vst [vmem:[#allocation31_spill] sm:$0xff] %v16781_v48 }
0x16a5   : > { %v11538_v23 = vpop.f32.mrb[192].mxu0 }
0x16a6   : > { %v6564_v3 = vmul.f32 0.088388346, %v11538_v23  ;;  %v6499_v1 = vpop.f32.mrb[193].mxu0 }
0x16a7   : > { %v11539_v4 = vpop.f32.mrb[194].mxu0  ;;  %v6562_v31 = vmul.f32 0.088388346, %v6499_v1 }
0x16a8   : > { %v6502_v61 = vpop.f32.mrb[195].mxu0  ;;  %v16785_v28 = vsel %vm14503_vm1, %v6564_v3, -inf  ;;  %v6565_v5 = vmul.f32 0.088388346, %v11539_v4 }
0x16a9   : > { %v6563_v7 = vmul.f32 0.088388346, %v6502_v61  ;;  %6598 = vmax.xlane.f32.xlu0 %v16785_v28  ;;  %v16795_v24 = vsel %vm14520_vm3, %v6562_v31, -inf }
0x16aa   : > { %v6581_v6 = vsel %vm14508_vm2, %v6565_v5, -inf }
0x16ab   : > { %v16790_v15 = vsel %vm14531_vm4, %v6563_v7, -inf }
0x16ac   : > { %6596 = vmax.xlane.f32.xlu1 %v16790_v15 }
0x16ad   : > { %6594 = vmax.xlane.f32.xlu0 %v16795_v24  ;;  %v11542_v11 = vpop.f32.mrb[196].mxu0 }
0x16ae   : > { %v6515_v50 = vpop.f32.mrb[197].mxu0  ;;  %v6568_v57 = vmul.f32 0.088388346, %v11542_v11 }
0x16af   : > { %v11543_v22 = vpop.f32.mrb[198].mxu0  ;;  %v6566_v0 = vmul.f32 0.088388346, %v6515_v50 }
0x16b0   : > { %v6569_v47 = vmul.f32 0.088388346, %v11543_v22  ;;  %v6518_v20 = vpop.f32.mrb[199].mxu0  ;;  %v16807_v23 = vsel %vm14542_vm5, %v6568_v57, -inf }
0x16b1   : > { %6600 = vmax.xlane.f32.xlu0 %v6581_v6  ;;  %v6567_v25 = vmul.f32 0.088388346, %v6518_v20  ;;  %v16817_v50 = vsel %vm14564_vm7, %v6566_v0, -inf  ;;  %v18995_v0 = vld [vmem:[#allocation81_spill] sm:$0xff] }
0x16b2   : > { %v16802_v58 = vsel %vm18716_vm14, %v6569_v47, -inf  ;;  %vm18996_vm0 = vnez %v18995_v0 }
0x16b3   : > { %6608 = vmax.xlane.f32.xlu1 %v16802_v58  ;;  %v16812_v31 = vsel %vm14575_vm8, %v6567_v25, -inf }
0x16b5   : > { %6606 = vmax.xlane.f32.xlu0 %v16807_v23  ;;  %v11546_v3 = vpop.f32.mrb[200].mxu0 }
0x16b6   : > { %v6531_v1 = vpop.f32.mrb[201].mxu0  ;;  %v6572_v7 = vmul.f32 0.088388346, %v11546_v3 }
0x16b7   : > { %6604 = vmax.xlane.f32.xlu1 %v16812_v31  ;;  %v11547_v61 = vpop.f32.mrb[202].mxu0  ;;  %v6570_v25 = vmul.f32 0.088388346, %v6531_v1 }
0x16b8   : > { %v6573_v5 = vmul.f32 0.088388346, %v11547_v61  ;;  %v6534_v11 = vpop.f32.mrb[203].mxu0  ;;  %v16827_v48 = vsel %vm18994_vm15, %v6572_v7, -inf }
0x16b9   : > { %6602 = vmax.xlane.f32.xlu0 %v16817_v50  ;;  %v6571_v57 = vmul.f32 0.088388346, %v6534_v11  ;;  %v16837_v1 = vsel %vm18998_vm13, %v6570_v25, -inf  ;;  %v19004_v25 = vld [vmem:[#allocation48_spill] sm:$0xff] }
0x16ba   : > { %v16822_v20 = vsel %vm18939_vm10, %v6573_v5, -inf }
0x16bb   : > { %6616 = vmax.xlane.f32.xlu1 %v16822_v20  ;;  %v16832_v55 = vsel %vm18996_vm0, %v6571_v57, -inf  ;;  %v19001_v57 = vld [vmem:[#allocation83_spill] sm:$0xff] }
0x16bc   : > { %vm19002_vm11 = vnez %v19001_v57 }
0x16bd   : > { %6614 = vmax.xlane.f32.xlu0 %v16827_v48  ;;  %v11550_v3 = vpop.f32.mrb[204].mxu0 }
0x16be   : > { %v6547_v61 = vpop.f32.mrb[205].mxu0  ;;  %v6576_v5 = vmul.f32 0.088388346, %v11550_v3  ;;  %v19003_v3 = vld [vmem:[#allocation56_spill] sm:$0xff] }
0x16bf   : > { %6612 = vmax.xlane.f32.xlu1 %v16832_v55  ;;  %v11551_v11 = vpop.f32.mrb[206].mxu0  ;;  %v6574_v7 = vmul.f32 0.088388346, %v6547_v61 }
0x16c0   : > { %v6550_v2 = vpop.f32.mrb[207].mxu0  ;;  %v16842_v54 = vsel %vm19000_vm9, %v6576_v5, -inf  ;;  %v6577_v60 = vmul.f32 0.088388346, %v11551_v11 }
0x16c1   : > { %6610 = vmax.xlane.f32.xlu0 %v16837_v1  ;;  %v16847_v9 = vsel %vm19002_vm11, %v6574_v7, -inf  ;;  %v6575_v61 = vmul.f32 0.088388346, %v6550_v2 }
0x16c2   : > { %v16856_v5 = vsel %vm19006_vm12, %v6577_v60, -inf }
0x16c3   : > { %v16861_v7 = vsel %vm19008_vm6, %v6575_v61, -inf  ;;  %vm19011_vm6 = vcmask 261120  }
0x16c4   : > { %vm19012_vm12 = vmmov %vm19011_vm6 }
0x16c5   : > { %6622 = vmax.xlane.f32.xlu0 %v16842_v54  ;;  %vm19013_vm11 = vmmov %vm19011_vm6 }
0x16c6   : > { %vm19014_vm9 = vmmov %vm19011_vm6 }
0x16c7   : > { %vm19015_vm13 = vmmov %vm19011_vm6 }
0x16c8   : > { %vm19016_vm0 = vmmov %vm19011_vm6 }
0x16c9   : > { %6618 = vmax.xlane.f32.xlu0 %v16847_v9  ;;  %vm19017_vm15 = vmmov %vm19016_vm0 }
0x16d0   : > { %6897 = vrot.lane.b32.xlu1 %v19003_v3, %s13606_s19 }
0x16df   : > { %6895 = vrot.lane.b32.xlu0 %v19004_v25, %s13606_s19 }
0x16f4   : > { %6624 = vmax.xlane.f32.xlu1 %v16856_v5 }
0x16f8   : > { %6620 = vmax.xlane.f32.xlu1 %v16861_v7 }
0x1736   : > { %v6599_v36 = vpop.xlane.xlu0 %6598 }
0x1737   : > { %v6628_v34 = vsub.f32 %v16785_v28, %v6599_v36 }
0x1739   : > { %v6646_v63 = vmul.f32 1.442695, %v6628_v34  ;;  %v6597_v11 = vpop.xlane.xlu1 %6596 }
0x173a   : > { %v6627_v2 = vsub.f32 %v16790_v15, %v6597_v11  ;;  %v6595_v42 = vpop.xlane.xlu0 %6594 }
0x173b   : > { %12899 = vpow2.f32 %v6646_v63  ;;  %v6626_v60 = vsub.f32 %v16795_v24, %v6595_v42 }
0x173c   : > { %v6644_v46 = vmul.f32 1.442695, %v6627_v2 }
0x173d   : > { %v6642_v25 = vmul.f32 1.442695, %v6626_v60 }
0x173e   : > { %12901 = vpow2.f32 %v6644_v46  ;;  %v6601_v61 = vpop.xlane.xlu0 %6600  ;;  %v19010_v46 = vld [vmem:[#allocation60_spill] sm:$0xff] }
0x173f   : > { %12903 = vpow2.f32 %v6642_v25  ;;  %v6629_v13 = vsub.f32 %v6581_v6, %v6601_v61 }
0x1740   : > { %v6609_v15 = vpop.xlane.xlu1 %6608 }
0x1741   : > { %v6648_v3 = vmul.f32 1.442695, %v6629_v13  ;;  %v19009_v13 = vld [vmem:[#allocation57_spill] sm:$0xff]  ;;  %v6633_v53 = vsub.f32 %v16802_v58, %v6609_v15 }
0x1742   : > { %v6607_v42 = vpop.xlane.xlu0 %6606 }
0x1743   : > { %12905 = vpow2.f32 %v6648_v3  ;;  %v6632_v6 = vsub.f32 %v16807_v23, %v6607_v42  ;;  %v6656_v17 = vmul.f32 1.442695, %v6633_v53 }
0x1744   : > { %v6605_v3 = vpop.xlane.xlu1 %6604 }
0x1745   : > { %v16869_v57 = vpop.eup %12899  ;;  %v6654_v11 = vmul.f32 1.442695, %v6632_v6  ;;  %v6631_v60 = vsub.f32 %v16812_v31, %v6605_v3 }
0x1746   : > { %6678 = vadd.xlane.f32.xlu1 %v16869_v57  ;;  %v6603_v28 = vpop.xlane.xlu0 %6602 }
0x1747   : > { %v6630_v2 = vsub.f32 %v16817_v50, %v6603_v28  ;;  %12907 = vpow2.f32 %v6654_v11  ;;  %v6652_v0 = vmul.f32 1.442695, %v6631_v60 }
0x1748   : > { %v16872_v36 = vpop.eup %12901  ;;  %v6617_v61 = vpop.xlane.xlu1 %6616 }
0x1749   : > { %v16874_v34 = vpop.eup %12903  ;;  %6676 = vadd.xlane.f32.xlu0 %v16872_v36  ;;  %v6637_v58 = vsub.f32 %v16822_v20, %v6617_v61 }
0x174a   : > { %6674 = vadd.xlane.f32.xlu1 %v16874_v34  ;;  %v6615_v24 = vpop.xlane.xlu0 %6614 }
0x174c   : > { %v6613_v47 = vpop.xlane.xlu1 %6612 }
0x174d   : > { %v16878_v63 = vpop.eup %12905 }
0x174e   : > { %6680 = vadd.xlane.f32.xlu1 %v16878_v63  ;;  %v6611_v25 = vpop.xlane.xlu0 %6610 }
0x174f   : > { %v6634_v50 = vsub.f32 %v16837_v1, %v6611_v25 }
0x1750   : > { %v16896_v53 = vpop.permute.xlu1 %6897 }
0x1751   : > { %v6658_v15 = vmul.f32 1.442695, %v6634_v50  ;;  %v16894_v3 = vpop.eup %12907 }
0x1752   : > { %v6623_v8 = vpop.xlane.xlu0 %6622 }
0x1753   : > { %v6640_v23 = vsub.f32 %v16842_v54, %v6623_v8  ;;  %v6664_v8 = vmul.f32 1.442695, %v6637_v58 }
0x1755   : > { %v6670_v31 = vmul.f32 1.442695, %v6640_v23 }
0x1756   : > { %v6619_v28 = vpop.xlane.xlu0 %6618 }
0x1757   : > { %v6638_v6 = vsub.f32 %v16847_v9, %v6619_v28 }
0x1759   : > { %v6666_v54 = vmul.f32 1.442695, %v6638_v6 }
0x175f   : > { %6899 = vrot.lane.b32.xlu0 %v19009_v13, %s13606_s19  ;;  %6901 = vrot.lane.b32.xlu1 %v19010_v46, %s13606_s19  ;;  %v6650_v13 = vmul.f32 1.442695, %v6630_v2  ;;  %v6636_v46 = vsub.f32 %v16827_v48, %v6615_v24  ;;  %v6635_v48 = vsub.f32 %v16832_v55, %v6613_v47 }
0x1761   : > { %12909 = vpow2.f32 %v6650_v13  ;;  %v6662_v42 = vmul.f32 1.442695, %v6636_v46  ;;  %v6660_v1 = vmul.f32 1.442695, %v6635_v48 }
0x1762   : > { %12911 = vpow2.f32 %v6652_v0 }
0x1763   : > { %12913 = vpow2.f32 %v6656_v17 }
0x1764   : > { %12915 = vpow2.f32 %v6662_v42  ;;  %v6896_v42 = vpop.permute.xlu0 %6895 }
0x1765   : > { %12917 = vpow2.f32 %v6670_v31 }
0x1766   : > { %12919 = vpow2.f32 %v6658_v15 }
0x1767   : > { %12921 = vpow2.f32 %v6666_v54 }
0x1768   : > { %12923 = vpow2.f32 %v6664_v8 }
0x176b   : > { %v16900_v17 = vpop.eup %12909 }
0x176c   : > { %v16902_v9 = vpop.eup %12911 }
0x176d   : > { %v16907_v46 = vpop.eup %12913 }
0x176e   : > { %v16909_v55 = vpop.eup %12915 }
0x176f   : > { %v16914_v25 = vpop.eup %12917 }
0x1770   : > { %v16916_v11 = vpop.eup %12919 }
0x1771   : > { %v16920_v2 = vpop.eup %12921 }
0x1772   : > { %v16922_v60 = vpop.eup %12923 }
0x177e   : > { %6686 = vadd.xlane.f32.xlu0 %v16894_v3 }
0x1781   : > { %v6625_v0 = vpop.xlane.xlu1 %6624 }
0x1782   : > { %v6641_v20 = vsub.f32 %v16856_v5, %v6625_v0  ;;  %6682 = vadd.xlane.f32.xlu0 %v16900_v17 }
0x1783   : > { %6684 = vadd.xlane.f32.xlu1 %v16902_v9 }
0x1784   : > { %v6672_v13 = vmul.f32 1.442695, %v6641_v20 }
0x1785   : > { %v6621_v24 = vpop.xlane.xlu1 %6620 }
0x1786   : > { %12925 = vpow2.f32 %v6672_v13  ;;  %v6639_v47 = vsub.f32 %v16861_v7, %v6621_v24  ;;  %6688 = vadd.xlane.f32.xlu0 %v16907_v46  ;;  %v6932_v13 = vsel %vm19011_vm6, %v16746_v49, 0  ;;  %vm19018_vm6 = vmmov %vm19016_vm0 }
0x1787   : > { %6694 = vadd.xlane.f32.xlu1 %v16909_v55  ;;  %12927 = vpow2.f32 %v6660_v1 }
0x1788   : > { %v6668_v5 = vmul.f32 1.442695, %v6639_v47 }
0x178a   : > { %6702 = vadd.xlane.f32.xlu0 %v16914_v25  ;;  %12929 = vpow2.f32 %v6668_v5 }
0x178b   : > { %6690 = vadd.xlane.f32.xlu1 %v16916_v11 }
0x178e   : > { %6698 = vadd.xlane.f32.xlu0 %v16920_v2 }
0x178f   : > { %6696 = vadd.xlane.f32.xlu1 %v16922_v60 }
0x1790   : > { %v16926_v7 = vpop.eup %12925 }
0x1791   : > { %v16928_v61 = vpop.eup %12927 }
0x1792   : > { %6704 = vadd.xlane.f32.xlu0 %v16926_v7 }
0x1793   : > { %6692 = vadd.xlane.f32.xlu1 %v16928_v61 }
0x1794   : > { %v16932_v23 = vpop.eup %12929 }
0x1797   : > { %6700 = vadd.xlane.f32.xlu1 %v16932_v23 }
0x17a8   : > { %6905 = vrot.lane.b32.xlu1 %v16481_v39, %s13606_s19  ;;  %6903 = vrot.lane.b32.xlu0 %v16471_v33, %s13606_s19 }
0x17ac   : > { %6877 = vrot.lane.b32.xlu1 %v16403_v10, %s13606_s19  ;;  %6875 = vrot.lane.b32.xlu0 %v16391_v32, %s13606_s19 }
0x17b0   : > { %6881 = vrot.lane.b32.xlu1 %v16429_v27, %s13606_s19  ;;  %6879 = vrot.lane.b32.xlu0 %v16420_v37, %s13606_s19 }
0x17b4   : > { %6885 = vrot.lane.b32.xlu1 %v16453_v38, %s13606_s19  ;;  %6883 = vrot.lane.b32.xlu0 %v16445_v12, %s13606_s19 }
0x17b8   : > { %6889 = vrot.lane.b32.xlu1 %v16477_v16, %s13606_s19  ;;  %6887 = vrot.lane.b32.xlu0 %v16468_v45, %s13606_s19 }
0x17bc   : > { %7238 = vrot.lane.b32.xlu1 %v16405_v21, %s13606_s19  ;;  %7236 = vrot.lane.b32.xlu0 %v16409_v14, %s13606_s19 }
0x17c0   : > { %7242 = vrot.lane.b32.xlu1 %v16431_v41, %s13606_s19  ;;  %7240 = vrot.lane.b32.xlu0 %v16435_v29, %s13606_s19 }
0x17c4   : > { %7246 = vrot.lane.b32.xlu1 %v16455_v62, %s13606_s19  ;;  %7244 = vrot.lane.b32.xlu0 %v16459_v18, %s13606_s19 }
0x17c8   : > { %7250 = vrot.lane.b32.xlu1 %v16479_v19, %s13606_s19  ;;  %7248 = vrot.lane.b32.xlu0 %v16483_v43, %s13606_s19 }
0x17cc   : > { %7375 = vrot.lane.b32.xlu1 %v16407_v44, %s13608_s24  ;;  %7373 = vrot.lane.b32.xlu0 %v16393_v51, %s13608_s24 }
0x17d3   : > { %v6679_v50 = vpop.xlane.xlu1 %6678 }
0x17d6   : > { %v6677_v28 = vpop.xlane.xlu0 %6676 }
0x17d7   : > { %12931 = vrcp.f32 %v6677_v28  ;;  %v6675_v31 = vpop.xlane.xlu1 %6674 }
0x17d8   : > { %12933 = vrcp.f32 %v6675_v31 }
0x17d9   : > { %12935 = vrcp.f32 %v6679_v50 }
0x17da   : > { %v6900_v49 = vpop.permute.xlu0 %6899 }
0x17db   : > { %v6681_v6 = vpop.xlane.xlu1 %6680 }
0x17dc   : > { %12937 = vrcp.f32 %v6681_v6 }
0x17e1   : > { %v12932_v58 = vpop.eup %12931 }
0x17e2   : > { %v12934_v15 = vpop.eup %12933  ;;  %v6709_v54 = vmul.f32 %v12932_v58, %v16872_v36  ;;  %v6935_v36 = vsel %vm19013_vm11, %v16864_v59, 0  ;;  %vm19020_vm11 = vmmov %vm19016_vm0 }
0x17e3   : > { %v6707_v8 = vmul.f32 %v12934_v15, %v16874_v34  ;;  %v12936_v48 = vpop.eup %12935  ;;  %v6941_v34 = vsel %vm19017_vm15, %v16896_v53, 0  ;;  %vm19021_vm15 = vmmov %vm19016_vm0 }
0x17e4   : > { %v6711_v51 = vmul.f32 %v12936_v48, %v16869_v57  ;;  %v6938_v57 = vsel %vm19015_vm13, %v6896_v42, 0  ;;  %vm19022_vm13 = vmmov %vm19016_vm0 }
0x17e5   : > { %v6738_v44 = vpack.c.bf16 %v6709_v54, %v6707_v8 }
0x17e6   : > { %v12938_v0 = vpop.eup %12937 }
0x17e7   : > { %v6713_v20 = vmul.f32 %v12938_v0, %v16878_v63  ;;  %11568 = vmatprep.mubr.bf16.mxu1 %v6738_v44 }
0x17e9   : > { %v6739_v1 = vpack.c.bf16 %v6713_v20, %v6711_v51 }
0x17eb   : > { %11569 = vmatmul.mubr.bf16.vlgmr.msra.gmra.mrb[208].mxu1 %v6739_v1 }
0x17ec   : > { %11585 = vmatpush3.bf16.xpose.msra.mxu1 %v6932_v13 }
0x17ed   : > { %11793 = vmatprep.subr.msk.bf16.mxu1 %vm19012_vm12, %v16864_v59  ;;  %vm19019_vm12 = vmmov %vm19016_vm0  ;;  %v6902_v59 = vpop.permute.xlu1 %6901 }
0x17ee   : > { %v6944_v63 = vsel %vm19019_vm12, %v6900_v49, 0  ;;  %vm19025_vm12 = vmmov %vm19016_vm0 }
0x17f4   : > { %11587 = vmatpush3.bf16.xpose.msra.mxu1 %v6935_v36 }
0x17f5   : > { %11794 = vmatprep.subr.msk.bf16.mxu1 %vm19014_vm9, %v6896_v42  ;;  %v6947_v42 = vsel %vm19016_vm0, %v6902_v59, 0  ;;  %vm19023_vm9 = vmmov %vm19016_vm0 }
0x17fc   : > { %11589 = vmatpush3.bf16.xpose.msra.mxu1 %v6938_v57 }
0x17fd   : > { %11795 = vmatprep.subr.msk.bf16.mxu1 %vm19016_vm0, %v16896_v53 }
0x1804   : > { %11591 = vmatpush3.bf16.xpose.msra.mxu1 %v6941_v34 }
0x1805   : > { %11796 = vmatprep.subr.msk.bf16.mxu1 %vm19018_vm6, %v6900_v49  ;;  %vm19024_vm6 = vmmov %vm19016_vm0 }
0x180b   : > { %v6687_v24 = vpop.xlane.xlu0 %6686 }
0x180c   : > { %11593 = vmatpush3.bf16.xpose.msra.mxu1 %v6944_v63 }
0x180d   : > { %11797 = vmatprep.subr.msk.bf16.mxu1 %vm19020_vm11, %v6902_v59  ;;  %vm19026_vm11 = vmmov %vm19016_vm0 }
0x180f   : > { %v6683_v47 = vpop.xlane.xlu0 %6682 }
0x1810   : > { %12939 = vrcp.f32 %v6683_v47  ;;  %v6685_v5 = vpop.xlane.xlu1 %6684 }
0x1811   : > { %12941 = vrcp.f32 %v6685_v5 }
0x1812   : > { %12943 = vrcp.f32 %v6687_v24 }
0x1813   : > { %v6689_v50 = vpop.xlane.xlu0 %6688 }
0x1814   : > { %11595 = vmatpush3.bf16.xpose.msra.mxu1 %v6947_v42  ;;  %12945 = vrcp.f32 %v6689_v50  ;;  %v6695_v53 = vpop.xlane.xlu1 %6694 }
0x1817   : > { %v6703_v28 = vpop.xlane.xlu0 %6702 }
0x1818   : > { %v6691_v31 = vpop.xlane.xlu1 %6690 }
0x181a   : > { %v12940_v6 = vpop.eup %12939 }
0x181b   : > { %v12942_v58 = vpop.eup %12941  ;;  %v6699_v15 = vpop.xlane.xlu0 %6698  ;;  %v6715_v54 = vmul.f32 %v12940_v6, %v16900_v17 }
0x181c   : > { %v12944_v8 = vpop.eup %12943  ;;  %v6697_v48 = vpop.xlane.xlu1 %6696  ;;  %v6717_v44 = vmul.f32 %v12942_v58, %v16902_v9 }
0x181d   : > { %12947 = vrcp.f32 %v6697_v48  ;;  %v6719_v1 = vmul.f32 %v12944_v8, %v16894_v3 }
0x181e   : > { %v12946_v0 = vpop.eup %12945  ;;  %v6740_v51 = vpack.c.bf16 %v6717_v44, %v6715_v54  ;;  %12949 = vrcp.f32 %v6691_v31 }
0x181f   : > { %v6705_v20 = vpop.xlane.xlu0 %6704  ;;  %v6721_v13 = vmul.f32 %v12946_v0, %v16907_v46  ;;  %12951 = vrcp.f32 %v6695_v53 }
0x1820   : > { %v6693_v36 = vpop.xlane.xlu1 %6692  ;;  %11572 = vmatprep.mubr.bf16.mxu1 %v6740_v51 }
0x1821   : > { %12953 = vrcp.f32 %v6693_v36  ;;  %v6741_v57 = vpack.c.bf16 %v6721_v13, %v6719_v1 }
0x1822   : > { %12955 = vrcp.f32 %v6699_v15 }
0x1823   : > { %11573 = vmatmul.mubr.bf16.gmra.mrb[212].mxu1 %v6741_v57  ;;  %v6904_v17 = vpop.permute.xlu0 %6903 }
0x1824   : > { %v6701_v34 = vpop.xlane.xlu1 %6700  ;;  %11798 = vmatprep.subr.msk.bf16.mxu1 %vm19021_vm15, %v6904_v17  ;;  %v6950_v9 = vsel %vm19022_vm13, %v6904_v17, 0  ;;  %vm19027_vm15 = vmmov %vm19016_vm0 }
0x1825   : > { %12957 = vrcp.f32 %v6701_v34  ;;  %11597 = vmatpush3.bf16.xpose.msra.mxu1 %v6950_v9  ;;  %vm19028_vm13 = vmmov %vm19016_vm0 }
0x1826   : > { %12959 = vrcp.f32 %v6705_v20 }
0x1827   : > { %v6876_v49 = vpop.permute.xlu0 %6875  ;;  %v12948_v3 = vpop.eup %12947  ;;  %12961 = vrcp.f32 %v6703_v28 }
0x1828   : > { %v6906_v46 = vpop.permute.xlu1 %6905  ;;  %v12950_v63 = vpop.eup %12949  ;;  %v6729_v5 = vmul.f32 %v12948_v3, %v16922_v60 }
0x1829   : > { %11799 = vmatprep.subr.msk.bf16.mxu1 %vm19023_vm9, %v6906_v46  ;;  %v12952_v24 = vpop.eup %12951  ;;  %v6953_v50 = vsel %vm19024_vm6, %v6906_v46, 0  ;;  %v6723_v53 = vmul.f32 %v12950_v63, %v16916_v11  ;;  %vm19029_vm9 = vmmov %vm19016_vm0 }
0x182a   : > { %v6727_v28 = vmul.f32 %v12952_v24, %v16909_v55  ;;  %vm19030_vm6 = vmmov %vm19016_vm0 }
0x182b   : > { %v12954_v59 = vpop.eup %12953  ;;  %v6880_v47 = vpop.permute.xlu0 %6879 }
0x182c   : > { %v6878_v42 = vpop.permute.xlu1 %6877  ;;  %v6725_v31 = vmul.f32 %v12954_v59, %v16928_v61  ;;  %v12956_v6 = vpop.eup %12955  ;;  %v6743_v8 = vpack.c.bf16 %v6729_v5, %v6727_v28 }
0x182d   : > { %11599 = vmatpush3.bf16.xpose.msra.mxu1 %v6953_v50  ;;  %v6731_v60 = vmul.f32 %v12956_v6, %v16920_v2 }
0x182e   : > { %v6742_v58 = vpack.c.bf16 %v6725_v31, %v6723_v53 }
0x182f   : > { %v12958_v15 = vpop.eup %12957  ;;  %v6884_v54 = vpop.permute.xlu0 %6883 }
0x1830   : > { %v12960_v48 = vpop.eup %12959  ;;  %v6882_v44 = vpop.permute.xlu1 %6881  ;;  %11576 = vmatprep.mubr.bf16.mxu1 %v6742_v58  ;;  %v6733_v0 = vmul.f32 %v12958_v15, %v16932_v23 }
0x1831   : > { %11577 = vmatmul.mubr.bf16.gmra.mrb[216].mxu1 %v6743_v8  ;;  %v12962_v51 = vpop.eup %12961  ;;  %v6737_v61 = vmul.f32 %v12960_v48, %v16926_v7 }
0x1832   : > { %v6744_v11 = vpack.c.bf16 %v6733_v0, %v6731_v60  ;;  %v6735_v55 = vmul.f32 %v12962_v51, %v16914_v25 }
0x1833   : > { %v6888_v20 = vpop.permute.xlu0 %6887 }
0x1834   : > { %v6886_v1 = vpop.permute.xlu1 %6885  ;;  %11580 = vmatprep.mubr.bf16.mxu1 %v6744_v11  ;;  %v6745_v36 = vpack.c.bf16 %v6737_v61, %v6735_v55 }
0x1837   : > { %v7237_v13 = vpop.permute.xlu0 %7236 }
0x1838   : > { %v6890_v57 = vpop.permute.xlu1 %6889  ;;  %11616 = vmatprep.subr.bf16.mxu0 %v7237_v13 }
0x1839   : > { %11581 = vmatmul.mubr.bf16.gmra.mrb[220].mxu1 %v6745_v36  ;;  %11617 = vmatpush3.bf16.msra.mxu0 %v7237_v13 }
0x183a   : > { %11600 = vmatprep.mubr.msk.bf16.mxu1 %vm19025_vm12, %v6876_v49  ;;  %vm19031_vm12 = vmmov %vm19016_vm0 }
0x183b   : > { %v7241_v23 = vpop.permute.xlu0 %7240 }
0x183c   : > { %v7239_v2 = vpop.permute.xlu1 %7238 }
0x183d   : > { %11618 = vmatprep.subr.bf16.mxu0 %v7239_v2 }
0x183e   : > { %11619 = vmatpush3.bf16.msra.mxu0 %v7239_v2 }
0x183f   : > { %11620 = vmatprep.subr.bf16.mxu0 %v7241_v23  ;;  %v7245_v25 = vpop.permute.xlu0 %7244 }
0x1840   : > { %v7243_v7 = vpop.permute.xlu1 %7242 }
0x1841   : > { %11601 = vmatmul.mubr.msk.bf16.vlgmr.msra.gmra.mrb[224].mxu1 %vm19026_vm11, %v6878_v42  ;;  %vm19032_vm11 = vmmov %vm19016_vm0 }
0x1842   : > { %11604 = vmatprep.mubr.msk.bf16.mxu1 %vm19016_vm0, %v6880_v47  ;;  %11621 = vmatpush3.bf16.msra.mxu0 %v7241_v23  ;;  %v19050_v47 = vld [vmem:[#allocation78_spill] sm:$0xff] }
0x1843   : > { %11622 = vmatprep.subr.bf16.mxu0 %v7243_v7  ;;  %v7249_v34 = vpop.permute.xlu0 %7248  ;;  %vm19051_vm0 = vnez %v19050_v47 }
0x1844   : > { %v7247_v17 = vpop.permute.xlu1 %7246 }
0x1846   : > { %11623 = vmatpush3.bf16.msra.mxu0 %v7243_v7 }
0x1847   : > { %11624 = vmatprep.subr.bf16.mxu0 %v7245_v25  ;;  %v17018_v49 = vpop.permute.xlu0 %7373 }
0x1848   : > { %v7251_v9 = vpop.permute.xlu1 %7250 }
0x1849   : > { %11605 = vmatmul.mubr.msk.bf16.gmra.mrb[228].mxu1 %vm19027_vm15, %v6882_v44 }
0x184a   : > { %11608 = vmatprep.mubr.msk.bf16.mxu1 %vm19028_vm13, %v6884_v54  ;;  %11625 = vmatpush3.bf16.msra.mxu0 %v7245_v25 }
0x184b   : > { %11626 = vmatprep.subr.bf16.mxu0 %v7247_v17 }
0x184e   : > { %11627 = vmatpush3.bf16.msra.mxu0 %v7247_v17 }
0x184f   : > { %11628 = vmatprep.subr.bf16.mxu0 %v7249_v34 }
0x1851   : > { %11609 = vmatmul.mubr.msk.bf16.gmra.mrb[232].mxu1 %vm19029_vm9, %v6886_v1 }
0x1852   : > { %11612 = vmatprep.mubr.msk.bf16.mxu1 %vm19030_vm6, %v6888_v20  ;;  %11629 = vmatpush3.bf16.msra.mxu0 %v7249_v34 }
0x1853   : > { %11630 = vmatprep.subr.bf16.mxu0 %v7251_v9 }
0x1856   : > { %11631 = vmatpush3.bf16.msra.mxu0 %v7251_v9 }
0x1857   : > { %11800 = vmatprep.subr.msk.bf16.mxu0 %vm19031_vm12, %v17018_v49 }
0x1859   : > { %11613 = vmatmul.mubr.msk.bf16.gmra.mrb[236].mxu1 %vm19032_vm11, %v6890_v57 }
0x18be   : > { %v17023_v3 = vpop.f32.mrb[208].mxu1 }
0x18bf   : > { %19033 = vst [vmem:[#allocation33_spill] sm:$0xff] %v17023_v3  ;;  %v17025_v46 = vpop.f32.mrb[209].mxu1 }
0x18c0   : > { %19034 = vst [vmem:[#allocation32_spill] sm:$0xff] %v17025_v46  ;;  %v17027_v63 = vpop.f32.mrb[210].mxu1 }
0x18c1   : > { %19035 = vst [vmem:[#allocation34_spill] sm:$0xff] %v17027_v63  ;;  %v17031_v59 = vpop.f32.mrb[211].mxu1 }
0x18c2   : > { %19036 = vst [vmem:[#allocation35_spill] sm:$0xff] %v17031_v59 }
0x18f6   : > { %v17035_v5 = vpop.f32.mrb[212].mxu1 }
0x18f7   : > { %19037 = vst [vmem:[#allocation36_spill] sm:$0xff] %v17035_v5  ;;  %v17037_v42 = vpop.f32.mrb[213].mxu1 }
0x18f8   : > { %19038 = vst [vmem:[#allocation37_spill] sm:$0xff] %v17037_v42  ;;  %v17039_v50 = vpop.f32.mrb[214].mxu1  ;;  %v19064_v42 = vld [vmem:[#allocation85_spill] sm:$0xff] }
0x18f9   : > { %19039 = vst [vmem:[#allocation38_spill] sm:$0xff] %v17039_v50  ;;  %v17043_v31 = vpop.f32.mrb[215].mxu1  ;;  %vm19065_vm11 = vnez %v19064_v42 }
0x18fa   : > { %19040 = vst [vmem:[#allocation39_spill] sm:$0xff] %v17043_v31  ;;  %v17152_v31 = vpop.permute.xlu1 %7375 }
0x1904   : > { %v17047_v28 = vpop.f32.mrb[216].mxu1 }
0x1905   : > { %19041 = vst [vmem:[#allocation40_spill] sm:$0xff] %v17047_v28  ;;  %v17049_v58 = vpop.f32.mrb[217].mxu1 }
0x1906   : > { %19042 = vst [vmem:[#allocation41_spill] sm:$0xff] %v17049_v58  ;;  %v17051_v15 = vpop.f32.mrb[218].mxu1 }
0x1907   : > { %19043 = vst [vmem:[#allocation42_spill] sm:$0xff] %v17051_v15  ;;  %v17055_v8 = vpop.f32.mrb[219].mxu1  ;;  %v19062_v15 = vld [vmem:[#allocation84_spill] sm:$0xff] }
0x1908   : > { %19044 = vst [vmem:[#allocation43_spill] sm:$0xff] %v17055_v8  ;;  %vm19063_vm12 = vnez %v19062_v15 }
0x190c   : > { %v17059_v44 = vpop.f32.mrb[220].mxu1 }
0x190d   : > { %19045 = vst [vmem:[#allocation44_spill] sm:$0xff] %v17059_v44  ;;  %v17061_v60 = vpop.f32.mrb[221].mxu1  ;;  %v19054_v44 = vld [vmem:[#allocation80_spill] sm:$0xff] }
0x190e   : > { %19046 = vst [vmem:[#allocation45_spill] sm:$0xff] %v17061_v60  ;;  %v17063_v0 = vpop.f32.mrb[222].mxu1  ;;  %vm19055_vm13 = vnez %v19054_v44 }
0x190f   : > { %19047 = vst [vmem:[#allocation46_spill] sm:$0xff] %v17063_v0  ;;  %v17067_v11 = vpop.f32.mrb[223].mxu1  ;;  %v19056_v0 = vld [vmem:[#allocation82_spill] sm:$0xff] }
0x1910   : > { %19048 = vst [vmem:[#allocation70_spill] sm:$0xff] %v17067_v11  ;;  %vm19057_vm9 = vnez %v19056_v0 }
0x1914   : > { %v11602_v61 = vpop.f32.mrb[224].mxu1 }
0x1915   : > { %v7054_v1 = vmul.f32 0.088388346, %v11602_v61  ;;  %v6989_v55 = vpop.f32.mrb[225].mxu1 }
0x1916   : > { %v11603_v13 = vpop.f32.mrb[226].mxu1  ;;  %v7052_v36 = vmul.f32 0.088388346, %v6989_v55 }
0x1917   : > { %v6992_v57 = vpop.f32.mrb[227].mxu1  ;;  %v17073_v2 = vsel %vm14503_vm1, %v7054_v1, -inf  ;;  %v7055_v25 = vmul.f32 0.088388346, %v11603_v13 }
0x1918   : > { %v7053_v23 = vmul.f32 0.088388346, %v6992_v57  ;;  %7088 = vmax.xlane.f32.xlu0 %v17073_v2  ;;  %v17083_v17 = vsel %vm14520_vm3, %v7052_v36, -inf }
0x1919   : > { %v7071_v20 = vsel %vm14508_vm2, %v7055_v25, -inf }
0x191a   : > { %v17078_v7 = vsel %vm14531_vm4, %v7053_v23, -inf }
0x191b   : > { %7086 = vmax.xlane.f32.xlu1 %v17078_v7 }
0x191c   : > { %7084 = vmax.xlane.f32.xlu0 %v17083_v17  ;;  %v11606_v34 = vpop.f32.mrb[228].mxu1 }
0x191d   : > { %v7005_v9 = vpop.f32.mrb[229].mxu1  ;;  %v7058_v1 = vmul.f32 0.088388346, %v11606_v34 }
0x191e   : > { %v11607_v61 = vpop.f32.mrb[230].mxu1  ;;  %v7056_v36 = vmul.f32 0.088388346, %v7005_v9 }
0x191f   : > { %v7059_v55 = vmul.f32 0.088388346, %v11607_v61  ;;  %v7008_v57 = vpop.f32.mrb[231].mxu1  ;;  %v17095_v51 = vsel %vm14542_vm5, %v7058_v1, -inf }
0x1920   : > { %7090 = vmax.xlane.f32.xlu0 %v7071_v20  ;;  %v7057_v23 = vmul.f32 0.088388346, %v7008_v57  ;;  %v17105_v9 = vsel %vm14564_vm7, %v7056_v36, -inf  ;;  %v19052_v36 = vld [vmem:[#allocation81_spill] sm:$0xff] }
0x1921   : > { %v17090_v13 = vsel %vm18716_vm14, %v7059_v55, -inf  ;;  %vm19053_vm15 = vnez %v19052_v36 }
0x1922   : > { %7098 = vmax.xlane.f32.xlu1 %v17090_v13  ;;  %v17100_v25 = vsel %vm14575_vm8, %v7057_v23, -inf }
0x1924   : > { %7096 = vmax.xlane.f32.xlu0 %v17095_v51  ;;  %v11610_v34 = vpop.f32.mrb[232].mxu1 }
0x1925   : > { %v7021_v61 = vpop.f32.mrb[233].mxu1  ;;  %v7062_v55 = vmul.f32 0.088388346, %v11610_v34 }
0x1926   : > { %7094 = vmax.xlane.f32.xlu1 %v17100_v25  ;;  %v11611_v57 = vpop.f32.mrb[234].mxu1  ;;  %v7060_v23 = vmul.f32 0.088388346, %v7021_v61 }
0x1927   : > { %v7063_v48 = vmul.f32 0.088388346, %v11611_v57  ;;  %v7024_v54 = vpop.f32.mrb[235].mxu1  ;;  %v17115_v24 = vsel %vm19051_vm0, %v7062_v55, -inf }
0x1928   : > { %7092 = vmax.xlane.f32.xlu0 %v17105_v9  ;;  %v7061_v1 = vmul.f32 0.088388346, %v7024_v54  ;;  %v17125_v61 = vsel %vm19055_vm13, %v7060_v23, -inf  ;;  %v19061_v23 = vld [vmem:[#allocation48_spill] sm:$0xff] }
0x1929   : > { %v17110_v53 = vsel %vm18939_vm10, %v7063_v48, -inf }
0x192a   : > { %7106 = vmax.xlane.f32.xlu1 %v17110_v53  ;;  %v17120_v60 = vsel %vm19053_vm15, %v7061_v1, -inf  ;;  %v19058_v1 = vld [vmem:[#allocation83_spill] sm:$0xff] }
0x192b   : > { %vm19059_vm6 = vnez %v19058_v1 }
0x192c   : > { %7104 = vmax.xlane.f32.xlu0 %v17115_v24  ;;  %v11614_v34 = vpop.f32.mrb[236].mxu1 }
0x192d   : > { %v7037_v57 = vpop.f32.mrb[237].mxu1  ;;  %v7066_v48 = vmul.f32 0.088388346, %v11614_v34  ;;  %v19060_v34 = vld [vmem:[#allocation56_spill] sm:$0xff] }
0x192e   : > { %7102 = vmax.xlane.f32.xlu1 %v17120_v60  ;;  %v11615_v54 = vpop.f32.mrb[238].mxu1  ;;  %v7064_v55 = vmul.f32 0.088388346, %v7037_v57 }
0x192f   : > { %v7040_v11 = vpop.f32.mrb[239].mxu1  ;;  %v17130_v58 = vsel %vm19057_vm9, %v7066_v48, -inf  ;;  %v7067_v28 = vmul.f32 0.088388346, %v11615_v54 }
0x1930   : > { %7100 = vmax.xlane.f32.xlu0 %v17125_v61  ;;  %v17135_v8 = vsel %vm19059_vm6, %v7064_v55, -inf  ;;  %v7065_v57 = vmul.f32 0.088388346, %v7040_v11 }
0x1931   : > { %v17144_v48 = vsel %vm19063_vm12, %v7067_v28, -inf }
0x1932   : > { %v17149_v55 = vsel %vm19065_vm11, %v7065_v57, -inf  ;;  %vm19068_vm11 = vcmask 261120  }
0x1933   : > { %vm19069_vm12 = vmmov %vm19068_vm11 }
0x1934   : > { %7112 = vmax.xlane.f32.xlu0 %v17130_v58  ;;  %vm19070_vm6 = vmmov %vm19068_vm11 }
0x1935   : > { %vm19071_vm9 = vmmov %vm19070_vm6 }
0x1936   : > { %vm19072_vm13 = vmmov %vm19070_vm6 }
0x1937   : > { %vm19073_vm15 = vmmov %vm19070_vm6 }
0x1938   : > { %7108 = vmax.xlane.f32.xlu0 %v17135_v8  ;;  %vm19074_vm0 = vmmov %vm19070_vm6 }
0x193f   : > { %7379 = vrot.lane.b32.xlu1 %v19060_v34, %s13608_s24 }
0x194e   : > { %7377 = vrot.lane.b32.xlu0 %v19061_v23, %s13608_s24 }
0x1963   : > { %7114 = vmax.xlane.f32.xlu1 %v17144_v48 }
0x1967   : > { %7110 = vmax.xlane.f32.xlu1 %v17149_v55 }
0x19a5   : > { %v7089_v34 = vpop.xlane.xlu0 %7088 }
0x19a6   : > { %v7118_v5 = vsub.f32 %v17073_v2, %v7089_v34 }
0x19a8   : > { %v7136_v23 = vmul.f32 1.442695, %v7118_v5  ;;  %v7087_v54 = vpop.xlane.xlu1 %7086 }
0x19a9   : > { %v7117_v11 = vsub.f32 %v17078_v7, %v7087_v54  ;;  %v7085_v50 = vpop.xlane.xlu0 %7084 }
0x19aa   : > { %12963 = vpow2.f32 %v7136_v23  ;;  %v7116_v28 = vsub.f32 %v17083_v17, %v7085_v50 }
0x19ab   : > { %v7134_v46 = vmul.f32 1.442695, %v7117_v11 }
0x19ac   : > { %v7132_v59 = vmul.f32 1.442695, %v7116_v28 }
0x19ad   : > { %12965 = vpow2.f32 %v7134_v46  ;;  %v7091_v57 = vpop.xlane.xlu0 %7090 }
0x19ae   : > { %12967 = vpow2.f32 %v7132_v59  ;;  %v7119_v3 = vsub.f32 %v7071_v20, %v7091_v57 }
0x19af   : > { %v7099_v20 = vpop.xlane.xlu1 %7098 }
0x19b0   : > { %v7138_v63 = vmul.f32 1.442695, %v7119_v3  ;;  %v19066_v3 = vld [vmem:[#allocation57_spill] sm:$0xff]  ;;  %v7123_v42 = vsub.f32 %v17090_v13, %v7099_v20 }
0x19b1   : > { %v7097_v46 = vpop.xlane.xlu0 %7096 }
0x19b2   : > { %12969 = vpow2.f32 %v7138_v63  ;;  %v19067_v63 = vld [vmem:[#allocation60_spill] sm:$0xff]  ;;  %v7122_v17 = vsub.f32 %v17095_v51, %v7097_v46  ;;  %v7146_v18 = vmul.f32 1.442695, %v7123_v42 }
0x19b3   : > { %v7095_v34 = vpop.xlane.xlu1 %7094 }
0x19b4   : > { %v17157_v43 = vpop.eup %12963  ;;  %v7144_v54 = vmul.f32 1.442695, %v7122_v17  ;;  %v7121_v28 = vsub.f32 %v17100_v25, %v7095_v34 }
0x19b5   : > { %7168 = vadd.xlane.f32.xlu1 %v17157_v43  ;;  %v7093_v59 = vpop.xlane.xlu0 %7092 }
0x19b6   : > { %v7120_v11 = vsub.f32 %v17105_v9, %v7093_v59  ;;  %12971 = vpow2.f32 %v7144_v54  ;;  %v7142_v15 = vmul.f32 1.442695, %v7121_v28 }
0x19b7   : > { %v17160_v5 = vpop.eup %12965  ;;  %v7107_v57 = vpop.xlane.xlu1 %7106 }
0x19b8   : > { %v17162_v2 = vpop.eup %12967  ;;  %7166 = vadd.xlane.f32.xlu0 %v17160_v5  ;;  %v7127_v13 = vsub.f32 %v17110_v53, %v7107_v57 }
0x19b9   : > { %7164 = vadd.xlane.f32.xlu1 %v17162_v2  ;;  %v7105_v7 = vpop.xlane.xlu0 %7104 }
0x19ba   : > { %v7154_v42 = vmul.f32 1.442695, %v7127_v13 }
0x19bb   : > { %v7103_v62 = vpop.xlane.xlu1 %7102 }
0x19bc   : > { %v17166_v50 = vpop.eup %12969 }
0x19bd   : > { %7170 = vadd.xlane.f32.xlu1 %v17166_v50  ;;  %v7101_v23 = vpop.xlane.xlu0 %7100 }
0x19be   : > { %v7124_v9 = vsub.f32 %v17125_v61, %v7101_v23 }
0x19c0   : > { %v7148_v20 = vmul.f32 1.442695, %v7124_v9  ;;  %v17182_v34 = vpop.eup %12971  ;;  %v7414_v9 = vsel %vm19068_vm11, %v17018_v49, 0  ;;  %vm19075_vm11 = vmmov %vm19074_vm0 }
0x19c1   : > { %v7113_v19 = vpop.xlane.xlu0 %7112 }
0x19c2   : > { %v7130_v51 = vsub.f32 %v17130_v58, %v7113_v19  ;;  %v7125_v58 = vsub.f32 %v17120_v60, %v7103_v62 }
0x19c4   : > { %v7160_v25 = vmul.f32 1.442695, %v7130_v51  ;;  %v7150_v61 = vmul.f32 1.442695, %v7125_v58 }
0x19c5   : > { %v7109_v59 = vpop.xlane.xlu0 %7108 }
0x19c6   : > { %v7128_v17 = vsub.f32 %v17135_v8, %v7109_v59 }
0x19c8   : > { %v7156_v19 = vmul.f32 1.442695, %v7128_v17 }
0x19ce   : > { %7381 = vrot.lane.b32.xlu0 %v19066_v3, %s13608_s24  ;;  %7383 = vrot.lane.b32.xlu1 %v19067_v63, %s13608_s24  ;;  %v7140_v3 = vmul.f32 1.442695, %v7120_v11  ;;  %v7126_v63 = vsub.f32 %v17115_v24, %v7105_v7  ;;  %v17184_v24 = vpop.permute.xlu1 %7379 }
0x19d0   : > { %12973 = vpow2.f32 %v7140_v3  ;;  %v7152_v46 = vmul.f32 1.442695, %v7126_v63 }
0x19d1   : > { %12975 = vpow2.f32 %v7142_v15 }
0x19d2   : > { %12977 = vpow2.f32 %v7146_v18 }
0x19d3   : > { %12979 = vpow2.f32 %v7152_v46 }
0x19d4   : > { %12981 = vpow2.f32 %v7160_v25 }
0x19d5   : > { %12983 = vpow2.f32 %v7148_v20 }
0x19d6   : > { %12985 = vpow2.f32 %v7156_v19 }
0x19d7   : > { %12987 = vpow2.f32 %v7154_v42 }
0x19da   : > { %v17188_v18 = vpop.eup %12973 }
0x19db   : > { %v17190_v8 = vpop.eup %12975 }
0x19dc   : > { %v17195_v23 = vpop.eup %12977 }
0x19dd   : > { %v17197_v62 = vpop.eup %12979 }
0x19de   : > { %v17202_v11 = vpop.eup %12981 }
0x19df   : > { %v17204_v28 = vpop.eup %12983 }
0x19e0   : > { %v17208_v57 = vpop.eup %12985 }
0x19e1   : > { %v17210_v3 = vpop.eup %12987 }
0x19ed   : > { %7176 = vadd.xlane.f32.xlu0 %v17182_v34 }
0x19f0   : > { %v7115_v15 = vpop.xlane.xlu1 %7114 }
0x19f1   : > { %v7131_v53 = vsub.f32 %v17144_v48, %v7115_v15  ;;  %7172 = vadd.xlane.f32.xlu0 %v17188_v18 }
0x19f2   : > { %7174 = vadd.xlane.f32.xlu1 %v17190_v8 }
0x19f3   : > { %v7162_v7 = vmul.f32 1.442695, %v7131_v53 }
0x19f4   : > { %v7111_v54 = vpop.xlane.xlu1 %7110 }
0x19f5   : > { %12989 = vpow2.f32 %v7162_v7  ;;  %v7129_v60 = vsub.f32 %v17149_v55, %v7111_v54  ;;  %7178 = vadd.xlane.f32.xlu0 %v17195_v23 }
0x19f6   : > { %7184 = vadd.xlane.f32.xlu1 %v17197_v62  ;;  %12991 = vpow2.f32 %v7150_v61 }
0x19f7   : > { %v7158_v48 = vmul.f32 1.442695, %v7129_v60 }
0x19f9   : > { %7192 = vadd.xlane.f32.xlu0 %v17202_v11  ;;  %12993 = vpow2.f32 %v7158_v48 }
0x19fa   : > { %7180 = vadd.xlane.f32.xlu1 %v17204_v28 }
0x19fd   : > { %7188 = vadd.xlane.f32.xlu0 %v17208_v57 }
0x19fe   : > { %7186 = vadd.xlane.f32.xlu1 %v17210_v3 }
0x19ff   : > { %v17214_v55 = vpop.eup %12989 }
0x1a00   : > { %v17216_v63 = vpop.eup %12991 }
0x1a01   : > { %7194 = vadd.xlane.f32.xlu0 %v17214_v55 }
0x1a02   : > { %7182 = vadd.xlane.f32.xlu1 %v17216_v63 }
0x1a03   : > { %v17220_v51 = vpop.eup %12993 }
0x1a06   : > { %7190 = vadd.xlane.f32.xlu1 %v17220_v51 }
0x1a17   : > { %7387 = vrot.lane.b32.xlu1 %v16481_v39, %s13608_s24  ;;  %7385 = vrot.lane.b32.xlu0 %v16471_v33, %s13608_s24 }
0x1a1b   : > { %7359 = vrot.lane.b32.xlu1 %v16403_v10, %s13608_s24  ;;  %7357 = vrot.lane.b32.xlu0 %v16391_v32, %s13608_s24  ;;  %v7378_v32 = vpop.permute.xlu0 %7377 }
0x1a1f   : > { %7363 = vrot.lane.b32.xlu1 %v16429_v27, %s13608_s24  ;;  %7361 = vrot.lane.b32.xlu0 %v16420_v37, %s13608_s24 }
0x1a23   : > { %7367 = vrot.lane.b32.xlu1 %v16453_v38, %s13608_s24  ;;  %7365 = vrot.lane.b32.xlu0 %v16445_v12, %s13608_s24 }
0x1a27   : > { %7371 = vrot.lane.b32.xlu1 %v16477_v16, %s13608_s24  ;;  %7369 = vrot.lane.b32.xlu0 %v16468_v45, %s13608_s24 }
0x1a2b   : > { %7720 = vrot.lane.b32.xlu1 %v16405_v21, %s13608_s24  ;;  %7718 = vrot.lane.b32.xlu0 %v16409_v14, %s13608_s24 }
0x1a2f   : > { %7722 = vrot.lane.b32.xlu0 %v16435_v29, %s13608_s24 }
0x1a33   : > { %7724 = vrot.lane.b32.xlu0 %v16431_v41, %s13608_s24 }
0x1a42   : > { %v7169_v10 = vpop.xlane.xlu1 %7168 }
0x1a45   : > { %v7167_v37 = vpop.xlane.xlu0 %7166 }
0x1a46   : > { %12995 = vrcp.f32 %v7167_v37  ;;  %v7165_v27 = vpop.xlane.xlu1 %7164 }
0x1a47   : > { %12997 = vrcp.f32 %v7165_v27 }
0x1a48   : > { %12999 = vrcp.f32 %v7169_v10 }
0x1a49   : > { %v7382_v49 = vpop.permute.xlu0 %7381 }
0x1a4a   : > { %v7171_v12 = vpop.xlane.xlu1 %7170 }
0x1a4b   : > { %13001 = vrcp.f32 %v7171_v12 }
0x1a50   : > { %v12996_v38 = vpop.eup %12995 }
0x1a51   : > { %v12998_v21 = vpop.eup %12997  ;;  %v7199_v45 = vmul.f32 %v12996_v38, %v17160_v5  ;;  %v7417_v5 = vsel %vm19070_vm6, %v17152_v31, 0  ;;  %vm19077_vm6 = vmmov %vm19074_vm0 }
0x1a52   : > { %v7197_v14 = vmul.f32 %v12998_v21, %v17162_v2  ;;  %v13000_v33 = vpop.eup %12999  ;;  %v7423_v2 = vsel %vm19074_vm0, %v17184_v24, 0 }
0x1a53   : > { %v7201_v41 = vmul.f32 %v13000_v33, %v17157_v43  ;;  %v7420_v43 = vsel %vm19072_vm13, %v7378_v32, 0  ;;  %vm19079_vm13 = vmmov %vm19074_vm0 }
0x1a54   : > { %v7228_v29 = vpack.c.bf16 %v7199_v45, %v7197_v14 }
0x1a55   : > { %v13002_v16 = vpop.eup %13001 }
0x1a56   : > { %v7203_v39 = vmul.f32 %v13002_v16, %v17166_v50  ;;  %11632 = vmatprep.mubr.bf16.mxu0 %v7228_v29 }
0x1a58   : > { %v7229_v46 = vpack.c.bf16 %v7203_v39, %v7201_v41 }
0x1a5a   : > { %11633 = vmatmul.mubr.bf16.vlgmr.msra.gmra.mrb[208].mxu0 %v7229_v46 }
0x1a5b   : > { %11649 = vmatpush3.bf16.xpose.msra.mxu0 %v7414_v9 }
0x1a5c   : > { %11801 = vmatprep.subr.msk.bf16.mxu0 %vm19069_vm12, %v17152_v31  ;;  %vm19076_vm12 = vmmov %vm19074_vm0  ;;  %v7384_v31 = vpop.permute.xlu1 %7383 }
0x1a5d   : > { %v7426_v50 = vsel %vm19076_vm12, %v7382_v49, 0  ;;  %vm19082_vm12 = vmmov %vm19074_vm0 }
0x1a63   : > { %11651 = vmatpush3.bf16.xpose.msra.mxu0 %v7417_v5 }
0x1a64   : > { %11802 = vmatprep.subr.msk.bf16.mxu0 %vm19071_vm9, %v7378_v32  ;;  %vm19080_vm9 = vmmov %vm19074_vm0 }
0x1a6b   : > { %11653 = vmatpush3.bf16.xpose.msra.mxu0 %v7420_v43 }
0x1a6c   : > { %11803 = vmatprep.subr.msk.bf16.mxu0 %vm19073_vm15, %v17184_v24  ;;  %vm19078_vm15 = vmmov %vm19074_vm0 }
0x1a6d   : > { %v7429_v13 = vsel %vm19078_vm15, %v7384_v31, 0  ;;  %vm19084_vm15 = vmmov %vm19074_vm0 }
0x1a73   : > { %11655 = vmatpush3.bf16.xpose.msra.mxu0 %v7423_v2 }
0x1a74   : > { %11804 = vmatprep.subr.msk.bf16.mxu0 %vm19075_vm11, %v7382_v49  ;;  %vm19081_vm11 = vmmov %vm19074_vm0 }
0x1a7a   : > { %v7177_v59 = vpop.xlane.xlu0 %7176 }
0x1a7b   : > { %11657 = vmatpush3.bf16.xpose.msra.mxu0 %v7426_v50 }
0x1a7c   : > { %11805 = vmatprep.subr.msk.bf16.mxu0 %vm19077_vm6, %v7384_v31  ;;  %vm19083_vm6 = vmmov %vm19074_vm0 }
0x1a7e   : > { %v7173_v25 = vpop.xlane.xlu0 %7172 }
0x1a7f   : > { %13003 = vrcp.f32 %v7173_v25  ;;  %v7175_v17 = vpop.xlane.xlu1 %7174 }
0x1a80   : > { %13005 = vrcp.f32 %v7175_v17 }
0x1a81   : > { %13007 = vrcp.f32 %v7177_v59 }
0x1a82   : > { %v7179_v20 = vpop.xlane.xlu0 %7178 }
0x1a83   : > { %11659 = vmatpush3.bf16.xpose.msra.mxu0 %v7429_v13  ;;  %13009 = vrcp.f32 %v7179_v20  ;;  %v7185_v24 = vpop.xlane.xlu1 %7184 }
0x1a86   : > { %v7193_v19 = vpop.xlane.xlu0 %7192 }
0x1a87   : > { %v7181_v42 = vpop.xlane.xlu1 %7180 }
0x1a89   : > { %v13004_v58 = vpop.eup %13003 }
0x1a8a   : > { %v13006_v15 = vpop.eup %13005  ;;  %v7189_v53 = vpop.xlane.xlu0 %7188  ;;  %v7205_v61 = vmul.f32 %v13004_v58, %v17188_v18 }
0x1a8b   : > { %v13008_v7 = vpop.eup %13007  ;;  %v7187_v54 = vpop.xlane.xlu1 %7186  ;;  %v7207_v60 = vmul.f32 %v13006_v15, %v17190_v8 }
0x1a8c   : > { %13011 = vrcp.f32 %v7187_v54  ;;  %v7209_v37 = vmul.f32 %v13008_v7, %v17182_v34 }
0x1a8d   : > { %v13010_v48 = vpop.eup %13009  ;;  %v7230_v32 = vpack.c.bf16 %v7207_v60, %v7205_v61  ;;  %13013 = vrcp.f32 %v7181_v42 }
0x1a8e   : > { %v7195_v10 = vpop.xlane.xlu0 %7194  ;;  %v7211_v27 = vmul.f32 %v13010_v48, %v17195_v23  ;;  %13015 = vrcp.f32 %v7185_v24 }
0x1a8f   : > { %v7183_v12 = vpop.xlane.xlu1 %7182  ;;  %11636 = vmatprep.mubr.bf16.mxu0 %v7230_v32 }
0x1a90   : > { %13017 = vrcp.f32 %v7183_v12  ;;  %v7231_v38 = vpack.c.bf16 %v7211_v27, %v7209_v37 }
0x1a91   : > { %13019 = vrcp.f32 %v7189_v53 }
0x1a92   : > { %11637 = vmatmul.mubr.bf16.gmra.mrb[212].mxu0 %v7231_v38  ;;  %v7386_v18 = vpop.permute.xlu0 %7385 }
0x1a93   : > { %v7191_v21 = vpop.xlane.xlu1 %7190  ;;  %11806 = vmatprep.subr.msk.bf16.mxu0 %vm19074_vm0, %v7386_v18  ;;  %v7432_v8 = vsel %vm19079_vm13, %v7386_v18, 0  ;;  %vm19085_vm13 = vmmov %vm19074_vm0 }
0x1a94   : > { %13021 = vrcp.f32 %v7191_v21  ;;  %11661 = vmatpush3.bf16.xpose.msra.mxu0 %v7432_v8 }
0x1a95   : > { %13023 = vrcp.f32 %v7195_v10 }
0x1a96   : > { %v7358_v45 = vpop.permute.xlu0 %7357  ;;  %v13012_v34 = vpop.eup %13011  ;;  %13025 = vrcp.f32 %v7193_v19 }
0x1a97   : > { %v7388_v23 = vpop.permute.xlu1 %7387  ;;  %v13014_v14 = vpop.eup %13013  ;;  %v7219_v41 = vmul.f32 %v13012_v34, %v17210_v3 }
0x1a98   : > { %11807 = vmatprep.subr.msk.bf16.mxu0 %vm19080_vm9, %v7388_v23  ;;  %v13016_v33 = vpop.eup %13015  ;;  %v7435_v46 = vsel %vm19081_vm11, %v7388_v23, 0  ;;  %v7213_v9 = vmul.f32 %v13014_v14, %v17204_v28  ;;  %vm19086_vm9 = vmmov %vm19074_vm0 }
0x1a99   : > { %v7217_v2 = vmul.f32 %v13016_v33, %v17197_v62  ;;  %vm19087_vm11 = vmmov %vm19074_vm0 }
0x1a9a   : > { %v13018_v29 = vpop.eup %13017  ;;  %v7362_v16 = vpop.permute.xlu0 %7361 }
0x1a9b   : > { %v7360_v39 = vpop.permute.xlu1 %7359  ;;  %v7215_v5 = vmul.f32 %v13018_v29, %v17216_v63  ;;  %v13020_v43 = vpop.eup %13019  ;;  %v7233_v31 = vpack.c.bf16 %v7219_v41, %v7217_v2 }
0x1a9c   : > { %11663 = vmatpush3.bf16.xpose.msra.mxu0 %v7435_v46  ;;  %v7221_v3 = vmul.f32 %v13020_v43, %v17208_v57 }
0x1a9d   : > { %v7232_v49 = vpack.c.bf16 %v7215_v5, %v7213_v9 }
0x1a9e   : > { %v13022_v50 = vpop.eup %13021  ;;  %v7366_v59 = vpop.permute.xlu0 %7365 }
0x1a9f   : > { %v13024_v25 = vpop.eup %13023  ;;  %v7364_v17 = vpop.permute.xlu1 %7363  ;;  %11640 = vmatprep.mubr.bf16.mxu0 %v7232_v49  ;;  %v7223_v13 = vmul.f32 %v13022_v50, %v17220_v51 }
0x1aa0   : > { %11641 = vmatmul.mubr.bf16.gmra.mrb[216].mxu0 %v7233_v31  ;;  %v13026_v20 = vpop.eup %13025  ;;  %v7227_v63 = vmul.f32 %v13024_v25, %v17214_v55 }
0x1aa1   : > { %v7234_v28 = vpack.c.bf16 %v7223_v13, %v7221_v3  ;;  %v7225_v62 = vmul.f32 %v13026_v20, %v17202_v11  ;;  %v19089_v11 = vmov 0  }
0x1aa2   : > { %v7370_v24 = vpop.permute.xlu0 %7369 }
0x1aa3   : > { %v7368_v19 = vpop.permute.xlu1 %7367  ;;  %11644 = vmatprep.mubr.bf16.mxu0 %v7234_v28  ;;  %v7235_v58 = vpack.c.bf16 %v7227_v63, %v7225_v62 }
0x1aa6   : > { %v7719_v42 = vpop.permute.xlu0 %7718 }
0x1aa7   : > { %v7372_v15 = vpop.permute.xlu1 %7371  ;;  %11680 = vmatprep.subr.bf16.mxu1 %v7719_v42 }
0x1aa8   : > { %11645 = vmatmul.mubr.bf16.gmra.mrb[220].mxu0 %v7235_v58  ;;  %11681 = vmatpush3.bf16.msra.mxu1 %v7719_v42 }
0x1aa9   : > { %11664 = vmatprep.mubr.msk.bf16.mxu0 %vm19082_vm12, %v7358_v45  ;;  %vm19088_vm12 = vmmov %vm19074_vm0 }
0x1aaa   : > { %v7723_v57 = vpop.permute.xlu0 %7722 }
0x1aab   : > { %v7721_v51 = vpop.permute.xlu1 %7720 }
0x1aac   : > { %11682 = vmatprep.subr.bf16.mxu1 %v7721_v51 }
0x1aad   : > { %11683 = vmatpush3.bf16.msra.mxu1 %v7721_v51 }
0x1aae   : > { %11684 = vmatprep.subr.bf16.mxu1 %v7723_v57  ;;  %v7725_v55 = vpop.permute.xlu0 %7724 }
0x1ab0   : > { %11665 = vmatmul.mubr.msk.bf16.vlgmr.msra.gmra.mrb[224].mxu0 %vm19083_vm6, %v7360_v39  ;;  %vm19132_vm6 = vmmov %vm19074_vm0 }
0x1ab1   : > { %11668 = vmatprep.mubr.msk.bf16.mxu0 %vm19084_vm15, %v7362_v16  ;;  %11685 = vmatpush3.bf16.msra.mxu1 %v7723_v57  ;;  %vm19134_vm15 = vmmov %vm19074_vm0 }
0x1ab2   : > { %11686 = vmatprep.subr.bf16.mxu1 %v7725_v55 }
0x1ab5   : > { %11687 = vmatpush3.bf16.msra.mxu1 %v7725_v55 }
0x1ab8   : > { %11669 = vmatmul.mubr.msk.bf16.gmra.mrb[228].mxu0 %vm19074_vm0, %v7364_v17 }
0x1ab9   : > { %11672 = vmatprep.mubr.msk.bf16.mxu0 %vm19085_vm13, %v7366_v59 }
0x1ac0   : > { %11673 = vmatmul.mubr.msk.bf16.gmra.mrb[232].mxu0 %vm19086_vm9, %v7368_v19 }
0x1ac1   : > { %11676 = vmatprep.mubr.msk.bf16.mxu0 %vm19087_vm11, %v7370_v24 }
0x1ac8   : > { %11677 = vmatmul.mubr.msk.bf16.gmra.mrb[236].mxu0 %vm19088_vm12, %v7372_v15  ;;  %vm19139_vm12 = vcmask 785408  }
0x1ac9   : > { %8747 = vmatprep.mubr.bf16.mxu0 %v19089_v11 }
0x1b2d   : > { %v17296_v53 = vpop.f32.mrb[208].mxu0 }
0x1b2e   : > { %v17298_v61 = vpop.f32.mrb[209].mxu0 }
0x1b2f   : > { %v17300_v7 = vpop.f32.mrb[210].mxu0 }
0x1b30   : > { %v12114_v54 = vpack.i.bf16 %v17300_v7, %v17296_v53  ;;  %v17304_v60 = vpop.f32.mrb[211].mxu0 }
0x1b31   : > { %v12109_v48 = vpack.i.bf16 %v17304_v60, %v17298_v61 }
0x1b65   : > { %v17308_v32 = vpop.f32.mrb[212].mxu0 }
0x1b66   : > { %v17310_v10 = vpop.f32.mrb[213].mxu0 }
0x1b67   : > { %v17312_v37 = vpop.f32.mrb[214].mxu0 }
0x1b68   : > { %v12144_v27 = vpack.i.bf16 %v17312_v37, %v17308_v32  ;;  %v17316_v12 = vpop.f32.mrb[215].mxu0 }
0x1b69   : > { %v12139_v38 = vpack.i.bf16 %v17316_v12, %v17310_v10 }
0x1b73   : > { %v17320_v18 = vpop.f32.mrb[216].mxu0 }
0x1b74   : > { %v17322_v21 = vpop.f32.mrb[217].mxu0 }
0x1b75   : > { %v17324_v8 = vpop.f32.mrb[218].mxu0 }
0x1b76   : > { %v12174_v45 = vpack.i.bf16 %v17324_v8, %v17320_v18  ;;  %v17328_v34 = vpop.f32.mrb[219].mxu0  ;;  %v19122_v18 = vld [vmem:[#allocation44_spill] sm:$0xff] }
0x1b77   : > { %v12169_v23 = vpack.i.bf16 %v17328_v34, %v17322_v21  ;;  %v19124_v21 = vld [vmem:[#allocation70_spill] sm:$0xff]  ;;  %v19125_v34 = vld [vmem:[#allocation45_spill] sm:$0xff] }
0x1b7b   : > { %v17332_v14 = vpop.f32.mrb[220].mxu0 }
0x1b7c   : > { %v17334_v33 = vpop.f32.mrb[221].mxu0 }
0x1b7d   : > { %v17336_v29 = vpop.f32.mrb[222].mxu0 }
0x1b7e   : > { %v12204_v16 = vpack.i.bf16 %v17336_v29, %v17332_v14  ;;  %v17340_v41 = vpop.f32.mrb[223].mxu0 }
0x1b7f   : > { %v12199_v39 = vpack.i.bf16 %v17340_v41, %v17334_v33  ;;  %v19129_v41 = vld [vmem:[#allocation88_spill] sm:$0xff] }
0x1b83   : > { %v11666_v46 = vpop.f32.mrb[224].mxu0 }
0x1b84   : > { %v7536_v9 = vmul.f32 0.088388346, %v11666_v46  ;;  %v7471_v5 = vpop.f32.mrb[225].mxu0 }
0x1b85   : > { %v11667_v43 = vpop.f32.mrb[226].mxu0  ;;  %v7534_v2 = vmul.f32 0.088388346, %v7471_v5 }
0x1b86   : > { %v7474_v49 = vpop.f32.mrb[227].mxu0  ;;  %v7552_v50 = vsel %vm14503_vm1, %v7536_v9, -inf  ;;  %v7537_v25 = vmul.f32 0.088388346, %v11667_v43  ;;  %vm19090_vm1 = vnez %v19050_v47 }
0x1b87   : > { %v7535_v59 = vmul.f32 0.088388346, %v7474_v49  ;;  %7570 = vmax.xlane.f32.xlu0 %v7552_v50  ;;  %v7550_v17 = vsel %vm14520_vm3, %v7534_v2, -inf  ;;  %vm19092_vm3 = vnez %v19054_v44  ;;  %v19096_v44 = vld [vmem:[#allocation62_spill] sm:$0xff] }
0x1b88   : > { %v7553_v63 = vsel %vm14508_vm2, %v7537_v25, -inf  ;;  %vm19091_vm2 = vnez %v19052_v36 }
0x1b89   : > { %v17348_v31 = vsel %vm14531_vm4, %v7535_v59, -inf  ;;  %vm19093_vm4 = vnez %v19056_v0 }
0x1b8a   : > { %7568 = vmax.xlane.f32.xlu1 %v17348_v31 }
0x1b8b   : > { %7566 = vmax.xlane.f32.xlu0 %v7550_v17  ;;  %v11670_v3 = vpop.f32.mrb[228].mxu0 }
0x1b8c   : > { %v7487_v13 = vpop.f32.mrb[229].mxu0  ;;  %v7540_v28 = vmul.f32 0.088388346, %v11670_v3  ;;  %v19095_v3 = vld [vmem:[#allocation59_spill] sm:$0xff] }
0x1b8d   : > { %v11671_v20 = vpop.f32.mrb[230].mxu0  ;;  %v7538_v35 = vmul.f32 0.088388346, %v7487_v13 }
0x1b8e   : > { %v7541_v24 = vmul.f32 0.088388346, %v11671_v20  ;;  %v7490_v56 = vpop.f32.mrb[231].mxu0  ;;  %v7556_v62 = vsel %vm14542_vm5, %v7540_v28, -inf  ;;  %vm19094_vm5 = vnez %v19058_v1  ;;  %v19097_v28 = vld [vmem:[#allocation84_spill] sm:$0xff] }
0x1b8f   : > { %7572 = vmax.xlane.f32.xlu0 %v7553_v63  ;;  %v7539_v52 = vmul.f32 0.088388346, %v7490_v56  ;;  %v7554_v55 = vsel %vm14564_vm7, %v7538_v35, -inf  ;;  %vm19098_vm7 = vnez %v19097_v28 }
0x1b90   : > { %v17357_v19 = vsel %vm18716_vm14, %v7541_v24, -inf  ;;  %v19099_v24 = vld [vmem:[#allocation85_spill] sm:$0xff]  ;;  %vm19128_vm14 = vmmov %vm19074_vm0 }
0x1b91   : > { %7580 = vmax.xlane.f32.xlu1 %v17357_v19  ;;  %v17364_v15 = vsel %vm14575_vm8, %v7539_v52, -inf  ;;  %vm19100_vm8 = vnez %v19099_v24 }
0x1b93   : > { %7578 = vmax.xlane.f32.xlu0 %v7556_v62  ;;  %v11674_v42 = vpop.f32.mrb[232].mxu0 }
0x1b94   : > { %v7503_v58 = vpop.f32.mrb[233].mxu0  ;;  %v7544_v57 = vmul.f32 0.088388346, %v11674_v42 }
0x1b95   : > { %7576 = vmax.xlane.f32.xlu1 %v17364_v15  ;;  %v11675_v26 = vpop.f32.mrb[234].mxu0  ;;  %v7542_v4 = vmul.f32 0.088388346, %v7503_v58 }
0x1b96   : > { %v7545_v40 = vmul.f32 0.088388346, %v11675_v26  ;;  %v7506_v51 = vpop.f32.mrb[235].mxu0  ;;  %v17376_v9 = vsel %vm19090_vm1, %v7544_v57, -inf  ;;  %vm19140_vm1 = vmmov %vm19139_vm12 }
0x1b97   : > { %7574 = vmax.xlane.f32.xlu0 %v7554_v55  ;;  %v7543_v46 = vmul.f32 0.088388346, %v7506_v51  ;;  %v17386_v59 = vsel %vm19092_vm3, %v7542_v4, -inf  ;;  %vm19142_vm3 = vmmov %vm19140_vm1 }
0x1b98   : > { %v17371_v30 = vsel %vm18939_vm10, %v7545_v40, -inf  ;;  %vm19130_vm10 = vmmov %vm19074_vm0  ;;  %vm19135_vm0 = vcmask 523264  }
0x1b99   : > { %7588 = vmax.xlane.f32.xlu1 %v17371_v30  ;;  %v17381_v22 = vsel %vm19091_vm2, %v7543_v46, -inf  ;;  %vm19136_vm13 = vmmov %vm19135_vm0 }
0x1b9a   : > { %vm19137_vm9 = vmmov %vm19135_vm0 }
0x1b9b   : > { %7586 = vmax.xlane.f32.xlu0 %v17376_v9  ;;  %v11678_v5 = vpop.f32.mrb[236].mxu0  ;;  %vm19138_vm11 = vmmov %vm19135_vm0 }
0x1b9c   : > { %v7519_v43 = vpop.f32.mrb[237].mxu0  ;;  %v7548_v2 = vmul.f32 0.088388346, %v11678_v5  ;;  %vm19141_vm2 = vmmov %vm19140_vm1 }
0x1b9d   : > { %7584 = vmax.xlane.f32.xlu1 %v17381_v22  ;;  %v11679_v6 = vpop.f32.mrb[238].mxu0  ;;  %v7546_v47 = vmul.f32 0.088388346, %v7519_v43 }
0x1b9e   : > { %v7522_v49 = vpop.f32.mrb[239].mxu0  ;;  %v17391_v25 = vsel %vm19093_vm4, %v7548_v2, -inf  ;;  %v7549_v13 = vmul.f32 0.088388346, %v11679_v6  ;;  %vm19144_vm4 = vmmov %vm19132_vm6 }
0x1b9f   : > { %7582 = vmax.xlane.f32.xlu0 %v17386_v59  ;;  %v17396_v36 = vsel %vm19094_vm5, %v7546_v47, -inf  ;;  %v7547_v20 = vmul.f32 0.088388346, %v7522_v49  ;;  %vm19146_vm5 = vmmov %vm19144_vm4 }
0x1ba0   : > { %v17405_v0 = vsel %vm19098_vm7, %v7549_v13, -inf  ;;  %vm19148_vm7 = vmmov %vm19144_vm4 }
0x1ba1   : > { %v17410_v1 = vsel %vm19100_vm8, %v7547_v20, -inf  ;;  %vm19150_vm8 = vmmov %vm19144_vm4 }
0x1ba3   : > { %7594 = vmax.xlane.f32.xlu0 %v17391_v25 }
0x1ba7   : > { %7590 = vmax.xlane.f32.xlu0 %v17396_v36 }
0x1bae   : > { %7728 = vrot.lane.b32.xlu1 %v19095_v3, %s13608_s24 }
0x1bbd   : > { %7726 = vrot.lane.b32.xlu0 %v19096_v44, %s13608_s24 }
0x1bd2   : > { %7596 = vmax.xlane.f32.xlu1 %v17405_v0 }
0x1bd6   : > { %7592 = vmax.xlane.f32.xlu1 %v17410_v1 }
0x1c14   : > { %v7571_v56 = vpop.xlane.xlu0 %7570 }
0x1c15   : > { %v7600_v52 = vsub.f32 %v7552_v50, %v7571_v56 }
0x1c17   : > { %v7618_v35 = vmul.f32 1.442695, %v7600_v52  ;;  %v7569_v58 = vpop.xlane.xlu1 %7568 }
0x1c18   : > { %v7567_v42 = vpop.xlane.xlu0 %7566  ;;  %v7599_v40 = vsub.f32 %v17348_v31, %v7569_v58 }
0x1c19   : > { %13027 = vpow2.f32 %v7618_v35  ;;  %v7598_v26 = vsub.f32 %v7550_v17, %v7567_v42 }
0x1c1a   : > { %v7616_v43 = vmul.f32 1.442695, %v7599_v40 }
0x1c1b   : > { %v7614_v57 = vmul.f32 1.442695, %v7598_v26 }
0x1c1c   : > { %v7573_v51 = vpop.xlane.xlu0 %7572 }
0x1c1d   : > { %13029 = vpow2.f32 %v7614_v57  ;;  %v7601_v46 = vsub.f32 %v7553_v63, %v7573_v51 }
0x1c1e   : > { %v7581_v4 = vpop.xlane.xlu1 %7580 }
0x1c1f   : > { %v7620_v5 = vmul.f32 1.442695, %v7601_v46  ;;  %v7605_v6 = vsub.f32 %v17357_v19, %v7581_v4  ;;  %v19101_v46 = vld [vmem:[#allocation102_spill] sm:$0xff]  ;;  %v19102_v4 = vld [vmem:[#allocation89_spill] sm:$0xff] }
0x1c20   : > { %v7579_v2 = vpop.xlane.xlu0 %7578 }
0x1c21   : > { %13031 = vpow2.f32 %v7620_v5  ;;  %v7604_v49 = vsub.f32 %v7556_v62, %v7579_v2  ;;  %v7628_v17 = vmul.f32 1.442695, %v7605_v6 }
0x1c22   : > { %v7577_v50 = vpop.xlane.xlu1 %7576  ;;  %13033 = vpow2.f32 %v7616_v43 }
0x1c23   : > { %v17415_v47 = vpop.eup %13027  ;;  %v7626_v3 = vmul.f32 1.442695, %v7604_v49  ;;  %v7603_v63 = vsub.f32 %v17364_v15, %v7577_v50 }
0x1c24   : > { %7650 = vadd.xlane.f32.xlu1 %v17415_v47  ;;  %v7575_v31 = vpop.xlane.xlu0 %7574 }
0x1c25   : > { %13035 = vpow2.f32 %v7626_v3  ;;  %v7602_v44 = vsub.f32 %v7554_v55, %v7575_v31  ;;  %v7624_v62 = vmul.f32 1.442695, %v7603_v63 }
0x1c26   : > { %13037 = vpow2.f32 %v7628_v17  ;;  %v7589_v52 = vpop.xlane.xlu1 %7588 }
0x1c27   : > { %v17419_v13 = vpop.eup %13029  ;;  %v7622_v20 = vmul.f32 1.442695, %v7602_v44  ;;  %v7609_v43 = vsub.f32 %v17371_v30, %v7589_v52 }
0x1c28   : > { %7646 = vadd.xlane.f32.xlu1 %v17419_v13  ;;  %v7587_v19 = vpop.xlane.xlu0 %7586 }
0x1c29   : > { %13039 = vpow2.f32 %v7622_v20  ;;  %v7636_v49 = vmul.f32 1.442695, %v7609_v43  ;;  %v7608_v50 = vsub.f32 %v17376_v9, %v7587_v19 }
0x1c2a   : > { %13041 = vpow2.f32 %v7624_v62  ;;  %v7585_v58 = vpop.xlane.xlu1 %7584 }
0x1c2b   : > { %v17422_v28 = vpop.eup %13031  ;;  %v7607_v6 = vsub.f32 %v17381_v22, %v7585_v58  ;;  %v7634_v31 = vmul.f32 1.442695, %v7608_v50 }
0x1c2c   : > { %7652 = vadd.xlane.f32.xlu1 %v17422_v28  ;;  %v7583_v24 = vpop.xlane.xlu0 %7582  ;;  %v17425_v56 = vpop.eup %13033 }
0x1c2d   : > { %v7606_v5 = vsub.f32 %v17386_v59, %v7583_v24  ;;  %v7632_v3 = vmul.f32 1.442695, %v7607_v6 }
0x1c2e   : > { %v7729_v51 = vpop.permute.xlu1 %7728 }
0x1c2f   : > { %v17427_v15 = vpop.eup %13035  ;;  %v7630_v2 = vmul.f32 1.442695, %v7606_v5 }
0x1c30   : > { %7648 = vadd.xlane.f32.xlu1 %v17425_v56  ;;  %7658 = vadd.xlane.f32.xlu0 %v17427_v15  ;;  %v7595_v55 = vpop.xlane.xlu0 %7594  ;;  %v17431_v35 = vpop.eup %13037 }
0x1c31   : > { %13043 = vpow2.f32 %v7630_v2  ;;  %v7612_v30 = vsub.f32 %v17391_v25, %v7595_v55 }
0x1c32   : > { %13045 = vpow2.f32 %v7636_v49 }
0x1c33   : > { %v17433_v42 = vpop.eup %13039  ;;  %13047 = vpow2.f32 %v7632_v3  ;;  %v7642_v19 = vmul.f32 1.442695, %v7612_v30 }
0x1c34   : > { %7660 = vadd.xlane.f32.xlu0 %v17431_v35  ;;  %7654 = vadd.xlane.f32.xlu1 %v17433_v42  ;;  %v7591_v26 = vpop.xlane.xlu0 %7590  ;;  %v17437_v57 = vpop.eup %13041  ;;  %13049 = vpow2.f32 %v7634_v31 }
0x1c35   : > { %v7610_v63 = vsub.f32 %v17396_v36, %v7591_v26  ;;  %v19103_v26 = vld [vmem:[#allocation34_spill] sm:$0xff] }
0x1c37   : > { %v7638_v22 = vmul.f32 1.442695, %v7610_v63 }
0x1c38   : > { %7656 = vadd.xlane.f32.xlu0 %v17437_v57  ;;  %v7727_v40 = vpop.permute.xlu0 %7726 }
0x1c39   : > { %11688 = vmatprep.subr.bf16.mxu1 %v7727_v40 }
0x1c3a   : > { %11689 = vmatpush3.bf16.msra.mxu1 %v7727_v40  ;;  %v19104_v40 = vld [vmem:[#allocation33_spill] sm:$0xff] }
0x1c3b   : > { %11690 = vmatprep.subr.bf16.mxu1 %v7729_v51  ;;  %v17452_v24 = vpop.eup %13043 }
0x1c3c   : > { %v17455_v52 = vpop.eup %13045 }
0x1c3d   : > { %v17457_v36 = vpop.eup %13047 }
0x1c3e   : > { %11691 = vmatpush3.bf16.msra.mxu1 %v7729_v51  ;;  %v17461_v25 = vpop.eup %13049  ;;  %v19105_v51 = vpack.i.bf16 %v19103_v26, %v19104_v40 }
0x1c45   : > { %7732 = vrot.lane.b32.xlu1 %v19101_v46, %s13608_s24  ;;  %v19106_v46 = vld [vmem:[#allocation35_spill] sm:$0xff] }
0x1c4e   : > { %7730 = vrot.lane.b32.xlu0 %v19102_v4, %s13608_s24  ;;  %v19107_v4 = vld [vmem:[#allocation32_spill] sm:$0xff] }
0x1c4f   : > { %v19108_v5 = vpack.i.bf16 %v19106_v46, %v19107_v4 }
0x1c5f   : > { %v7597_v17 = vpop.xlane.xlu1 %7596 }
0x1c60   : > { %v7613_v20 = vsub.f32 %v17405_v0, %v7597_v17 }
0x1c62   : > { %v7644_v9 = vmul.f32 1.442695, %v7613_v20 }
0x1c63   : > { %v7593_v44 = vpop.xlane.xlu1 %7592 }
0x1c64   : > { %v7611_v59 = vsub.f32 %v17410_v1, %v7593_v44 }
0x1c66   : > { %v7640_v62 = vmul.f32 1.442695, %v7611_v59 }
0x1c68   : > { %13051 = vpow2.f32 %v7640_v62 }
0x1c69   : > { %7662 = vadd.xlane.f32.xlu1 %v17452_v24  ;;  %13053 = vpow2.f32 %v7638_v22 }
0x1c6a   : > { %13055 = vpow2.f32 %v7644_v9 }
0x1c6b   : > { %13057 = vpow2.f32 %v7642_v19 }
0x1c6d   : > { %7664 = vadd.xlane.f32.xlu0 %v17457_v36  ;;  %7668 = vadd.xlane.f32.xlu1 %v17455_v52 }
0x1c71   : > { %7666 = vadd.xlane.f32.xlu0 %v17461_v25 }
0x1c72   : > { %v17464_v0 = vpop.eup %13051 }
0x1c73   : > { %7672 = vadd.xlane.f32.xlu1 %v17464_v0  ;;  %v17467_v1 = vpop.eup %13053 }
0x1c74   : > { %v17470_v55 = vpop.eup %13055 }
0x1c75   : > { %7670 = vadd.xlane.f32.xlu0 %v17467_v1  ;;  %v17473_v58 = vpop.eup %13057 }
0x1c77   : > { %7676 = vadd.xlane.f32.xlu1 %v17470_v55 }
0x1c79   : > { %7674 = vadd.xlane.f32.xlu0 %v17473_v58 }
0x1c88   : > { %12105 = vrot.lane.b32.xlu1 %v19105_v51, %s13608_s24 }
0x1c8c   : > { %12110 = vrot.lane.b32.xlu1 %v12109_v48, %s13606_s19 }
0x1c8f   : > { %12100 = vrot.lane.b32.xlu0 %v19108_v5, %s13608_s24 }
0x1c90   : > { %12115 = vrot.lane.b32.xlu1 %v12114_v54, %s13606_s19 }
0x1cb1   : > { %v7651_v43 = vpop.xlane.xlu1 %7650 }
0x1cb5   : > { %v7647_v6 = vpop.xlane.xlu1 %7646 }
0x1cb6   : > { %13059 = vrcp.f32 %v7647_v6 }
0x1cb9   : > { %v7653_v2 = vpop.xlane.xlu1 %7652 }
0x1cbd   : > { %v7649_v49 = vpop.xlane.xlu1 %7648  ;;  %v7659_v50 = vpop.xlane.xlu0 %7658 }
0x1cbe   : > { %13061 = vrcp.f32 %v7649_v49 }
0x1cbf   : > { %13063 = vrcp.f32 %v7653_v2 }
0x1cc0   : > { %13065 = vrcp.f32 %v7651_v43  ;;  %v13060_v3 = vpop.eup %13059 }
0x1cc1   : > { %v7655_v61 = vpop.xlane.xlu1 %7654  ;;  %v7661_v60 = vpop.xlane.xlu0 %7660  ;;  %v7679_v7 = vmul.f32 %v13060_v3, %v17419_v13 }
0x1cc2   : > { %13067 = vrcp.f32 %v7655_v61 }
0x1cc5   : > { %v7657_v48 = vpop.xlane.xlu0 %7656  ;;  %v7733_v44 = vpop.permute.xlu1 %7732 }
0x1cc6   : > { %13069 = vrcp.f32 %v7657_v48 }
0x1cc7   : > { %13071 = vrcp.f32 %v7661_v60 }
0x1cc8   : > { %v13062_v17 = vpop.eup %13061  ;;  %13073 = vrcp.f32 %v7659_v50 }
0x1cc9   : > { %v13064_v31 = vpop.eup %13063  ;;  %v7731_v53 = vpop.permute.xlu0 %7730  ;;  %v7681_v54 = vmul.f32 %v13062_v17, %v17425_v56 }
0x1cca   : > { %11692 = vmatprep.subr.bf16.mxu1 %v7731_v53  ;;  %v13066_v63 = vpop.eup %13065  ;;  %v7685_v59 = vmul.f32 %v13064_v31, %v17422_v28 }
0x1ccb   : > { %11693 = vmatpush3.bf16.msra.mxu1 %v7731_v53  ;;  %v7710_v20 = vpack.c.bf16 %v7681_v54, %v7679_v7  ;;  %v7683_v22 = vmul.f32 %v13066_v63, %v17415_v47 }
0x1ccc   : > { %11694 = vmatprep.subr.bf16.mxu1 %v7733_v44  ;;  %v13068_v30 = vpop.eup %13067 }
0x1ccd   : > { %11696 = vmatprep.mubr.bf16.mxu1 %v7710_v20  ;;  %v7711_v9 = vpack.c.bf16 %v7685_v59, %v7683_v22  ;;  %v7687_v13 = vmul.f32 %v13068_v30, %v17433_v42  ;;  %v12372_v30 = vld [vmem:[#allocation16 + $0x8] sm:$0xff]   ;;  %v12373_v22 = vld [vmem:[#allocation16 + $0x10] sm:$0xff]  }
0x1ccf   : > { %11695 = vmatpush3.bf16.msra.mxu1 %v7733_v44 }
0x1cd0   : > { %v13070_v62 = vpop.eup %13069 }
0x1cd1   : > { %v13072_v19 = vpop.eup %13071  ;;  %v7689_v56 = vmul.f32 %v13070_v62, %v17437_v57  ;;  %v12376_v62 = vld [vmem:[#allocation16 + $0x28] sm:$0xff]  }
0x1cd2   : > { %11697 = vmatmul.mubr.bf16.vlgmr.msra.gmra.mrb[240].mxu1 %v7711_v9  ;;  %v13074_v26 = vpop.eup %13073  ;;  %v7693_v51 = vmul.f32 %v13072_v19, %v17431_v35 }
0x1cd3   : > { %v7712_v40 = vpack.c.bf16 %v7689_v56, %v7687_v13  ;;  %v7691_v28 = vmul.f32 %v13074_v26, %v17427_v15 }
0x1cd5   : > { %11700 = vmatprep.mubr.bf16.mxu1 %v7712_v40  ;;  %v7713_v46 = vpack.c.bf16 %v7693_v51, %v7691_v28  ;;  %v19109_v28 = vld [vmem:[#allocation38_spill] sm:$0xff] }
0x1cda   : > { %11701 = vmatmul.mubr.bf16.gmra.mrb[244].mxu1 %v7713_v46  ;;  %v19110_v46 = vld [vmem:[#allocation36_spill] sm:$0xff] }
0x1cf6   : > { %v7663_v4 = vpop.xlane.xlu1 %7662 }
0x1cf7   : > { %13075 = vrcp.f32 %v7663_v4  ;;  %v19111_v4 = vpack.i.bf16 %v19109_v28, %v19110_v46 }
0x1cfa   : > { %v7669_v47 = vpop.xlane.xlu1 %7668  ;;  %v7665_v5 = vpop.xlane.xlu0 %7664 }
0x1cfb   : > { %13077 = vrcp.f32 %v7665_v5  ;;  %v19112_v5 = vld [vmem:[#allocation39_spill] sm:$0xff] }
0x1cfc   : > { %13079 = vrcp.f32 %v7669_v47 }
0x1cfe   : > { %v7667_v43 = vpop.xlane.xlu0 %7666 }
0x1cff   : > { %13081 = vrcp.f32 %v7667_v43  ;;  %v19113_v43 = vld [vmem:[#allocation37_spill] sm:$0xff] }
0x1d00   : > { %v7673_v42 = vpop.xlane.xlu1 %7672 }
0x1d01   : > { %13083 = vrcp.f32 %v7673_v42  ;;  %v13076_v6 = vpop.eup %13075  ;;  %v19114_v42 = vpack.i.bf16 %v19112_v5, %v19113_v43 }
0x1d02   : > { %v7671_v57 = vpop.xlane.xlu0 %7670  ;;  %v7695_v50 = vmul.f32 %v13076_v6, %v17452_v24 }
0x1d03   : > { %13085 = vrcp.f32 %v7671_v57 }
0x1d04   : > { %v7677_v2 = vpop.xlane.xlu1 %7676 }
0x1d05   : > { %13087 = vrcp.f32 %v7677_v2  ;;  %v13078_v35 = vpop.eup %13077 }
0x1d06   : > { %v7675_v49 = vpop.xlane.xlu0 %7674  ;;  %v13080_v15 = vpop.eup %13079  ;;  %v7697_v61 = vmul.f32 %v13078_v35, %v17457_v36 }
0x1d07   : > { %13089 = vrcp.f32 %v7675_v49  ;;  %v7701_v17 = vmul.f32 %v13080_v15, %v17455_v52  ;;  %v12371_v52 = vld [vmem:[#allocation16] sm:$0xff]   ;;  %v19115_v49 = vld [vmem:[#allocation42_spill] sm:$0xff]  ;;  %v19116_v15 = vld [vmem:[#allocation40_spill] sm:$0xff] }
0x1d08   : > { %v7714_v48 = vpack.c.bf16 %v7697_v61, %v7695_v50  ;;  %11712 = vmatprep.subr.bf16.mxu1 %v12371_v52  ;;  %v19117_v50 = vpack.i.bf16 %v19115_v49, %v19116_v15  ;;  %v19118_v61 = vld [vmem:[#allocation43_spill] sm:$0xff] }
0x1d09   : > { %v13082_v60 = vpop.eup %13081  ;;  %11713 = vmatpush3.bf16.msra.mxu1 %v12371_v52 }
0x1d0a   : > { %v7699_v3 = vmul.f32 %v13082_v60, %v17461_v25  ;;  %11704 = vmatprep.mubr.bf16.mxu1 %v7714_v48  ;;  %11714 = vmatprep.subr.bf16.mxu1 %v12372_v30  ;;  %v19119_v60 = vld [vmem:[#allocation41_spill] sm:$0xff] }
0x1d0b   : > { %v13084_v31 = vpop.eup %13083  ;;  %v19120_v48 = vpack.i.bf16 %v19118_v61, %v19119_v60 }
0x1d0c   : > { %v7715_v53 = vpack.c.bf16 %v7701_v17, %v7699_v3  ;;  %v7705_v63 = vmul.f32 %v13084_v31, %v17464_v0  ;;  %v12375_v0 = vld [vmem:[#allocation16 + $0x20] sm:$0xff]   ;;  %v19121_v17 = vld [vmem:[#allocation46_spill] sm:$0xff] }
0x1d0d   : > { %v13086_v7 = vpop.eup %13085  ;;  %11715 = vmatpush3.bf16.msra.mxu1 %v12372_v30  ;;  %v19123_v8 = vpack.i.bf16 %v19121_v17, %v19122_v18  ;;  %v19147_v18 = vld [vmem:[#allocation96_spill] sm:$0xff] }
0x1d0e   : > { %11705 = vmatmul.mubr.bf16.gmra.mrb[248].mxu1 %v7715_v53  ;;  %v7703_v54 = vmul.f32 %v13086_v7, %v17467_v1  ;;  %11716 = vmatprep.subr.bf16.mxu1 %v12373_v22  ;;  %v12374_v1 = vld [vmem:[#allocation16 + $0x18] sm:$0xff]  }
0x1d0f   : > { %v13088_v44 = vpop.eup %13087 }
0x1d10   : > { %v7716_v20 = vpack.c.bf16 %v7705_v63, %v7703_v54  ;;  %v7709_v59 = vmul.f32 %v13088_v44, %v17470_v55  ;;  %v12377_v55 = vld [vmem:[#allocation16 + $0x30] sm:$0xff]   ;;  %v12106_v63 = vpop.permute.xlu1 %12105 }
0x1d11   : > { %v13090_v24 = vpop.eup %13089  ;;  %11717 = vmatpush3.bf16.msra.mxu1 %v12373_v22  ;;  %v12107_v52 = vunpack.i.l.bf16 %v12106_v63  ;;  %v19127_v22 = vld [vmem:[#allocation92_spill] sm:$0xff] }
0x1d12   : > { %11708 = vmatprep.mubr.bf16.mxu1 %v7716_v20  ;;  %v7707_v36 = vmul.f32 %v13090_v24, %v17473_v58  ;;  %11718 = vmatprep.subr.bf16.mxu1 %v12374_v1  ;;  %v12378_v58 = vld [vmem:[#allocation16 + $0x38] sm:$0xff]   ;;  %v12101_v20 = vpop.permute.xlu0 %12100 }
0x1d14   : > { %v7717_v25 = vpack.c.bf16 %v7709_v59, %v7707_v36  ;;  %v12111_v44 = vpop.permute.xlu1 %12110  ;;  %v12103_v36 = vunpack.i.h.bf16 %v12101_v20  ;;  %v12102_v59 = vunpack.i.l.bf16 %v12101_v20 }
0x1d15   : > { %11719 = vmatpush3.bf16.msra.mxu1 %v12374_v1  ;;  %v12113_v29 = vunpack.i.h.bf16 %v12111_v44 }
0x1d16   : > { %11709 = vmatmul.mubr.bf16.gmra.mrb[252].mxu1 %v7717_v25  ;;  %11720 = vmatprep.subr.bf16.mxu1 %v12375_v0  ;;  %v12108_v25 = vunpack.i.h.bf16 %v12106_v63  ;;  %v8032_v33 = vsel %vm19128_vm14, %v19127_v22, %v12103_v36  ;;  %vm19151_vm14 = vmmov %vm19135_vm0 }
0x1d17   : > { %v8048_v46 = vsel %vm19138_vm11, %v8032_v33, %v12113_v29 }
0x1d18   : > { %v12116_v24 = vpop.permute.xlu1 %12115 }
0x1d19   : > { %11721 = vmatpush3.bf16.msra.mxu1 %v12375_v0  ;;  %v12118_v30 = vunpack.i.h.bf16 %v12116_v24  ;;  %v12117_v14 = vunpack.i.l.bf16 %v12116_v24  ;;  %v19131_v0 = vld [vmem:[#allocation86_spill] sm:$0xff] }
0x1d1a   : > { %11722 = vmatprep.subr.bf16.mxu1 %v12376_v62 }
0x1d1d   : > { %11723 = vmatpush3.bf16.msra.mxu1 %v12376_v62  ;;  %v8034_v62 = vsel %vm19132_vm6, %v19131_v0, %v12108_v25  ;;  %vm19153_vm6 = vmmov %vm19135_vm0 }
0x1d1e   : > { %11724 = vmatprep.subr.bf16.mxu1 %v12377_v55 }
0x1d21   : > { %11725 = vmatpush3.bf16.msra.mxu1 %v12377_v55  ;;  %v19133_v55 = vld [vmem:[#allocation87_spill] sm:$0xff] }
0x1d22   : > { %11726 = vmatprep.subr.bf16.mxu1 %v12378_v58 }
0x1d25   : > { %11727 = vmatpush3.bf16.msra.mxu1 %v12378_v58  ;;  %v8033_v58 = vsel %vm19134_vm15, %v19133_v55, %v12107_v52  ;;  %vm19154_vm15 = vmmov %vm19135_vm0 }
0x1da5   : > { %v11698_v9 = vpop.f32.mrb[240].mxu1 }
0x1da6   : > { %v7776_v19 = vpop.f32.mrb[241].mxu1 }
0x1da7   : > { %v11699_v13 = vpop.f32.mrb[242].mxu1 }
0x1da8   : > { %v12124_v56 = vpack.i.bf16 %v11699_v13, %v11698_v9  ;;  %v7779_v26 = vpop.f32.mrb[243].mxu1 }
0x1da9   : > { %v12119_v40 = vpack.i.bf16 %v7779_v26, %v7776_v19  ;;  %v8050_v26 = vsel %vm19136_vm13, %v8034_v62, %v12118_v30 }
0x1daa   : > { %12125 = vrot.lane.b32.xlu1 %v12124_v56, %s13607_s15  ;;  %v8049_v56 = vsel %vm19135_vm0, %v8033_v58, %v12117_v14 }
0x1dab   : > { %12120 = vrot.lane.b32.xlu0 %v12119_v40, %s13607_s15 }
0x1dad   : > { %v11702_v51 = vpop.f32.mrb[244].mxu1 }
0x1dae   : > { %12135 = vrot.lane.b32.xlu1 %v19111_v4, %s13608_s24  ;;  %v7792_v47 = vpop.f32.mrb[245].mxu1 }
0x1daf   : > { %12130 = vrot.lane.b32.xlu0 %v19114_v42, %s13608_s24  ;;  %v11703_v57 = vpop.f32.mrb[246].mxu1 }
0x1db0   : > { %v12154_v6 = vpack.i.bf16 %v11703_v57, %v11702_v51  ;;  %v7795_v2 = vpop.f32.mrb[247].mxu1 }
0x1db1   : > { %v12149_v35 = vpack.i.bf16 %v7795_v2, %v7792_v47 }
0x1db2   : > { %12145 = vrot.lane.b32.xlu1 %v12144_v27, %s13606_s19 }
0x1db3   : > { %12140 = vrot.lane.b32.xlu0 %v12139_v38, %s13606_s19 }
0x1db6   : > { %12155 = vrot.lane.b32.xlu1 %v12154_v6, %s13607_s15 }
0x1db7   : > { %12150 = vrot.lane.b32.xlu0 %v12149_v35, %s13607_s15 }
0x1dba   : > { %12165 = vrot.lane.b32.xlu1 %v19117_v50, %s13608_s24 }
0x1dbb   : > { %12160 = vrot.lane.b32.xlu0 %v19120_v48, %s13608_s24 }
0x1dbe   : > { %12175 = vrot.lane.b32.xlu1 %v12174_v45, %s13606_s19 }
0x1dbf   : > { %12170 = vrot.lane.b32.xlu0 %v12169_v23, %s13606_s19  ;;  %v19126_v23 = vpack.i.bf16 %v19124_v21, %v19125_v34 }
0x1de1   : > { %v11706_v32 = vpop.f32.mrb[248].mxu1 }
0x1de2   : > { %v7808_v10 = vpop.f32.mrb[249].mxu1 }
0x1de3   : > { %v11707_v37 = vpop.f32.mrb[250].mxu1 }
0x1de4   : > { %v12184_v27 = vpack.i.bf16 %v11707_v37, %v11706_v32  ;;  %v7811_v12 = vpop.f32.mrb[251].mxu1 }
0x1de5   : > { %v12179_v38 = vpack.i.bf16 %v7811_v12, %v7808_v10 }
0x1de6   : > { %12185 = vrot.lane.b32.xlu1 %v12184_v27, %s13607_s15  ;;  %v19143_v27 = vld [vmem:[#allocation91_spill] sm:$0xff] }
0x1de7   : > { %12180 = vrot.lane.b32.xlu0 %v12179_v38, %s13607_s15  ;;  %v19145_v38 = vld [vmem:[#allocation90_spill] sm:$0xff] }
0x1de9   : > { %v11710_v3 = vpop.f32.mrb[252].mxu1 }
0x1dea   : > { %12195 = vrot.lane.b32.xlu1 %v19123_v8, %s13608_s24  ;;  %v7824_v45 = vpop.f32.mrb[253].mxu1 }
0x1deb   : > { %12190 = vrot.lane.b32.xlu0 %v19126_v23, %s13608_s24  ;;  %v11711_v31 = vpop.f32.mrb[254].mxu1  ;;  %s19191_s24 = sld [smem:[#allocation121_spill]] }
0x1dec   : > { %v12214_v53 = vpack.i.bf16 %v11711_v31, %v11710_v3  ;;  %v7827_v7 = vpop.f32.mrb[255].mxu1 }
0x1ded   : > { %v12209_v54 = vpack.i.bf16 %v7827_v7, %v7824_v45  ;;  %v19149_v45 = vld [vmem:[#allocation93_spill] sm:$0xff] }
0x1dee   : > { %12205 = vrot.lane.b32.xlu1 %v12204_v16, %s13606_s19  ;;  %v12112_v16 = vunpack.i.l.bf16 %v12111_v44 }
0x1def   : > { %12200 = vrot.lane.b32.xlu0 %v12199_v39, %s13606_s19  ;;  %v8031_v39 = vsel %vm19130_vm10, %v19129_v41, %v12102_v59  ;;  %vm19152_vm10 = vmmov %vm19135_vm0  ;;  %s19216_s19 = sld [smem:[#allocation126_spill]] }
0x1df0   : > { %v8047_v28 = vsel %vm19137_vm9, %v8031_v39, %v12112_v16  ;;  %vm19155_vm0 = vmmov %vm19140_vm1 }
0x1df1   : > { %vm19156_vm13 = vmmov %vm19155_vm0 }
0x1df2   : > { %12215 = vrot.lane.b32.xlu1 %v12214_v53, %s13607_s15  ;;  %vm19157_vm9 = vmmov %vm19155_vm0 }
0x1df3   : > { %12210 = vrot.lane.b32.xlu0 %v12209_v54, %s13607_s15  ;;  %vm19158_vm11 = vmmov %vm19155_vm0 }
0x1e1c   : > { %v12126_v1 = vpop.permute.xlu1 %12125 }
0x1e1d   : > { %v12128_v9 = vunpack.i.h.bf16 %v12126_v1  ;;  %v12127_v19 = vunpack.i.l.bf16 %v12126_v1  ;;  %v12121_v13 = vpop.permute.xlu0 %12120 }
0x1e1e   : > { %v12123_v40 = vunpack.i.h.bf16 %v12121_v13  ;;  %v12122_v51 = vunpack.i.l.bf16 %v12121_v13  ;;  %v19161_v13 = vld [vmem:[#allocation94_spill] sm:$0xff] }
0x1e1f   : > { %v8066_v4 = vsel %vm19139_vm12, %v8050_v26, %v12128_v9  ;;  %v8065_v47 = vsel %vm19140_vm1, %v8049_v56, %v12127_v19  ;;  %v19159_v9 = vld [vmem:[#allocation95_spill] sm:$0xff]  ;;  %vm19160_vm12 = vmmov %vm19144_vm4 }
0x1e20   : > { %v8080_v5 = vpack.c.bf16 %v8066_v4, %v8065_v47  ;;  %v12136_v43 = vpop.permute.xlu1 %12135  ;;  %v8063_v42 = vsel %vm19141_vm2, %v8047_v28, %v12122_v51  ;;  %v8064_v57 = vsel %vm19142_vm3, %v8048_v46, %v12123_v40  ;;  %vm19162_vm1 = vmmov %vm19144_vm4  ;;  %v19163_v40 = vld [vmem:[#allocation100_spill] sm:$0xff]  ;;  %v19165_v28 = vld [vmem:[#allocation97_spill] sm:$0xff] }
0x1e21   : > { %v12131_v6 = vpop.permute.xlu0 %12130  ;;  %v8079_v2 = vpack.c.bf16 %v8064_v57, %v8063_v42  ;;  %v12138_v35 = vunpack.i.h.bf16 %v12136_v43  ;;  %v12137_v49 = vunpack.i.l.bf16 %v12136_v43  ;;  %vm19164_vm2 = vmmov %vm19162_vm1 }
0x1e22   : > { %v12133_v50 = vunpack.i.h.bf16 %v12131_v6  ;;  %v12132_v61 = vunpack.i.l.bf16 %v12131_v6  ;;  %vm19166_vm3 = vmmov %vm19162_vm1 }
0x1e23   : > { %11728 = vmatprep.mubr.bf16.mxu1 %v8079_v2  ;;  %v8038_v12 = vsel %vm19144_vm4, %v19143_v27, %v12138_v35  ;;  %v8037_v3 = vsel %vm19146_vm5, %v19145_v38, %v12137_v49  ;;  %vm19167_vm4 = vmmov %vm19153_vm6 }
0x1e24   : > { %v12146_v15 = vpop.permute.xlu1 %12145  ;;  %11729 = vmatmul.mubr.bf16.vlgmr.msra.gmra.mrb[0].mxu1 %v8080_v5  ;;  %v8036_v8 = vsel %vm19148_vm7, %v19147_v18, %v12133_v50  ;;  %v8035_v21 = vsel %vm19150_vm8, %v19149_v45, %v12132_v61  ;;  %vm19168_vm5 = vmmov %vm19167_vm4 }
0x1e25   : > { %v12141_v60 = vpop.permute.xlu0 %12140  ;;  %v12148_v48 = vunpack.i.h.bf16 %v12146_v15  ;;  %v12147_v32 = vunpack.i.l.bf16 %v12146_v15  ;;  %vm19169_vm7 = vmmov %vm19167_vm4 }
0x1e26   : > { %v12143_v10 = vunpack.i.h.bf16 %v12141_v60  ;;  %v12142_v37 = vunpack.i.l.bf16 %v12141_v60  ;;  %vm19170_vm8 = vmmov %vm19167_vm4 }
0x1e27   : > { %v8053_v53 = vsel %vm19151_vm14, %v8037_v3, %v12147_v32  ;;  %v8054_v7 = vsel %vm19152_vm10, %v8038_v12, %v12148_v48  ;;  %vm19171_vm14 = vmmov %vm19155_vm0 }
0x1e28   : > { %v12156_v17 = vpop.permute.xlu1 %12155  ;;  %v8051_v44 = vsel %vm19153_vm6, %v8035_v21, %v12142_v37  ;;  %v8052_v20 = vsel %vm19154_vm15, %v8036_v8, %v12143_v10  ;;  %vm19172_vm10 = vmmov %vm19155_vm0 }
0x1e29   : > { %v12158_v34 = vunpack.i.h.bf16 %v12156_v17  ;;  %v12157_v23 = vunpack.i.l.bf16 %v12156_v17  ;;  %v12151_v31 = vpop.permute.xlu0 %12150  ;;  %vm19173_vm6 = vmmov %vm19155_vm0 }
0x1e2a   : > { %v12153_v54 = vunpack.i.h.bf16 %v12151_v31  ;;  %v12152_v63 = vunpack.i.l.bf16 %v12151_v31  ;;  %vm19174_vm15 = vmmov %vm19155_vm0  ;;  %v19177_v31 = vld [vmem:[#allocation98_spill] sm:$0xff] }
0x1e2b   : > { %v8070_v24 = vsel %vm19155_vm0, %v8054_v7, %v12158_v34  ;;  %v8069_v36 = vsel %vm19156_vm13, %v8053_v53, %v12157_v23  ;;  %v19175_v34 = vld [vmem:[#allocation99_spill] sm:$0xff]  ;;  %vm19176_vm0 = vmmov %vm19162_vm1 }
0x1e2c   : > { %v8082_v59 = vpack.c.bf16 %v8070_v24, %v8069_v36  ;;  %v8067_v25 = vsel %vm19157_vm9, %v8051_v44, %v12152_v63  ;;  %v8068_v52 = vsel %vm19158_vm11, %v8052_v20, %v12153_v54  ;;  %v12166_v14 = vpop.permute.xlu1 %12165  ;;  %vm19178_vm13 = vmmov %vm19176_vm0  ;;  %v19179_v54 = vld [vmem:[#allocation31_spill] sm:$0xff]  ;;  %v19181_v44 = vld [vmem:[#allocation101_spill] sm:$0xff] }
0x1e2d   : > { %v8081_v30 = vpack.c.bf16 %v8068_v52, %v8067_v25  ;;  %v12161_v29 = vpop.permute.xlu0 %12160  ;;  %v12168_v22 = vunpack.i.h.bf16 %v12166_v14  ;;  %v12167_v33 = vunpack.i.l.bf16 %v12166_v14  ;;  %vm19180_vm9 = vmmov %vm19176_vm0 }
0x1e2e   : > { %v12163_v39 = vunpack.i.h.bf16 %v12161_v29  ;;  %v12162_v1 = vunpack.i.l.bf16 %v12161_v29  ;;  %vm19182_vm11 = vmmov %vm19176_vm0 }
0x1e2f   : > { %11732 = vmatprep.mubr.bf16.mxu1 %v8081_v30  ;;  %v8042_v19 = vsel %vm19160_vm12, %v19159_v9, %v12168_v22  ;;  %v8041_v56 = vsel %vm19162_vm1, %v19161_v13, %v12167_v33  ;;  %vm19183_vm12 = vmmov %vm19167_vm4 }
0x1e30   : > { %11733 = vmatmul.mubr.bf16.gmra.mrb[4].mxu1 %v8082_v59  ;;  %v12176_v16 = vpop.permute.xlu1 %12175  ;;  %v8040_v51 = vsel %vm19164_vm2, %v19163_v40, %v12163_v39  ;;  %v8039_v46 = vsel %vm19166_vm3, %v19165_v28, %v12162_v1  ;;  %vm19184_vm1 = vmmov %vm19167_vm4  ;;  %v19193_v28 = vld [vmem:[#allocation64_spill] sm:$0xff] }
0x1e31   : > { %v12171_v41 = vpop.permute.xlu0 %12170  ;;  %v12178_v0 = vunpack.i.h.bf16 %v12176_v16  ;;  %v12177_v62 = vunpack.i.l.bf16 %v12176_v16  ;;  %vm19185_vm2 = vmmov %vm19184_vm1 }
0x1e32   : > { %v12173_v55 = vunpack.i.h.bf16 %v12171_v41  ;;  %v12172_v58 = vunpack.i.l.bf16 %v12171_v41  ;;  %vm19186_vm3 = vmmov %vm19184_vm1 }
0x1e33   : > { %v8057_v43 = vsel %vm19167_vm4, %v8041_v56, %v12177_v62  ;;  %v8058_v42 = vsel %vm19168_vm5, %v8042_v19, %v12178_v0  ;;  %vm19187_vm4 = vmmov %vm19173_vm6  ;;  %v10425_v62 = vld [vmem:[%s19191_s24] ss:$0 sm:$0xff]  ;;  %s19220_s24 = sld [smem:[#allocation130_spill]] }
0x1e34   : > { %v8055_v2 = vsel %vm19169_vm7, %v8039_v46, %v12172_v58  ;;  %v8056_v35 = vsel %vm19170_vm8, %v8040_v51, %v12173_v55  ;;  %vm19188_vm5 = vmmov %vm19187_vm4 }
0x1e35   : > { %vm19189_vm7 = vmmov %vm19187_vm4 }
0x1e36   : > { %vm19190_vm8 = vmmov %vm19187_vm4 }
0x1e58   : > { %v12186_v26 = vpop.permute.xlu1 %12185 }
0x1e59   : > { %v12188_v4 = vunpack.i.h.bf16 %v12186_v26  ;;  %v12187_v47 = vunpack.i.l.bf16 %v12186_v26  ;;  %v12181_v5 = vpop.permute.xlu0 %12180  ;;  %v19192_v26 = vld [vmem:[#allocation55_spill] sm:$0xff] }
0x1e5a   : > { %v12183_v57 = vunpack.i.h.bf16 %v12181_v5  ;;  %v12182_v6 = vunpack.i.l.bf16 %v12181_v5 }
0x1e5b   : > { %v8074_v49 = vsel %vm19171_vm14, %v8058_v42, %v12188_v4  ;;  %v8073_v15 = vsel %vm19172_vm10, %v8057_v43, %v12187_v47  ;;  %v19194_v4 = vld [vmem:[#allocation61_spill] sm:$0xff]  ;;  %v19195_v43 = vld [vmem:[#allocation68_spill] sm:$0xff] }
0x1e5c   : > { %v8084_v50 = vpack.c.bf16 %v8074_v49, %v8073_v15  ;;  %v12196_v61 = vpop.permute.xlu1 %12195  ;;  %v8071_v60 = vsel %vm19173_vm6, %v8055_v2, %v12182_v6  ;;  %v8072_v48 = vsel %vm19174_vm15, %v8056_v35, %v12183_v57 }
0x1e5d   : > { %v12191_v32 = vpop.permute.xlu0 %12190  ;;  %v8083_v10 = vpack.c.bf16 %v8072_v48, %v8071_v60  ;;  %v12198_v37 = vunpack.i.h.bf16 %v12196_v61  ;;  %v12197_v27 = vunpack.i.l.bf16 %v12196_v61 }
0x1e5e   : > { %v12193_v38 = vunpack.i.h.bf16 %v12191_v32  ;;  %v12192_v3 = vunpack.i.l.bf16 %v12191_v32  ;;  %v19197_v32 = vld [vmem:[#allocation51_spill] sm:$0xff] }
0x1e5f   : > { %11736 = vmatprep.mubr.bf16.mxu1 %v8083_v10  ;;  %v8046_v23 = vsel %vm19176_vm0, %v19175_v34, %v12198_v37  ;;  %v8045_v53 = vsel %vm19178_vm13, %v19177_v31, %v12197_v27  ;;  %v19198_v37 = vld [vmem:[#allocation50_spill] sm:$0xff] }
0x1e60   : > { %v12206_v12 = vpop.permute.xlu1 %12205  ;;  %11737 = vmatmul.mubr.bf16.gmra.mrb[8].mxu1 %v8084_v50  ;;  %v8044_v63 = vsel %vm19180_vm9, %v19179_v54, %v12193_v38  ;;  %v8043_v20 = vsel %vm19182_vm11, %v19181_v44, %v12192_v3  ;;  %v19196_v50 = vld [vmem:[#allocation65_spill] sm:$0xff]  ;;  %v19200_v34 = vld [vmem:[#allocation54_spill] sm:$0xff] }
0x1e61   : > { %v12201_v17 = vpop.permute.xlu0 %12200  ;;  %v12208_v18 = vunpack.i.h.bf16 %v12206_v12  ;;  %v12207_v8 = vunpack.i.l.bf16 %v12206_v12  ;;  %v19199_v12 = vld [vmem:[#allocation58_spill] sm:$0xff] }
0x1e62   : > { %v12203_v45 = vunpack.i.h.bf16 %v12201_v17  ;;  %v12202_v21 = vunpack.i.l.bf16 %v12201_v17 }
0x1e63   : > { %v8061_v25 = vsel %vm19183_vm12, %v8045_v53, %v12207_v8  ;;  %v8062_v52 = vsel %vm19184_vm1, %v8046_v23, %v12208_v18 }
0x1e64   : > { %v12216_v7 = vpop.permute.xlu1 %12215  ;;  %v8059_v29 = vsel %vm19185_vm2, %v8043_v20, %v12202_v21  ;;  %v8060_v16 = vsel %vm19186_vm3, %v8044_v63, %v12203_v45  ;;  %v19202_v63 = vld [vmem:[#allocation53_spill] sm:$0xff]  ;;  %v19203_v20 = vld [vmem:[#allocation67_spill] sm:$0xff] }
0x1e65   : > { %v12218_v24 = vunpack.i.h.bf16 %v12216_v7  ;;  %v12217_v36 = vunpack.i.l.bf16 %v12216_v7  ;;  %v12211_v59 = vpop.permute.xlu0 %12210  ;;  %v19201_v7 = vld [vmem:[#allocation63_spill] sm:$0xff] }
0x1e66   : > { %v12213_v30 = vunpack.i.h.bf16 %v12211_v59  ;;  %v12212_v14 = vunpack.i.l.bf16 %v12211_v59 }
0x1e67   : > { %v8078_v22 = vsel %vm19187_vm4, %v8062_v52, %v12218_v24  ;;  %v8077_v33 = vsel %vm19188_vm5, %v8061_v25, %v12217_v36 }
0x1e68   : > { %v8086_v41 = vpack.c.bf16 %v8078_v22, %v8077_v33  ;;  %v8075_v39 = vsel %vm19189_vm7, %v8059_v29, %v12212_v14  ;;  %v8076_v1 = vsel %vm19190_vm8, %v8060_v16, %v12213_v30  ;;  %v19204_v29 = vld [vmem:[#allocation49_spill] sm:$0xff] }
0x1e69   : > { %v8085_v0 = vpack.c.bf16 %v8076_v1, %v8075_v39  ;;  %v19206_v1 = vld [vmem:[#allocation52_spill] sm:$0xff] }
0x1e6b   : > { %11740 = vmatprep.mubr.bf16.mxu1 %v8085_v0 }
0x1e6c   : > { %11741 = vmatmul.mubr.bf16.gmra.mrb[12].mxu1 %v8086_v41  ;;  %v19205_v41 = vld [vmem:[#allocation103_spill] sm:$0xff] }
0x1e6d   : > { %8860 = vmatprep.mubr.bf16.mxu1 %v19089_v11 }
0x1ef7   : > { %v11730_v55 = vpop.f32.mrb[0].mxu1 }
0x1ef8   : > { %v8192_v58 = vpop.f32.mrb[1].mxu1  ;;  %v8201_v56 = vadd.f32 %v11730_v55, %v10425_v62  ;;  %v19207_v55 = vld [vmem:[#allocation104_spill] sm:$0xff] }
0x1ef9   : > { %v8193_v9 = vadd.f32 %v10425_v62, %v8192_v58  ;;  %v11731_v19 = vpop.f32.mrb[2].mxu1 }
0x1efa   : > { %v8195_v13 = vpop.f32.mrb[3].mxu1  ;;  %v17640_v47 = vadd.f32 %v8201_v56, %v19194_v4  ;;  %v8204_v5 = vadd.f32 %v11731_v19, %v10425_v62  ;;  %v12381_v19 = vld [vmem:[#allocation17 + $0x4] ss:$16 sps:$4 sm:$0xff]  }
0x1efb   : > { %v17633_v40 = vadd.f32 %v8193_v9, %v19192_v26  ;;  %v8196_v51 = vadd.f32 %v10425_v62, %v8195_v13  ;;  %v12379_v9 = vld [vmem:[#allocation17] ss:$16 sps:$4 sm:$0xff]   ;;  %v12384_v13 = vld [vmem:[#allocation17 + $0xc] ss:$16 sps:$4 sm:$0xff]   ;;  %v12387_v56 = vld [vmem:[#allocation17 + $0x24] ss:$16 sps:$4 sm:$0xff]   ;;  %8715 = vmatprep.subr.bf16.mxu0 %v12381_v19 }
0x1efc   : > { %v17645_v42 = vadd.f32 %v8204_v5, %v19195_v43  ;;  %v12390_v26 = vld [vmem:[#allocation17 + $0x2c] ss:$16 sps:$4 sm:$0xff]   ;;  %8828 = vmatprep.subr.bf16.mxu1 %v12384_v13  ;;  %8716 = vmatpush1.bf16.msra.mxu0 %v12379_v9  ;;  %v12400_v9 = vld [vmem:[#allocation17 + $0x68] ss:$16 sps:$4 sm:$0xff]   ;;  %v12405_v19 = vld [vmem:[#allocation17 + $0x84] ss:$16 sps:$4 sm:$0xff]  }
0x1efd   : > { %v17636_v46 = vadd.f32 %v8196_v51, %v19193_v28  ;;  %8273 = vadd.xlane.f32.xlu0 %v17633_v40  ;;  %v12385_v51 = vld [vmem:[#allocation17 + $0x20] ss:$16 sps:$4 sm:$0xff]   ;;  %8717 = vmatprep.subr.bf16.mxu0 %v12387_v56  ;;  %v12388_v28 = vld [vmem:[#allocation17 + $0x28] ss:$16 sps:$4 sm:$0xff]  }
0x1efe   : > { %v12403_v13 = vld [vmem:[#allocation17 + $0x80] ss:$16 sps:$4 sm:$0xff]   ;;  %v12406_v56 = vld [vmem:[#allocation17 + $0x88] ss:$16 sps:$4 sm:$0xff]  }
0x1eff   : > { %8275 = vadd.xlane.f32.xlu1 %v17636_v46 }
0x1f00   : > { %8718 = vmatpush1.bf16.msra.mxu0 %v12385_v51  ;;  %v12414_v51 = vld [vmem:[#allocation17 + $0xac] ss:$16 sps:$4 sm:$0xff]  }
0x1f01   : > { %8277 = vadd.xlane.f32.xlu0 %v17640_v47 }
0x1f03   : > { %v11734_v57 = vpop.f32.mrb[4].mxu1 }
0x1f04   : > { %v8208_v6 = vpop.f32.mrb[5].mxu1  ;;  %v8217_v15 = vadd.f32 %v11734_v57, %v10425_v62 }
0x1f05   : > { %v8209_v2 = vadd.f32 %v10425_v62, %v8208_v6  ;;  %v11735_v35 = vpop.f32.mrb[6].mxu1  ;;  %8279 = vadd.xlane.f32.xlu0 %v17645_v42 }
0x1f06   : > { %v8211_v49 = vpop.f32.mrb[7].mxu1  ;;  %v8220_v48 = vadd.f32 %v11735_v35, %v10425_v62  ;;  %v17656_v27 = vadd.f32 %v8217_v15, %v19198_v37 }
0x1f07   : > { %v17649_v61 = vadd.f32 %v8209_v2, %v19196_v50  ;;  %v8212_v60 = vadd.f32 %v10425_v62, %v8211_v49 }
0x1f08   : > { %v17660_v38 = vadd.f32 %v8220_v48, %v19199_v12 }
0x1f09   : > { %v17652_v10 = vadd.f32 %v8212_v60, %v19197_v32  ;;  %8281 = vadd.xlane.f32.xlu0 %v17649_v61 }
0x1f0b   : > { %8283 = vadd.xlane.f32.xlu1 %v17652_v10 }
0x1f0d   : > { %8285 = vadd.xlane.f32.xlu0 %v17656_v27 }
0x1f0f   : > { %8287 = vadd.xlane.f32.xlu1 %v17660_v38 }
0x1f33   : > { %v11738_v3 = vpop.f32.mrb[8].mxu1 }
0x1f34   : > { %v8224_v17 = vpop.f32.mrb[9].mxu1  ;;  %v8233_v21 = vadd.f32 %v11738_v3, %v10425_v62 }
0x1f35   : > { %v8225_v18 = vadd.f32 %v10425_v62, %v8224_v17  ;;  %v11739_v8 = vpop.f32.mrb[10].mxu1 }
0x1f36   : > { %v8227_v45 = vpop.f32.mrb[11].mxu1  ;;  %v8236_v53 = vadd.f32 %v11739_v8, %v10425_v62  ;;  %v17672_v44 = vadd.f32 %v8233_v21, %v19202_v63 }
0x1f37   : > { %v17665_v23 = vadd.f32 %v8225_v18, %v19200_v34  ;;  %v8228_v31 = vadd.f32 %v10425_v62, %v8227_v45 }
0x1f38   : > { %v17676_v24 = vadd.f32 %v8236_v53, %v19203_v20 }
0x1f39   : > { %v17668_v54 = vadd.f32 %v8228_v31, %v19201_v7  ;;  %8289 = vadd.xlane.f32.xlu0 %v17665_v23 }
0x1f3b   : > { %8291 = vadd.xlane.f32.xlu1 %v17668_v54 }
0x1f3d   : > { %8293 = vadd.xlane.f32.xlu0 %v17672_v44 }
0x1f3f   : > { %v11742_v36 = vpop.f32.mrb[12].mxu1  ;;  %8295 = vadd.xlane.f32.xlu1 %v17676_v24 }
0x1f40   : > { %v8240_v59 = vpop.f32.mrb[13].mxu1  ;;  %v8249_v14 = vadd.f32 %v11742_v36, %v10425_v62 }
0x1f41   : > { %v8241_v25 = vadd.f32 %v10425_v62, %v8240_v59  ;;  %v11743_v52 = vpop.f32.mrb[14].mxu1 }
0x1f42   : > { %v8243_v30 = vpop.f32.mrb[15].mxu1  ;;  %v8252_v33 = vadd.f32 %v11743_v52, %v10425_v62  ;;  %v17688_v0 = vadd.f32 %v8249_v14, %v19206_v1  ;;  %v12396_v14 = vld [vmem:[#allocation17 + $0x4c] ss:$16 sps:$4 sm:$0xff]  }
0x1f43   : > { %v17681_v16 = vadd.f32 %v8241_v25, %v19204_v29  ;;  %v8244_v22 = vadd.f32 %v10425_v62, %v8243_v30  ;;  %v12382_v62 = vld [vmem:[#allocation17 + $0x8] ss:$16 sps:$4 sm:$0xff]   ;;  %v12393_v30 = vld [vmem:[#allocation17 + $0x44] ss:$16 sps:$4 sm:$0xff]   ;;  %v12391_v29 = vld [vmem:[#allocation17 + $0x40] ss:$16 sps:$4 sm:$0xff]  }
0x1f44   : > { %v17692_v58 = vadd.f32 %v8252_v33, %v19207_v55  ;;  %8829 = vmatpush1.bf16.msra.mxu1 %v12382_v62  ;;  %8719 = vmatprep.subr.bf16.mxu0 %v12393_v30  ;;  %v12402_v1 = vld [vmem:[#allocation17 + $0x6c] ss:$16 sps:$4 sm:$0xff]   ;;  %v12397_v55 = vld [vmem:[#allocation17 + $0x60] ss:$16 sps:$4 sm:$0xff]  }
0x1f45   : > { %v17684_v39 = vadd.f32 %v8244_v22, %v19205_v41  ;;  %8297 = vadd.xlane.f32.xlu0 %v17681_v16  ;;  %8830 = vmatprep.subr.bf16.mxu1 %v12390_v26  ;;  %v12394_v22 = vld [vmem:[#allocation17 + $0x48] ss:$16 sps:$4 sm:$0xff]   ;;  %v12399_v41 = vld [vmem:[#allocation17 + $0x64] ss:$16 sps:$4 sm:$0xff]   ;;  %v12408_v62 = vld [vmem:[#allocation17 + $0x8c] ss:$16 sps:$4 sm:$0xff]  }
0x1f46   : > { %8720 = vmatpush1.bf16.msra.mxu0 %v12391_v29  ;;  %v12411_v26 = vld [vmem:[#allocation17 + $0xa4] ss:$16 sps:$4 sm:$0xff]  }
0x1f47   : > { %8299 = vadd.xlane.f32.xlu1 %v17684_v39  ;;  %8721 = vmatprep.subr.bf16.mxu0 %v12399_v41 }
0x1f48   : > { %8831 = vmatpush1.bf16.msra.mxu1 %v12388_v28  ;;  %v12409_v28 = vld [vmem:[#allocation17 + $0xa0] ss:$16 sps:$4 sm:$0xff]  }
0x1f49   : > { %8301 = vadd.xlane.f32.xlu0 %v17688_v0  ;;  %8832 = vmatprep.subr.bf16.mxu1 %v12396_v14 }
0x1f4a   : > { %8722 = vmatpush1.bf16.msra.mxu0 %v12397_v55 }
0x1f4b   : > { %8303 = vadd.xlane.f32.xlu1 %v17692_v58  ;;  %8723 = vmatprep.subr.bf16.mxu0 %v12405_v19 }
0x1f4c   : > { %8833 = vmatpush1.bf16.msra.mxu1 %v12394_v22 }
0x1f4d   : > { %8834 = vmatprep.subr.bf16.mxu1 %v12402_v1 }
0x1f4e   : > { %8724 = vmatpush1.bf16.msra.mxu0 %v12403_v13 }
0x1f4f   : > { %8725 = vmatprep.subr.bf16.mxu0 %v12411_v26 }
0x1f50   : > { %8835 = vmatpush1.bf16.msra.mxu1 %v12400_v9 }
0x1f51   : > { %8836 = vmatprep.subr.bf16.mxu1 %v12408_v62 }
0x1f52   : > { %8726 = vmatpush1.bf16.msra.mxu0 %v12409_v28 }
0x1f54   : > { %8837 = vmatpush1.bf16.msra.mxu1 %v12406_v56 }
0x1f55   : > { %8838 = vmatprep.subr.bf16.mxu1 %v12414_v51 }
0x1f8a   : > { %v8274_v4 = vpop.xlane.xlu0 %8273 }
0x1f8b   : > { %v8305_v5 = vmul.f32 0.0078125, %v8274_v4  ;;  %v12412_v4 = vld [vmem:[#allocation17 + $0xa8] ss:$16 sps:$4 sm:$0xff]  }
0x1f8c   : > { %v8276_v43 = vpop.xlane.xlu1 %8275  ;;  %8839 = vmatpush1.bf16.msra.mxu1 %v12412_v4 }
0x1f8d   : > { %v17697_v57 = vsub.f32 %v17633_v40, %v8305_v5  ;;  %v8306_v6 = vmul.f32 0.0078125, %v8276_v43  ;;  %v12417_v5 = vld [vmem:[#allocation17 + $0xc4] ss:$16 sps:$4 sm:$0xff]   ;;  %v12420_v43 = vld [vmem:[#allocation17 + $0xcc] ss:$16 sps:$4 sm:$0xff]  }
0x1f8e   : > { %v8278_v2 = vpop.xlane.xlu0 %8277  ;;  %8727 = vmatprep.subr.bf16.mxu0 %v12417_v5  ;;  %8840 = vmatprep.subr.bf16.mxu1 %v12420_v43  ;;  %v12427_v43 = vld [vmem:[#allocation19 + $0x40] sm:$0xff]  }
0x1f8f   : > { %v17700_v35 = vsub.f32 %v17636_v46, %v8306_v6  ;;  %v8307_v49 = vmul.f32 0.0078125, %v8278_v2  ;;  %v8337_v15 = vmul.f32 %v17697_v57, %v17697_v57  ;;  %v12415_v6 = vld [vmem:[#allocation17 + $0xc0] ss:$16 sps:$4 sm:$0xff]   ;;  %v12418_v2 = vld [vmem:[#allocation17 + $0xc8] ss:$16 sps:$4 sm:$0xff]  }
0x1f90   : > { %8728 = vmatpush1.bf16.msra.mxu0 %v12415_v6  ;;  %8841 = vmatpush1.bf16.msra.mxu1 %v12418_v2  ;;  %v12428_v6 = vld [vmem:[#allocation19 + $0xc0] sm:$0xff]  }
0x1f91   : > { %v17705_v50 = vsub.f32 %v17640_v47, %v8307_v49  ;;  %8353 = vadd.xlane.f32.xlu0 %v8337_v15  ;;  %v8338_v60 = vmul.f32 %v17700_v35, %v17700_v35  ;;  %v12423_v49 = vld [vmem:[#allocation17 + $0xe4] ss:$16 sps:$4 sm:$0xff]   ;;  %v12426_v15 = vld [vmem:[#allocation17 + $0xec] ss:$16 sps:$4 sm:$0xff]  }
0x1f92   : > { %v8280_v48 = vpop.xlane.xlu0 %8279  ;;  %8729 = vmatprep.subr.bf16.mxu0 %v12423_v49  ;;  %8842 = vmatprep.subr.bf16.mxu1 %v12426_v15 }
0x1f93   : > { %v8308_v32 = vmul.f32 0.0078125, %v8280_v48  ;;  %8355 = vadd.xlane.f32.xlu1 %v8338_v60  ;;  %v8339_v37 = vmul.f32 %v17705_v50, %v17705_v50  ;;  %v12421_v60 = vld [vmem:[#allocation17 + $0xe0] ss:$16 sps:$4 sm:$0xff]   ;;  %v12424_v48 = vld [vmem:[#allocation17 + $0xe8] ss:$16 sps:$4 sm:$0xff]  }
0x1f94   : > { %8730 = vmatpush1.bf16.msra.mxu0 %v12421_v60  ;;  %8843 = vmatpush1.bf16.msra.mxu1 %v12424_v48 }
0x1f95   : > { %v17712_v12 = vsub.f32 %v17645_v42, %v8308_v32  ;;  %8357 = vadd.xlane.f32.xlu0 %v8339_v37  ;;  %10976 = vmatprep.subr.bf16.mxu0 %v12427_v43  ;;  %v17787_v43 = vld [vmem:[%s19209_s3] ss:$0 sm:$0xff] }
0x1f96   : > { %v8282_v3 = vpop.xlane.xlu0 %8281  ;;  %11040 = vmatprep.subr.bf16.mxu1 %v12428_v6 }
0x1f97   : > { %v8309_v17 = vmul.f32 0.0078125, %v8282_v3  ;;  %v8340_v18 = vmul.f32 %v17712_v12, %v17712_v12 }
0x1f98   : > { %v8284_v8 = vpop.xlane.xlu1 %8283 }
0x1f99   : > { %v17717_v45 = vsub.f32 %v17649_v61, %v8309_v17  ;;  %v8310_v21 = vmul.f32 0.0078125, %v8284_v8  ;;  %8359 = vadd.xlane.f32.xlu1 %v8340_v18 }
0x1f9a   : > { %v8286_v34 = vpop.xlane.xlu0 %8285 }
0x1f9b   : > { %v17720_v31 = vsub.f32 %v17652_v10, %v8310_v21  ;;  %v8311_v53 = vmul.f32 0.0078125, %v8286_v34  ;;  %v8341_v7 = vmul.f32 %v17717_v45, %v17717_v45 }
0x1f9c   : > { %v8288_v63 = vpop.xlane.xlu1 %8287 }
0x1f9d   : > { %v17725_v20 = vsub.f32 %v17656_v27, %v8311_v53  ;;  %v8312_v36 = vmul.f32 0.0078125, %v8288_v63  ;;  %8361 = vadd.xlane.f32.xlu0 %v8341_v7  ;;  %v8342_v59 = vmul.f32 %v17720_v31, %v17720_v31 }
0x1f9f   : > { %v17730_v25 = vsub.f32 %v17660_v38, %v8312_v36  ;;  %8363 = vadd.xlane.f32.xlu1 %v8342_v59  ;;  %v8343_v52 = vmul.f32 %v17725_v20, %v17725_v20 }
0x1fa1   : > { %8365 = vadd.xlane.f32.xlu0 %v8343_v52  ;;  %v8344_v33 = vmul.f32 %v17730_v25, %v17730_v25 }
0x1fa3   : > { %8367 = vadd.xlane.f32.xlu1 %v8344_v33 }
0x1fc6   : > { %v8290_v32 = vpop.xlane.xlu0 %8289 }
0x1fc7   : > { %v8313_v37 = vmul.f32 0.0078125, %v8290_v32 }
0x1fc8   : > { %v8292_v3 = vpop.xlane.xlu1 %8291 }
0x1fc9   : > { %v17737_v17 = vsub.f32 %v17665_v23, %v8313_v37  ;;  %v8314_v18 = vmul.f32 0.0078125, %v8292_v3 }
0x1fca   : > { %v8294_v8 = vpop.xlane.xlu0 %8293 }
0x1fcb   : > { %v17740_v21 = vsub.f32 %v17668_v54, %v8314_v18  ;;  %v8315_v34 = vmul.f32 0.0078125, %v8294_v8  ;;  %v8345_v53 = vmul.f32 %v17737_v17, %v17737_v17 }
0x1fcc   : > { %v8296_v7 = vpop.xlane.xlu1 %8295 }
0x1fcd   : > { %v17745_v63 = vsub.f32 %v17672_v44, %v8315_v34  ;;  %v8316_v36 = vmul.f32 0.0078125, %v8296_v7  ;;  %8369 = vadd.xlane.f32.xlu0 %v8345_v53  ;;  %v8346_v59 = vmul.f32 %v17740_v21, %v17740_v21 }
0x1fcf   : > { %v17750_v52 = vsub.f32 %v17676_v24, %v8316_v36  ;;  %8371 = vadd.xlane.f32.xlu1 %v8346_v59  ;;  %v8347_v30 = vmul.f32 %v17745_v63, %v17745_v63 }
0x1fd1   : > { %8373 = vadd.xlane.f32.xlu0 %v8347_v30  ;;  %v8348_v14 = vmul.f32 %v17750_v52, %v17750_v52 }
0x1fd2   : > { %v8298_v29 = vpop.xlane.xlu0 %8297 }
0x1fd3   : > { %v8317_v22 = vmul.f32 0.0078125, %v8298_v29  ;;  %8375 = vadd.xlane.f32.xlu1 %v8348_v14  ;;  %v17779_v14 = vld [vmem:[%s19208_s2] ss:$0 sm:$0xff]  ;;  %s13609_s2 = smov [#allocation22]  }
0x1fd4   : > { %v8300_v33 = vpop.xlane.xlu1 %8299 }
0x1fd5   : > { %v17757_v41 = vsub.f32 %v17681_v16, %v8317_v22  ;;  %v8318_v1 = vmul.f32 0.0078125, %v8300_v33 }
0x1fd6   : > { %v8302_v55 = vpop.xlane.xlu0 %8301 }
0x1fd7   : > { %v17760_v9 = vsub.f32 %v17684_v39, %v8318_v1  ;;  %v8319_v19 = vmul.f32 0.0078125, %v8302_v55  ;;  %v8349_v62 = vmul.f32 %v17757_v41, %v17757_v41 }
0x1fd8   : > { %v8304_v13 = vpop.xlane.xlu1 %8303 }
0x1fd9   : > { %v17765_v56 = vsub.f32 %v17688_v0, %v8319_v19  ;;  %v8320_v26 = vmul.f32 0.0078125, %v8304_v13  ;;  %8377 = vadd.xlane.f32.xlu0 %v8349_v62  ;;  %v8350_v51 = vmul.f32 %v17760_v9, %v17760_v9 }
0x1fdb   : > { %v17770_v28 = vsub.f32 %v17692_v58, %v8320_v26  ;;  %8379 = vadd.xlane.f32.xlu1 %v8350_v51  ;;  %v8351_v4 = vmul.f32 %v17765_v56, %v17765_v56 }
0x1fdd   : > { %8381 = vadd.xlane.f32.xlu0 %v8351_v4  ;;  %v8352_v5 = vmul.f32 %v17770_v28, %v17770_v28 }
0x1fdf   : > { %8383 = vadd.xlane.f32.xlu1 %v8352_v5 }
0x201e   : > { %v8354_v2 = vpop.xlane.xlu0 %8353 }
0x201f   : > { %v8385_v49 = vmul.f32 0.0078125, %v8354_v2 }
0x2020   : > { %v8356_v15 = vpop.xlane.xlu1 %8355 }
0x2021   : > { %v8401_v60 = vadd.f32 1e-05, %v8385_v49  ;;  %v8386_v48 = vmul.f32 0.0078125, %v8356_v15 }
0x2022   : > { %v8358_v32 = vpop.xlane.xlu0 %8357 }
0x2023   : > { %13091 = vrsqrt.f32 %v8401_v60  ;;  %v8402_v37 = vadd.f32 1e-05, %v8386_v48  ;;  %v8387_v3 = vmul.f32 0.0078125, %v8358_v32 }
0x2025   : > { %13093 = vrsqrt.f32 %v8402_v37  ;;  %v8403_v18 = vadd.f32 1e-05, %v8387_v3  ;;  %v12429_v37 = vld [vmem:[#allocation19] sm:$0xff]  }
0x2026   : > { %v8360_v8 = vpop.xlane.xlu1 %8359  ;;  %v12430_v3 = vld [vmem:[#allocation19 + $0x80] sm:$0xff]  }
0x2027   : > { %13095 = vrsqrt.f32 %v8403_v18  ;;  %v8388_v34 = vmul.f32 0.0078125, %v8360_v8  ;;  %v12431_v18 = vld [vmem:[#allocation19 + $0x48] sm:$0xff]  }
0x2028   : > { %v12432_v8 = vld [vmem:[#allocation19 + $0xc8] sm:$0xff]  }
0x2029   : > { %v8404_v53 = vadd.f32 1e-05, %v8388_v34 }
0x202a   : > { %v8362_v7 = vpop.xlane.xlu0 %8361 }
0x202b   : > { %13097 = vrsqrt.f32 %v8404_v53  ;;  %v8389_v36 = vmul.f32 0.0078125, %v8362_v7 }
0x202c   : > { %v8364_v59 = vpop.xlane.xlu1 %8363 }
0x202d   : > { %v13092_v30 = vpop.eup %13091  ;;  %v8405_v29 = vadd.f32 1e-05, %v8389_v36  ;;  %v8390_v22 = vmul.f32 0.0078125, %v8364_v59  ;;  %v12434_v36 = vld [vmem:[#allocation19 + $0x88] sm:$0xff]  }
0x202e   : > { %v8433_v33 = vmul.f32 %v13092_v30, %v17697_v57  ;;  %v8366_v1 = vpop.xlane.xlu0 %8365  ;;  %v12435_v30 = vld [vmem:[#allocation19 + $0x50] sm:$0xff]  }
0x202f   : > { %v13094_v55 = vpop.eup %13093  ;;  %13099 = vrsqrt.f32 %v8405_v29  ;;  %v8406_v19 = vadd.f32 1e-05, %v8390_v22  ;;  %v8391_v62 = vmul.f32 0.0078125, %v8366_v1  ;;  %v12436_v29 = vld [vmem:[#allocation19 + $0xd0] sm:$0xff]  }
0x2030   : > { %v8455_v13 = vmul.f32 %v17779_v14, %v8433_v33  ;;  %v8434_v26 = vmul.f32 %v13094_v55, %v17700_v35  ;;  %v8368_v51 = vpop.xlane.xlu1 %8367 }
0x2031   : > { %v13096_v4 = vpop.eup %13095  ;;  %13101 = vrsqrt.f32 %v8406_v19  ;;  %v8392_v5 = vmul.f32 0.0078125, %v8368_v51  ;;  %v8407_v6 = vadd.f32 1e-05, %v8391_v62  ;;  %v12437_v62 = vld [vmem:[#allocation19 + $0x10] sm:$0xff]   ;;  %v12439_v51 = vld [vmem:[#allocation19 + $0x58] sm:$0xff]  }
0x2032   : > { %v8456_v57 = vmul.f32 %v17779_v14, %v8434_v26  ;;  %v8477_v49 = vadd.f32 %v17787_v43, %v8455_v13  ;;  %v8435_v60 = vmul.f32 %v13096_v4, %v17705_v50  ;;  %v12438_v13 = vld [vmem:[#allocation19 + $0x90] sm:$0xff]   ;;  %v12440_v4 = vld [vmem:[#allocation19 + $0xd8] sm:$0xff]  }
0x2033   : > { %v8408_v2 = vadd.f32 1e-05, %v8392_v5 }
0x2034   : > { %v8478_v15 = vadd.f32 %v17787_v43, %v8456_v57  ;;  %v8457_v34 = vmul.f32 %v17779_v14, %v8435_v60 }
0x2035   : > { %v13098_v35 = vpop.eup %13097  ;;  %13103 = vrsqrt.f32 %v8408_v2  ;;  %v12442_v2 = vld [vmem:[#allocation19 + $0x98] sm:$0xff]  }
0x2036   : > { %v8493_v48 = vpack.c.bf16 %v8478_v15, %v8477_v49  ;;  %v8436_v32 = vmul.f32 %v13098_v35, %v17712_v12  ;;  %13105 = vrsqrt.f32 %v8407_v6  ;;  %v12433_v12 = vld [vmem:[#allocation19 + $0x8] sm:$0xff]   ;;  %v8479_v22 = vadd.f32 %v17787_v43, %v8457_v34  ;;  %v12441_v6 = vld [vmem:[#allocation19 + $0x18] sm:$0xff]   ;;  %v12443_v49 = vld [vmem:[#allocation19 + $0x60] sm:$0xff]  }
0x2037   : > { %v12444_v15 = vld [vmem:[#allocation19 + $0xe0] sm:$0xff]  }
0x2038   : > { %8748 = vmatmul.mubr.bf16.vlgmr.msra.gmra.mrb[240].mxu0 %v8493_v48  ;;  %8861 = vmatmul.mubr.bf16.vlgmr.msra.gmra.mrb[16].mxu1 %v8493_v48  ;;  %v8458_v53 = vmul.f32 %v17779_v14, %v8436_v32 }
0x2039   : > { %v13100_v7 = vpop.eup %13099  ;;  %8757 = vmatprep.mubr.bf16.mxu0 %v19089_v11  ;;  %8870 = vmatprep.mubr.bf16.mxu1 %v19089_v11 }
0x203a   : > { %v8480_v50 = vadd.f32 %v17787_v43, %v8458_v53  ;;  %10977 = vmatpush3.bf16.msra.mxu0 %v12429_v37  ;;  %11041 = vmatpush3.bf16.msra.mxu1 %v12430_v3  ;;  %v8437_v33 = vmul.f32 %v13100_v7, %v17717_v45  ;;  %v12445_v37 = vld [vmem:[#allocation19 + $0x20] sm:$0xff]  }
0x203b   : > { %v13102_v59 = vpop.eup %13101  ;;  %10978 = vmatprep.subr.bf16.mxu0 %v12431_v18  ;;  %11042 = vmatprep.subr.bf16.mxu1 %v12432_v8  ;;  %v12446_v3 = vld [vmem:[#allocation19 + $0xa0] sm:$0xff]   ;;  %v12448_v18 = vld [vmem:[#allocation19 + $0xe8] sm:$0xff]  }
0x203c   : > { %v8438_v1 = vmul.f32 %v13102_v59, %v17720_v31  ;;  %v8494_v55 = vpack.c.bf16 %v8480_v50, %v8479_v22  ;;  %v8459_v5 = vmul.f32 %v17779_v14, %v8437_v33 }
0x203e   : > { %v8460_v19 = vmul.f32 %v17779_v14, %v8438_v1  ;;  %10979 = vmatpush3.bf16.msra.mxu0 %v12433_v12  ;;  %11043 = vmatpush3.bf16.msra.mxu1 %v12434_v36  ;;  %v8481_v60 = vadd.f32 %v17787_v43, %v8459_v5 }
0x203f   : > { %v13104_v26 = vpop.eup %13103  ;;  %10980 = vmatprep.subr.bf16.mxu0 %v12435_v30  ;;  %11044 = vmatprep.subr.bf16.mxu1 %v12436_v29 }
0x2040   : > { %8758 = vmatmul.mubr.bf16.gmra.mrb[244].mxu0 %v8494_v55  ;;  %8871 = vmatmul.mubr.bf16.gmra.mrb[20].mxu1 %v8494_v55  ;;  %v13106_v57 = vpop.eup %13105  ;;  %v8482_v45 = vadd.f32 %v17787_v43, %v8460_v19  ;;  %v8440_v31 = vmul.f32 %v13104_v26, %v17730_v25  ;;  %v12447_v25 = vld [vmem:[#allocation19 + $0x68] sm:$0xff]  }
0x2041   : > { %8767 = vmatprep.mubr.bf16.mxu0 %v19089_v11  ;;  %8880 = vmatprep.mubr.bf16.mxu1 %v19089_v11  ;;  %v8439_v35 = vmul.f32 %v13106_v57, %v17725_v20 }
0x2042   : > { %10981 = vmatpush3.bf16.msra.mxu0 %v12437_v62  ;;  %11045 = vmatpush3.bf16.msra.mxu1 %v12438_v13  ;;  %v8495_v48 = vpack.c.bf16 %v8482_v45, %v8481_v60  ;;  %v8462_v32 = vmul.f32 %v17779_v14, %v8440_v31 }
0x2043   : > { %10982 = vmatprep.subr.bf16.mxu0 %v12439_v51  ;;  %11046 = vmatprep.subr.bf16.mxu1 %v12440_v4  ;;  %v8461_v8 = vmul.f32 %v17779_v14, %v8439_v35 }
0x2044   : > { %v8484_v20 = vadd.f32 %v17787_v43, %v8462_v32 }
0x2045   : > { %v8483_v34 = vadd.f32 %v17787_v43, %v8461_v8 }
0x2046   : > { %10983 = vmatpush3.bf16.msra.mxu0 %v12441_v6  ;;  %11047 = vmatpush3.bf16.msra.mxu1 %v12442_v2 }
0x2047   : > { %10984 = vmatprep.subr.bf16.mxu0 %v12443_v49  ;;  %11048 = vmatprep.subr.bf16.mxu1 %v12444_v15  ;;  %v8496_v53 = vpack.c.bf16 %v8484_v20, %v8483_v34 }
0x2048   : > { %8768 = vmatmul.mubr.bf16.gmra.mrb[248].mxu0 %v8495_v48  ;;  %8881 = vmatmul.mubr.bf16.gmra.mrb[24].mxu1 %v8495_v48 }
0x2049   : > { %8777 = vmatprep.mubr.bf16.mxu0 %v19089_v11  ;;  %8890 = vmatprep.mubr.bf16.mxu1 %v19089_v11 }
0x204a   : > { %10985 = vmatpush3.bf16.msra.mxu0 %v12445_v37  ;;  %11049 = vmatpush3.bf16.msra.mxu1 %v12446_v3 }
0x204b   : > { %10986 = vmatprep.subr.bf16.mxu0 %v12447_v25  ;;  %11050 = vmatprep.subr.bf16.mxu1 %v12448_v18 }
0x2050   : > { %8778 = vmatmul.mubr.bf16.gmra.mrb[252].mxu0 %v8496_v53  ;;  %8891 = vmatmul.mubr.bf16.gmra.mrb[28].mxu1 %v8496_v53 }
0x2051   : > { %8787 = vmatprep.mubr.bf16.mxu0 %v19089_v11  ;;  %8900 = vmatprep.mubr.bf16.mxu1 %v19089_v11 }
0x205a   : > { %v8370_v7 = vpop.xlane.xlu0 %8369 }
0x205b   : > { %v8393_v50 = vmul.f32 0.0078125, %v8370_v7 }
0x205c   : > { %v8372_v12 = vpop.xlane.xlu1 %8371 }
0x205d   : > { %v8409_v36 = vadd.f32 1e-05, %v8393_v50  ;;  %v8394_v59 = vmul.f32 0.0078125, %v8372_v12 }
0x205e   : > { %v8374_v30 = vpop.xlane.xlu0 %8373 }
0x205f   : > { %13107 = vrsqrt.f32 %v8409_v36  ;;  %v8410_v29 = vadd.f32 1e-05, %v8394_v59  ;;  %v8395_v22 = vmul.f32 0.0078125, %v8374_v30 }
0x2060   : > { %v8376_v33 = vpop.xlane.xlu1 %8375 }
0x2061   : > { %13109 = vrsqrt.f32 %v8410_v29  ;;  %v8411_v1 = vadd.f32 1e-05, %v8395_v22  ;;  %v8396_v55 = vmul.f32 0.0078125, %v8376_v33 }
0x2063   : > { %13111 = vrsqrt.f32 %v8411_v1  ;;  %v8412_v19 = vadd.f32 1e-05, %v8396_v55 }
0x2065   : > { %13113 = vrsqrt.f32 %v8412_v19 }
0x2066   : > { %v8378_v62 = vpop.xlane.xlu0 %8377 }
0x2067   : > { %v8397_v13 = vmul.f32 0.0078125, %v8378_v62 }
0x2068   : > { %v8380_v26 = vpop.xlane.xlu1 %8379 }
0x2069   : > { %v13108_v51 = vpop.eup %13107  ;;  %v8413_v4 = vadd.f32 1e-05, %v8397_v13  ;;  %v8398_v5 = vmul.f32 0.0078125, %v8380_v26 }
0x206a   : > { %v8441_v57 = vmul.f32 %v13108_v51, %v17737_v17  ;;  %v8382_v45 = vpop.xlane.xlu0 %8381 }
0x206b   : > { %v13110_v31 = vpop.eup %13109  ;;  %13115 = vrsqrt.f32 %v8413_v4  ;;  %v8414_v6 = vadd.f32 1e-05, %v8398_v5  ;;  %v8399_v2 = vmul.f32 0.0078125, %v8382_v45  ;;  %v12449_v4 = vld [vmem:[#allocation19 + $0x28] sm:$0xff]   ;;  %v12454_v45 = vld [vmem:[#allocation19 + $0xb0] sm:$0xff]  }
0x206c   : > { %v8463_v49 = vmul.f32 %v17779_v14, %v8441_v57  ;;  %v8442_v15 = vmul.f32 %v13110_v31, %v17740_v21  ;;  %v8384_v60 = vpop.xlane.xlu1 %8383  ;;  %v12450_v5 = vld [vmem:[#allocation19 + $0xa8] sm:$0xff]   ;;  %10987 = vmatpush3.bf16.msra.mxu0 %v12449_v4  ;;  %v12452_v57 = vld [vmem:[#allocation19 + $0xf0] sm:$0xff]   ;;  %v12455_v31 = vld [vmem:[#allocation19 + $0x78] sm:$0xff]  }
0x206d   : > { %v13112_v35 = vpop.eup %13111  ;;  %13117 = vrsqrt.f32 %v8414_v6  ;;  %v8400_v48 = vmul.f32 0.0078125, %v8384_v60  ;;  %v8415_v3 = vadd.f32 1e-05, %v8399_v2  ;;  %11051 = vmatpush3.bf16.msra.mxu1 %v12450_v5  ;;  %v12456_v6 = vld [vmem:[#allocation19 + $0xf8] sm:$0xff]  }
0x206e   : > { %v8464_v32 = vmul.f32 %v17779_v14, %v8442_v15  ;;  %v8485_v17 = vadd.f32 %v17787_v43, %v8463_v49  ;;  %v8443_v8 = vmul.f32 %v13112_v35, %v17745_v63  ;;  %11052 = vmatprep.subr.bf16.mxu1 %v12452_v57  ;;  %v12457_v2 = vld [vmem:[#allocation19 + $0x38] sm:$0xff]   ;;  %v19212_v35 = vld [vmem:[#allocation69_spill] sm:$0xff] }
0x206f   : > { %v13114_v37 = vpop.eup %13113  ;;  %v8416_v25 = vadd.f32 1e-05, %v8400_v48  ;;  %v12458_v49 = vld [vmem:[#allocation19 + $0xb8] sm:$0xff]   ;;  %v19213_v48 = vsub.s32 2, %v19212_v35 }
0x2070   : > { %v8486_v18 = vadd.f32 %v17787_v43, %v8464_v32  ;;  %v8444_v20 = vmul.f32 %v13114_v37, %v17750_v52  ;;  %v8465_v53 = vmul.f32 %v17779_v14, %v8443_v8  ;;  %v19211_v15 = vld [vmem:[#allocation66_spill] sm:$0xff]  ;;  %v19214_v37 = vld [vmem:[#allocation47_spill] sm:$0xff] }
0x2071   : > { %13119 = vrsqrt.f32 %v8416_v25  ;;  %11053 = vmatpush3.bf16.msra.mxu1 %v12454_v45  ;;  %v19215_v25 = vsub.s32 3, %v19212_v35 }
0x2072   : > { %v8497_v34 = vpack.c.bf16 %v8486_v18, %v8485_v17  ;;  %v8466_v21 = vmul.f32 %v17779_v14, %v8444_v20  ;;  %13121 = vrsqrt.f32 %v8415_v3  ;;  %v8487_v63 = vadd.f32 %v17787_v43, %v8465_v53  ;;  %11054 = vmatprep.subr.bf16.mxu1 %v12456_v6 }
0x2074   : > { %8788 = vmatmul.mubr.bf16.gmra.mrb[0].mxu0 %v8497_v34  ;;  %8901 = vmatmul.mubr.bf16.gmra.mrb[32].mxu1 %v8497_v34  ;;  %v8488_v50 = vadd.f32 %v17787_v43, %v8466_v21 }
0x2075   : > { %v13116_v7 = vpop.eup %13115  ;;  %8797 = vmatprep.mubr.bf16.mxu0 %v19089_v11  ;;  %8910 = vmatprep.mubr.bf16.mxu1 %v19089_v11 }
0x2076   : > { %v8445_v52 = vmul.f32 %v13116_v7, %v17757_v41  ;;  %v8498_v59 = vpack.c.bf16 %v8488_v50, %v8487_v63  ;;  %11055 = vmatpush3.bf16.msra.mxu1 %v12458_v49 }
0x2077   : > { %v13118_v12 = vpop.eup %13117 }
0x2078   : > { %v8446_v36 = vmul.f32 %v13118_v12, %v17760_v9  ;;  %v8467_v22 = vmul.f32 %v17779_v14, %v8445_v52 }
0x207a   : > { %v8468_v30 = vmul.f32 %v17779_v14, %v8446_v36  ;;  %v8489_v41 = vadd.f32 %v17787_v43, %v8467_v22 }
0x207b   : > { %v13120_v29 = vpop.eup %13119 }
0x207c   : > { %8798 = vmatmul.mubr.bf16.gmra.mrb[4].mxu0 %v8498_v59  ;;  %8911 = vmatmul.mubr.bf16.gmra.mrb[36].mxu1 %v8498_v59  ;;  %v13122_v33 = vpop.eup %13121  ;;  %v8490_v1 = vadd.f32 %v17787_v43, %v8468_v30  ;;  %v8448_v55 = vmul.f32 %v13120_v29, %v17770_v28 }
0x207d   : > { %8807 = vmatprep.mubr.bf16.mxu0 %v19089_v11  ;;  %8920 = vmatprep.mubr.bf16.mxu1 %v19089_v11  ;;  %v8447_v9 = vmul.f32 %v13122_v33, %v17765_v56  ;;  %v12451_v56 = vld [vmem:[#allocation19 + $0x70] sm:$0xff]  }
0x207e   : > { %v8499_v19 = vpack.c.bf16 %v8490_v1, %v8489_v41  ;;  %v8470_v62 = vmul.f32 %v17779_v14, %v8448_v55  ;;  %10988 = vmatprep.subr.bf16.mxu0 %v12451_v56 }
0x207f   : > { %v8469_v13 = vmul.f32 %v17779_v14, %v8447_v9  ;;  %v12453_v14 = vld [vmem:[#allocation19 + $0x30] sm:$0xff]  }
0x2080   : > { %v8492_v26 = vadd.f32 %v17787_v43, %v8470_v62  ;;  %10989 = vmatpush3.bf16.msra.mxu0 %v12453_v14 }
0x2081   : > { %v8491_v51 = vadd.f32 %v17787_v43, %v8469_v13  ;;  %10990 = vmatprep.subr.bf16.mxu0 %v12455_v31  ;;  %v8533_v43 = vld [vmem:[%s19210_s12] sm:$0xf]  ;;  %s18172_s12 = scalar_lea.vmem [#allocation22], %s10232_s23 }
0x2082   : > { %v17852_v60 = vrot.slane %v8533_v43, %v19211_v15  ;;  %v17856_v32 = vrot.slane %v8533_v43, %v19213_v48  ;;  %v17859_v3 = vrot.slane %v8533_v43, %v19214_v37  ;;  %v17863_v17 = vrot.slane %v8533_v43, %v19215_v25  ;;  %s10024_s0 = sshll.u32 %s18172_s12, 4  ;;  %s18239_s0 = int_to_ptr.vmem [resolvable:$true] %s10024_s0 }
0x2083   : > { %v8500_v28 = vpack.c.bf16 %v8492_v26, %v8491_v51  ;;  %s13493_s29 = scalar_lea.vmem %s18239_s0, 4096 }
0x2084   : > { %8808 = vmatmul.mubr.bf16.gmra.mrb[8].mxu0 %v8499_v19  ;;  %8921 = vmatmul.mubr.bf16.gmra.mrb[40].mxu1 %v8499_v19  ;;  %p13494_p13 = scmp.ne.s32.totalorder %s18239_s0, %s13493_s29 }
0x2085   : > { %8817 = vmatprep.mubr.bf16.mxu0 %v19089_v11  ;;  %8930 = vmatprep.mubr.bf16.mxu1 %v19089_v11 }
0x2086   : > { %10991 = vmatpush3.bf16.msra.mxu0 %v12457_v2  ;;  %p13495_p6 = pnand %p13494_p13, %p19221_p8 }
0x2088   : > { %p13496_p9 = pneg %p13495_p6 }
0x208c   : > { %8818 = vmatmul.mubr.bf16.gmra.mrb[12].mxu0 %v8500_v28  ;;  %8931 = vmatmul.mubr.bf16.gmra.mrb[44].mxu1 %v8500_v28 }
0x210b   : > { %v8749_v18 = vpop.f32.mrb[240].mxu0  ;;  %v8862_v8 = vpop.f32.mrb[16].mxu1 }
0x210c   : > { %v8750_v20 = vadd.f32 %v8749_v18, %v17852_v60  ;;  %v8863_v34 = vadd.f32 %v8862_v8, %v17856_v32  ;;  %v8751_v21 = vpop.f32.mrb[241].mxu0  ;;  %v8864_v53 = vpop.f32.mrb[17].mxu1 }
0x210d   : > { %v8752_v7 = vadd.f32 %v8751_v21, %v17859_v3  ;;  %v8865_v50 = vadd.f32 %v8864_v53, %v17863_v17  ;;  %v8753_v12 = vpop.f32.mrb[242].mxu0  ;;  %v8866_v63 = vpop.f32.mrb[18].mxu1 }
0x210e   : > { %v8754_v52 = vadd.f32 %v8753_v12, %v17852_v60  ;;  %v8867_v36 = vadd.f32 %v8866_v63, %v17856_v32  ;;  %v8755_v59 = vpop.f32.mrb[243].mxu0  ;;  %v8868_v30 = vpop.f32.mrb[19].mxu1  ;;  %v8941_v33 = vmax.f32 %v8750_v20, 0.0  ;;  %v8943_v1 = vmax.f32 %v8863_v34, 0.0 }
0x210f   : > { %v8756_v29 = vadd.f32 %v8755_v59, %v17859_v3  ;;  %v8869_v22 = vadd.f32 %v8868_v30, %v17863_v17  ;;  %v8942_v9 = vmax.f32 %v8752_v7, 0.0  ;;  %v8944_v19 = vmax.f32 %v8865_v50, 0.0 }
0x2110   : > { %v8945_v55 = vmax.f32 %v8754_v52, 0.0  ;;  %v8947_v41 = vmax.f32 %v8867_v36, 0.0 }
0x2111   : > { %v8946_v62 = vmax.f32 %v8756_v29, 0.0  ;;  %v8948_v13 = vmax.f32 %v8869_v22, 0.0 }
0x2112   : > { %v9005_v26 = vpack.c.bf16 %v8945_v55, %v8941_v33  ;;  %v9007_v51 = vpack.c.bf16 %v8947_v41, %v8943_v1 }
0x2113   : > { %v9006_v28 = vpack.c.bf16 %v8946_v62, %v8942_v9  ;;  %v9008_v4 = vpack.c.bf16 %v8948_v13, %v8944_v19  ;;  %v8759_v5 = vpop.f32.mrb[244].mxu0  ;;  %v8872_v56 = vpop.f32.mrb[20].mxu1 }
0x2114   : > { %v8760_v57 = vadd.f32 %v8759_v5, %v17852_v60  ;;  %v8873_v14 = vadd.f32 %v8872_v56, %v17856_v32  ;;  %v8761_v45 = vpop.f32.mrb[245].mxu0  ;;  %v8874_v31 = vpop.f32.mrb[21].mxu1 }
0x2115   : > { %v8762_v6 = vadd.f32 %v8761_v45, %v17859_v3  ;;  %v8875_v2 = vadd.f32 %v8874_v31, %v17863_v17  ;;  %v8763_v49 = vpop.f32.mrb[246].mxu0  ;;  %v8876_v43 = vpop.f32.mrb[22].mxu1  ;;  %9325 = vmatprep.mubr.bf16.mxu0 %v9006_v28  ;;  %9422 = vmatprep.mubr.bf16.mxu1 %v9008_v4 }
0x2116   : > { %v8764_v35 = vadd.f32 %v8763_v49, %v17852_v60  ;;  %v8877_v48 = vadd.f32 %v8876_v43, %v17856_v32  ;;  %v8765_v25 = vpop.f32.mrb[247].mxu0  ;;  %v8878_v18 = vpop.f32.mrb[23].mxu1  ;;  %9326 = vmatmul.mubr.bf16.vlgmr.msra.gmra.mrb[16].mxu0 %v9005_v26  ;;  %9423 = vmatmul.mubr.bf16.vlgmr.msra.gmra.mrb[48].mxu1 %v9007_v51  ;;  %v8949_v34 = vmax.f32 %v8760_v57, 0.0  ;;  %v8951_v21 = vmax.f32 %v8873_v14, 0.0 }
0x2117   : > { %v8766_v8 = vadd.f32 %v8765_v25, %v17859_v3  ;;  %v8879_v20 = vadd.f32 %v8878_v18, %v17863_v17  ;;  %v8950_v50 = vmax.f32 %v8762_v6, 0.0  ;;  %v8952_v12 = vmax.f32 %v8875_v2, 0.0 }
0x2118   : > { %v8953_v53 = vmax.f32 %v8764_v35, 0.0  ;;  %v8955_v7 = vmax.f32 %v8877_v48, 0.0 }
0x2119   : > { %v8954_v63 = vmax.f32 %v8766_v8, 0.0  ;;  %v8956_v52 = vmax.f32 %v8879_v20, 0.0 }
0x211a   : > { %v9009_v36 = vpack.c.bf16 %v8953_v53, %v8949_v34  ;;  %v9011_v59 = vpack.c.bf16 %v8955_v7, %v8951_v21 }
0x211b   : > { %v9010_v30 = vpack.c.bf16 %v8954_v63, %v8950_v50  ;;  %v9012_v29 = vpack.c.bf16 %v8956_v52, %v8952_v12  ;;  %v8769_v22 = vpop.f32.mrb[248].mxu0  ;;  %v8882_v33 = vpop.f32.mrb[24].mxu1 }
0x211c   : > { %v8770_v1 = vadd.f32 %v8769_v22, %v17852_v60  ;;  %v8883_v55 = vadd.f32 %v8882_v33, %v17856_v32  ;;  %v8771_v41 = vpop.f32.mrb[249].mxu0  ;;  %v8884_v9 = vpop.f32.mrb[25].mxu1 }
0x211d   : > { %v8772_v19 = vadd.f32 %v8771_v41, %v17859_v3  ;;  %v8885_v62 = vadd.f32 %v8884_v9, %v17863_v17  ;;  %v8773_v13 = vpop.f32.mrb[250].mxu0  ;;  %v8886_v26 = vpop.f32.mrb[26].mxu1  ;;  %9333 = vmatprep.mubr.bf16.mxu0 %v9010_v30  ;;  %9430 = vmatprep.mubr.bf16.mxu1 %v9012_v29 }
0x211e   : > { %v8774_v51 = vadd.f32 %v8773_v13, %v17852_v60  ;;  %v8887_v28 = vadd.f32 %v8886_v26, %v17856_v32  ;;  %v8775_v4 = vpop.f32.mrb[251].mxu0  ;;  %v8888_v5 = vpop.f32.mrb[27].mxu1  ;;  %9334 = vmatmul.mubr.bf16.gmra.mrb[20].mxu0 %v9009_v36  ;;  %9431 = vmatmul.mubr.bf16.gmra.mrb[52].mxu1 %v9011_v59  ;;  %v8957_v14 = vmax.f32 %v8770_v1, 0.0  ;;  %v8959_v45 = vmax.f32 %v8883_v55, 0.0 }
0x211f   : > { %v8776_v56 = vadd.f32 %v8775_v4, %v17859_v3  ;;  %v8889_v57 = vadd.f32 %v8888_v5, %v17863_v17  ;;  %v8958_v2 = vmax.f32 %v8772_v19, 0.0  ;;  %v8960_v49 = vmax.f32 %v8885_v62, 0.0 }
0x2120   : > { %v8961_v31 = vmax.f32 %v8774_v51, 0.0  ;;  %v8963_v6 = vmax.f32 %v8887_v28, 0.0 }
0x2121   : > { %v8962_v43 = vmax.f32 %v8776_v56, 0.0  ;;  %v8964_v35 = vmax.f32 %v8889_v57, 0.0 }
0x2122   : > { %v9013_v48 = vpack.c.bf16 %v8961_v31, %v8957_v14  ;;  %v9015_v25 = vpack.c.bf16 %v8963_v6, %v8959_v45 }
0x2123   : > { %v9014_v18 = vpack.c.bf16 %v8962_v43, %v8958_v2  ;;  %v9016_v8 = vpack.c.bf16 %v8964_v35, %v8960_v49  ;;  %v8779_v20 = vpop.f32.mrb[252].mxu0  ;;  %v8892_v34 = vpop.f32.mrb[28].mxu1 }
0x2124   : > { %v8780_v21 = vadd.f32 %v8779_v20, %v17852_v60  ;;  %v8893_v53 = vadd.f32 %v8892_v34, %v17856_v32  ;;  %v8781_v7 = vpop.f32.mrb[253].mxu0  ;;  %v8894_v50 = vpop.f32.mrb[29].mxu1 }
0x2125   : > { %v8782_v12 = vadd.f32 %v8781_v7, %v17859_v3  ;;  %v8895_v63 = vadd.f32 %v8894_v50, %v17863_v17  ;;  %v8783_v52 = vpop.f32.mrb[254].mxu0  ;;  %v8896_v36 = vpop.f32.mrb[30].mxu1  ;;  %9341 = vmatprep.mubr.bf16.mxu0 %v9014_v18  ;;  %9438 = vmatprep.mubr.bf16.mxu1 %v9016_v8 }
0x2126   : > { %v8784_v59 = vadd.f32 %v8783_v52, %v17852_v60  ;;  %v8897_v30 = vadd.f32 %v8896_v36, %v17856_v32  ;;  %v8785_v29 = vpop.f32.mrb[255].mxu0  ;;  %v8898_v22 = vpop.f32.mrb[31].mxu1  ;;  %9342 = vmatmul.mubr.bf16.gmra.mrb[24].mxu0 %v9013_v48  ;;  %9439 = vmatmul.mubr.bf16.gmra.mrb[56].mxu1 %v9015_v25  ;;  %v8965_v55 = vmax.f32 %v8780_v21, 0.0  ;;  %v8967_v41 = vmax.f32 %v8893_v53, 0.0 }
0x2127   : > { %v8786_v33 = vadd.f32 %v8785_v29, %v17859_v3  ;;  %v8899_v1 = vadd.f32 %v8898_v22, %v17863_v17  ;;  %v8966_v62 = vmax.f32 %v8782_v12, 0.0  ;;  %v8968_v13 = vmax.f32 %v8895_v63, 0.0 }
0x2128   : > { %v8969_v9 = vmax.f32 %v8784_v59, 0.0  ;;  %v8971_v19 = vmax.f32 %v8897_v30, 0.0 }
0x2129   : > { %v8970_v26 = vmax.f32 %v8786_v33, 0.0  ;;  %v8972_v51 = vmax.f32 %v8899_v1, 0.0 }
0x212a   : > { %v9017_v28 = vpack.c.bf16 %v8969_v9, %v8965_v55  ;;  %v9019_v4 = vpack.c.bf16 %v8971_v19, %v8967_v41 }
0x212b   : > { %v9018_v5 = vpack.c.bf16 %v8970_v26, %v8966_v62  ;;  %v9020_v56 = vpack.c.bf16 %v8972_v51, %v8968_v13 }
0x212d   : > { %9349 = vmatprep.mubr.bf16.mxu0 %v9018_v5  ;;  %9446 = vmatprep.mubr.bf16.mxu1 %v9020_v56 }
0x212e   : > { %9350 = vmatmul.mubr.bf16.gmra.mrb[28].mxu0 %v9017_v28  ;;  %9447 = vmatmul.mubr.bf16.gmra.mrb[60].mxu1 %v9019_v4 }
0x2147   : > { %v8789_v57 = vpop.f32.mrb[0].mxu0  ;;  %v8902_v14 = vpop.f32.mrb[32].mxu1 }
0x2148   : > { %v8790_v45 = vadd.f32 %v8789_v57, %v17852_v60  ;;  %v8903_v31 = vadd.f32 %v8902_v14, %v17856_v32  ;;  %v8791_v6 = vpop.f32.mrb[1].mxu0  ;;  %v8904_v2 = vpop.f32.mrb[33].mxu1 }
0x2149   : > { %v8792_v49 = vadd.f32 %v8791_v6, %v17859_v3  ;;  %v8905_v43 = vadd.f32 %v8904_v2, %v17863_v17  ;;  %v8793_v35 = vpop.f32.mrb[2].mxu0  ;;  %v8906_v48 = vpop.f32.mrb[34].mxu1 }
0x214a   : > { %v8794_v25 = vadd.f32 %v8793_v35, %v17852_v60  ;;  %v8907_v18 = vadd.f32 %v8906_v48, %v17856_v32  ;;  %v8795_v8 = vpop.f32.mrb[3].mxu0  ;;  %v8908_v20 = vpop.f32.mrb[35].mxu1  ;;  %v8973_v53 = vmax.f32 %v8790_v45, 0.0  ;;  %v8975_v7 = vmax.f32 %v8903_v31, 0.0 }
0x214b   : > { %v8796_v34 = vadd.f32 %v8795_v8, %v17859_v3  ;;  %v8909_v21 = vadd.f32 %v8908_v20, %v17863_v17  ;;  %v8974_v63 = vmax.f32 %v8792_v49, 0.0  ;;  %v8976_v52 = vmax.f32 %v8905_v43, 0.0 }
0x214c   : > { %v8977_v50 = vmax.f32 %v8794_v25, 0.0  ;;  %v8979_v12 = vmax.f32 %v8907_v18, 0.0 }
0x214d   : > { %v8978_v36 = vmax.f32 %v8796_v34, 0.0  ;;  %v8980_v59 = vmax.f32 %v8909_v21, 0.0 }
0x214e   : > { %v9021_v30 = vpack.c.bf16 %v8977_v50, %v8973_v53  ;;  %v9023_v29 = vpack.c.bf16 %v8979_v12, %v8975_v7 }
0x214f   : > { %v9022_v22 = vpack.c.bf16 %v8978_v36, %v8974_v63  ;;  %v9024_v33 = vpack.c.bf16 %v8980_v59, %v8976_v52  ;;  %v8799_v1 = vpop.f32.mrb[4].mxu0  ;;  %v8912_v55 = vpop.f32.mrb[36].mxu1 }
0x2150   : > { %v8800_v41 = vadd.f32 %v8799_v1, %v17852_v60  ;;  %v8913_v9 = vadd.f32 %v8912_v55, %v17856_v32  ;;  %v8801_v19 = vpop.f32.mrb[5].mxu0  ;;  %v8914_v62 = vpop.f32.mrb[37].mxu1 }
0x2151   : > { %v8802_v13 = vadd.f32 %v8801_v19, %v17859_v3  ;;  %v8915_v26 = vadd.f32 %v8914_v62, %v17863_v17  ;;  %v8803_v51 = vpop.f32.mrb[6].mxu0  ;;  %v8916_v28 = vpop.f32.mrb[38].mxu1  ;;  %9357 = vmatprep.mubr.bf16.mxu0 %v9022_v22  ;;  %9454 = vmatprep.mubr.bf16.mxu1 %v9024_v33 }
0x2152   : > { %v8804_v4 = vadd.f32 %v8803_v51, %v17852_v60  ;;  %v8917_v5 = vadd.f32 %v8916_v28, %v17856_v32  ;;  %v8805_v56 = vpop.f32.mrb[7].mxu0  ;;  %v8918_v57 = vpop.f32.mrb[39].mxu1  ;;  %9358 = vmatmul.mubr.bf16.gmra.mrb[32].mxu0 %v9021_v30  ;;  %9455 = vmatmul.mubr.bf16.gmra.mrb[64].mxu1 %v9023_v29  ;;  %v8981_v31 = vmax.f32 %v8800_v41, 0.0  ;;  %v8983_v6 = vmax.f32 %v8913_v9, 0.0 }
0x2153   : > { %v8806_v14 = vadd.f32 %v8805_v56, %v17859_v3  ;;  %v8919_v45 = vadd.f32 %v8918_v57, %v17863_v17  ;;  %v8982_v43 = vmax.f32 %v8802_v13, 0.0  ;;  %v8984_v35 = vmax.f32 %v8915_v26, 0.0 }
0x2154   : > { %v8985_v2 = vmax.f32 %v8804_v4, 0.0  ;;  %v8987_v49 = vmax.f32 %v8917_v5, 0.0 }
0x2155   : > { %v8986_v48 = vmax.f32 %v8806_v14, 0.0  ;;  %v8988_v25 = vmax.f32 %v8919_v45, 0.0 }
0x2156   : > { %v9025_v18 = vpack.c.bf16 %v8985_v2, %v8981_v31  ;;  %v9027_v8 = vpack.c.bf16 %v8987_v49, %v8983_v6 }
0x2157   : > { %v9026_v20 = vpack.c.bf16 %v8986_v48, %v8982_v43  ;;  %v9028_v34 = vpack.c.bf16 %v8988_v25, %v8984_v35  ;;  %v8809_v21 = vpop.f32.mrb[8].mxu0  ;;  %v8922_v53 = vpop.f32.mrb[40].mxu1 }
0x2158   : > { %v8810_v7 = vadd.f32 %v8809_v21, %v17852_v60  ;;  %v8923_v50 = vadd.f32 %v8922_v53, %v17856_v32  ;;  %v8811_v12 = vpop.f32.mrb[9].mxu0  ;;  %v8924_v63 = vpop.f32.mrb[41].mxu1 }
0x2159   : > { %v8812_v52 = vadd.f32 %v8811_v12, %v17859_v3  ;;  %v8925_v36 = vadd.f32 %v8924_v63, %v17863_v17  ;;  %v8813_v59 = vpop.f32.mrb[10].mxu0  ;;  %v8926_v30 = vpop.f32.mrb[42].mxu1  ;;  %9365 = vmatprep.mubr.bf16.mxu0 %v9026_v20  ;;  %9462 = vmatprep.mubr.bf16.mxu1 %v9028_v34 }
0x215a   : > { %v8814_v29 = vadd.f32 %v8813_v59, %v17852_v60  ;;  %v8927_v22 = vadd.f32 %v8926_v30, %v17856_v32  ;;  %v8815_v33 = vpop.f32.mrb[11].mxu0  ;;  %v8928_v1 = vpop.f32.mrb[43].mxu1  ;;  %9366 = vmatmul.mubr.bf16.gmra.mrb[36].mxu0 %v9025_v18  ;;  %9463 = vmatmul.mubr.bf16.gmra.mrb[68].mxu1 %v9027_v8  ;;  %v8989_v9 = vmax.f32 %v8810_v7, 0.0  ;;  %v8991_v19 = vmax.f32 %v8923_v50, 0.0 }
0x215b   : > { %v8816_v55 = vadd.f32 %v8815_v33, %v17859_v3  ;;  %v8929_v41 = vadd.f32 %v8928_v1, %v17863_v17  ;;  %v8990_v26 = vmax.f32 %v8812_v52, 0.0  ;;  %v8992_v51 = vmax.f32 %v8925_v36, 0.0 }
0x215c   : > { %v8993_v62 = vmax.f32 %v8814_v29, 0.0  ;;  %v8995_v13 = vmax.f32 %v8927_v22, 0.0 }
0x215d   : > { %v8994_v28 = vmax.f32 %v8816_v55, 0.0  ;;  %v8996_v4 = vmax.f32 %v8929_v41, 0.0 }
0x215e   : > { %v9029_v5 = vpack.c.bf16 %v8993_v62, %v8989_v9  ;;  %v9031_v56 = vpack.c.bf16 %v8995_v13, %v8991_v19 }
0x215f   : > { %v9030_v57 = vpack.c.bf16 %v8994_v28, %v8990_v26  ;;  %v9032_v14 = vpack.c.bf16 %v8996_v4, %v8992_v51  ;;  %v8819_v45 = vpop.f32.mrb[12].mxu0  ;;  %v8932_v31 = vpop.f32.mrb[44].mxu1 }
0x2160   : > { %v8820_v6 = vadd.f32 %v8819_v45, %v17852_v60  ;;  %v8933_v2 = vadd.f32 %v8932_v31, %v17856_v32  ;;  %v8821_v49 = vpop.f32.mrb[13].mxu0  ;;  %v8934_v43 = vpop.f32.mrb[45].mxu1 }
0x2161   : > { %v8822_v35 = vadd.f32 %v8821_v49, %v17859_v3  ;;  %v8935_v48 = vadd.f32 %v8934_v43, %v17863_v17  ;;  %v8823_v25 = vpop.f32.mrb[14].mxu0  ;;  %v8936_v18 = vpop.f32.mrb[46].mxu1  ;;  %9373 = vmatprep.mubr.bf16.mxu0 %v9030_v57  ;;  %9470 = vmatprep.mubr.bf16.mxu1 %v9032_v14 }
0x2162   : > { %v8824_v8 = vadd.f32 %v8823_v25, %v17852_v60  ;;  %v8937_v20 = vadd.f32 %v8936_v18, %v17856_v32  ;;  %v8825_v34 = vpop.f32.mrb[15].mxu0  ;;  %v8938_v21 = vpop.f32.mrb[47].mxu1  ;;  %9374 = vmatmul.mubr.bf16.gmra.mrb[40].mxu0 %v9029_v5  ;;  %9471 = vmatmul.mubr.bf16.gmra.mrb[72].mxu1 %v9031_v56  ;;  %v8997_v50 = vmax.f32 %v8820_v6, 0.0  ;;  %v8999_v12 = vmax.f32 %v8933_v2, 0.0  ;;  %v17933_v5 = vld [vmem:[%s19216_s19] ss:$0 sm:$0xff] }
0x2163   : > { %v8826_v53 = vadd.f32 %v8825_v34, %v17859_v3  ;;  %v8939_v7 = vadd.f32 %v8938_v21, %v17863_v17  ;;  %v8998_v36 = vmax.f32 %v8822_v35, 0.0  ;;  %v9000_v59 = vmax.f32 %v8935_v48, 0.0 }
0x2164   : > { %v9001_v63 = vmax.f32 %v8824_v8, 0.0  ;;  %v9003_v52 = vmax.f32 %v8937_v20, 0.0 }
0x2165   : > { %v9002_v30 = vmax.f32 %v8826_v53, 0.0  ;;  %v9004_v29 = vmax.f32 %v8939_v7, 0.0 }
0x2166   : > { %v9033_v22 = vpack.c.bf16 %v9001_v63, %v8997_v50  ;;  %v9035_v60 = vpack.c.bf16 %v9003_v52, %v8999_v12 }
0x2167   : > { %v9034_v33 = vpack.c.bf16 %v9002_v30, %v8998_v36  ;;  %v9036_v32 = vpack.c.bf16 %v9004_v29, %v9000_v59 }
0x2169   : > { %9381 = vmatprep.mubr.bf16.mxu0 %v9034_v33  ;;  %9478 = vmatprep.mubr.bf16.mxu1 %v9036_v32 }
0x216a   : > { %9382 = vmatmul.mubr.bf16.gmra.mrb[44].mxu0 %v9033_v22  ;;  %9479 = vmatmul.mubr.bf16.gmra.mrb[76].mxu1 %v9035_v60 }
0x216b   : > { %9896 = vmatprep.mubr.bf16.mxu0 %v19089_v11 }
0x21e9   : > { %v10992_v3 = vpop.f32.mrb[16].mxu0  ;;  %v11056_v17 = vpop.f32.mrb[48].mxu1 }
0x21ea   : > { %v10993_v1 = vpop.f32.mrb[17].mxu0  ;;  %v11057_v55 = vpop.f32.mrb[49].mxu1 }
0x21eb   : > { %v10994_v41 = vadd.f32 %v10993_v1, %v10992_v3  ;;  %v11058_v9 = vadd.f32 %v11057_v55, %v11056_v17  ;;  %v10995_v19 = vpop.f32.mrb[18].mxu0  ;;  %v11059_v62 = vpop.f32.mrb[50].mxu1 }
0x21ec   : > { %v10996_v13 = vpop.f32.mrb[19].mxu0  ;;  %v11060_v26 = vpop.f32.mrb[51].mxu1 }
0x21ed   : > { %v9425_v51 = vadd.f32 %v11058_v9, %v10994_v41  ;;  %v10997_v28 = vadd.f32 %v10996_v13, %v10995_v19  ;;  %v11061_v4 = vadd.f32 %v11060_v26, %v11059_v62 }
0x21ef   : > { %v9487_v56 = vadd.f32 %v9425_v51, %v17633_v40  ;;  %v9428_v57 = vadd.f32 %v11061_v4, %v10997_v28 }
0x21f1   : > { %v9488_v14 = vadd.f32 %v9428_v57, %v17636_v46  ;;  %v10998_v45 = vpop.f32.mrb[20].mxu0  ;;  %v11062_v31 = vpop.f32.mrb[52].mxu1  ;;  %v17938_v6 = vadd.f32 %v17933_v5, %v9487_v56 }
0x21f2   : > { %v10999_v2 = vpop.f32.mrb[21].mxu0  ;;  %v11063_v49 = vpop.f32.mrb[53].mxu1 }
0x21f3   : > { %v11000_v43 = vadd.f32 %v10999_v2, %v10998_v45  ;;  %v11064_v35 = vadd.f32 %v11063_v49, %v11062_v31  ;;  %v11001_v48 = vpop.f32.mrb[22].mxu0  ;;  %v11065_v25 = vpop.f32.mrb[54].mxu1  ;;  %9528 = vadd.xlane.f32.xlu0 %v17938_v6  ;;  %v17942_v18 = vadd.f32 %v17933_v5, %v9488_v14 }
0x21f4   : > { %v11002_v40 = vpop.f32.mrb[23].mxu0  ;;  %v11066_v8 = vpop.f32.mrb[55].mxu1 }
0x21f5   : > { %v9433_v20 = vadd.f32 %v11064_v35, %v11000_v43  ;;  %v11003_v46 = vadd.f32 %v11002_v40, %v11001_v48  ;;  %v11067_v34 = vadd.f32 %v11066_v8, %v11065_v25  ;;  %9530 = vadd.xlane.f32.xlu1 %v17942_v18 }
0x21f7   : > { %v9489_v21 = vadd.f32 %v9433_v20, %v17640_v47  ;;  %v9436_v53 = vadd.f32 %v11067_v34, %v11003_v46 }
0x21f9   : > { %v9490_v7 = vadd.f32 %v9436_v53, %v17645_v42  ;;  %v11004_v50 = vpop.f32.mrb[24].mxu0  ;;  %v11068_v12 = vpop.f32.mrb[56].mxu1  ;;  %v17948_v63 = vadd.f32 %v17933_v5, %v9489_v21 }
0x21fa   : > { %v11005_v52 = vpop.f32.mrb[25].mxu0  ;;  %v11069_v36 = vpop.f32.mrb[57].mxu1 }
0x21fb   : > { %v11006_v59 = vadd.f32 %v11005_v52, %v11004_v50  ;;  %v11070_v30 = vadd.f32 %v11069_v36, %v11068_v12  ;;  %v11007_v29 = vpop.f32.mrb[26].mxu0  ;;  %v11071_v22 = vpop.f32.mrb[58].mxu1  ;;  %9532 = vadd.xlane.f32.xlu0 %v17948_v63  ;;  %v17952_v60 = vadd.f32 %v17933_v5, %v9490_v7 }
0x21fc   : > { %v11008_v47 = vpop.f32.mrb[27].mxu0  ;;  %v11072_v33 = vpop.f32.mrb[59].mxu1 }
0x21fd   : > { %v9441_v32 = vadd.f32 %v11070_v30, %v11006_v59  ;;  %v11009_v42 = vadd.f32 %v11008_v47, %v11007_v29  ;;  %v11073_v3 = vadd.f32 %v11072_v33, %v11071_v22  ;;  %9534 = vadd.xlane.f32.xlu1 %v17952_v60 }
0x21ff   : > { %v9491_v17 = vadd.f32 %v9441_v32, %v17649_v61  ;;  %v9444_v1 = vadd.f32 %v11073_v3, %v11009_v42 }
0x2201   : > { %v9492_v55 = vadd.f32 %v9444_v1, %v17652_v10  ;;  %v11010_v41 = vpop.f32.mrb[28].mxu0  ;;  %v11074_v9 = vpop.f32.mrb[60].mxu1  ;;  %v17958_v19 = vadd.f32 %v17933_v5, %v9491_v17 }
0x2202   : > { %v11011_v62 = vpop.f32.mrb[29].mxu0  ;;  %v11075_v13 = vpop.f32.mrb[61].mxu1 }
0x2203   : > { %v11012_v26 = vadd.f32 %v11011_v62, %v11010_v41  ;;  %v11076_v51 = vadd.f32 %v11075_v13, %v11074_v9  ;;  %v11013_v28 = vpop.f32.mrb[30].mxu0  ;;  %v11077_v4 = vpop.f32.mrb[62].mxu1  ;;  %9536 = vadd.xlane.f32.xlu0 %v17958_v19  ;;  %v17962_v56 = vadd.f32 %v17933_v5, %v9492_v55 }
0x2204   : > { %v11014_v61 = vpop.f32.mrb[31].mxu0  ;;  %v11078_v57 = vpop.f32.mrb[63].mxu1 }
0x2205   : > { %v9449_v14 = vadd.f32 %v11076_v51, %v11012_v26  ;;  %v11015_v10 = vadd.f32 %v11014_v61, %v11013_v28  ;;  %v11079_v45 = vadd.f32 %v11078_v57, %v11077_v4  ;;  %9538 = vadd.xlane.f32.xlu1 %v17962_v56 }
0x2207   : > { %v9493_v31 = vadd.f32 %v9449_v14, %v17656_v27  ;;  %v9452_v2 = vadd.f32 %v11079_v45, %v11015_v10 }
0x2209   : > { %v9494_v49 = vadd.f32 %v9452_v2, %v17660_v38  ;;  %v17968_v43 = vadd.f32 %v17933_v5, %v9493_v31 }
0x220b   : > { %9540 = vadd.xlane.f32.xlu0 %v17968_v43  ;;  %v17972_v35 = vadd.f32 %v17933_v5, %v9494_v49 }
0x220d   : > { %9542 = vadd.xlane.f32.xlu1 %v17972_v35 }
0x2225   : > { %v11016_v48 = vpop.f32.mrb[32].mxu0  ;;  %v11080_v25 = vpop.f32.mrb[64].mxu1 }
0x2226   : > { %v11017_v40 = vpop.f32.mrb[33].mxu0  ;;  %v11081_v8 = vpop.f32.mrb[65].mxu1 }
0x2227   : > { %v11018_v20 = vadd.f32 %v11017_v40, %v11016_v48  ;;  %v11082_v46 = vadd.f32 %v11081_v8, %v11080_v25  ;;  %v11019_v27 = vpop.f32.mrb[34].mxu0  ;;  %v11083_v34 = vpop.f32.mrb[66].mxu1 }
0x2228   : > { %v11020_v21 = vpop.f32.mrb[35].mxu0  ;;  %v11084_v38 = vpop.f32.mrb[67].mxu1 }
0x2229   : > { %v9457_v53 = vadd.f32 %v11082_v46, %v11018_v20  ;;  %v11021_v7 = vadd.f32 %v11020_v21, %v11019_v27  ;;  %v11085_v50 = vadd.f32 %v11084_v38, %v11083_v34 }
0x222b   : > { %v9495_v12 = vadd.f32 %v9457_v53, %v17665_v23  ;;  %v9460_v52 = vadd.f32 %v11085_v50, %v11021_v7 }
0x222d   : > { %v9496_v36 = vadd.f32 %v9460_v52, %v17668_v54  ;;  %v11022_v59 = vpop.f32.mrb[36].mxu0  ;;  %v11086_v30 = vpop.f32.mrb[68].mxu1  ;;  %v17978_v29 = vadd.f32 %v17933_v5, %v9495_v12 }
0x222e   : > { %v11023_v22 = vpop.f32.mrb[37].mxu0  ;;  %v11087_v47 = vpop.f32.mrb[69].mxu1 }
0x222f   : > { %v11024_v33 = vadd.f32 %v11023_v22, %v11022_v59  ;;  %v11088_v32 = vadd.f32 %v11087_v47, %v11086_v30  ;;  %v11025_v42 = vpop.f32.mrb[38].mxu0  ;;  %v11089_v3 = vpop.f32.mrb[70].mxu1  ;;  %9544 = vadd.xlane.f32.xlu0 %v17978_v29  ;;  %v17982_v17 = vadd.f32 %v17933_v5, %v9496_v36 }
0x2230   : > { %v11026_v23 = vpop.f32.mrb[39].mxu0  ;;  %v11090_v1 = vpop.f32.mrb[71].mxu1 }
0x2231   : > { %v9465_v55 = vadd.f32 %v11088_v32, %v11024_v33  ;;  %v11027_v54 = vadd.f32 %v11026_v23, %v11025_v42  ;;  %v11091_v41 = vadd.f32 %v11090_v1, %v11089_v3  ;;  %9546 = vadd.xlane.f32.xlu1 %v17982_v17  ;;  %v12459_v42 = vld [vmem:[#allocation20] ss:$8 sps:$4 sm:$0xff]   ;;  %v12461_v3 = vld [vmem:[#allocation20 + $0x4] ss:$8 sps:$4 sm:$0xff]   ;;  %v12464_v23 = vld [vmem:[#allocation20 + $0x14] ss:$8 sps:$4 sm:$0xff]  }
0x2232   : > { %9864 = vmatprep.subr.bf16.mxu0 %v12461_v3  ;;  %v12462_v1 = vld [vmem:[#allocation20 + $0x10] ss:$8 sps:$4 sm:$0xff]  }
0x2233   : > { %v9497_v9 = vadd.f32 %v9465_v55, %v17672_v44  ;;  %v9468_v62 = vadd.f32 %v11091_v41, %v11027_v54  ;;  %9865 = vmatpush1.bf16.msra.mxu0 %v12459_v42 }
0x2234   : > { %9866 = vmatprep.subr.bf16.mxu0 %v12464_v23 }
0x2235   : > { %v9498_v13 = vadd.f32 %v9468_v62, %v17676_v24  ;;  %v11028_v26 = vpop.f32.mrb[40].mxu0  ;;  %v11092_v51 = vpop.f32.mrb[72].mxu1  ;;  %v17988_v28 = vadd.f32 %v17933_v5, %v9497_v9 }
0x2236   : > { %v11029_v4 = vpop.f32.mrb[41].mxu0  ;;  %v11093_v61 = vpop.f32.mrb[73].mxu1 }
0x2237   : > { %v11030_v57 = vadd.f32 %v11029_v4, %v11028_v26  ;;  %v11094_v14 = vadd.f32 %v11093_v61, %v11092_v51  ;;  %v11031_v10 = vpop.f32.mrb[42].mxu0  ;;  %v11095_v45 = vpop.f32.mrb[74].mxu1  ;;  %9548 = vadd.xlane.f32.xlu0 %v17988_v28  ;;  %v17992_v31 = vadd.f32 %v17933_v5, %v9498_v13  ;;  %9867 = vmatpush1.bf16.msra.mxu0 %v12462_v1 }
0x2238   : > { %v11032_v44 = vpop.f32.mrb[43].mxu0  ;;  %v11096_v2 = vpop.f32.mrb[75].mxu1 }
0x2239   : > { %v9473_v49 = vadd.f32 %v11094_v14, %v11030_v57  ;;  %v11033_v24 = vadd.f32 %v11032_v44, %v11031_v10  ;;  %v11097_v48 = vadd.f32 %v11096_v2, %v11095_v45  ;;  %9550 = vadd.xlane.f32.xlu1 %v17992_v31 }
0x223b   : > { %v9499_v25 = vadd.f32 %v9473_v49, %v17681_v16  ;;  %v9476_v40 = vadd.f32 %v11097_v48, %v11033_v24  ;;  %v12467_v49 = vld [vmem:[#allocation20 + $0x24] ss:$8 sps:$4 sm:$0xff]   ;;  %v12465_v24 = vld [vmem:[#allocation20 + $0x20] ss:$8 sps:$4 sm:$0xff]  }
0x223c   : > { %9868 = vmatprep.subr.bf16.mxu0 %v12467_v49 }
0x223d   : > { %v9500_v8 = vadd.f32 %v9476_v40, %v17684_v39  ;;  %v11034_v20 = vpop.f32.mrb[44].mxu0  ;;  %v11098_v46 = vpop.f32.mrb[76].mxu1  ;;  %v17998_v27 = vadd.f32 %v17933_v5, %v9499_v25  ;;  %9869 = vmatpush1.bf16.msra.mxu0 %v12465_v24 }
0x223e   : > { %v11035_v34 = vpop.f32.mrb[45].mxu0  ;;  %v11099_v21 = vpop.f32.mrb[77].mxu1 }
0x223f   : > { %v11036_v38 = vadd.f32 %v11035_v34, %v11034_v20  ;;  %v11100_v53 = vadd.f32 %v11099_v21, %v11098_v46  ;;  %v11101_v7 = vpop.f32.mrb[78].mxu1  ;;  %9552 = vadd.xlane.f32.xlu0 %v17998_v27  ;;  %v11037_v50 = vpop.f32.mrb[46].mxu0  ;;  %v18002_v12 = vadd.f32 %v17933_v5, %v9500_v8  ;;  %v12468_v20 = vld [vmem:[#allocation20 + $0x30] ss:$8 sps:$4 sm:$0xff]  }
0x2240   : > { %v11038_v16 = vpop.f32.mrb[47].mxu0  ;;  %v11102_v52 = vpop.f32.mrb[79].mxu1 }
0x2241   : > { %v9481_v36 = vadd.f32 %v11100_v53, %v11036_v38  ;;  %v11039_v39 = vadd.f32 %v11038_v16, %v11037_v50  ;;  %v11103_v59 = vadd.f32 %v11102_v52, %v11101_v7  ;;  %9554 = vadd.xlane.f32.xlu1 %v18002_v12  ;;  %v12473_v38 = vld [vmem:[#allocation20 + $0x44] ss:$8 sps:$4 sm:$0xff]   ;;  %v12471_v53 = vld [vmem:[#allocation20 + $0x40] ss:$8 sps:$4 sm:$0xff]   ;;  %v12474_v50 = vld [vmem:[#allocation20 + $0x50] ss:$8 sps:$4 sm:$0xff]  }
0x2242   : > { %v12479_v16 = vld [vmem:[#allocation20 + $0x64] ss:$8 sps:$4 sm:$0xff]   ;;  %v12477_v52 = vld [vmem:[#allocation20 + $0x60] ss:$8 sps:$4 sm:$0xff]  }
0x2243   : > { %v9501_v30 = vadd.f32 %v9481_v36, %v17688_v0  ;;  %v9484_v22 = vadd.f32 %v11103_v59, %v11039_v39  ;;  %v12480_v36 = vld [vmem:[#allocation20 + $0x70] ss:$8 sps:$4 sm:$0xff]  }
0x2245   : > { %v9502_v47 = vadd.f32 %v9484_v22, %v17692_v58  ;;  %v18008_v33 = vadd.f32 %v17933_v5, %v9501_v30 }
0x2247   : > { %9556 = vadd.xlane.f32.xlu0 %v18008_v33  ;;  %v18012_v32 = vadd.f32 %v17933_v5, %v9502_v47 }
0x2249   : > { %9558 = vadd.xlane.f32.xlu1 %v18012_v32 }
0x2280   : > { %v9529_v0 = vpop.xlane.xlu0 %9528 }
0x2281   : > { %v9560_v58 = vmul.f32 0.0078125, %v9529_v0 }
0x2282   : > { %v9531_v55 = vpop.xlane.xlu1 %9530 }
0x2283   : > { %v18016_v54 = vsub.f32 %v17938_v6, %v9560_v58  ;;  %v9561_v41 = vmul.f32 0.0078125, %v9531_v55 }
0x2285   : > { %v18019_v5 = vsub.f32 %v17942_v18, %v9561_v41  ;;  %v9592_v9 = vmul.f32 %v18016_v54, %v18016_v54 }
0x2287   : > { %9608 = vadd.xlane.f32.xlu0 %v9592_v9  ;;  %v9593_v62 = vmul.f32 %v18019_v5, %v18019_v5 }
0x2288   : > { %v9533_v13 = vpop.xlane.xlu0 %9532 }
0x2289   : > { %v9562_v26 = vmul.f32 0.0078125, %v9533_v13  ;;  %9610 = vadd.xlane.f32.xlu1 %v9593_v62 }
0x228a   : > { %v9535_v51 = vpop.xlane.xlu1 %9534 }
0x228b   : > { %v18026_v4 = vsub.f32 %v17948_v63, %v9562_v26  ;;  %v9563_v6 = vmul.f32 0.0078125, %v9535_v51 }
0x228d   : > { %v18029_v61 = vsub.f32 %v17952_v60, %v9563_v6  ;;  %v9594_v18 = vmul.f32 %v18026_v4, %v18026_v4 }
0x228f   : > { %9612 = vadd.xlane.f32.xlu0 %v9594_v18  ;;  %v9595_v57 = vmul.f32 %v18029_v61, %v18029_v61 }
0x2290   : > { %v9537_v14 = vpop.xlane.xlu0 %9536 }
0x2291   : > { %v9564_v10 = vmul.f32 0.0078125, %v9537_v14  ;;  %9614 = vadd.xlane.f32.xlu1 %v9595_v57 }
0x2292   : > { %v9539_v45 = vpop.xlane.xlu1 %9538 }
0x2293   : > { %v18036_v44 = vsub.f32 %v17958_v19, %v9564_v10  ;;  %v9565_v63 = vmul.f32 0.0078125, %v9539_v45  ;;  %v12470_v19 = vld [vmem:[#allocation20 + $0x34] ss:$8 sps:$4 sm:$0xff]  }
0x2294   : > { %9870 = vmatprep.subr.bf16.mxu0 %v12470_v19 }
0x2295   : > { %v18039_v2 = vsub.f32 %v17962_v56, %v9565_v63  ;;  %v9596_v60 = vmul.f32 %v18036_v44, %v18036_v44  ;;  %9871 = vmatpush1.bf16.msra.mxu0 %v12468_v20 }
0x2296   : > { %9872 = vmatprep.subr.bf16.mxu0 %v12473_v38 }
0x2297   : > { %9616 = vadd.xlane.f32.xlu0 %v9596_v60  ;;  %v9597_v48 = vmul.f32 %v18039_v2, %v18039_v2 }
0x2298   : > { %v9541_v25 = vpop.xlane.xlu0 %9540 }
0x2299   : > { %v9566_v40 = vmul.f32 0.0078125, %v9541_v25  ;;  %9618 = vadd.xlane.f32.xlu1 %v9597_v48  ;;  %9873 = vmatpush1.bf16.msra.mxu0 %v12471_v53  ;;  %v18098_v53 = vld [vmem:[%s19217_s14] ss:$0 sm:$0xff]  ;;  %s18237_s14 = scalar_lea.hbm %s19220_s24, %s10527_s20 }
0x229a   : > { %v9543_v8 = vpop.xlane.xlu1 %9542 }
0x229b   : > { %v18046_v56 = vsub.f32 %v17968_v43, %v9566_v40  ;;  %v9567_v46 = vmul.f32 0.0078125, %v9543_v8  ;;  %v12476_v43 = vld [vmem:[#allocation20 + $0x54] ss:$8 sps:$4 sm:$0xff]  }
0x229c   : > { %9874 = vmatprep.subr.bf16.mxu0 %v12476_v43 }
0x229d   : > { %v18049_v34 = vsub.f32 %v17972_v35, %v9567_v46  ;;  %v9598_v21 = vmul.f32 %v18046_v56, %v18046_v56  ;;  %9875 = vmatpush1.bf16.msra.mxu0 %v12474_v50  ;;  %v12482_v35 = vld [vmem:[#allocation20 + $0x74] ss:$8 sps:$4 sm:$0xff]  }
0x229e   : > { %9876 = vmatprep.subr.bf16.mxu0 %v12479_v16 }
0x229f   : > { %9620 = vadd.xlane.f32.xlu0 %v9598_v21  ;;  %v9599_v7 = vmul.f32 %v18049_v34, %v18049_v34 }
0x22a1   : > { %9622 = vadd.xlane.f32.xlu1 %v9599_v7  ;;  %9877 = vmatpush1.bf16.msra.mxu0 %v12477_v52 }
0x22a2   : > { %9878 = vmatprep.subr.bf16.mxu0 %v12482_v35 }
0x22a5   : > { %9879 = vmatpush1.bf16.msra.mxu0 %v12480_v36 }
0x22bc   : > { %v9545_v39 = vpop.xlane.xlu0 %9544 }
0x22bd   : > { %v9568_v59 = vmul.f32 0.0078125, %v9545_v39  ;;  %v18106_v39 = vld [vmem:[%s19218_s17] ss:$0 sm:$0xff]  ;;  %s13497_s17 = sshll.u32 %s13609_s2, 4  ;;  %s13498_s17 = int_to_ptr.vmem [resolvable:$false] %s13497_s17 }
0x22be   : > { %v9547_v30 = vpop.xlane.xlu1 %9546  ;;  %s13499_s25 = scalar_lea.vmem %s13498_s17, 8192  ;;  %p13500_p4 = scmp.lt.s32.totalorder %s18239_s0, %s13498_s17 }
0x22bf   : > { %v18056_v22 = vsub.f32 %v17978_v29, %v9568_v59  ;;  %v9569_v47 = vmul.f32 0.0078125, %v9547_v30  ;;  %p13501_p3 = scmp.lt.s32.totalorder %s13499_s25, %s13493_s29 }
0x22c1   : > { %v18059_v42 = vsub.f32 %v17982_v17, %v9569_v47  ;;  %v9600_v3 = vmul.f32 %v18056_v22, %v18056_v22  ;;  %p13502_p0 = por %p13501_p3, %p13500_p4 }
0x22c3   : > { %9624 = vadd.xlane.f32.xlu0 %v9600_v3  ;;  %v9601_v23 = vmul.f32 %v18059_v42, %v18059_v42  ;;  %p13503_p5 = pnand %p13502_p0, %p13496_p9 }
0x22c4   : > { %v9549_v1 = vpop.xlane.xlu0 %9548 }
0x22c5   : > { %v9570_v0 = vmul.f32 0.0078125, %v9549_v1  ;;  %9626 = vadd.xlane.f32.xlu1 %v9601_v23 }
0x22c6   : > { %v9551_v58 = vpop.xlane.xlu1 %9550 }
0x22c7   : > { %v18066_v55 = vsub.f32 %v17988_v28, %v9570_v0  ;;  %v9571_v29 = vmul.f32 0.0078125, %v9551_v58 }
0x22c9   : > { %v18069_v41 = vsub.f32 %v17992_v31, %v9571_v29  ;;  %v9602_v17 = vmul.f32 %v18066_v55, %v18066_v55 }
0x22cb   : > { %9628 = vadd.xlane.f32.xlu0 %v9602_v17  ;;  %v9603_v9 = vmul.f32 %v18069_v41, %v18069_v41 }
0x22cc   : > { %v9553_v62 = vpop.xlane.xlu0 %9552 }
0x22cd   : > { %v9572_v13 = vmul.f32 0.0078125, %v9553_v62  ;;  %9630 = vadd.xlane.f32.xlu1 %v9603_v9 }
0x22ce   : > { %v9555_v26 = vpop.xlane.xlu1 %9554 }
0x22cf   : > { %v18076_v51 = vsub.f32 %v17998_v27, %v9572_v13  ;;  %v9573_v28 = vmul.f32 0.0078125, %v9555_v26 }
0x22d1   : > { %v18079_v6 = vsub.f32 %v18002_v12, %v9573_v28  ;;  %v9604_v31 = vmul.f32 %v18076_v51, %v18076_v51 }
0x22d3   : > { %9632 = vadd.xlane.f32.xlu0 %v9604_v31  ;;  %v9605_v18 = vmul.f32 %v18079_v6, %v18079_v6 }
0x22d4   : > { %v9557_v57 = vpop.xlane.xlu0 %9556 }
0x22d5   : > { %v9574_v14 = vmul.f32 0.0078125, %v9557_v57  ;;  %9634 = vadd.xlane.f32.xlu1 %v9605_v18 }
0x22d6   : > { %v9559_v10 = vpop.xlane.xlu1 %9558 }
0x22d7   : > { %v18086_v45 = vsub.f32 %v18008_v33, %v9574_v14  ;;  %v9575_v27 = vmul.f32 0.0078125, %v9559_v10 }
0x22d9   : > { %v18089_v63 = vsub.f32 %v18012_v32, %v9575_v27  ;;  %v9606_v12 = vmul.f32 %v18086_v45, %v18086_v45 }
0x22db   : > { %9636 = vadd.xlane.f32.xlu0 %v9606_v12  ;;  %v9607_v60 = vmul.f32 %v18089_v63, %v18089_v63 }
0x22dd   : > { %9638 = vadd.xlane.f32.xlu1 %v9607_v60 }
0x2314   : > { %v9609_v49 = vpop.xlane.xlu0 %9608 }
0x2315   : > { %v9640_v24 = vmul.f32 0.0078125, %v9609_v49 }
0x2316   : > { %v9611_v48 = vpop.xlane.xlu1 %9610 }
0x2317   : > { %v9656_v25 = vadd.f32 1e-05, %v9640_v24  ;;  %v9641_v40 = vmul.f32 0.0078125, %v9611_v48 }
0x2319   : > { %13123 = vrsqrt.f32 %v9656_v25  ;;  %v9657_v33 = vadd.f32 1e-05, %v9641_v40 }
0x231b   : > { %13125 = vrsqrt.f32 %v9657_v33 }
0x231c   : > { %v9613_v19 = vpop.xlane.xlu0 %9612 }
0x231d   : > { %v9642_v8 = vmul.f32 0.0078125, %v9613_v19 }
0x231e   : > { %v9615_v32 = vpop.xlane.xlu1 %9614 }
0x231f   : > { %v9658_v20 = vadd.f32 1e-05, %v9642_v8  ;;  %v9643_v46 = vmul.f32 0.0078125, %v9615_v32 }
0x2321   : > { %13127 = vrsqrt.f32 %v9658_v20  ;;  %v9659_v21 = vadd.f32 1e-05, %v9643_v46 }
0x2323   : > { %v13124_v38 = vpop.eup %13123  ;;  %13129 = vrsqrt.f32 %v9659_v21 }
0x2324   : > { %v9688_v7 = vmul.f32 %v13124_v38, %v18016_v54  ;;  %v9617_v43 = vpop.xlane.xlu0 %9616 }
0x2325   : > { %v13126_v50 = vpop.eup %13125  ;;  %v9644_v16 = vmul.f32 0.0078125, %v9617_v43 }
0x2326   : > { %v9710_v52 = vmul.f32 %v18098_v53, %v9688_v7  ;;  %v9689_v35 = vmul.f32 %v13126_v50, %v18019_v5  ;;  %v9619_v36 = vpop.xlane.xlu1 %9618 }
0x2327   : > { %v9660_v59 = vadd.f32 1e-05, %v9644_v16  ;;  %v9645_v30 = vmul.f32 0.0078125, %v9619_v36 }
0x2328   : > { %v9711_v47 = vmul.f32 %v18098_v53, %v9689_v35  ;;  %v9732_v54 = vadd.f32 %v18106_v39, %v9710_v52 }
0x2329   : > { %13131 = vrsqrt.f32 %v9660_v59  ;;  %v9661_v3 = vadd.f32 1e-05, %v9645_v30 }
0x232a   : > { %v9733_v23 = vadd.f32 %v18106_v39, %v9711_v47 }
0x232b   : > { %v13128_v1 = vpop.eup %13127  ;;  %13133 = vrsqrt.f32 %v9661_v3 }
0x232c   : > { %v9748_v0 = vpack.c.bf16 %v9733_v23, %v9732_v54  ;;  %v9690_v5 = vmul.f32 %v13128_v1, %v18026_v4  ;;  %v9621_v58 = vpop.xlane.xlu0 %9620 }
0x232d   : > { %v13130_v29 = vpop.eup %13129  ;;  %v9646_v17 = vmul.f32 0.0078125, %v9621_v58 }
0x232e   : > { %v9712_v9 = vmul.f32 %v18098_v53, %v9690_v5  ;;  %v9691_v62 = vmul.f32 %v13130_v29, %v18029_v61  ;;  %v9623_v13 = vpop.xlane.xlu1 %9622  ;;  %9897 = vmatmul.mubr.bf16.vlgmr.msra.gmra.mrb[48].mxu0 %v9748_v0 }
0x232f   : > { %v9662_v26 = vadd.f32 1e-05, %v9646_v17  ;;  %v9647_v28 = vmul.f32 0.0078125, %v9623_v13  ;;  %9906 = vmatprep.mubr.bf16.mxu0 %v19089_v11 }
0x2330   : > { %v9713_v31 = vmul.f32 %v18098_v53, %v9691_v62  ;;  %v9734_v57 = vadd.f32 %v18106_v39, %v9712_v9 }
0x2331   : > { %13135 = vrsqrt.f32 %v9662_v26  ;;  %v9663_v18 = vadd.f32 1e-05, %v9647_v28 }
0x2332   : > { %v9735_v4 = vadd.f32 %v18106_v39, %v9713_v31 }
0x2333   : > { %v13132_v14 = vpop.eup %13131  ;;  %13137 = vrsqrt.f32 %v9663_v18 }
0x2334   : > { %v9749_v10 = vpack.c.bf16 %v9735_v4, %v9734_v57  ;;  %v9692_v27 = vmul.f32 %v13132_v14, %v18036_v44 }
0x2335   : > { %v13134_v61 = vpop.eup %13133 }
0x2336   : > { %v9714_v12 = vmul.f32 %v18098_v53, %v9692_v27  ;;  %v9693_v60 = vmul.f32 %v13134_v61, %v18039_v2  ;;  %9907 = vmatmul.mubr.bf16.gmra.mrb[52].mxu0 %v9749_v10 }
0x2337   : > { %9916 = vmatprep.mubr.bf16.mxu0 %v19089_v11 }
0x2338   : > { %v9715_v49 = vmul.f32 %v18098_v53, %v9693_v60  ;;  %v9736_v24 = vadd.f32 %v18106_v39, %v9714_v12 }
0x233a   : > { %v9737_v48 = vadd.f32 %v18106_v39, %v9715_v49 }
0x233b   : > { %v13136_v25 = vpop.eup %13135 }
0x233c   : > { %v9750_v40 = vpack.c.bf16 %v9737_v48, %v9736_v24  ;;  %v9694_v33 = vmul.f32 %v13136_v25, %v18046_v56 }
0x233d   : > { %v13138_v19 = vpop.eup %13137 }
0x233e   : > { %v9716_v44 = vmul.f32 %v18098_v53, %v9694_v33  ;;  %v9695_v8 = vmul.f32 %v13138_v19, %v18049_v34  ;;  %9917 = vmatmul.mubr.bf16.gmra.mrb[56].mxu0 %v9750_v40 }
0x233f   : > { %9926 = vmatprep.mubr.bf16.mxu0 %v19089_v11 }
0x2340   : > { %v9717_v2 = vmul.f32 %v18098_v53, %v9695_v8  ;;  %v9738_v32 = vadd.f32 %v18106_v39, %v9716_v44 }
0x2342   : > { %v9739_v20 = vadd.f32 %v18106_v39, %v9717_v2 }
0x2344   : > { %v9751_v46 = vpack.c.bf16 %v9739_v20, %v9738_v32 }
0x2346   : > { %9927 = vmatmul.mubr.bf16.gmra.mrb[60].mxu0 %v9751_v46 }
0x2347   : > { %9936 = vmatprep.mubr.bf16.mxu0 %v19089_v11 }
0x2350   : > { %v9625_v21 = vpop.xlane.xlu0 %9624 }
0x2351   : > { %v9648_v56 = vmul.f32 0.0078125, %v9625_v21 }
0x2352   : > { %v9627_v38 = vpop.xlane.xlu1 %9626 }
0x2353   : > { %v9664_v7 = vadd.f32 1e-05, %v9648_v56  ;;  %v9649_v43 = vmul.f32 0.0078125, %v9627_v38 }
0x2355   : > { %13139 = vrsqrt.f32 %v9664_v7  ;;  %v9665_v34 = vadd.f32 1e-05, %v9649_v43 }
0x2357   : > { %13141 = vrsqrt.f32 %v9665_v34 }
0x2358   : > { %v9629_v50 = vpop.xlane.xlu0 %9628 }
0x2359   : > { %v9650_v16 = vmul.f32 0.0078125, %v9629_v50 }
0x235a   : > { %v9631_v52 = vpop.xlane.xlu1 %9630 }
0x235b   : > { %v9666_v35 = vadd.f32 1e-05, %v9650_v16  ;;  %v9651_v36 = vmul.f32 0.0078125, %v9631_v52 }
0x235d   : > { %13143 = vrsqrt.f32 %v9666_v35  ;;  %v9667_v59 = vadd.f32 1e-05, %v9651_v36 }
0x235f   : > { %v13140_v30 = vpop.eup %13139  ;;  %13145 = vrsqrt.f32 %v9667_v59 }
0x2360   : > { %v9696_v47 = vmul.f32 %v13140_v30, %v18056_v22  ;;  %v9633_v3 = vpop.xlane.xlu0 %9632 }
0x2361   : > { %v13142_v54 = vpop.eup %13141  ;;  %v9652_v23 = vmul.f32 0.0078125, %v9633_v3 }
0x2362   : > { %v9718_v1 = vmul.f32 %v18098_v53, %v9696_v47  ;;  %v9697_v0 = vmul.f32 %v13142_v54, %v18059_v42  ;;  %v9635_v5 = vpop.xlane.xlu1 %9634 }
0x2363   : > { %v9668_v58 = vadd.f32 1e-05, %v9652_v23  ;;  %v9653_v29 = vmul.f32 0.0078125, %v9635_v5 }
0x2364   : > { %v9719_v17 = vmul.f32 %v18098_v53, %v9697_v0  ;;  %v9740_v62 = vadd.f32 %v18106_v39, %v9718_v1 }
0x2365   : > { %13147 = vrsqrt.f32 %v9668_v58  ;;  %v9669_v9 = vadd.f32 1e-05, %v9653_v29 }
0x2366   : > { %v9741_v13 = vadd.f32 %v18106_v39, %v9719_v17 }
0x2367   : > { %v13144_v26 = vpop.eup %13143  ;;  %13149 = vrsqrt.f32 %v9669_v9 }
0x2368   : > { %v9752_v22 = vpack.c.bf16 %v9741_v13, %v9740_v62  ;;  %v9698_v28 = vmul.f32 %v13144_v26, %v18066_v55  ;;  %v9637_v31 = vpop.xlane.xlu0 %9636 }
0x2369   : > { %v13146_v18 = vpop.eup %13145  ;;  %v9654_v57 = vmul.f32 0.0078125, %v9637_v31 }
0x236a   : > { %v9720_v42 = vmul.f32 %v18098_v53, %v9698_v28  ;;  %v9699_v4 = vmul.f32 %v13146_v18, %v18069_v41  ;;  %v9639_v14 = vpop.xlane.xlu1 %9638  ;;  %9937 = vmatmul.mubr.bf16.gmra.mrb[64].mxu0 %v9752_v22 }
0x236b   : > { %v9670_v10 = vadd.f32 1e-05, %v9654_v57  ;;  %v9655_v27 = vmul.f32 0.0078125, %v9639_v14  ;;  %9946 = vmatprep.mubr.bf16.mxu0 %v19089_v11 }
0x236c   : > { %v9721_v61 = vmul.f32 %v18098_v53, %v9699_v4  ;;  %v9742_v60 = vadd.f32 %v18106_v39, %v9720_v42 }
0x236d   : > { %13151 = vrsqrt.f32 %v9670_v10  ;;  %v9671_v12 = vadd.f32 1e-05, %v9655_v27 }
0x236e   : > { %v9743_v55 = vadd.f32 %v18106_v39, %v9721_v61 }
0x236f   : > { %v13148_v49 = vpop.eup %13147  ;;  %13153 = vrsqrt.f32 %v9671_v12 }
0x2370   : > { %v9753_v24 = vpack.c.bf16 %v9743_v55, %v9742_v60  ;;  %v9700_v48 = vmul.f32 %v13148_v49, %v18076_v51 }
0x2371   : > { %v13150_v41 = vpop.eup %13149 }
0x2372   : > { %v9722_v25 = vmul.f32 %v18098_v53, %v9700_v48  ;;  %v9701_v40 = vmul.f32 %v13150_v41, %v18079_v6  ;;  %9947 = vmatmul.mubr.bf16.gmra.mrb[68].mxu0 %v9753_v24 }
0x2373   : > { %9956 = vmatprep.mubr.bf16.mxu0 %v19089_v11 }
0x2374   : > { %v9723_v33 = vmul.f32 %v18098_v53, %v9701_v40  ;;  %v9744_v19 = vadd.f32 %v18106_v39, %v9722_v25 }
0x2376   : > { %v9745_v44 = vadd.f32 %v18106_v39, %v9723_v33 }
0x2377   : > { %v13152_v8 = vpop.eup %13151 }
0x2378   : > { %v9754_v2 = vpack.c.bf16 %v9745_v44, %v9744_v19  ;;  %v9702_v32 = vmul.f32 %v13152_v8, %v18086_v45  ;;  %v9772_v45 = vld [vmem:[%s19219_s7] sm:$0x3] }
0x2379   : > { %v13154_v51 = vpop.eup %13153  ;;  %v18165_v7 = vrot.slane %v9772_v45, %v19211_v15 }
0x237a   : > { %v9724_v20 = vmul.f32 %v18098_v53, %v9702_v32  ;;  %v9703_v46 = vmul.f32 %v13154_v51, %v18089_v63  ;;  %9957 = vmatmul.mubr.bf16.gmra.mrb[72].mxu0 %v9754_v2  ;;  %v18168_v63 = vrot.slane %v9772_v45, %v19214_v37 }
0x237b   : > { %9966 = vmatprep.mubr.bf16.mxu0 %v19089_v11 }
0x237c   : > { %v9725_v6 = vmul.f32 %v18098_v53, %v9703_v46  ;;  %v9746_v21 = vadd.f32 %v18106_v39, %v9724_v20 }
0x237e   : > { %v9747_v56 = vadd.f32 %v18106_v39, %v9725_v6 }
0x2380   : > { %v9755_v38 = vpack.c.bf16 %v9747_v56, %v9746_v21 }
0x2382   : > { %9967 = vmatmul.mubr.bf16.gmra.mrb[76].mxu0 %v9755_v38 }
0x2401   : > { %v9898_v11 = vpop.f32.mrb[48].mxu0 }
0x2402   : > { %v9899_v53 = vadd.f32 %v9898_v11, %v18165_v7  ;;  %v9900_v43 = vpop.f32.mrb[49].mxu0 }
0x2403   : > { %v9901_v34 = vadd.f32 %v9900_v43, %v18168_v63  ;;  %v9902_v39 = vpop.f32.mrb[50].mxu0 }
0x2404   : > { %9977 = vst [vmem:[%s18172_s12] sm:$0xff] %v9899_v53  ;;  %v9903_v15 = vadd.f32 %v9902_v39, %v18165_v7  ;;  %v9904_v37 = vpop.f32.mrb[51].mxu0 }
0x2405   : > { %9978 = vst [vmem:[%s18172_s12 + $0x8] sm:$0xff] %v9901_v34  ;;  %v9905_v50 = vadd.f32 %v9904_v37, %v18168_v63 }
0x2406   : > { %9979 = vst [vmem:[%s18172_s12 + $0x10] sm:$0xff] %v9903_v15 }
0x2407   : > { %9980 = vst [vmem:[%s18172_s12 + $0x18] sm:$0xff] %v9905_v50 }
0x2409   : > { %v9908_v16 = vpop.f32.mrb[52].mxu0 }
0x240a   : > { %v9909_v52 = vadd.f32 %v9908_v16, %v18165_v7  ;;  %v9910_v35 = vpop.f32.mrb[53].mxu0 }
0x240b   : > { %v9911_v36 = vadd.f32 %v9910_v35, %v18168_v63  ;;  %v9912_v59 = vpop.f32.mrb[54].mxu0 }
0x240c   : > { %9981 = vst [vmem:[%s18172_s12 + $0x20] sm:$0xff] %v9909_v52  ;;  %v9913_v30 = vadd.f32 %v9912_v59, %v18165_v7  ;;  %v9914_v47 = vpop.f32.mrb[55].mxu0 }
0x240d   : > { %9982 = vst [vmem:[%s18172_s12 + $0x28] sm:$0xff] %v9911_v36  ;;  %v9915_v3 = vadd.f32 %v9914_v47, %v18168_v63 }
0x240e   : > { %9983 = vst [vmem:[%s18172_s12 + $0x30] sm:$0xff] %v9913_v30 }
0x240f   : > { %9984 = vst [vmem:[%s18172_s12 + $0x38] sm:$0xff] %v9915_v3 }
0x2411   : > { %v9918_v54 = vpop.f32.mrb[56].mxu0 }
0x2412   : > { %v9919_v23 = vadd.f32 %v9918_v54, %v18165_v7  ;;  %v9920_v1 = vpop.f32.mrb[57].mxu0 }
0x2413   : > { %v9921_v0 = vadd.f32 %v9920_v1, %v18168_v63  ;;  %v9922_v5 = vpop.f32.mrb[58].mxu0 }
0x2414   : > { %9985 = vst [vmem:[%s18172_s12 + $0x40] sm:$0xff] %v9919_v23  ;;  %v9923_v58 = vadd.f32 %v9922_v5, %v18165_v7  ;;  %v9924_v29 = vpop.f32.mrb[59].mxu0 }
0x2415   : > { %9986 = vst [vmem:[%s18172_s12 + $0x48] sm:$0xff] %v9921_v0  ;;  %v9925_v17 = vadd.f32 %v9924_v29, %v18168_v63 }
0x2416   : > { %9987 = vst [vmem:[%s18172_s12 + $0x50] sm:$0xff] %v9923_v58 }
0x2417   : > { %9988 = vst [vmem:[%s18172_s12 + $0x58] sm:$0xff] %v9925_v17 }
0x2419   : > { %v9928_v9 = vpop.f32.mrb[60].mxu0 }
0x241a   : > { %v9929_v62 = vadd.f32 %v9928_v9, %v18165_v7  ;;  %v9930_v13 = vpop.f32.mrb[61].mxu0 }
0x241b   : > { %v9931_v26 = vadd.f32 %v9930_v13, %v18168_v63  ;;  %v9932_v22 = vpop.f32.mrb[62].mxu0 }
0x241c   : > { %9989 = vst [vmem:[%s18172_s12 + $0x60] sm:$0xff] %v9929_v62  ;;  %v9933_v28 = vadd.f32 %v9932_v22, %v18165_v7  ;;  %v9934_v31 = vpop.f32.mrb[63].mxu0 }
0x241d   : > { %9990 = vst [vmem:[%s18172_s12 + $0x68] sm:$0xff] %v9931_v26  ;;  %v9935_v18 = vadd.f32 %v9934_v31, %v18168_v63 }
0x241e   : > { %9991 = vst [vmem:[%s18172_s12 + $0x70] sm:$0xff] %v9933_v28 }
0x241f   : > { %9992 = vst [vmem:[%s18172_s12 + $0x78] sm:$0xff] %v9935_v18 }
0x243d   : > { %v9938_v57 = vpop.f32.mrb[64].mxu0 }
0x243e   : > { %v9939_v42 = vadd.f32 %v9938_v57, %v18165_v7  ;;  %v9940_v4 = vpop.f32.mrb[65].mxu0 }
0x243f   : > { %v9941_v14 = vadd.f32 %v9940_v4, %v18168_v63  ;;  %v9942_v10 = vpop.f32.mrb[66].mxu0 }
0x2440   : > { %9993 = vst [vmem:[%s18172_s12 + $0x80] sm:$0xff] %v9939_v42  ;;  %v9943_v27 = vadd.f32 %v9942_v10, %v18165_v7  ;;  %v9944_v61 = vpop.f32.mrb[67].mxu0 }
0x2441   : > { %9994 = vst [vmem:[%s18172_s12 + $0x88] sm:$0xff] %v9941_v14  ;;  %v9945_v12 = vadd.f32 %v9944_v61, %v18168_v63 }
0x2442   : > { %9995 = vst [vmem:[%s18172_s12 + $0x90] sm:$0xff] %v9943_v27 }
0x2443   : > { %9996 = vst [vmem:[%s18172_s12 + $0x98] sm:$0xff] %v9945_v12 }
0x2445   : > { %v9948_v60 = vpop.f32.mrb[68].mxu0 }
0x2446   : > { %v9949_v55 = vadd.f32 %v9948_v60, %v18165_v7  ;;  %v9950_v49 = vpop.f32.mrb[69].mxu0 }
0x2447   : > { %v9951_v24 = vadd.f32 %v9950_v49, %v18168_v63  ;;  %v9952_v48 = vpop.f32.mrb[70].mxu0 }
0x2448   : > { %9997 = vst [vmem:[%s18172_s12 + $0xa0] sm:$0xff] %v9949_v55  ;;  %v9953_v41 = vadd.f32 %v9952_v48, %v18165_v7  ;;  %v9954_v25 = vpop.f32.mrb[71].mxu0 }
0x2449   : > { %9998 = vst [vmem:[%s18172_s12 + $0xa8] sm:$0xff] %v9951_v24  ;;  %v9955_v40 = vadd.f32 %v9954_v25, %v18168_v63 }
0x244a   : > { %9999 = vst [vmem:[%s18172_s12 + $0xb0] sm:$0xff] %v9953_v41 }
0x244b   : > { %10000 = vst [vmem:[%s18172_s12 + $0xb8] sm:$0xff] %v9955_v40 }
0x244d   : > { %v9958_v33 = vpop.f32.mrb[72].mxu0 }
0x244e   : > { %v9959_v19 = vadd.f32 %v9958_v33, %v18165_v7  ;;  %v9960_v44 = vpop.f32.mrb[73].mxu0 }
0x244f   : > { %v9961_v8 = vadd.f32 %v9960_v44, %v18168_v63  ;;  %v9962_v2 = vpop.f32.mrb[74].mxu0 }
0x2450   : > { %10001 = vst [vmem:[%s18172_s12 + $0xc0] sm:$0xff] %v9959_v19  ;;  %v9963_v32 = vadd.f32 %v9962_v2, %v18165_v7  ;;  %v9964_v51 = vpop.f32.mrb[75].mxu0 }
0x2451   : > { %10002 = vst [vmem:[%s18172_s12 + $0xc8] sm:$0xff] %v9961_v8  ;;  %v9965_v20 = vadd.f32 %v9964_v51, %v18168_v63 }
0x2452   : > { %10003 = vst [vmem:[%s18172_s12 + $0xd0] sm:$0xff] %v9963_v32 }
0x2453   : > { %10004 = vst [vmem:[%s18172_s12 + $0xd8] sm:$0xff] %v9965_v20 }
0x2455   : > { %v9968_v46 = vpop.f32.mrb[76].mxu0 }
0x2456   : > { %v9969_v6 = vadd.f32 %v9968_v46, %v18165_v7  ;;  %v9970_v21 = vpop.f32.mrb[77].mxu0 }
0x2457   : > { %v9971_v56 = vadd.f32 %v9970_v21, %v18168_v63  ;;  %v9972_v38 = vpop.f32.mrb[78].mxu0 }
0x2458   : > { %10005 = vst [vmem:[%s18172_s12 + $0xe0] sm:$0xff] %v9969_v6  ;;  %v9973_v45 = vadd.f32 %v9972_v38, %v18165_v7  ;;  %v9974_v11 = vpop.f32.mrb[79].mxu0 }
0x2459   : > { %10006 = vst [vmem:[%s18172_s12 + $0xe8] sm:$0xff] %v9971_v56  ;;  %v9975_v53 = vadd.f32 %v9974_v11, %v18168_v63 }
0x245a   : > { %10007 = vst [vmem:[%s18172_s12 + $0xf0] sm:$0xff] %v9973_v45 }
0x245b   : > { %10008 = vst [vmem:[%s18172_s12 + $0xf8] sm:$0xff] %v9975_v53 }
0x245c   : > { %13506 = shalt.err (!%p13503_p5)
}
0x245d   : > { %s13507_s3 = scalar_lea.hbm %s18237_s14, 4096  ;;  %s13511_s12 = scalar_lea.hbm %s19220_s24, 8192 }
0x245e   : > { %p13508_p2 = scmp.ne.s32.totalorder %s18237_s14, %s13507_s3  ;;  %p13512_p1 = scmp.lt.u32.totalorder %s18237_s14, %s19220_s24 }
0x245f   : > { %p13513_p11 = scmp.lt.u32.totalorder %s13511_s12, %s13507_s3  ;;  %p13515_p13 = scmp.lt.u32.totalorder %s13507_s3, %s18237_s14 }
0x2460   : > { %p13509_p7 = pnand %p13508_p2, %p19221_p8 }
0x2461   : > { %p13514_p12 = por %p13513_p11, %p13512_p1 }
0x2462   : > { %p13510_p10 = pneg %p13509_p7 }
0x2463   : > { %p13516_p6 = por %p13515_p13, %p13514_p12 }
0x2465   : > { %p13517_p9 = pnand %p13516_p6, %p13510_p10 }
0x2467   : > { %13520 = shalt.err (!%p13517_p9)
}
0x2468   : > { %s13610_s15 = smov 256   ;;  %s13611_s29 = smov 16  }
0x2469   : > { %11854 = dma.vmem_to_hbm [thread:$0]  (%p19221_p8), %s18239_s0, 4096, %s18237_s14, %s10010_s10, %s13610_s15, %s13610_s15, %s13611_s29  }
0x246a PF: > { %s10039_s2 = sand.u32 1, %s13571_s8   ;;  %p19222_p4 = scmp.ne.s32.totalorder %s18558_s21, 0 }
0x246b   : > { %p19223_p3 = scmp.ge.s32.totalorder %s13583_s30, 2  ;;  %s10040_s17 = scalar_lea.sflag [#allocation4], %s10039_s2 }
0x246d   : > { %p11895_p0 = pnand %p19223_p3, %p19222_p4 }
0x246f   : > { %13566 = dma.done.wait (!%p11895_p0), %s10040_s17, 4096  }
0x2470   : > { %13568 = vsyncadd (!%p11895_p0), %s10040_s17, 4294963200  ;;  %p47_p5 = scmp.ge.s32.totalorder %s14049_s11, 4   ;;  %s19224_s8 = smov %s13575_s5 }
0x2471   : > { %s19225_s5 = smov %s13579_s9  ;;  %s19226_s9 = smov %s14061_s1 }
0x2472   : > { %s19227_s30 = smov %s14049_s11  ;;  %49 = sbr.rel (!%p47_p5) target bundleno = 38 (0x26), region = 221 }
0x2479   :  { %10045 = vsyncpa [#allocation3], 1 }
0x247a   :  { %10047 = vsyncpa [#allocation3 + $0x1], 1 }
0x247b   :  { %10048 = vsyncpa [#allocation6], 1 }
0x247c   :  { %10049 = vsyncpa [#allocation9], 1 }
0x247d   :  { %10050 = vsyncpa [#allocation12], 1 }
0x247e   :  { %10051 = vsyncpa [#allocation15], 1 }
0x247f   :  { %10052 = vsyncpa [#allocation18], 1 }
0x2480   :  { %10053 = vsyncpa [#allocation21], 1 }
0x2481   :  { %10054 = vsyncpa [#allocation4], 1 }
0x2482   :  { %10056 = vsyncpa [#allocation4 + $0x1], 1 }

</bundles_post_ra>
